<compile_context>
chip_gen: v6e
topology: v6e:2x2x1
jax: 0.10.0
libtpu: 0.0.40
codegen_flags: <defaults>
</compile_context>

<pallas_src>
import functools

import numpy as np

import jax
import jax.numpy as jnp
from jax import lax
from jax.experimental import pallas as pl
from jax.experimental.pallas import tpu as pltpu

EPS = 1e-5          # nn.BatchNorm3d default eps
NEG_SLOPE = 0.2     # LeakyReLU negative_slope

# Tap order matches the row-major flatten of the (ky, kx) = (3, 3) PyTorch kernel:
# t = (dy+1)*3 + (dx+1)
_TAPS = tuple((dy, dx) for dy in (-1, 0, 1) for dx in (-1, 0, 1))
_CENTER_T = 4
_NONCENTER = tuple((t, dy, dx) for t, (dy, dx) in enumerate(_TAPS) if (dy, dx) != (0, 0))


# ------------------------------ host-side helpers ------------------------------

def _make_tap_masks(H, W):
    """(8, S) f32 boundary-validity masks for the 8 non-center taps (host constants)."""
    S = H * W
    col = np.arange(S) % W
    row = np.arange(S) // W
    rows = []
    for _, dy, dx in _NONCENTER:
        m = np.ones(S, dtype=bool)
        if dx == 1:
            m &= col < (W - 1)
        if dx == -1:
            m &= col > 0
        if dy == 1:
            m &= row < (H - 1)
        if dy == -1:
            m &= row > 0
        rows.append(m)
    return jnp.asarray(np.stack(rows).astype(np.float32))


def _vmem_policy():
    """Generation-aware block budget + scoped-VMEM limit."""
    phys = 64 << 20                     # conservative (v7x) floor if the query fails
    try:
        phys = int(getattr(pltpu.get_tpu_info(), "vmem_capacity_bytes", phys))
    except Exception:
        pass
    block_budget = max(2 << 20, phys // 16)       # ~4 MiB on v7x, ~8 MiB on v5e/v6e
    vmem_limit = min((phys * 3) // 4, 96 << 20)   # above scoped defaults, below physical
    return block_budget, vmem_limit


def _pick_dtile(C, D, S, budget_bytes):
    """Largest depth tile that fits the budget; prefer multiples of 8 (sublane-dense).
    A ragged tail (D % Dt != 0) is masked in-kernel, never a full-D over-allocation."""
    per_row = C * S * 4
    max_rows = max(1, budget_bytes // per_row)
    if D <= max_rows:
        return D                         # whole depth per block when it fits
    dt = (max_rows // 8) * 8
    return dt if dt >= 8 else max_rows
    # TODO(synk): for inherently tiny D (<8), fold N into the block's sublane axis
    # to avoid 3->8 sublane padding waste on this VALU-bound kernel.


def _finalize_bn(stats, gamma, beta, count):
    """Tiny (C, 2)-sized glue: fold BN batch stats into per-channel scale/shift.
    var = E[x^2] - E[x]^2 in f32 (fine at these scales/tolerances)."""
    st = jnp.sum(stats, axis=0)                    # (C, 2): [:,0]=sum, [:,1]=sumsq
    mean = st[:, 0] / count
    var = st[:, 1] / count - mean * mean           # biased variance (training-mode BN)
    scale = gamma * lax.rsqrt(var + EPS)
    shift = beta - mean * scale
    return scale, shift


# ------------------------------ in-kernel helpers ------------------------------

def _block_valid(D, Dt, S, ragged):
    """(Dt,1) valid-row mask and valid-element count for a possibly-ragged depth tile."""
    if not ragged:
        return None, float(Dt * S)
    d = pl.program_id(1)
    rows = d * Dt + lax.broadcasted_iota(jnp.int32, (Dt, 1), 0)
    valid = rows < D
    n_valid = (jnp.minimum(D - d * Dt, Dt) * S).astype(jnp.float32)
    return valid, n_valid


def _conv3x3_bias_stats(load_in, w_ref, b_ref, m_all, y_ref, *, C, W, S, Dt, n_valid):
    """3x3 'same' conv on the flattened spatial axis + bias.

    Writes conv+bias into y_ref[0, co] and returns the (C, 2) [sum, sumsq] BN
    partial statistics of this block.  Loop order is (ci -> tap -> co): every
    rolled+masked tap is materialized exactly once and immediately MAC'd into
    the C output-channel accumulators (live set = C accs + 1 channel + 1 tap).
    Weights / bias are SMEM scalars; the halo is lane-rotates (XLU) + masks.
    """
    # TODO(synk): for large C switch to an MXU im2col path (tile target 128 on
    # v5e vs 256 on v6e/v7x); at C=4 the scalar-broadcast VPU MACs win.
    # TODO(synk): optional bf16 multiply path on v6e/v7x (f32 accumulate) ~2x VALU.
    accs = [jnp.zeros((Dt, S), jnp.float32) for _ in range(C)]
    for ci in range(C):
        a = load_in(ci)                                    # (Dt, S), zero on invalid rows
        for co in range(C):                                # center tap: no roll, no mask
            accs[co] = accs[co] + w_ref[(co * C + ci) * 9 + _CENTER_T] * a
        for j, (t, dy, dx) in enumerate(_NONCENTER):
            k = dy * W + dx
            tap = pltpu.roll(a, shift=(-k) % S, axis=1) * m_all[j:j + 1, :]
            for co in range(C):
                accs[co] = accs[co] + w_ref[(co * C + ci) * 9 + t] * tap

    # BN stats straight from the live accumulators (no y_ref reload); bias folded
    # analytically:  sum(acc+b) = sum(acc) + b*n ;  sum((acc+b)^2) = sum(acc^2)
    # + 2b*sum(acc) + b^2*n  with n = number of VALID elements in the block.
    row_id = lax.broadcasted_iota(jnp.int32, (C, 2), 0)
    col_id = lax.broadcasted_iota(jnp.int32, (C, 2), 1)
    partial = jnp.zeros((C, 2), jnp.float32)
    for co in range(C):
        acc = accs[co]
        b = b_ref[co]
        y_ref[0, co] = acc + b
        s = jnp.sum(jnp.sum(acc, axis=1, keepdims=True), axis=0, keepdims=True)        # (1,1)
        q = jnp.sum(jnp.sum(acc * acc, axis=1, keepdims=True), axis=0, keepdims=True)  # (1,1)
        s_tot = s + b * n_valid
        q_tot = q + 2.0 * b * s + (b * b) * n_valid
        partial = partial + jnp.where(row_id == co,
                                      jnp.where(col_id == 0, s_tot, q_tot), 0.0)
    return partial


# ---------------------------------- kernels ------------------------------------

def _conv1_stats_kernel(x_ref, m_ref, w_ref, b_ref, y_ref, stat_ref,
                        *, C, W, S, D, Dt, ragged):
    """conv1 + bias + BN1 partial batch stats (stats accumulate across the d axis)."""
    m_all = m_ref[...]
    valid, n_valid = _block_valid(D, Dt, S, ragged)

    def load_in(ci):
        a = x_ref[0, ci]
        return a if valid is None else jnp.where(valid, a, 0.0)

    @pl.when(pl.program_id(1) == 0)
    def _():
        stat_ref[...] = jnp.zeros_like(stat_ref)

    part = _conv3x3_bias_stats(load_in, w_ref, b_ref, m_all, y_ref,
                               C=C, W=W, S=S, Dt=Dt, n_valid=n_valid)
    stat_ref[0] = stat_ref[0] + part


def _bn1_act_conv2_stats_kernel(y1_ref, m_ref, w_ref, b_ref, sc_ref, sh_ref,
                                y2_ref, stat_ref, *, C, W, S, D, Dt, ragged):
    """BN1-apply + LeakyReLU fused into conv2's input read, + conv2 + bias
    + BN2 partial batch stats."""
    m_all = m_ref[...]
    valid, n_valid = _block_valid(D, Dt, S, ragged)

    def load_in(ci):
        v = y1_ref[0, ci] * sc_ref[ci] + sh_ref[ci]          # BN1 as one FMA per channel
        v = jnp.where(v >= 0.0, v, NEG_SLOPE * v)            # LeakyReLU(0.2)
        return v if valid is None else jnp.where(valid, v, 0.0)

    @pl.when(pl.program_id(1) == 0)
    def _():
        stat_ref[...] = jnp.zeros_like(stat_ref)

    part = _conv3x3_bias_stats(load_in, w_ref, b_ref, m_all, y2_ref,
                               C=C, W=W, S=S, Dt=Dt, n_valid=n_valid)
    stat_ref[0] = stat_ref[0] + part


def _bn2_residual_kernel(y2_ref, x_ref, sc_ref, sh_ref, o_ref, *, C):
    """BN2-apply + residual add."""
    for c in range(C):
        o_ref[0, c] = y2_ref[0, c] * sc_ref[c] + sh_ref[c] + x_ref[0, c]


# -------------------------------- host wrapper ---------------------------------

def residual_block_2d(x_ncdhw, params, *, block_budget_bytes=None):
    """Forward pass of ResidualBlock2D.  x: (N, C, D, H, W) float32."""
    N, C, D, H, W = x_ncdhw.shape
    S = H * W
    x = x_ncdhw.reshape(N, C, D, S)                          # free reshape, no transpose

    block_budget, vmem_limit = _vmem_policy()
    if block_budget_bytes is not None:                       # test hook (ragged tiling)
        block_budget = block_budget_bytes
    Dt = _pick_dtile(C, D, S, block_budget)
    nd = -(-D // Dt)
    ragged = (D % Dt) != 0
    grid = (N, nd)
    # TODO(synk): when N == 1 the 'parallel' axis has a single step, idling one
    # v7x TensorCore; a core-split over C or S would recover that half.

    masks = _make_tap_masks(H, W)

    act_spec = pl.BlockSpec((1, C, Dt, S), lambda n, d: (n, 0, d, 0))
    mask_spec = pl.BlockSpec((8, S), lambda n, d: (0, 0))          # resident constant
    stat_spec = pl.BlockSpec((1, C, 2), lambda n, d: (n, 0, 0))    # accumulator over d
    smem = pl.BlockSpec(memory_space=pltpu.MemorySpace.SMEM)

    conv_cparams = pltpu.CompilerParams(
        dimension_semantics=("parallel", "arbitrary"),             # stats reduce over d
        vmem_limit_bytes=vmem_limit)
    res_cparams = pltpu.CompilerParams(
        dimension_semantics=("parallel", "parallel"),
        vmem_limit_bytes=vmem_limit)

    act_shape = jax.ShapeDtypeStruct((N, C, D, S), jnp.float32)
    stat_shape = jax.ShapeDtypeStruct((N, C, 2), jnp.float32)
    count = float(N * D * S)

    w1 = params["w1"].reshape(-1)                            # (C*C*9,) -> SMEM scalars
    w2 = params["w2"].reshape(-1)
    kw = dict(C=C, W=W, S=S, D=D, Dt=Dt, ragged=ragged)

    # --- kernel 1: conv1 + bias + BN1 batch stats --------------------------------
    y1, st1 = pl.pallas_call(
        functools.partial(_conv1_stats_kernel, **kw),
        grid=grid,
        in_specs=[act_spec, mask_spec, smem, smem],
        out_specs=(act_spec, stat_spec),
        out_shape=(act_shape, stat_shape),
        compiler_params=conv_cparams,
    )(x, masks, w1, params["b1"])
    scale1, shift1 = _finalize_bn(st1, params["g1"], params["be1"], count)

    # --- kernel 2: BN1 + LeakyReLU + conv2 + bias + BN2 batch stats ---------------
    y2, st2 = pl.pallas_call(
        functools.partial(_bn1_act_conv2_stats_kernel, **kw),
        grid=grid,
        in_specs=[act_spec, mask_spec, smem, smem, smem, smem],
        out_specs=(act_spec, stat_spec),
        out_shape=(act_shape, stat_shape),
        compiler_params=conv_cparams,
    )(y1, masks, w2, params["b2"], scale1, shift1)
    scale2, shift2 = _finalize_bn(st2, params["g2"], params["be2"], count)

    # --- kernel 3: BN2-apply + residual add (output aliases y2's buffer) ----------
    out = pl.pallas_call(
        functools.partial(_bn2_residual_kernel, C=C),
        grid=grid,
        in_specs=[act_spec, act_spec, smem, smem],
        out_specs=act_spec,
        out_shape=act_shape,
        compiler_params=res_cparams,
        input_output_aliases={0: 0},
    )(y2, x, scale2, shift2)

    return out.reshape(N, C, D, H, W)


def init_params(key, C):
    """Deterministic init.  Conv weights in (Cout, Cin, kh, kw) layout (the depth-1
    kernel axis of PyTorch's (Cout, Cin, 1, 3, 3) is dropped).  BN gamma=1, beta=0."""
    k1, k2, k3, k4 = jax.random.split(key, 4)
    fan_in = C * 3 * 3
    bound = fan_in ** -0.5
    return {
        "w1": jax.random.uniform(k1, (C, C, 3, 3), jnp.float32, -bound, bound),
        "b1": jax.random.uniform(k2, (C,), jnp.float32, -bound, bound),
        "w2": jax.random.uniform(k3, (C, C, 3, 3), jnp.float32, -bound, bound),
        "b2": jax.random.uniform(k4, (C,), jnp.float32, -bound, bound),
        "g1": jnp.ones((C,), jnp.float32), "be1": jnp.zeros((C,), jnp.float32),
        "g2": jnp.ones((C,), jnp.float32), "be2": jnp.zeros((C,), jnp.float32),
    }


# ------------------------------ pure-JAX reference ------------------------------

def _ref_forward(x, params):
    N, C, D, H, W = x.shape

    def conv(z, w, b):
        o = lax.conv_general_dilated(
            z, w.reshape(C, C, 1, 3, 3),
            window_strides=(1, 1, 1),
            padding=((0, 0), (1, 1), (1, 1)),
            dimension_numbers=("NCDHW", "OIDHW", "NCDHW"),
            precision=lax.Precision.HIGHEST)
        return o + b.reshape(1, C, 1, 1, 1)

    def bn(z, g, be):
        m = jnp.mean(z, axis=(0, 2, 3, 4), keepdims=True)
        v = jnp.mean((z - m) ** 2, axis=(0, 2, 3, 4), keepdims=True)
        return ((z - m) * lax.rsqrt(v + EPS) * g.reshape(1, C, 1, 1, 1)
                + be.reshape(1, C, 1, 1, 1))

    y = conv(x, params["w1"], params["b1"])
    y = bn(y, params["g1"], params["be1"])
    y = jnp.where(y >= 0, y, NEG_SLOPE * y)
    y = conv(y, params["w2"], params["b2"])
    y = bn(y, params["g2"], params["be2"])
    return y + x


if __name__ == "__main__":
    key = jax.random.PRNGKey(0)
    kp, kx1, kx2 = jax.random.split(key, 3)
    C = 4
    params = init_params(kp, C)

    # Case 1: N=2, C=4, D=8, H=W=16 -> sublane-dense Dt=8 blocks, lane-dense S=256,
    # both megacore grid steps busy.
    x1 = jax.random.normal(kx1, (2, C, 8, 16, 16), jnp.float32)
    out1 = jax.block_until_ready(jax.jit(residual_block_2d)(x1, params))
    ref1 = _ref_forward(x1, params)
    assert out1.shape == x1.shape, (out1.shape, x1.shape)
    err1 = float(jnp.max(jnp.abs(out1 - ref1)))
    assert err1 < 1e-3, f"case1 max abs err vs reference: {err1}"

    # Case 2: ragged depth tiling (D=11 with Dt=8 forced via a tiny test-only budget)
    # and a non-square, non-power-of-two W -- locks in the roll/mask halo semantics.
    x2 = jax.random.normal(kx2, (1, C, 11, 16, 24), jnp.float32)
    fwd2 = jax.jit(functools.partial(residual_block_2d, block_budget_bytes=64 << 10))
    out2 = jax.block_until_ready(fwd2(x2, params))
    ref2 = _ref_forward(x2, params)
    assert out2.shape == x2.shape, (out2.shape, x2.shape)
    err2 = float(jnp.max(jnp.abs(out2 - ref2)))
    assert err2 < 1e-3, f"case2 max abs err vs reference: {err2}"

    print("KERNEL_OK")
</pallas_src>

<mosaic_0001>
module attributes {stable_mosaic.version = 11 : i64} {
  func.func @_conv1_stats_kernel(%arg0: i32, %arg1: i32, %arg2: memref<1x4x8x256xf32, #tpu.memory_space<vmem>>, %arg3: memref<8x256xf32, #tpu.memory_space<vmem>>, %arg4: memref<144xf32, #tpu.memory_space<smem>>, %arg5: memref<4xf32, #tpu.memory_space<smem>>, %arg6: memref<1x4x8x256xf32, #tpu.memory_space<vmem>>, %arg7: memref<1x4x2xf32, #tpu.memory_space<vmem>>) attributes {dimension_semantics = [#tpu.dimension_semantics<parallel>, #tpu.dimension_semantics<arbitrary>], iteration_bounds = array<i64: 2, 1>, scalar_prefetch = 0 : i64, scratch_operands = 0 : i64, tpu.core_type = #tpu.core_type<tc>, window_params = [{transform_indices = @transform_0, window_bounds = array<i64: 1, 4, 8, 256>}, {pipeline_mode = #tpu.pipeline_mode<synchronous>, transform_indices = @transform_1, window_bounds = array<i64: 8, 256>}, {transform_indices = @transform_2, window_bounds = array<i64: 144>}, {transform_indices = @transform_3, window_bounds = array<i64: 4>}, {transform_indices = @transform_4, window_bounds = array<i64: 1, 4, 8, 256>}, {transform_indices = @transform_5, window_bounds = array<i64: 1, 4, 2>}]} {
    %c0 = arith.constant 0 : index
    %c0_0 = arith.constant 0 : index
    %0 = vector.load %arg3[%c0, %c0_0] : memref<8x256xf32, #tpu.memory_space<vmem>>, vector<8x256xf32>
    %c0_i32 = arith.constant 0 : i32
    %1 = arith.cmpi eq, %arg1, %c0_i32 : i32
    %2 = arith.extui %1 : i1 to i32
    %c0_i32_1 = arith.constant 0 : i32
    %3 = arith.cmpi ne, %2, %c0_i32_1 : i32
    scf.if %3 {
      %cst_111 = arith.constant 0.000000e+00 : f32
      %881 = vector.broadcast %cst_111 : f32 to vector<1x4x2xf32>
      %c0_112 = arith.constant 0 : index
      %c0_113 = arith.constant 0 : index
      %c0_114 = arith.constant 0 : index
      %882 = vector.load %arg7[%c0_112, %c0_113, %c0_114] : memref<1x4x2xf32, #tpu.memory_space<vmem>>, vector<1x4x2xf32>
      tpu.vector_store %arg7[%c0_112, %c0_113, %c0_114], %881 {strides = array<i32>} : memref<1x4x2xf32, #tpu.memory_space<vmem>>, vector<1x4x2xf32>,
    } else {
    }
    %cst = arith.constant 0.000000e+00 : f32
    %4 = vector.broadcast %cst : f32 to vector<8x256xf32>
    %cst_2 = arith.constant 0.000000e+00 : f32
    %5 = vector.broadcast %cst_2 : f32 to vector<8x256xf32>
    %cst_3 = arith.constant 0.000000e+00 : f32
    %6 = vector.broadcast %cst_3 : f32 to vector<8x256xf32>
    %cst_4 = arith.constant 0.000000e+00 : f32
    %7 = vector.broadcast %cst_4 : f32 to vector<8x256xf32>
    %c0_5 = arith.constant 0 : index
    %c0_6 = arith.constant 0 : index
    %c0_7 = arith.constant 0 : index
    %c0_8 = arith.constant 0 : index
    %8 = vector.load %arg2[%c0_5, %c0_6, %c0_7, %c0_8] : memref<1x4x8x256xf32, #tpu.memory_space<vmem>>, vector<1x1x8x256xf32>
    %9 = vector.shape_cast %8 : vector<1x1x8x256xf32> to vector<8x256xf32>
    %c4 = arith.constant 4 : index
    %10 = memref.load %arg4[%c4] : memref<144xf32, #tpu.memory_space<smem>>
    %11 = vector.broadcast %10 : f32 to vector<8x256xf32>
    %12 = arith.mulf %11, %9 : vector<8x256xf32>
    %13 = arith.addf %4, %12 : vector<8x256xf32>
    %c40 = arith.constant 40 : index
    %14 = memref.load %arg4[%c40] : memref<144xf32, #tpu.memory_space<smem>>
    %15 = vector.broadcast %14 : f32 to vector<8x256xf32>
    %16 = arith.mulf %15, %9 : vector<8x256xf32>
    %17 = arith.addf %5, %16 : vector<8x256xf32>
    %c76 = arith.constant 76 : index
    %18 = memref.load %arg4[%c76] : memref<144xf32, #tpu.memory_space<smem>>
    %19 = vector.broadcast %18 : f32 to vector<8x256xf32>
    %20 = arith.mulf %19, %9 : vector<8x256xf32>
    %21 = arith.addf %6, %20 : vector<8x256xf32>
    %c112 = arith.constant 112 : index
    %22 = memref.load %arg4[%c112] : memref<144xf32, #tpu.memory_space<smem>>
    %23 = vector.broadcast %22 : f32 to vector<8x256xf32>
    %24 = arith.mulf %23, %9 : vector<8x256xf32>
    %25 = arith.addf %7, %24 : vector<8x256xf32>
    %c17_i32 = arith.constant 17 : i32
    %26 = tpu.dynamic_rotate %9 by %c17_i32 dim 1 : vector<8x256xf32>, i32 -> vector<8x256xf32>
    %27 = vector.extract_strided_slice %0 {offsets = [0, 0], sizes = [1, 256], strides = [1, 1]} : vector<8x256xf32> to vector<1x256xf32>
    %28 = vector.broadcast %27 : vector<1x256xf32> to vector<8x256xf32>
    %29 = arith.mulf %26, %28 : vector<8x256xf32>
    %c0_9 = arith.constant 0 : index
    %30 = memref.load %arg4[%c0_9] : memref<144xf32, #tpu.memory_space<smem>>
    %31 = vector.broadcast %30 : f32 to vector<8x256xf32>
    %32 = arith.mulf %31, %29 : vector<8x256xf32>
    %33 = arith.addf %13, %32 : vector<8x256xf32>
    %c36 = arith.constant 36 : index
    %34 = memref.load %arg4[%c36] : memref<144xf32, #tpu.memory_space<smem>>
    %35 = vector.broadcast %34 : f32 to vector<8x256xf32>
    %36 = arith.mulf %35, %29 : vector<8x256xf32>
    %37 = arith.addf %17, %36 : vector<8x256xf32>
    %c72 = arith.constant 72 : index
    %38 = memref.load %arg4[%c72] : memref<144xf32, #tpu.memory_space<smem>>
    %39 = vector.broadcast %38 : f32 to vector<8x256xf32>
    %40 = arith.mulf %39, %29 : vector<8x256xf32>
    %41 = arith.addf %21, %40 : vector<8x256xf32>
    %c108 = arith.constant 108 : index
    %42 = memref.load %arg4[%c108] : memref<144xf32, #tpu.memory_space<smem>>
    %43 = vector.broadcast %42 : f32 to vector<8x256xf32>
    %44 = arith.mulf %43, %29 : vector<8x256xf32>
    %45 = arith.addf %25, %44 : vector<8x256xf32>
    %c16_i32 = arith.constant 16 : i32
    %46 = tpu.dynamic_rotate %9 by %c16_i32 dim 1 : vector<8x256xf32>, i32 -> vector<8x256xf32>
    %47 = vector.extract_strided_slice %0 {offsets = [1, 0], sizes = [1, 256], strides = [1, 1]} : vector<8x256xf32> to vector<1x256xf32>
    %48 = vector.broadcast %47 : vector<1x256xf32> to vector<8x256xf32>
    %49 = arith.mulf %46, %48 : vector<8x256xf32>
    %c1 = arith.constant 1 : index
    %50 = memref.load %arg4[%c1] : memref<144xf32, #tpu.memory_space<smem>>
    %51 = vector.broadcast %50 : f32 to vector<8x256xf32>
    %52 = arith.mulf %51, %49 : vector<8x256xf32>
    %53 = arith.addf %33, %52 : vector<8x256xf32>
    %c37 = arith.constant 37 : index
    %54 = memref.load %arg4[%c37] : memref<144xf32, #tpu.memory_space<smem>>
    %55 = vector.broadcast %54 : f32 to vector<8x256xf32>
    %56 = arith.mulf %55, %49 : vector<8x256xf32>
    %57 = arith.addf %37, %56 : vector<8x256xf32>
    %c73 = arith.constant 73 : index
    %58 = memref.load %arg4[%c73] : memref<144xf32, #tpu.memory_space<smem>>
    %59 = vector.broadcast %58 : f32 to vector<8x256xf32>
    %60 = arith.mulf %59, %49 : vector<8x256xf32>
    %61 = arith.addf %41, %60 : vector<8x256xf32>
    %c109 = arith.constant 109 : index
    %62 = memref.load %arg4[%c109] : memref<144xf32, #tpu.memory_space<smem>>
    %63 = vector.broadcast %62 : f32 to vector<8x256xf32>
    %64 = arith.mulf %63, %49 : vector<8x256xf32>
    %65 = arith.addf %45, %64 : vector<8x256xf32>
    %c15_i32 = arith.constant 15 : i32
    %66 = tpu.dynamic_rotate %9 by %c15_i32 dim 1 : vector<8x256xf32>, i32 -> vector<8x256xf32>
    %67 = vector.extract_strided_slice %0 {offsets = [2, 0], sizes = [1, 256], strides = [1, 1]} : vector<8x256xf32> to vector<1x256xf32>
    %68 = vector.broadcast %67 : vector<1x256xf32> to vector<8x256xf32>
    %69 = arith.mulf %66, %68 : vector<8x256xf32>
    %c2 = arith.constant 2 : index
    %70 = memref.load %arg4[%c2] : memref<144xf32, #tpu.memory_space<smem>>
    %71 = vector.broadcast %70 : f32 to vector<8x256xf32>
    %72 = arith.mulf %71, %69 : vector<8x256xf32>
    %73 = arith.addf %53, %72 : vector<8x256xf32>
    %c38 = arith.constant 38 : index
    %74 = memref.load %arg4[%c38] : memref<144xf32, #tpu.memory_space<smem>>
    %75 = vector.broadcast %74 : f32 to vector<8x256xf32>
    %76 = arith.mulf %75, %69 : vector<8x256xf32>
    %77 = arith.addf %57, %76 : vector<8x256xf32>
    %c74 = arith.constant 74 : index
    %78 = memref.load %arg4[%c74] : memref<144xf32, #tpu.memory_space<smem>>
    %79 = vector.broadcast %78 : f32 to vector<8x256xf32>
    %80 = arith.mulf %79, %69 : vector<8x256xf32>
    %81 = arith.addf %61, %80 : vector<8x256xf32>
    %c110 = arith.constant 110 : index
    %82 = memref.load %arg4[%c110] : memref<144xf32, #tpu.memory_space<smem>>
    %83 = vector.broadcast %82 : f32 to vector<8x256xf32>
    %84 = arith.mulf %83, %69 : vector<8x256xf32>
    %85 = arith.addf %65, %84 : vector<8x256xf32>
    %c1_i32 = arith.constant 1 : i32
    %86 = tpu.dynamic_rotate %9 by %c1_i32 dim 1 : vector<8x256xf32>, i32 -> vector<8x256xf32>
    %87 = vector.extract_strided_slice %0 {offsets = [3, 0], sizes = [1, 256], strides = [1, 1]} : vector<8x256xf32> to vector<1x256xf32>
    %88 = vector.broadcast %87 : vector<1x256xf32> to vector<8x256xf32>
    %89 = arith.mulf %86, %88 : vector<8x256xf32>
    %c3 = arith.constant 3 : index
    %90 = memref.load %arg4[%c3] : memref<144xf32, #tpu.memory_space<smem>>
    %91 = vector.broadcast %90 : f32 to vector<8x256xf32>
    %92 = arith.mulf %91, %89 : vector<8x256xf32>
    %93 = arith.addf %73, %92 : vector<8x256xf32>
    %c39 = arith.constant 39 : index
    %94 = memref.load %arg4[%c39] : memref<144xf32, #tpu.memory_space<smem>>
    %95 = vector.broadcast %94 : f32 to vector<8x256xf32>
    %96 = arith.mulf %95, %89 : vector<8x256xf32>
    %97 = arith.addf %77, %96 : vector<8x256xf32>
    %c75 = arith.constant 75 : index
    %98 = memref.load %arg4[%c75] : memref<144xf32, #tpu.memory_space<smem>>
    %99 = vector.broadcast %98 : f32 to vector<8x256xf32>
    %100 = arith.mulf %99, %89 : vector<8x256xf32>
    %101 = arith.addf %81, %100 : vector<8x256xf32>
    %c111 = arith.constant 111 : index
    %102 = memref.load %arg4[%c111] : memref<144xf32, #tpu.memory_space<smem>>
    %103 = vector.broadcast %102 : f32 to vector<8x256xf32>
    %104 = arith.mulf %103, %89 : vector<8x256xf32>
    %105 = arith.addf %85, %104 : vector<8x256xf32>
    %c255_i32 = arith.constant 255 : i32
    %106 = tpu.dynamic_rotate %9 by %c255_i32 dim 1 : vector<8x256xf32>, i32 -> vector<8x256xf32>
    %107 = vector.extract_strided_slice %0 {offsets = [4, 0], sizes = [1, 256], strides = [1, 1]} : vector<8x256xf32> to vector<1x256xf32>
    %108 = vector.broadcast %107 : vector<1x256xf32> to vector<8x256xf32>
    %109 = arith.mulf %106, %108 : vector<8x256xf32>
    %c5 = arith.constant 5 : index
    %110 = memref.load %arg4[%c5] : memref<144xf32, #tpu.memory_space<smem>>
    %111 = vector.broadcast %110 : f32 to vector<8x256xf32>
    %112 = arith.mulf %111, %109 : vector<8x256xf32>
    %113 = arith.addf %93, %112 : vector<8x256xf32>
    %c41 = arith.constant 41 : index
    %114 = memref.load %arg4[%c41] : memref<144xf32, #tpu.memory_space<smem>>
    %115 = vector.broadcast %114 : f32 to vector<8x256xf32>
    %116 = arith.mulf %115, %109 : vector<8x256xf32>
    %117 = arith.addf %97, %116 : vector<8x256xf32>
    %c77 = arith.constant 77 : index
    %118 = memref.load %arg4[%c77] : memref<144xf32, #tpu.memory_space<smem>>
    %119 = vector.broadcast %118 : f32 to vector<8x256xf32>
    %120 = arith.mulf %119, %109 : vector<8x256xf32>
    %121 = arith.addf %101, %120 : vector<8x256xf32>
    %c113 = arith.constant 113 : index
    %122 = memref.load %arg4[%c113] : memref<144xf32, #tpu.memory_space<smem>>
    %123 = vector.broadcast %122 : f32 to vector<8x256xf32>
    %124 = arith.mulf %123, %109 : vector<8x256xf32>
    %125 = arith.addf %105, %124 : vector<8x256xf32>
    %c241_i32 = arith.constant 241 : i32
    %126 = tpu.dynamic_rotate %9 by %c241_i32 dim 1 : vector<8x256xf32>, i32 -> vector<8x256xf32>
    %127 = vector.extract_strided_slice %0 {offsets = [5, 0], sizes = [1, 256], strides = [1, 1]} : vector<8x256xf32> to vector<1x256xf32>
    %128 = vector.broadcast %127 : vector<1x256xf32> to vector<8x256xf32>
    %129 = arith.mulf %126, %128 : vector<8x256xf32>
    %c6 = arith.constant 6 : index
    %130 = memref.load %arg4[%c6] : memref<144xf32, #tpu.memory_space<smem>>
    %131 = vector.broadcast %130 : f32 to vector<8x256xf32>
    %132 = arith.mulf %131, %129 : vector<8x256xf32>
    %133 = arith.addf %113, %132 : vector<8x256xf32>
    %c42 = arith.constant 42 : index
    %134 = memref.load %arg4[%c42] : memref<144xf32, #tpu.memory_space<smem>>
    %135 = vector.broadcast %134 : f32 to vector<8x256xf32>
    %136 = arith.mulf %135, %129 : vector<8x256xf32>
    %137 = arith.addf %117, %136 : vector<8x256xf32>
    %c78 = arith.constant 78 : index
    %138 = memref.load %arg4[%c78] : memref<144xf32, #tpu.memory_space<smem>>
    %139 = vector.broadcast %138 : f32 to vector<8x256xf32>
    %140 = arith.mulf %139, %129 : vector<8x256xf32>
    %141 = arith.addf %121, %140 : vector<8x256xf32>
    %c114 = arith.constant 114 : index
    %142 = memref.load %arg4[%c114] : memref<144xf32, #tpu.memory_space<smem>>
    %143 = vector.broadcast %142 : f32 to vector<8x256xf32>
    %144 = arith.mulf %143, %129 : vector<8x256xf32>
    %145 = arith.addf %125, %144 : vector<8x256xf32>
    %c240_i32 = arith.constant 240 : i32
    %146 = tpu.dynamic_rotate %9 by %c240_i32 dim 1 : vector<8x256xf32>, i32 -> vector<8x256xf32>
    %147 = vector.extract_strided_slice %0 {offsets = [6, 0], sizes = [1, 256], strides = [1, 1]} : vector<8x256xf32> to vector<1x256xf32>
    %148 = vector.broadcast %147 : vector<1x256xf32> to vector<8x256xf32>
    %149 = arith.mulf %146, %148 : vector<8x256xf32>
    %c7 = arith.constant 7 : index
    %150 = memref.load %arg4[%c7] : memref<144xf32, #tpu.memory_space<smem>>
    %151 = vector.broadcast %150 : f32 to vector<8x256xf32>
    %152 = arith.mulf %151, %149 : vector<8x256xf32>
    %153 = arith.addf %133, %152 : vector<8x256xf32>
    %c43 = arith.constant 43 : index
    %154 = memref.load %arg4[%c43] : memref<144xf32, #tpu.memory_space<smem>>
    %155 = vector.broadcast %154 : f32 to vector<8x256xf32>
    %156 = arith.mulf %155, %149 : vector<8x256xf32>
    %157 = arith.addf %137, %156 : vector<8x256xf32>
    %c79 = arith.constant 79 : index
    %158 = memref.load %arg4[%c79] : memref<144xf32, #tpu.memory_space<smem>>
    %159 = vector.broadcast %158 : f32 to vector<8x256xf32>
    %160 = arith.mulf %159, %149 : vector<8x256xf32>
    %161 = arith.addf %141, %160 : vector<8x256xf32>
    %c115 = arith.constant 115 : index
    %162 = memref.load %arg4[%c115] : memref<144xf32, #tpu.memory_space<smem>>
    %163 = vector.broadcast %162 : f32 to vector<8x256xf32>
    %164 = arith.mulf %163, %149 : vector<8x256xf32>
    %165 = arith.addf %145, %164 : vector<8x256xf32>
    %c239_i32 = arith.constant 239 : i32
    %166 = tpu.dynamic_rotate %9 by %c239_i32 dim 1 : vector<8x256xf32>, i32 -> vector<8x256xf32>
    %167 = vector.extract_strided_slice %0 {offsets = [7, 0], sizes = [1, 256], strides = [1, 1]} : vector<8x256xf32> to vector<1x256xf32>
    %168 = vector.broadcast %167 : vector<1x256xf32> to vector<8x256xf32>
    %169 = arith.mulf %166, %168 : vector<8x256xf32>
    %c8 = arith.constant 8 : index
    %170 = memref.load %arg4[%c8] : memref<144xf32, #tpu.memory_space<smem>>
    %171 = vector.broadcast %170 : f32 to vector<8x256xf32>
    %172 = arith.mulf %171, %169 : vector<8x256xf32>
    %173 = arith.addf %153, %172 : vector<8x256xf32>
    %c44 = arith.constant 44 : index
    %174 = memref.load %arg4[%c44] : memref<144xf32, #tpu.memory_space<smem>>
    %175 = vector.broadcast %174 : f32 to vector<8x256xf32>
    %176 = arith.mulf %175, %169 : vector<8x256xf32>
    %177 = arith.addf %157, %176 : vector<8x256xf32>
    %c80 = arith.constant 80 : index
    %178 = memref.load %arg4[%c80] : memref<144xf32, #tpu.memory_space<smem>>
    %179 = vector.broadcast %178 : f32 to vector<8x256xf32>
    %180 = arith.mulf %179, %169 : vector<8x256xf32>
    %181 = arith.addf %161, %180 : vector<8x256xf32>
    %c116 = arith.constant 116 : index
    %182 = memref.load %arg4[%c116] : memref<144xf32, #tpu.memory_space<smem>>
    %183 = vector.broadcast %182 : f32 to vector<8x256xf32>
    %184 = arith.mulf %183, %169 : vector<8x256xf32>
    %185 = arith.addf %165, %184 : vector<8x256xf32>
    %c0_10 = arith.constant 0 : index
    %c1_11 = arith.constant 1 : index
    %c0_12 = arith.constant 0 : index
    %c0_13 = arith.constant 0 : index
    %186 = vector.load %arg2[%c0_10, %c1_11, %c0_12, %c0_13] : memref<1x4x8x256xf32, #tpu.memory_space<vmem>>, vector<1x1x8x256xf32>
    %187 = vector.shape_cast %186 : vector<1x1x8x256xf32> to vector<8x256xf32>
    %c13 = arith.constant 13 : index
    %188 = memref.load %arg4[%c13] : memref<144xf32, #tpu.memory_space<smem>>
    %189 = vector.broadcast %188 : f32 to vector<8x256xf32>
    %190 = arith.mulf %189, %187 : vector<8x256xf32>
    %191 = arith.addf %173, %190 : vector<8x256xf32>
    %c49 = arith.constant 49 : index
    %192 = memref.load %arg4[%c49] : memref<144xf32, #tpu.memory_space<smem>>
    %193 = vector.broadcast %192 : f32 to vector<8x256xf32>
    %194 = arith.mulf %193, %187 : vector<8x256xf32>
    %195 = arith.addf %177, %194 : vector<8x256xf32>
    %c85 = arith.constant 85 : index
    %196 = memref.load %arg4[%c85] : memref<144xf32, #tpu.memory_space<smem>>
    %197 = vector.broadcast %196 : f32 to vector<8x256xf32>
    %198 = arith.mulf %197, %187 : vector<8x256xf32>
    %199 = arith.addf %181, %198 : vector<8x256xf32>
    %c121 = arith.constant 121 : index
    %200 = memref.load %arg4[%c121] : memref<144xf32, #tpu.memory_space<smem>>
    %201 = vector.broadcast %200 : f32 to vector<8x256xf32>
    %202 = arith.mulf %201, %187 : vector<8x256xf32>
    %203 = arith.addf %185, %202 : vector<8x256xf32>
    %c17_i32_14 = arith.constant 17 : i32
    %204 = tpu.dynamic_rotate %187 by %c17_i32_14 dim 1 : vector<8x256xf32>, i32 -> vector<8x256xf32>
    %205 = vector.extract_strided_slice %0 {offsets = [0, 0], sizes = [1, 256], strides = [1, 1]} : vector<8x256xf32> to vector<1x256xf32>
    %206 = vector.broadcast %205 : vector<1x256xf32> to vector<8x256xf32>
    %207 = arith.mulf %204, %206 : vector<8x256xf32>
    %c9 = arith.constant 9 : index
    %208 = memref.load %arg4[%c9] : memref<144xf32, #tpu.memory_space<smem>>
    %209 = vector.broadcast %208 : f32 to vector<8x256xf32>
    %210 = arith.mulf %209, %207 : vector<8x256xf32>
    %211 = arith.addf %191, %210 : vector<8x256xf32>
    %c45 = arith.constant 45 : index
    %212 = memref.load %arg4[%c45] : memref<144xf32, #tpu.memory_space<smem>>
    %213 = vector.broadcast %212 : f32 to vector<8x256xf32>
    %214 = arith.mulf %213, %207 : vector<8x256xf32>
    %215 = arith.addf %195, %214 : vector<8x256xf32>
    %c81 = arith.constant 81 : index
    %216 = memref.load %arg4[%c81] : memref<144xf32, #tpu.memory_space<smem>>
    %217 = vector.broadcast %216 : f32 to vector<8x256xf32>
    %218 = arith.mulf %217, %207 : vector<8x256xf32>
    %219 = arith.addf %199, %218 : vector<8x256xf32>
    %c117 = arith.constant 117 : index
    %220 = memref.load %arg4[%c117] : memref<144xf32, #tpu.memory_space<smem>>
    %221 = vector.broadcast %220 : f32 to vector<8x256xf32>
    %222 = arith.mulf %221, %207 : vector<8x256xf32>
    %223 = arith.addf %203, %222 : vector<8x256xf32>
    %c16_i32_15 = arith.constant 16 : i32
    %224 = tpu.dynamic_rotate %187 by %c16_i32_15 dim 1 : vector<8x256xf32>, i32 -> vector<8x256xf32>
    %225 = vector.extract_strided_slice %0 {offsets = [1, 0], sizes = [1, 256], strides = [1, 1]} : vector<8x256xf32> to vector<1x256xf32>
    %226 = vector.broadcast %225 : vector<1x256xf32> to vector<8x256xf32>
    %227 = arith.mulf %224, %226 : vector<8x256xf32>
    %c10 = arith.constant 10 : index
    %228 = memref.load %arg4[%c10] : memref<144xf32, #tpu.memory_space<smem>>
    %229 = vector.broadcast %228 : f32 to vector<8x256xf32>
    %230 = arith.mulf %229, %227 : vector<8x256xf32>
    %231 = arith.addf %211, %230 : vector<8x256xf32>
    %c46 = arith.constant 46 : index
    %232 = memref.load %arg4[%c46] : memref<144xf32, #tpu.memory_space<smem>>
    %233 = vector.broadcast %232 : f32 to vector<8x256xf32>
    %234 = arith.mulf %233, %227 : vector<8x256xf32>
    %235 = arith.addf %215, %234 : vector<8x256xf32>
    %c82 = arith.constant 82 : index
    %236 = memref.load %arg4[%c82] : memref<144xf32, #tpu.memory_space<smem>>
    %237 = vector.broadcast %236 : f32 to vector<8x256xf32>
    %238 = arith.mulf %237, %227 : vector<8x256xf32>
    %239 = arith.addf %219, %238 : vector<8x256xf32>
    %c118 = arith.constant 118 : index
    %240 = memref.load %arg4[%c118] : memref<144xf32, #tpu.memory_space<smem>>
    %241 = vector.broadcast %240 : f32 to vector<8x256xf32>
    %242 = arith.mulf %241, %227 : vector<8x256xf32>
    %243 = arith.addf %223, %242 : vector<8x256xf32>
    %c15_i32_16 = arith.constant 15 : i32
    %244 = tpu.dynamic_rotate %187 by %c15_i32_16 dim 1 : vector<8x256xf32>, i32 -> vector<8x256xf32>
    %245 = vector.extract_strided_slice %0 {offsets = [2, 0], sizes = [1, 256], strides = [1, 1]} : vector<8x256xf32> to vector<1x256xf32>
    %246 = vector.broadcast %245 : vector<1x256xf32> to vector<8x256xf32>
    %247 = arith.mulf %244, %246 : vector<8x256xf32>
    %c11 = arith.constant 11 : index
    %248 = memref.load %arg4[%c11] : memref<144xf32, #tpu.memory_space<smem>>
    %249 = vector.broadcast %248 : f32 to vector<8x256xf32>
    %250 = arith.mulf %249, %247 : vector<8x256xf32>
    %251 = arith.addf %231, %250 : vector<8x256xf32>
    %c47 = arith.constant 47 : index
    %252 = memref.load %arg4[%c47] : memref<144xf32, #tpu.memory_space<smem>>
    %253 = vector.broadcast %252 : f32 to vector<8x256xf32>
    %254 = arith.mulf %253, %247 : vector<8x256xf32>
    %255 = arith.addf %235, %254 : vector<8x256xf32>
    %c83 = arith.constant 83 : index
    %256 = memref.load %arg4[%c83] : memref<144xf32, #tpu.memory_space<smem>>
    %257 = vector.broadcast %256 : f32 to vector<8x256xf32>
    %258 = arith.mulf %257, %247 : vector<8x256xf32>
    %259 = arith.addf %239, %258 : vector<8x256xf32>
    %c119 = arith.constant 119 : index
    %260 = memref.load %arg4[%c119] : memref<144xf32, #tpu.memory_space<smem>>
    %261 = vector.broadcast %260 : f32 to vector<8x256xf32>
    %262 = arith.mulf %261, %247 : vector<8x256xf32>
    %263 = arith.addf %243, %262 : vector<8x256xf32>
    %c1_i32_17 = arith.constant 1 : i32
    %264 = tpu.dynamic_rotate %187 by %c1_i32_17 dim 1 : vector<8x256xf32>, i32 -> vector<8x256xf32>
    %265 = vector.extract_strided_slice %0 {offsets = [3, 0], sizes = [1, 256], strides = [1, 1]} : vector<8x256xf32> to vector<1x256xf32>
    %266 = vector.broadcast %265 : vector<1x256xf32> to vector<8x256xf32>
    %267 = arith.mulf %264, %266 : vector<8x256xf32>
    %c12 = arith.constant 12 : index
    %268 = memref.load %arg4[%c12] : memref<144xf32, #tpu.memory_space<smem>>
    %269 = vector.broadcast %268 : f32 to vector<8x256xf32>
    %270 = arith.mulf %269, %267 : vector<8x256xf32>
    %271 = arith.addf %251, %270 : vector<8x256xf32>
    %c48 = arith.constant 48 : index
    %272 = memref.load %arg4[%c48] : memref<144xf32, #tpu.memory_space<smem>>
    %273 = vector.broadcast %272 : f32 to vector<8x256xf32>
    %274 = arith.mulf %273, %267 : vector<8x256xf32>
    %275 = arith.addf %255, %274 : vector<8x256xf32>
    %c84 = arith.constant 84 : index
    %276 = memref.load %arg4[%c84] : memref<144xf32, #tpu.memory_space<smem>>
    %277 = vector.broadcast %276 : f32 to vector<8x256xf32>
    %278 = arith.mulf %277, %267 : vector<8x256xf32>
    %279 = arith.addf %259, %278 : vector<8x256xf32>
    %c120 = arith.constant 120 : index
    %280 = memref.load %arg4[%c120] : memref<144xf32, #tpu.memory_space<smem>>
    %281 = vector.broadcast %280 : f32 to vector<8x256xf32>
    %282 = arith.mulf %281, %267 : vector<8x256xf32>
    %283 = arith.addf %263, %282 : vector<8x256xf32>
    %c255_i32_18 = arith.constant 255 : i32
    %284 = tpu.dynamic_rotate %187 by %c255_i32_18 dim 1 : vector<8x256xf32>, i32 -> vector<8x256xf32>
    %285 = vector.extract_strided_slice %0 {offsets = [4, 0], sizes = [1, 256], strides = [1, 1]} : vector<8x256xf32> to vector<1x256xf32>
    %286 = vector.broadcast %285 : vector<1x256xf32> to vector<8x256xf32>
    %287 = arith.mulf %284, %286 : vector<8x256xf32>
    %c14 = arith.constant 14 : index
    %288 = memref.load %arg4[%c14] : memref<144xf32, #tpu.memory_space<smem>>
    %289 = vector.broadcast %288 : f32 to vector<8x256xf32>
    %290 = arith.mulf %289, %287 : vector<8x256xf32>
    %291 = arith.addf %271, %290 : vector<8x256xf32>
    %c50 = arith.constant 50 : index
    %292 = memref.load %arg4[%c50] : memref<144xf32, #tpu.memory_space<smem>>
    %293 = vector.broadcast %292 : f32 to vector<8x256xf32>
    %294 = arith.mulf %293, %287 : vector<8x256xf32>
    %295 = arith.addf %275, %294 : vector<8x256xf32>
    %c86 = arith.constant 86 : index
    %296 = memref.load %arg4[%c86] : memref<144xf32, #tpu.memory_space<smem>>
    %297 = vector.broadcast %296 : f32 to vector<8x256xf32>
    %298 = arith.mulf %297, %287 : vector<8x256xf32>
    %299 = arith.addf %279, %298 : vector<8x256xf32>
    %c122 = arith.constant 122 : index
    %300 = memref.load %arg4[%c122] : memref<144xf32, #tpu.memory_space<smem>>
    %301 = vector.broadcast %300 : f32 to vector<8x256xf32>
    %302 = arith.mulf %301, %287 : vector<8x256xf32>
    %303 = arith.addf %283, %302 : vector<8x256xf32>
    %c241_i32_19 = arith.constant 241 : i32
    %304 = tpu.dynamic_rotate %187 by %c241_i32_19 dim 1 : vector<8x256xf32>, i32 -> vector<8x256xf32>
    %305 = vector.extract_strided_slice %0 {offsets = [5, 0], sizes = [1, 256], strides = [1, 1]} : vector<8x256xf32> to vector<1x256xf32>
    %306 = vector.broadcast %305 : vector<1x256xf32> to vector<8x256xf32>
    %307 = arith.mulf %304, %306 : vector<8x256xf32>
    %c15 = arith.constant 15 : index
    %308 = memref.load %arg4[%c15] : memref<144xf32, #tpu.memory_space<smem>>
    %309 = vector.broadcast %308 : f32 to vector<8x256xf32>
    %310 = arith.mulf %309, %307 : vector<8x256xf32>
    %311 = arith.addf %291, %310 : vector<8x256xf32>
    %c51 = arith.constant 51 : index
    %312 = memref.load %arg4[%c51] : memref<144xf32, #tpu.memory_space<smem>>
    %313 = vector.broadcast %312 : f32 to vector<8x256xf32>
    %314 = arith.mulf %313, %307 : vector<8x256xf32>
    %315 = arith.addf %295, %314 : vector<8x256xf32>
    %c87 = arith.constant 87 : index
    %316 = memref.load %arg4[%c87] : memref<144xf32, #tpu.memory_space<smem>>
    %317 = vector.broadcast %316 : f32 to vector<8x256xf32>
    %318 = arith.mulf %317, %307 : vector<8x256xf32>
    %319 = arith.addf %299, %318 : vector<8x256xf32>
    %c123 = arith.constant 123 : index
    %320 = memref.load %arg4[%c123] : memref<144xf32, #tpu.memory_space<smem>>
    %321 = vector.broadcast %320 : f32 to vector<8x256xf32>
    %322 = arith.mulf %321, %307 : vector<8x256xf32>
    %323 = arith.addf %303, %322 : vector<8x256xf32>
    %c240_i32_20 = arith.constant 240 : i32
    %324 = tpu.dynamic_rotate %187 by %c240_i32_20 dim 1 : vector<8x256xf32>, i32 -> vector<8x256xf32>
    %325 = vector.extract_strided_slice %0 {offsets = [6, 0], sizes = [1, 256], strides = [1, 1]} : vector<8x256xf32> to vector<1x256xf32>
    %326 = vector.broadcast %325 : vector<1x256xf32> to vector<8x256xf32>
    %327 = arith.mulf %324, %326 : vector<8x256xf32>
    %c16 = arith.constant 16 : index
    %328 = memref.load %arg4[%c16] : memref<144xf32, #tpu.memory_space<smem>>
    %329 = vector.broadcast %328 : f32 to vector<8x256xf32>
    %330 = arith.mulf %329, %327 : vector<8x256xf32>
    %331 = arith.addf %311, %330 : vector<8x256xf32>
    %c52 = arith.constant 52 : index
    %332 = memref.load %arg4[%c52] : memref<144xf32, #tpu.memory_space<smem>>
    %333 = vector.broadcast %332 : f32 to vector<8x256xf32>
    %334 = arith.mulf %333, %327 : vector<8x256xf32>
    %335 = arith.addf %315, %334 : vector<8x256xf32>
    %c88 = arith.constant 88 : index
    %336 = memref.load %arg4[%c88] : memref<144xf32, #tpu.memory_space<smem>>
    %337 = vector.broadcast %336 : f32 to vector<8x256xf32>
    %338 = arith.mulf %337, %327 : vector<8x256xf32>
    %339 = arith.addf %319, %338 : vector<8x256xf32>
    %c124 = arith.constant 124 : index
    %340 = memref.load %arg4[%c124] : memref<144xf32, #tpu.memory_space<smem>>
    %341 = vector.broadcast %340 : f32 to vector<8x256xf32>
    %342 = arith.mulf %341, %327 : vector<8x256xf32>
    %343 = arith.addf %323, %342 : vector<8x256xf32>
    %c239_i32_21 = arith.constant 239 : i32
    %344 = tpu.dynamic_rotate %187 by %c239_i32_21 dim 1 : vector<8x256xf32>, i32 -> vector<8x256xf32>
    %345 = vector.extract_strided_slice %0 {offsets = [7, 0], sizes = [1, 256], strides = [1, 1]} : vector<8x256xf32> to vector<1x256xf32>
    %346 = vector.broadcast %345 : vector<1x256xf32> to vector<8x256xf32>
    %347 = arith.mulf %344, %346 : vector<8x256xf32>
    %c17 = arith.constant 17 : index
    %348 = memref.load %arg4[%c17] : memref<144xf32, #tpu.memory_space<smem>>
    %349 = vector.broadcast %348 : f32 to vector<8x256xf32>
    %350 = arith.mulf %349, %347 : vector<8x256xf32>
    %351 = arith.addf %331, %350 : vector<8x256xf32>
    %c53 = arith.constant 53 : index
    %352 = memref.load %arg4[%c53] : memref<144xf32, #tpu.memory_space<smem>>
    %353 = vector.broadcast %352 : f32 to vector<8x256xf32>
    %354 = arith.mulf %353, %347 : vector<8x256xf32>
    %355 = arith.addf %335, %354 : vector<8x256xf32>
    %c89 = arith.constant 89 : index
    %356 = memref.load %arg4[%c89] : memref<144xf32, #tpu.memory_space<smem>>
    %357 = vector.broadcast %356 : f32 to vector<8x256xf32>
    %358 = arith.mulf %357, %347 : vector<8x256xf32>
    %359 = arith.addf %339, %358 : vector<8x256xf32>
    %c125 = arith.constant 125 : index
    %360 = memref.load %arg4[%c125] : memref<144xf32, #tpu.memory_space<smem>>
    %361 = vector.broadcast %360 : f32 to vector<8x256xf32>
    %362 = arith.mulf %361, %347 : vector<8x256xf32>
    %363 = arith.addf %343, %362 : vector<8x256xf32>
    %c0_22 = arith.constant 0 : index
    %c2_23 = arith.constant 2 : index
    %c0_24 = arith.constant 0 : index
    %c0_25 = arith.constant 0 : index
    %364 = vector.load %arg2[%c0_22, %c2_23, %c0_24, %c0_25] : memref<1x4x8x256xf32, #tpu.memory_space<vmem>>, vector<1x1x8x256xf32>
    %365 = vector.shape_cast %364 : vector<1x1x8x256xf32> to vector<8x256xf32>
    %c22 = arith.constant 22 : index
    %366 = memref.load %arg4[%c22] : memref<144xf32, #tpu.memory_space<smem>>
    %367 = vector.broadcast %366 : f32 to vector<8x256xf32>
    %368 = arith.mulf %367, %365 : vector<8x256xf32>
    %369 = arith.addf %351, %368 : vector<8x256xf32>
    %c58 = arith.constant 58 : index
    %370 = memref.load %arg4[%c58] : memref<144xf32, #tpu.memory_space<smem>>
    %371 = vector.broadcast %370 : f32 to vector<8x256xf32>
    %372 = arith.mulf %371, %365 : vector<8x256xf32>
    %373 = arith.addf %355, %372 : vector<8x256xf32>
    %c94 = arith.constant 94 : index
    %374 = memref.load %arg4[%c94] : memref<144xf32, #tpu.memory_space<smem>>
    %375 = vector.broadcast %374 : f32 to vector<8x256xf32>
    %376 = arith.mulf %375, %365 : vector<8x256xf32>
    %377 = arith.addf %359, %376 : vector<8x256xf32>
    %c130 = arith.constant 130 : index
    %378 = memref.load %arg4[%c130] : memref<144xf32, #tpu.memory_space<smem>>
    %379 = vector.broadcast %378 : f32 to vector<8x256xf32>
    %380 = arith.mulf %379, %365 : vector<8x256xf32>
    %381 = arith.addf %363, %380 : vector<8x256xf32>
    %c17_i32_26 = arith.constant 17 : i32
    %382 = tpu.dynamic_rotate %365 by %c17_i32_26 dim 1 : vector<8x256xf32>, i32 -> vector<8x256xf32>
    %383 = vector.extract_strided_slice %0 {offsets = [0, 0], sizes = [1, 256], strides = [1, 1]} : vector<8x256xf32> to vector<1x256xf32>
    %384 = vector.broadcast %383 : vector<1x256xf32> to vector<8x256xf32>
    %385 = arith.mulf %382, %384 : vector<8x256xf32>
    %c18 = arith.constant 18 : index
    %386 = memref.load %arg4[%c18] : memref<144xf32, #tpu.memory_space<smem>>
    %387 = vector.broadcast %386 : f32 to vector<8x256xf32>
    %388 = arith.mulf %387, %385 : vector<8x256xf32>
    %389 = arith.addf %369, %388 : vector<8x256xf32>
    %c54 = arith.constant 54 : index
    %390 = memref.load %arg4[%c54] : memref<144xf32, #tpu.memory_space<smem>>
    %391 = vector.broadcast %390 : f32 to vector<8x256xf32>
    %392 = arith.mulf %391, %385 : vector<8x256xf32>
    %393 = arith.addf %373, %392 : vector<8x256xf32>
    %c90 = arith.constant 90 : index
    %394 = memref.load %arg4[%c90] : memref<144xf32, #tpu.memory_space<smem>>
    %395 = vector.broadcast %394 : f32 to vector<8x256xf32>
    %396 = arith.mulf %395, %385 : vector<8x256xf32>
    %397 = arith.addf %377, %396 : vector<8x256xf32>
    %c126 = arith.constant 126 : index
    %398 = memref.load %arg4[%c126] : memref<144xf32, #tpu.memory_space<smem>>
    %399 = vector.broadcast %398 : f32 to vector<8x256xf32>
    %400 = arith.mulf %399, %385 : vector<8x256xf32>
    %401 = arith.addf %381, %400 : vector<8x256xf32>
    %c16_i32_27 = arith.constant 16 : i32
    %402 = tpu.dynamic_rotate %365 by %c16_i32_27 dim 1 : vector<8x256xf32>, i32 -> vector<8x256xf32>
    %403 = vector.extract_strided_slice %0 {offsets = [1, 0], sizes = [1, 256], strides = [1, 1]} : vector<8x256xf32> to vector<1x256xf32>
    %404 = vector.broadcast %403 : vector<1x256xf32> to vector<8x256xf32>
    %405 = arith.mulf %402, %404 : vector<8x256xf32>
    %c19 = arith.constant 19 : index
    %406 = memref.load %arg4[%c19] : memref<144xf32, #tpu.memory_space<smem>>
    %407 = vector.broadcast %406 : f32 to vector<8x256xf32>
    %408 = arith.mulf %407, %405 : vector<8x256xf32>
    %409 = arith.addf %389, %408 : vector<8x256xf32>
    %c55 = arith.constant 55 : index
    %410 = memref.load %arg4[%c55] : memref<144xf32, #tpu.memory_space<smem>>
    %411 = vector.broadcast %410 : f32 to vector<8x256xf32>
    %412 = arith.mulf %411, %405 : vector<8x256xf32>
    %413 = arith.addf %393, %412 : vector<8x256xf32>
    %c91 = arith.constant 91 : index
    %414 = memref.load %arg4[%c91] : memref<144xf32, #tpu.memory_space<smem>>
    %415 = vector.broadcast %414 : f32 to vector<8x256xf32>
    %416 = arith.mulf %415, %405 : vector<8x256xf32>
    %417 = arith.addf %397, %416 : vector<8x256xf32>
    %c127 = arith.constant 127 : index
    %418 = memref.load %arg4[%c127] : memref<144xf32, #tpu.memory_space<smem>>
    %419 = vector.broadcast %418 : f32 to vector<8x256xf32>
    %420 = arith.mulf %419, %405 : vector<8x256xf32>
    %421 = arith.addf %401, %420 : vector<8x256xf32>
    %c15_i32_28 = arith.constant 15 : i32
    %422 = tpu.dynamic_rotate %365 by %c15_i32_28 dim 1 : vector<8x256xf32>, i32 -> vector<8x256xf32>
    %423 = vector.extract_strided_slice %0 {offsets = [2, 0], sizes = [1, 256], strides = [1, 1]} : vector<8x256xf32> to vector<1x256xf32>
    %424 = vector.broadcast %423 : vector<1x256xf32> to vector<8x256xf32>
    %425 = arith.mulf %422, %424 : vector<8x256xf32>
    %c20 = arith.constant 20 : index
    %426 = memref.load %arg4[%c20] : memref<144xf32, #tpu.memory_space<smem>>
    %427 = vector.broadcast %426 : f32 to vector<8x256xf32>
    %428 = arith.mulf %427, %425 : vector<8x256xf32>
    %429 = arith.addf %409, %428 : vector<8x256xf32>
    %c56 = arith.constant 56 : index
    %430 = memref.load %arg4[%c56] : memref<144xf32, #tpu.memory_space<smem>>
    %431 = vector.broadcast %430 : f32 to vector<8x256xf32>
    %432 = arith.mulf %431, %425 : vector<8x256xf32>
    %433 = arith.addf %413, %432 : vector<8x256xf32>
    %c92 = arith.constant 92 : index
    %434 = memref.load %arg4[%c92] : memref<144xf32, #tpu.memory_space<smem>>
    %435 = vector.broadcast %434 : f32 to vector<8x256xf32>
    %436 = arith.mulf %435, %425 : vector<8x256xf32>
    %437 = arith.addf %417, %436 : vector<8x256xf32>
    %c128 = arith.constant 128 : index
    %438 = memref.load %arg4[%c128] : memref<144xf32, #tpu.memory_space<smem>>
    %439 = vector.broadcast %438 : f32 to vector<8x256xf32>
    %440 = arith.mulf %439, %425 : vector<8x256xf32>
    %441 = arith.addf %421, %440 : vector<8x256xf32>
    %c1_i32_29 = arith.constant 1 : i32
    %442 = tpu.dynamic_rotate %365 by %c1_i32_29 dim 1 : vector<8x256xf32>, i32 -> vector<8x256xf32>
    %443 = vector.extract_strided_slice %0 {offsets = [3, 0], sizes = [1, 256], strides = [1, 1]} : vector<8x256xf32> to vector<1x256xf32>
    %444 = vector.broadcast %443 : vector<1x256xf32> to vector<8x256xf32>
    %445 = arith.mulf %442, %444 : vector<8x256xf32>
    %c21 = arith.constant 21 : index
    %446 = memref.load %arg4[%c21] : memref<144xf32, #tpu.memory_space<smem>>
    %447 = vector.broadcast %446 : f32 to vector<8x256xf32>
    %448 = arith.mulf %447, %445 : vector<8x256xf32>
    %449 = arith.addf %429, %448 : vector<8x256xf32>
    %c57 = arith.constant 57 : index
    %450 = memref.load %arg4[%c57] : memref<144xf32, #tpu.memory_space<smem>>
    %451 = vector.broadcast %450 : f32 to vector<8x256xf32>
    %452 = arith.mulf %451, %445 : vector<8x256xf32>
    %453 = arith.addf %433, %452 : vector<8x256xf32>
    %c93 = arith.constant 93 : index
    %454 = memref.load %arg4[%c93] : memref<144xf32, #tpu.memory_space<smem>>
    %455 = vector.broadcast %454 : f32 to vector<8x256xf32>
    %456 = arith.mulf %455, %445 : vector<8x256xf32>
    %457 = arith.addf %437, %456 : vector<8x256xf32>
    %c129 = arith.constant 129 : index
    %458 = memref.load %arg4[%c129] : memref<144xf32, #tpu.memory_space<smem>>
    %459 = vector.broadcast %458 : f32 to vector<8x256xf32>
    %460 = arith.mulf %459, %445 : vector<8x256xf32>
    %461 = arith.addf %441, %460 : vector<8x256xf32>
    %c255_i32_30 = arith.constant 255 : i32
    %462 = tpu.dynamic_rotate %365 by %c255_i32_30 dim 1 : vector<8x256xf32>, i32 -> vector<8x256xf32>
    %463 = vector.extract_strided_slice %0 {offsets = [4, 0], sizes = [1, 256], strides = [1, 1]} : vector<8x256xf32> to vector<1x256xf32>
    %464 = vector.broadcast %463 : vector<1x256xf32> to vector<8x256xf32>
    %465 = arith.mulf %462, %464 : vector<8x256xf32>
    %c23 = arith.constant 23 : index
    %466 = memref.load %arg4[%c23] : memref<144xf32, #tpu.memory_space<smem>>
    %467 = vector.broadcast %466 : f32 to vector<8x256xf32>
    %468 = arith.mulf %467, %465 : vector<8x256xf32>
    %469 = arith.addf %449, %468 : vector<8x256xf32>
    %c59 = arith.constant 59 : index
    %470 = memref.load %arg4[%c59] : memref<144xf32, #tpu.memory_space<smem>>
    %471 = vector.broadcast %470 : f32 to vector<8x256xf32>
    %472 = arith.mulf %471, %465 : vector<8x256xf32>
    %473 = arith.addf %453, %472 : vector<8x256xf32>
    %c95 = arith.constant 95 : index
    %474 = memref.load %arg4[%c95] : memref<144xf32, #tpu.memory_space<smem>>
    %475 = vector.broadcast %474 : f32 to vector<8x256xf32>
    %476 = arith.mulf %475, %465 : vector<8x256xf32>
    %477 = arith.addf %457, %476 : vector<8x256xf32>
    %c131 = arith.constant 131 : index
    %478 = memref.load %arg4[%c131] : memref<144xf32, #tpu.memory_space<smem>>
    %479 = vector.broadcast %478 : f32 to vector<8x256xf32>
    %480 = arith.mulf %479, %465 : vector<8x256xf32>
    %481 = arith.addf %461, %480 : vector<8x256xf32>
    %c241_i32_31 = arith.constant 241 : i32
    %482 = tpu.dynamic_rotate %365 by %c241_i32_31 dim 1 : vector<8x256xf32>, i32 -> vector<8x256xf32>
    %483 = vector.extract_strided_slice %0 {offsets = [5, 0], sizes = [1, 256], strides = [1, 1]} : vector<8x256xf32> to vector<1x256xf32>
    %484 = vector.broadcast %483 : vector<1x256xf32> to vector<8x256xf32>
    %485 = arith.mulf %482, %484 : vector<8x256xf32>
    %c24 = arith.constant 24 : index
    %486 = memref.load %arg4[%c24] : memref<144xf32, #tpu.memory_space<smem>>
    %487 = vector.broadcast %486 : f32 to vector<8x256xf32>
    %488 = arith.mulf %487, %485 : vector<8x256xf32>
    %489 = arith.addf %469, %488 : vector<8x256xf32>
    %c60 = arith.constant 60 : index
    %490 = memref.load %arg4[%c60] : memref<144xf32, #tpu.memory_space<smem>>
    %491 = vector.broadcast %490 : f32 to vector<8x256xf32>
    %492 = arith.mulf %491, %485 : vector<8x256xf32>
    %493 = arith.addf %473, %492 : vector<8x256xf32>
    %c96 = arith.constant 96 : index
    %494 = memref.load %arg4[%c96] : memref<144xf32, #tpu.memory_space<smem>>
    %495 = vector.broadcast %494 : f32 to vector<8x256xf32>
    %496 = arith.mulf %495, %485 : vector<8x256xf32>
    %497 = arith.addf %477, %496 : vector<8x256xf32>
    %c132 = arith.constant 132 : index
    %498 = memref.load %arg4[%c132] : memref<144xf32, #tpu.memory_space<smem>>
    %499 = vector.broadcast %498 : f32 to vector<8x256xf32>
    %500 = arith.mulf %499, %485 : vector<8x256xf32>
    %501 = arith.addf %481, %500 : vector<8x256xf32>
    %c240_i32_32 = arith.constant 240 : i32
    %502 = tpu.dynamic_rotate %365 by %c240_i32_32 dim 1 : vector<8x256xf32>, i32 -> vector<8x256xf32>
    %503 = vector.extract_strided_slice %0 {offsets = [6, 0], sizes = [1, 256], strides = [1, 1]} : vector<8x256xf32> to vector<1x256xf32>
    %504 = vector.broadcast %503 : vector<1x256xf32> to vector<8x256xf32>
    %505 = arith.mulf %502, %504 : vector<8x256xf32>
    %c25 = arith.constant 25 : index
    %506 = memref.load %arg4[%c25] : memref<144xf32, #tpu.memory_space<smem>>
    %507 = vector.broadcast %506 : f32 to vector<8x256xf32>
    %508 = arith.mulf %507, %505 : vector<8x256xf32>
    %509 = arith.addf %489, %508 : vector<8x256xf32>
    %c61 = arith.constant 61 : index
    %510 = memref.load %arg4[%c61] : memref<144xf32, #tpu.memory_space<smem>>
    %511 = vector.broadcast %510 : f32 to vector<8x256xf32>
    %512 = arith.mulf %511, %505 : vector<8x256xf32>
    %513 = arith.addf %493, %512 : vector<8x256xf32>
    %c97 = arith.constant 97 : index
    %514 = memref.load %arg4[%c97] : memref<144xf32, #tpu.memory_space<smem>>
    %515 = vector.broadcast %514 : f32 to vector<8x256xf32>
    %516 = arith.mulf %515, %505 : vector<8x256xf32>
    %517 = arith.addf %497, %516 : vector<8x256xf32>
    %c133 = arith.constant 133 : index
    %518 = memref.load %arg4[%c133] : memref<144xf32, #tpu.memory_space<smem>>
    %519 = vector.broadcast %518 : f32 to vector<8x256xf32>
    %520 = arith.mulf %519, %505 : vector<8x256xf32>
    %521 = arith.addf %501, %520 : vector<8x256xf32>
    %c239_i32_33 = arith.constant 239 : i32
    %522 = tpu.dynamic_rotate %365 by %c239_i32_33 dim 1 : vector<8x256xf32>, i32 -> vector<8x256xf32>
    %523 = vector.extract_strided_slice %0 {offsets = [7, 0], sizes = [1, 256], strides = [1, 1]} : vector<8x256xf32> to vector<1x256xf32>
    %524 = vector.broadcast %523 : vector<1x256xf32> to vector<8x256xf32>
    %525 = arith.mulf %522, %524 : vector<8x256xf32>
    %c26 = arith.constant 26 : index
    %526 = memref.load %arg4[%c26] : memref<144xf32, #tpu.memory_space<smem>>
    %527 = vector.broadcast %526 : f32 to vector<8x256xf32>
    %528 = arith.mulf %527, %525 : vector<8x256xf32>
    %529 = arith.addf %509, %528 : vector<8x256xf32>
    %c62 = arith.constant 62 : index
    %530 = memref.load %arg4[%c62] : memref<144xf32, #tpu.memory_space<smem>>
    %531 = vector.broadcast %530 : f32 to vector<8x256xf32>
    %532 = arith.mulf %531, %525 : vector<8x256xf32>
    %533 = arith.addf %513, %532 : vector<8x256xf32>
    %c98 = arith.constant 98 : index
    %534 = memref.load %arg4[%c98] : memref<144xf32, #tpu.memory_space<smem>>
    %535 = vector.broadcast %534 : f32 to vector<8x256xf32>
    %536 = arith.mulf %535, %525 : vector<8x256xf32>
    %537 = arith.addf %517, %536 : vector<8x256xf32>
    %c134 = arith.constant 134 : index
    %538 = memref.load %arg4[%c134] : memref<144xf32, #tpu.memory_space<smem>>
    %539 = vector.broadcast %538 : f32 to vector<8x256xf32>
    %540 = arith.mulf %539, %525 : vector<8x256xf32>
    %541 = arith.addf %521, %540 : vector<8x256xf32>
    %c0_34 = arith.constant 0 : index
    %c3_35 = arith.constant 3 : index
    %c0_36 = arith.constant 0 : index
    %c0_37 = arith.constant 0 : index
    %542 = vector.load %arg2[%c0_34, %c3_35, %c0_36, %c0_37] : memref<1x4x8x256xf32, #tpu.memory_space<vmem>>, vector<1x1x8x256xf32>
    %543 = vector.shape_cast %542 : vector<1x1x8x256xf32> to vector<8x256xf32>
    %c31 = arith.constant 31 : index
    %544 = memref.load %arg4[%c31] : memref<144xf32, #tpu.memory_space<smem>>
    %545 = vector.broadcast %544 : f32 to vector<8x256xf32>
    %546 = arith.mulf %545, %543 : vector<8x256xf32>
    %547 = arith.addf %529, %546 : vector<8x256xf32>
    %c67 = arith.constant 67 : index
    %548 = memref.load %arg4[%c67] : memref<144xf32, #tpu.memory_space<smem>>
    %549 = vector.broadcast %548 : f32 to vector<8x256xf32>
    %550 = arith.mulf %549, %543 : vector<8x256xf32>
    %551 = arith.addf %533, %550 : vector<8x256xf32>
    %c103 = arith.constant 103 : index
    %552 = memref.load %arg4[%c103] : memref<144xf32, #tpu.memory_space<smem>>
    %553 = vector.broadcast %552 : f32 to vector<8x256xf32>
    %554 = arith.mulf %553, %543 : vector<8x256xf32>
    %555 = arith.addf %537, %554 : vector<8x256xf32>
    %c139 = arith.constant 139 : index
    %556 = memref.load %arg4[%c139] : memref<144xf32, #tpu.memory_space<smem>>
    %557 = vector.broadcast %556 : f32 to vector<8x256xf32>
    %558 = arith.mulf %557, %543 : vector<8x256xf32>
    %559 = arith.addf %541, %558 : vector<8x256xf32>
    %c17_i32_38 = arith.constant 17 : i32
    %560 = tpu.dynamic_rotate %543 by %c17_i32_38 dim 1 : vector<8x256xf32>, i32 -> vector<8x256xf32>
    %561 = vector.extract_strided_slice %0 {offsets = [0, 0], sizes = [1, 256], strides = [1, 1]} : vector<8x256xf32> to vector<1x256xf32>
    %562 = vector.broadcast %561 : vector<1x256xf32> to vector<8x256xf32>
    %563 = arith.mulf %560, %562 : vector<8x256xf32>
    %c27 = arith.constant 27 : index
    %564 = memref.load %arg4[%c27] : memref<144xf32, #tpu.memory_space<smem>>
    %565 = vector.broadcast %564 : f32 to vector<8x256xf32>
    %566 = arith.mulf %565, %563 : vector<8x256xf32>
    %567 = arith.addf %547, %566 : vector<8x256xf32>
    %c63 = arith.constant 63 : index
    %568 = memref.load %arg4[%c63] : memref<144xf32, #tpu.memory_space<smem>>
    %569 = vector.broadcast %568 : f32 to vector<8x256xf32>
    %570 = arith.mulf %569, %563 : vector<8x256xf32>
    %571 = arith.addf %551, %570 : vector<8x256xf32>
    %c99 = arith.constant 99 : index
    %572 = memref.load %arg4[%c99] : memref<144xf32, #tpu.memory_space<smem>>
    %573 = vector.broadcast %572 : f32 to vector<8x256xf32>
    %574 = arith.mulf %573, %563 : vector<8x256xf32>
    %575 = arith.addf %555, %574 : vector<8x256xf32>
    %c135 = arith.constant 135 : index
    %576 = memref.load %arg4[%c135] : memref<144xf32, #tpu.memory_space<smem>>
    %577 = vector.broadcast %576 : f32 to vector<8x256xf32>
    %578 = arith.mulf %577, %563 : vector<8x256xf32>
    %579 = arith.addf %559, %578 : vector<8x256xf32>
    %c16_i32_39 = arith.constant 16 : i32
    %580 = tpu.dynamic_rotate %543 by %c16_i32_39 dim 1 : vector<8x256xf32>, i32 -> vector<8x256xf32>
    %581 = vector.extract_strided_slice %0 {offsets = [1, 0], sizes = [1, 256], strides = [1, 1]} : vector<8x256xf32> to vector<1x256xf32>
    %582 = vector.broadcast %581 : vector<1x256xf32> to vector<8x256xf32>
    %583 = arith.mulf %580, %582 : vector<8x256xf32>
    %c28 = arith.constant 28 : index
    %584 = memref.load %arg4[%c28] : memref<144xf32, #tpu.memory_space<smem>>
    %585 = vector.broadcast %584 : f32 to vector<8x256xf32>
    %586 = arith.mulf %585, %583 : vector<8x256xf32>
    %587 = arith.addf %567, %586 : vector<8x256xf32>
    %c64 = arith.constant 64 : index
    %588 = memref.load %arg4[%c64] : memref<144xf32, #tpu.memory_space<smem>>
    %589 = vector.broadcast %588 : f32 to vector<8x256xf32>
    %590 = arith.mulf %589, %583 : vector<8x256xf32>
    %591 = arith.addf %571, %590 : vector<8x256xf32>
    %c100 = arith.constant 100 : index
    %592 = memref.load %arg4[%c100] : memref<144xf32, #tpu.memory_space<smem>>
    %593 = vector.broadcast %592 : f32 to vector<8x256xf32>
    %594 = arith.mulf %593, %583 : vector<8x256xf32>
    %595 = arith.addf %575, %594 : vector<8x256xf32>
    %c136 = arith.constant 136 : index
    %596 = memref.load %arg4[%c136] : memref<144xf32, #tpu.memory_space<smem>>
    %597 = vector.broadcast %596 : f32 to vector<8x256xf32>
    %598 = arith.mulf %597, %583 : vector<8x256xf32>
    %599 = arith.addf %579, %598 : vector<8x256xf32>
    %c15_i32_40 = arith.constant 15 : i32
    %600 = tpu.dynamic_rotate %543 by %c15_i32_40 dim 1 : vector<8x256xf32>, i32 -> vector<8x256xf32>
    %601 = vector.extract_strided_slice %0 {offsets = [2, 0], sizes = [1, 256], strides = [1, 1]} : vector<8x256xf32> to vector<1x256xf32>
    %602 = vector.broadcast %601 : vector<1x256xf32> to vector<8x256xf32>
    %603 = arith.mulf %600, %602 : vector<8x256xf32>
    %c29 = arith.constant 29 : index
    %604 = memref.load %arg4[%c29] : memref<144xf32, #tpu.memory_space<smem>>
    %605 = vector.broadcast %604 : f32 to vector<8x256xf32>
    %606 = arith.mulf %605, %603 : vector<8x256xf32>
    %607 = arith.addf %587, %606 : vector<8x256xf32>
    %c65 = arith.constant 65 : index
    %608 = memref.load %arg4[%c65] : memref<144xf32, #tpu.memory_space<smem>>
    %609 = vector.broadcast %608 : f32 to vector<8x256xf32>
    %610 = arith.mulf %609, %603 : vector<8x256xf32>
    %611 = arith.addf %591, %610 : vector<8x256xf32>
    %c101 = arith.constant 101 : index
    %612 = memref.load %arg4[%c101] : memref<144xf32, #tpu.memory_space<smem>>
    %613 = vector.broadcast %612 : f32 to vector<8x256xf32>
    %614 = arith.mulf %613, %603 : vector<8x256xf32>
    %615 = arith.addf %595, %614 : vector<8x256xf32>
    %c137 = arith.constant 137 : index
    %616 = memref.load %arg4[%c137] : memref<144xf32, #tpu.memory_space<smem>>
    %617 = vector.broadcast %616 : f32 to vector<8x256xf32>
    %618 = arith.mulf %617, %603 : vector<8x256xf32>
    %619 = arith.addf %599, %618 : vector<8x256xf32>
    %c1_i32_41 = arith.constant 1 : i32
    %620 = tpu.dynamic_rotate %543 by %c1_i32_41 dim 1 : vector<8x256xf32>, i32 -> vector<8x256xf32>
    %621 = vector.extract_strided_slice %0 {offsets = [3, 0], sizes = [1, 256], strides = [1, 1]} : vector<8x256xf32> to vector<1x256xf32>
    %622 = vector.broadcast %621 : vector<1x256xf32> to vector<8x256xf32>
    %623 = arith.mulf %620, %622 : vector<8x256xf32>
    %c30 = arith.constant 30 : index
    %624 = memref.load %arg4[%c30] : memref<144xf32, #tpu.memory_space<smem>>
    %625 = vector.broadcast %624 : f32 to vector<8x256xf32>
    %626 = arith.mulf %625, %623 : vector<8x256xf32>
    %627 = arith.addf %607, %626 : vector<8x256xf32>
    %c66 = arith.constant 66 : index
    %628 = memref.load %arg4[%c66] : memref<144xf32, #tpu.memory_space<smem>>
    %629 = vector.broadcast %628 : f32 to vector<8x256xf32>
    %630 = arith.mulf %629, %623 : vector<8x256xf32>
    %631 = arith.addf %611, %630 : vector<8x256xf32>
    %c102 = arith.constant 102 : index
    %632 = memref.load %arg4[%c102] : memref<144xf32, #tpu.memory_space<smem>>
    %633 = vector.broadcast %632 : f32 to vector<8x256xf32>
    %634 = arith.mulf %633, %623 : vector<8x256xf32>
    %635 = arith.addf %615, %634 : vector<8x256xf32>
    %c138 = arith.constant 138 : index
    %636 = memref.load %arg4[%c138] : memref<144xf32, #tpu.memory_space<smem>>
    %637 = vector.broadcast %636 : f32 to vector<8x256xf32>
    %638 = arith.mulf %637, %623 : vector<8x256xf32>
    %639 = arith.addf %619, %638 : vector<8x256xf32>
    %c255_i32_42 = arith.constant 255 : i32
    %640 = tpu.dynamic_rotate %543 by %c255_i32_42 dim 1 : vector<8x256xf32>, i32 -> vector<8x256xf32>
    %641 = vector.extract_strided_slice %0 {offsets = [4, 0], sizes = [1, 256], strides = [1, 1]} : vector<8x256xf32> to vector<1x256xf32>
    %642 = vector.broadcast %641 : vector<1x256xf32> to vector<8x256xf32>
    %643 = arith.mulf %640, %642 : vector<8x256xf32>
    %c32 = arith.constant 32 : index
    %644 = memref.load %arg4[%c32] : memref<144xf32, #tpu.memory_space<smem>>
    %645 = vector.broadcast %644 : f32 to vector<8x256xf32>
    %646 = arith.mulf %645, %643 : vector<8x256xf32>
    %647 = arith.addf %627, %646 : vector<8x256xf32>
    %c68 = arith.constant 68 : index
    %648 = memref.load %arg4[%c68] : memref<144xf32, #tpu.memory_space<smem>>
    %649 = vector.broadcast %648 : f32 to vector<8x256xf32>
    %650 = arith.mulf %649, %643 : vector<8x256xf32>
    %651 = arith.addf %631, %650 : vector<8x256xf32>
    %c104 = arith.constant 104 : index
    %652 = memref.load %arg4[%c104] : memref<144xf32, #tpu.memory_space<smem>>
    %653 = vector.broadcast %652 : f32 to vector<8x256xf32>
    %654 = arith.mulf %653, %643 : vector<8x256xf32>
    %655 = arith.addf %635, %654 : vector<8x256xf32>
    %c140 = arith.constant 140 : index
    %656 = memref.load %arg4[%c140] : memref<144xf32, #tpu.memory_space<smem>>
    %657 = vector.broadcast %656 : f32 to vector<8x256xf32>
    %658 = arith.mulf %657, %643 : vector<8x256xf32>
    %659 = arith.addf %639, %658 : vector<8x256xf32>
    %c241_i32_43 = arith.constant 241 : i32
    %660 = tpu.dynamic_rotate %543 by %c241_i32_43 dim 1 : vector<8x256xf32>, i32 -> vector<8x256xf32>
    %661 = vector.extract_strided_slice %0 {offsets = [5, 0], sizes = [1, 256], strides = [1, 1]} : vector<8x256xf32> to vector<1x256xf32>
    %662 = vector.broadcast %661 : vector<1x256xf32> to vector<8x256xf32>
    %663 = arith.mulf %660, %662 : vector<8x256xf32>
    %c33 = arith.constant 33 : index
    %664 = memref.load %arg4[%c33] : memref<144xf32, #tpu.memory_space<smem>>
    %665 = vector.broadcast %664 : f32 to vector<8x256xf32>
    %666 = arith.mulf %665, %663 : vector<8x256xf32>
    %667 = arith.addf %647, %666 : vector<8x256xf32>
    %c69 = arith.constant 69 : index
    %668 = memref.load %arg4[%c69] : memref<144xf32, #tpu.memory_space<smem>>
    %669 = vector.broadcast %668 : f32 to vector<8x256xf32>
    %670 = arith.mulf %669, %663 : vector<8x256xf32>
    %671 = arith.addf %651, %670 : vector<8x256xf32>
    %c105 = arith.constant 105 : index
    %672 = memref.load %arg4[%c105] : memref<144xf32, #tpu.memory_space<smem>>
    %673 = vector.broadcast %672 : f32 to vector<8x256xf32>
    %674 = arith.mulf %673, %663 : vector<8x256xf32>
    %675 = arith.addf %655, %674 : vector<8x256xf32>
    %c141 = arith.constant 141 : index
    %676 = memref.load %arg4[%c141] : memref<144xf32, #tpu.memory_space<smem>>
    %677 = vector.broadcast %676 : f32 to vector<8x256xf32>
    %678 = arith.mulf %677, %663 : vector<8x256xf32>
    %679 = arith.addf %659, %678 : vector<8x256xf32>
    %c240_i32_44 = arith.constant 240 : i32
    %680 = tpu.dynamic_rotate %543 by %c240_i32_44 dim 1 : vector<8x256xf32>, i32 -> vector<8x256xf32>
    %681 = vector.extract_strided_slice %0 {offsets = [6, 0], sizes = [1, 256], strides = [1, 1]} : vector<8x256xf32> to vector<1x256xf32>
    %682 = vector.broadcast %681 : vector<1x256xf32> to vector<8x256xf32>
    %683 = arith.mulf %680, %682 : vector<8x256xf32>
    %c34 = arith.constant 34 : index
    %684 = memref.load %arg4[%c34] : memref<144xf32, #tpu.memory_space<smem>>
    %685 = vector.broadcast %684 : f32 to vector<8x256xf32>
    %686 = arith.mulf %685, %683 : vector<8x256xf32>
    %687 = arith.addf %667, %686 : vector<8x256xf32>
    %c70 = arith.constant 70 : index
    %688 = memref.load %arg4[%c70] : memref<144xf32, #tpu.memory_space<smem>>
    %689 = vector.broadcast %688 : f32 to vector<8x256xf32>
    %690 = arith.mulf %689, %683 : vector<8x256xf32>
    %691 = arith.addf %671, %690 : vector<8x256xf32>
    %c106 = arith.constant 106 : index
    %692 = memref.load %arg4[%c106] : memref<144xf32, #tpu.memory_space<smem>>
    %693 = vector.broadcast %692 : f32 to vector<8x256xf32>
    %694 = arith.mulf %693, %683 : vector<8x256xf32>
    %695 = arith.addf %675, %694 : vector<8x256xf32>
    %c142 = arith.constant 142 : index
    %696 = memref.load %arg4[%c142] : memref<144xf32, #tpu.memory_space<smem>>
    %697 = vector.broadcast %696 : f32 to vector<8x256xf32>
    %698 = arith.mulf %697, %683 : vector<8x256xf32>
    %699 = arith.addf %679, %698 : vector<8x256xf32>
    %c239_i32_45 = arith.constant 239 : i32
    %700 = tpu.dynamic_rotate %543 by %c239_i32_45 dim 1 : vector<8x256xf32>, i32 -> vector<8x256xf32>
    %701 = vector.extract_strided_slice %0 {offsets = [7, 0], sizes = [1, 256], strides = [1, 1]} : vector<8x256xf32> to vector<1x256xf32>
    %702 = vector.broadcast %701 : vector<1x256xf32> to vector<8x256xf32>
    %703 = arith.mulf %700, %702 : vector<8x256xf32>
    %c35 = arith.constant 35 : index
    %704 = memref.load %arg4[%c35] : memref<144xf32, #tpu.memory_space<smem>>
    %705 = vector.broadcast %704 : f32 to vector<8x256xf32>
    %706 = arith.mulf %705, %703 : vector<8x256xf32>
    %707 = arith.addf %687, %706 : vector<8x256xf32>
    %c71 = arith.constant 71 : index
    %708 = memref.load %arg4[%c71] : memref<144xf32, #tpu.memory_space<smem>>
    %709 = vector.broadcast %708 : f32 to vector<8x256xf32>
    %710 = arith.mulf %709, %703 : vector<8x256xf32>
    %711 = arith.addf %691, %710 : vector<8x256xf32>
    %c107 = arith.constant 107 : index
    %712 = memref.load %arg4[%c107] : memref<144xf32, #tpu.memory_space<smem>>
    %713 = vector.broadcast %712 : f32 to vector<8x256xf32>
    %714 = arith.mulf %713, %703 : vector<8x256xf32>
    %715 = arith.addf %695, %714 : vector<8x256xf32>
    %c143 = arith.constant 143 : index
    %716 = memref.load %arg4[%c143] : memref<144xf32, #tpu.memory_space<smem>>
    %717 = vector.broadcast %716 : f32 to vector<8x256xf32>
    %718 = arith.mulf %717, %703 : vector<8x256xf32>
    %719 = arith.addf %699, %718 : vector<8x256xf32>
    %720 = tpu.iota {dimensions = array<i32: 0>} : vector<4x2xi32>
    %721 = tpu.iota {dimensions = array<i32: 1>} : vector<4x2xi32>
    %cst_46 = arith.constant 0.000000e+00 : f32
    %722 = vector.broadcast %cst_46 : f32 to vector<4x2xf32>
    %c0_47 = arith.constant 0 : index
    %723 = memref.load %arg5[%c0_47] : memref<4xf32, #tpu.memory_space<smem>>
    %724 = vector.broadcast %723 : f32 to vector<8x256xf32>
    %725 = arith.addf %707, %724 : vector<8x256xf32>
    %c0_48 = arith.constant 0 : index
    %c0_49 = arith.constant 0 : index
    %c0_50 = arith.constant 0 : index
    %c0_51 = arith.constant 0 : index
    %726 = vector.load %arg6[%c0_48, %c0_49, %c0_50, %c0_51] : memref<1x4x8x256xf32, #tpu.memory_space<vmem>>, vector<1x1x8x256xf32>
    %727 = vector.shape_cast %726 : vector<1x1x8x256xf32> to vector<8x256xf32>
    %728 = vector.shape_cast %725 : vector<8x256xf32> to vector<1x1x8x256xf32>
    tpu.vector_store %arg6[%c0_48, %c0_49, %c0_50, %c0_51], %728 {strides = array<i32>} : memref<1x4x8x256xf32, #tpu.memory_space<vmem>>, vector<1x1x8x256xf32>,
    %cst_52 = arith.constant dense<0.000000e+00> : vector<8xf32>
    %729 = vector.multi_reduction <add>, %707, %cst_52 [1] : vector<8x256xf32> to vector<8xf32>
    %730 = vector.shape_cast %729 : vector<8xf32> to vector<8x1xf32>
    %cst_53 = arith.constant dense<0.000000e+00> : vector<1xf32>
    %731 = vector.multi_reduction <add>, %730, %cst_53 [0] : vector<8x1xf32> to vector<1xf32>
    %732 = vector.shape_cast %731 : vector<1xf32> to vector<1x1xf32>
    %733 = arith.mulf %707, %707 : vector<8x256xf32>
    %cst_54 = arith.constant dense<0.000000e+00> : vector<8xf32>
    %734 = vector.multi_reduction <add>, %733, %cst_54 [1] : vector<8x256xf32> to vector<8xf32>
    %735 = vector.shape_cast %734 : vector<8xf32> to vector<8x1xf32>
    %cst_55 = arith.constant dense<0.000000e+00> : vector<1xf32>
    %736 = vector.multi_reduction <add>, %735, %cst_55 [0] : vector<8x1xf32> to vector<1xf32>
    %737 = vector.shape_cast %736 : vector<1xf32> to vector<1x1xf32>
    %cst_56 = arith.constant 2.048000e+03 : f32
    %738 = arith.mulf %723, %cst_56 : f32
    %739 = vector.broadcast %738 : f32 to vector<1x1xf32>
    %740 = arith.addf %732, %739 : vector<1x1xf32>
    %cst_57 = arith.constant 2.000000e+00 : f32
    %741 = arith.mulf %cst_57, %723 : f32
    %742 = vector.broadcast %741 : f32 to vector<1x1xf32>
    %743 = arith.mulf %742, %732 : vector<1x1xf32>
    %744 = arith.addf %737, %743 : vector<1x1xf32>
    %745 = arith.mulf %723, %723 : f32
    %cst_58 = arith.constant 2.048000e+03 : f32
    %746 = arith.mulf %745, %cst_58 : f32
    %747 = vector.broadcast %746 : f32 to vector<1x1xf32>
    %748 = arith.addf %744, %747 : vector<1x1xf32>
    %c0_i32_59 = arith.constant 0 : i32
    %749 = vector.broadcast %c0_i32_59 : i32 to vector<4x2xi32>
    %750 = arith.cmpi eq, %720, %749 : vector<4x2xi32>
    %c0_i32_60 = arith.constant 0 : i32
    %751 = vector.broadcast %c0_i32_60 : i32 to vector<4x2xi32>
    %752 = arith.cmpi eq, %721, %751 : vector<4x2xi32>
    %753 = vector.shape_cast %740 : vector<1x1xf32> to vector<1x1xf32>
    %754 = vector.broadcast %753 : vector<1x1xf32> to vector<4x2xf32>
    %755 = vector.shape_cast %748 : vector<1x1xf32> to vector<1x1xf32>
    %756 = vector.broadcast %755 : vector<1x1xf32> to vector<4x2xf32>
    %757 = arith.select %752, %754, %756 : vector<4x2xi1>, vector<4x2xf32>
    %cst_61 = arith.constant 0.000000e+00 : f32
    %758 = vector.broadcast %cst_61 : f32 to vector<4x2xf32>
    %759 = arith.select %750, %757, %758 : vector<4x2xi1>, vector<4x2xf32>
    %760 = arith.addf %722, %759 : vector<4x2xf32>
    %c1_62 = arith.constant 1 : index
    %761 = memref.load %arg5[%c1_62] : memref<4xf32, #tpu.memory_space<smem>>
    %762 = vector.broadcast %761 : f32 to vector<8x256xf32>
    %763 = arith.addf %711, %762 : vector<8x256xf32>
    %c0_63 = arith.constant 0 : index
    %c1_64 = arith.constant 1 : index
    %c0_65 = arith.constant 0 : index
    %c0_66 = arith.constant 0 : index
    %764 = vector.load %arg6[%c0_63, %c1_64, %c0_65, %c0_66] : memref<1x4x8x256xf32, #tpu.memory_space<vmem>>, vector<1x1x8x256xf32>
    %765 = vector.shape_cast %764 : vector<1x1x8x256xf32> to vector<8x256xf32>
    %766 = vector.shape_cast %763 : vector<8x256xf32> to vector<1x1x8x256xf32>
    tpu.vector_store %arg6[%c0_63, %c1_64, %c0_65, %c0_66], %766 {strides = array<i32>} : memref<1x4x8x256xf32, #tpu.memory_space<vmem>>, vector<1x1x8x256xf32>,
    %cst_67 = arith.constant dense<0.000000e+00> : vector<8xf32>
    %767 = vector.multi_reduction <add>, %711, %cst_67 [1] : vector<8x256xf32> to vector<8xf32>
    %768 = vector.shape_cast %767 : vector<8xf32> to vector<8x1xf32>
    %cst_68 = arith.constant dense<0.000000e+00> : vector<1xf32>
    %769 = vector.multi_reduction <add>, %768, %cst_68 [0] : vector<8x1xf32> to vector<1xf32>
    %770 = vector.shape_cast %769 : vector<1xf32> to vector<1x1xf32>
    %771 = arith.mulf %711, %711 : vector<8x256xf32>
    %cst_69 = arith.constant dense<0.000000e+00> : vector<8xf32>
    %772 = vector.multi_reduction <add>, %771, %cst_69 [1] : vector<8x256xf32> to vector<8xf32>
    %773 = vector.shape_cast %772 : vector<8xf32> to vector<8x1xf32>
    %cst_70 = arith.constant dense<0.000000e+00> : vector<1xf32>
    %774 = vector.multi_reduction <add>, %773, %cst_70 [0] : vector<8x1xf32> to vector<1xf32>
    %775 = vector.shape_cast %774 : vector<1xf32> to vector<1x1xf32>
    %cst_71 = arith.constant 2.048000e+03 : f32
    %776 = arith.mulf %761, %cst_71 : f32
    %777 = vector.broadcast %776 : f32 to vector<1x1xf32>
    %778 = arith.addf %770, %777 : vector<1x1xf32>
    %cst_72 = arith.constant 2.000000e+00 : f32
    %779 = arith.mulf %cst_72, %761 : f32
    %780 = vector.broadcast %779 : f32 to vector<1x1xf32>
    %781 = arith.mulf %780, %770 : vector<1x1xf32>
    %782 = arith.addf %775, %781 : vector<1x1xf32>
    %783 = arith.mulf %761, %761 : f32
    %cst_73 = arith.constant 2.048000e+03 : f32
    %784 = arith.mulf %783, %cst_73 : f32
    %785 = vector.broadcast %784 : f32 to vector<1x1xf32>
    %786 = arith.addf %782, %785 : vector<1x1xf32>
    %c1_i32_74 = arith.constant 1 : i32
    %787 = vector.broadcast %c1_i32_74 : i32 to vector<4x2xi32>
    %788 = arith.cmpi eq, %720, %787 : vector<4x2xi32>
    %c0_i32_75 = arith.constant 0 : i32
    %789 = vector.broadcast %c0_i32_75 : i32 to vector<4x2xi32>
    %790 = arith.cmpi eq, %721, %789 : vector<4x2xi32>
    %791 = vector.shape_cast %778 : vector<1x1xf32> to vector<1x1xf32>
    %792 = vector.broadcast %791 : vector<1x1xf32> to vector<4x2xf32>
    %793 = vector.shape_cast %786 : vector<1x1xf32> to vector<1x1xf32>
    %794 = vector.broadcast %793 : vector<1x1xf32> to vector<4x2xf32>
    %795 = arith.select %790, %792, %794 : vector<4x2xi1>, vector<4x2xf32>
    %cst_76 = arith.constant 0.000000e+00 : f32
    %796 = vector.broadcast %cst_76 : f32 to vector<4x2xf32>
    %797 = arith.select %788, %795, %796 : vector<4x2xi1>, vector<4x2xf32>
    %798 = arith.addf %760, %797 : vector<4x2xf32>
    %c2_77 = arith.constant 2 : index
    %799 = memref.load %arg5[%c2_77] : memref<4xf32, #tpu.memory_space<smem>>
    %800 = vector.broadcast %799 : f32 to vector<8x256xf32>
    %801 = arith.addf %715, %800 : vector<8x256xf32>
    %c0_78 = arith.constant 0 : index
    %c2_79 = arith.constant 2 : index
    %c0_80 = arith.constant 0 : index
    %c0_81 = arith.constant 0 : index
    %802 = vector.load %arg6[%c0_78, %c2_79, %c0_80, %c0_81] : memref<1x4x8x256xf32, #tpu.memory_space<vmem>>, vector<1x1x8x256xf32>
    %803 = vector.shape_cast %802 : vector<1x1x8x256xf32> to vector<8x256xf32>
    %804 = vector.shape_cast %801 : vector<8x256xf32> to vector<1x1x8x256xf32>
    tpu.vector_store %arg6[%c0_78, %c2_79, %c0_80, %c0_81], %804 {strides = array<i32>} : memref<1x4x8x256xf32, #tpu.memory_space<vmem>>, vector<1x1x8x256xf32>,
    %cst_82 = arith.constant dense<0.000000e+00> : vector<8xf32>
    %805 = vector.multi_reduction <add>, %715, %cst_82 [1] : vector<8x256xf32> to vector<8xf32>
    %806 = vector.shape_cast %805 : vector<8xf32> to vector<8x1xf32>
    %cst_83 = arith.constant dense<0.000000e+00> : vector<1xf32>
    %807 = vector.multi_reduction <add>, %806, %cst_83 [0] : vector<8x1xf32> to vector<1xf32>
    %808 = vector.shape_cast %807 : vector<1xf32> to vector<1x1xf32>
    %809 = arith.mulf %715, %715 : vector<8x256xf32>
    %cst_84 = arith.constant dense<0.000000e+00> : vector<8xf32>
    %810 = vector.multi_reduction <add>, %809, %cst_84 [1] : vector<8x256xf32> to vector<8xf32>
    %811 = vector.shape_cast %810 : vector<8xf32> to vector<8x1xf32>
    %cst_85 = arith.constant dense<0.000000e+00> : vector<1xf32>
    %812 = vector.multi_reduction <add>, %811, %cst_85 [0] : vector<8x1xf32> to vector<1xf32>
    %813 = vector.shape_cast %812 : vector<1xf32> to vector<1x1xf32>
    %cst_86 = arith.constant 2.048000e+03 : f32
    %814 = arith.mulf %799, %cst_86 : f32
    %815 = vector.broadcast %814 : f32 to vector<1x1xf32>
    %816 = arith.addf %808, %815 : vector<1x1xf32>
    %cst_87 = arith.constant 2.000000e+00 : f32
    %817 = arith.mulf %cst_87, %799 : f32
    %818 = vector.broadcast %817 : f32 to vector<1x1xf32>
    %819 = arith.mulf %818, %808 : vector<1x1xf32>
    %820 = arith.addf %813, %819 : vector<1x1xf32>
    %821 = arith.mulf %799, %799 : f32
    %cst_88 = arith.constant 2.048000e+03 : f32
    %822 = arith.mulf %821, %cst_88 : f32
    %823 = vector.broadcast %822 : f32 to vector<1x1xf32>
    %824 = arith.addf %820, %823 : vector<1x1xf32>
    %c2_i32 = arith.constant 2 : i32
    %825 = vector.broadcast %c2_i32 : i32 to vector<4x2xi32>
    %826 = arith.cmpi eq, %720, %825 : vector<4x2xi32>
    %c0_i32_89 = arith.constant 0 : i32
    %827 = vector.broadcast %c0_i32_89 : i32 to vector<4x2xi32>
    %828 = arith.cmpi eq, %721, %827 : vector<4x2xi32>
    %829 = vector.shape_cast %816 : vector<1x1xf32> to vector<1x1xf32>
    %830 = vector.broadcast %829 : vector<1x1xf32> to vector<4x2xf32>
    %831 = vector.shape_cast %824 : vector<1x1xf32> to vector<1x1xf32>
    %832 = vector.broadcast %831 : vector<1x1xf32> to vector<4x2xf32>
    %833 = arith.select %828, %830, %832 : vector<4x2xi1>, vector<4x2xf32>
    %cst_90 = arith.constant 0.000000e+00 : f32
    %834 = vector.broadcast %cst_90 : f32 to vector<4x2xf32>
    %835 = arith.select %826, %833, %834 : vector<4x2xi1>, vector<4x2xf32>
    %836 = arith.addf %798, %835 : vector<4x2xf32>
    %c3_91 = arith.constant 3 : index
    %837 = memref.load %arg5[%c3_91] : memref<4xf32, #tpu.memory_space<smem>>
    %838 = vector.broadcast %837 : f32 to vector<8x256xf32>
    %839 = arith.addf %719, %838 : vector<8x256xf32>
    %c0_92 = arith.constant 0 : index
    %c3_93 = arith.constant 3 : index
    %c0_94 = arith.constant 0 : index
    %c0_95 = arith.constant 0 : index
    %840 = vector.load %arg6[%c0_92, %c3_93, %c0_94, %c0_95] : memref<1x4x8x256xf32, #tpu.memory_space<vmem>>, vector<1x1x8x256xf32>
    %841 = vector.shape_cast %840 : vector<1x1x8x256xf32> to vector<8x256xf32>
    %842 = vector.shape_cast %839 : vector<8x256xf32> to vector<1x1x8x256xf32>
    tpu.vector_store %arg6[%c0_92, %c3_93, %c0_94, %c0_95], %842 {strides = array<i32>} : memref<1x4x8x256xf32, #tpu.memory_space<vmem>>, vector<1x1x8x256xf32>,
    %cst_96 = arith.constant dense<0.000000e+00> : vector<8xf32>
    %843 = vector.multi_reduction <add>, %719, %cst_96 [1] : vector<8x256xf32> to vector<8xf32>
    %844 = vector.shape_cast %843 : vector<8xf32> to vector<8x1xf32>
    %cst_97 = arith.constant dense<0.000000e+00> : vector<1xf32>
    %845 = vector.multi_reduction <add>, %844, %cst_97 [0] : vector<8x1xf32> to vector<1xf32>
    %846 = vector.shape_cast %845 : vector<1xf32> to vector<1x1xf32>
    %847 = arith.mulf %719, %719 : vector<8x256xf32>
    %cst_98 = arith.constant dense<0.000000e+00> : vector<8xf32>
    %848 = vector.multi_reduction <add>, %847, %cst_98 [1] : vector<8x256xf32> to vector<8xf32>
    %849 = vector.shape_cast %848 : vector<8xf32> to vector<8x1xf32>
    %cst_99 = arith.constant dense<0.000000e+00> : vector<1xf32>
    %850 = vector.multi_reduction <add>, %849, %cst_99 [0] : vector<8x1xf32> to vector<1xf32>
    %851 = vector.shape_cast %850 : vector<1xf32> to vector<1x1xf32>
    %cst_100 = arith.constant 2.048000e+03 : f32
    %852 = arith.mulf %837, %cst_100 : f32
    %853 = vector.broadcast %852 : f32 to vector<1x1xf32>
    %854 = arith.addf %846, %853 : vector<1x1xf32>
    %cst_101 = arith.constant 2.000000e+00 : f32
    %855 = arith.mulf %cst_101, %837 : f32
    %856 = vector.broadcast %855 : f32 to vector<1x1xf32>
    %857 = arith.mulf %856, %846 : vector<1x1xf32>
    %858 = arith.addf %851, %857 : vector<1x1xf32>
    %859 = arith.mulf %837, %837 : f32
    %cst_102 = arith.constant 2.048000e+03 : f32
    %860 = arith.mulf %859, %cst_102 : f32
    %861 = vector.broadcast %860 : f32 to vector<1x1xf32>
    %862 = arith.addf %858, %861 : vector<1x1xf32>
    %c3_i32 = arith.constant 3 : i32
    %863 = vector.broadcast %c3_i32 : i32 to vector<4x2xi32>
    %864 = arith.cmpi eq, %720, %863 : vector<4x2xi32>
    %c0_i32_103 = arith.constant 0 : i32
    %865 = vector.broadcast %c0_i32_103 : i32 to vector<4x2xi32>
    %866 = arith.cmpi eq, %721, %865 : vector<4x2xi32>
    %867 = vector.shape_cast %854 : vector<1x1xf32> to vector<1x1xf32>
    %868 = vector.broadcast %867 : vector<1x1xf32> to vector<4x2xf32>
    %869 = vector.shape_cast %862 : vector<1x1xf32> to vector<1x1xf32>
    %870 = vector.broadcast %869 : vector<1x1xf32> to vector<4x2xf32>
    %871 = arith.select %866, %868, %870 : vector<4x2xi1>, vector<4x2xf32>
    %cst_104 = arith.constant 0.000000e+00 : f32
    %872 = vector.broadcast %cst_104 : f32 to vector<4x2xf32>
    %873 = arith.select %864, %871, %872 : vector<4x2xi1>, vector<4x2xf32>
    %874 = arith.addf %836, %873 : vector<4x2xf32>
    %c0_105 = arith.constant 0 : index
    %c0_106 = arith.constant 0 : index
    %c0_107 = arith.constant 0 : index
    %875 = vector.load %arg7[%c0_105, %c0_106, %c0_107] : memref<1x4x2xf32, #tpu.memory_space<vmem>>, vector<1x4x2xf32>
    %876 = vector.shape_cast %875 : vector<1x4x2xf32> to vector<4x2xf32>
    %877 = arith.addf %876, %874 : vector<4x2xf32>
    %c0_108 = arith.constant 0 : index
    %c0_109 = arith.constant 0 : index
    %c0_110 = arith.constant 0 : index
    %878 = vector.load %arg7[%c0_108, %c0_109, %c0_110] : memref<1x4x2xf32, #tpu.memory_space<vmem>>, vector<1x4x2xf32>
    %879 = vector.shape_cast %878 : vector<1x4x2xf32> to vector<4x2xf32>
    %880 = vector.shape_cast %877 : vector<4x2xf32> to vector<1x4x2xf32>
    tpu.vector_store %arg7[%c0_108, %c0_109, %c0_110], %880 {strides = array<i32>} : memref<1x4x2xf32, #tpu.memory_space<vmem>>, vector<1x4x2xf32>,
    return
  }
  func.func @transform_0(%arg0: i32, %arg1: i32) -> (i32, i32, i32, i32) {
    %c0_i32 = arith.constant 0 : i32
    %c0_i32_0 = arith.constant 0 : i32
    %c0_i32_1 = arith.constant 0 : i32
    return %arg0, %c0_i32, %arg1, %c0_i32_0 : i32, i32, i32, i32
  }
  func.func @transform_1(%arg0: i32, %arg1: i32) -> (i32, i32) {
    %c0_i32 = arith.constant 0 : i32
    %c0_i32_0 = arith.constant 0 : i32
    %c0_i32_1 = arith.constant 0 : i32
    return %c0_i32, %c0_i32_0 : i32, i32
  }
  func.func @transform_2(%arg0: i32, %arg1: i32) -> i32 {
    %c0_i32 = arith.constant 0 : i32
    %c0_i32_0 = arith.constant 0 : i32
    return %c0_i32 : i32
  }
  func.func @transform_3(%arg0: i32, %arg1: i32) -> i32 {
    %c0_i32 = arith.constant 0 : i32
    %c0_i32_0 = arith.constant 0 : i32
    return %c0_i32 : i32
  }
  func.func @transform_4(%arg0: i32, %arg1: i32) -> (i32, i32, i32, i32) {
    %c0_i32 = arith.constant 0 : i32
    %c0_i32_0 = arith.constant 0 : i32
    %c0_i32_1 = arith.constant 0 : i32
    return %arg0, %c0_i32, %arg1, %c0_i32_0 : i32, i32, i32, i32
  }
  func.func @transform_5(%arg0: i32, %arg1: i32) -> (i32, i32, i32) {
    %c0_i32 = arith.constant 0 : i32
    %c0_i32_0 = arith.constant 0 : i32
    %c0_i32_1 = arith.constant 0 : i32
    return %arg0, %c0_i32, %c0_i32_0 : i32, i32, i32
  }
}

module attributes {stable_mosaic.version = 11 : i64} {
  func.func @_bn2_residual_kernel(%arg0: i32, %arg1: i32, %arg2: memref<1x4x8x256xf32, #tpu.memory_space<vmem>>, %arg3: memref<1x4x8x256xf32, #tpu.memory_space<vmem>>, %arg4: memref<4xf32, #tpu.memory_space<smem>>, %arg5: memref<4xf32, #tpu.memory_space<smem>>, %arg6: memref<1x4x8x256xf32, #tpu.memory_space<vmem>>) attributes {dimension_semantics = [#tpu.dimension_semantics<parallel>, #tpu.dimension_semantics<parallel>], iteration_bounds = array<i64: 2, 1>, scalar_prefetch = 0 : i64, scratch_operands = 0 : i64, tpu.core_type = #tpu.core_type<tc>, window_params = [{transform_indices = @transform_0, window_bounds = array<i64: 1, 4, 8, 256>}, {transform_indices = @transform_1, window_bounds = array<i64: 1, 4, 8, 256>}, {transform_indices = @transform_2, window_bounds = array<i64: 4>}, {transform_indices = @transform_3, window_bounds = array<i64: 4>}, {transform_indices = @transform_4, window_bounds = array<i64: 1, 4, 8, 256>}]} {
    %c0 = arith.constant 0 : index
    %c0_0 = arith.constant 0 : index
    %c0_1 = arith.constant 0 : index
    %c0_2 = arith.constant 0 : index
    %0 = vector.load %arg2[%c0, %c0_0, %c0_1, %c0_2] : memref<1x4x8x256xf32, #tpu.memory_space<vmem>>, vector<1x1x8x256xf32>
    %1 = vector.shape_cast %0 : vector<1x1x8x256xf32> to vector<8x256xf32>
    %c0_3 = arith.constant 0 : index
    %2 = memref.load %arg4[%c0_3] : memref<4xf32, #tpu.memory_space<smem>>
    %3 = vector.broadcast %2 : f32 to vector<8x256xf32>
    %4 = arith.mulf %1, %3 : vector<8x256xf32>
    %c0_4 = arith.constant 0 : index
    %5 = memref.load %arg5[%c0_4] : memref<4xf32, #tpu.memory_space<smem>>
    %6 = vector.broadcast %5 : f32 to vector<8x256xf32>
    %7 = arith.addf %4, %6 : vector<8x256xf32>
    %c0_5 = arith.constant 0 : index
    %c0_6 = arith.constant 0 : index
    %c0_7 = arith.constant 0 : index
    %c0_8 = arith.constant 0 : index
    %8 = vector.load %arg3[%c0_5, %c0_6, %c0_7, %c0_8] : memref<1x4x8x256xf32, #tpu.memory_space<vmem>>, vector<1x1x8x256xf32>
    %9 = vector.shape_cast %8 : vector<1x1x8x256xf32> to vector<8x256xf32>
    %10 = arith.addf %7, %9 : vector<8x256xf32>
    %c0_9 = arith.constant 0 : index
    %c0_10 = arith.constant 0 : index
    %c0_11 = arith.constant 0 : index
    %c0_12 = arith.constant 0 : index
    %11 = vector.load %arg6[%c0_9, %c0_10, %c0_11, %c0_12] : memref<1x4x8x256xf32, #tpu.memory_space<vmem>>, vector<1x1x8x256xf32>
    %12 = vector.shape_cast %11 : vector<1x1x8x256xf32> to vector<8x256xf32>
    %13 = vector.shape_cast %10 : vector<8x256xf32> to vector<1x1x8x256xf32>
    tpu.vector_store %arg6[%c0_9, %c0_10, %c0_11, %c0_12], %13 {strides = array<i32>} : memref<1x4x8x256xf32, #tpu.memory_space<vmem>>, vector<1x1x8x256xf32>,
    %c0_13 = arith.constant 0 : index
    %c1 = arith.constant 1 : index
    %c0_14 = arith.constant 0 : index
    %c0_15 = arith.constant 0 : index
    %14 = vector.load %arg2[%c0_13, %c1, %c0_14, %c0_15] : memref<1x4x8x256xf32, #tpu.memory_space<vmem>>, vector<1x1x8x256xf32>
    %15 = vector.shape_cast %14 : vector<1x1x8x256xf32> to vector<8x256xf32>
    %c1_16 = arith.constant 1 : index
    %16 = memref.load %arg4[%c1_16] : memref<4xf32, #tpu.memory_space<smem>>
    %17 = vector.broadcast %16 : f32 to vector<8x256xf32>
    %18 = arith.mulf %15, %17 : vector<8x256xf32>
    %c1_17 = arith.constant 1 : index
    %19 = memref.load %arg5[%c1_17] : memref<4xf32, #tpu.memory_space<smem>>
    %20 = vector.broadcast %19 : f32 to vector<8x256xf32>
    %21 = arith.addf %18, %20 : vector<8x256xf32>
    %c0_18 = arith.constant 0 : index
    %c1_19 = arith.constant 1 : index
    %c0_20 = arith.constant 0 : index
    %c0_21 = arith.constant 0 : index
    %22 = vector.load %arg3[%c0_18, %c1_19, %c0_20, %c0_21] : memref<1x4x8x256xf32, #tpu.memory_space<vmem>>, vector<1x1x8x256xf32>
    %23 = vector.shape_cast %22 : vector<1x1x8x256xf32> to vector<8x256xf32>
    %24 = arith.addf %21, %23 : vector<8x256xf32>
    %c0_22 = arith.constant 0 : index
    %c1_23 = arith.constant 1 : index
    %c0_24 = arith.constant 0 : index
    %c0_25 = arith.constant 0 : index
    %25 = vector.load %arg6[%c0_22, %c1_23, %c0_24, %c0_25] : memref<1x4x8x256xf32, #tpu.memory_space<vmem>>, vector<1x1x8x256xf32>
    %26 = vector.shape_cast %25 : vector<1x1x8x256xf32> to vector<8x256xf32>
    %27 = vector.shape_cast %24 : vector<8x256xf32> to vector<1x1x8x256xf32>
    tpu.vector_store %arg6[%c0_22, %c1_23, %c0_24, %c0_25], %27 {strides = array<i32>} : memref<1x4x8x256xf32, #tpu.memory_space<vmem>>, vector<1x1x8x256xf32>,
    %c0_26 = arith.constant 0 : index
    %c2 = arith.constant 2 : index
    %c0_27 = arith.constant 0 : index
    %c0_28 = arith.constant 0 : index
    %28 = vector.load %arg2[%c0_26, %c2, %c0_27, %c0_28] : memref<1x4x8x256xf32, #tpu.memory_space<vmem>>, vector<1x1x8x256xf32>
    %29 = vector.shape_cast %28 : vector<1x1x8x256xf32> to vector<8x256xf32>
    %c2_29 = arith.constant 2 : index
    %30 = memref.load %arg4[%c2_29] : memref<4xf32, #tpu.memory_space<smem>>
    %31 = vector.broadcast %30 : f32 to vector<8x256xf32>
    %32 = arith.mulf %29, %31 : vector<8x256xf32>
    %c2_30 = arith.constant 2 : index
    %33 = memref.load %arg5[%c2_30] : memref<4xf32, #tpu.memory_space<smem>>
    %34 = vector.broadcast %33 : f32 to vector<8x256xf32>
    %35 = arith.addf %32, %34 : vector<8x256xf32>
    %c0_31 = arith.constant 0 : index
    %c2_32 = arith.constant 2 : index
    %c0_33 = arith.constant 0 : index
    %c0_34 = arith.constant 0 : index
    %36 = vector.load %arg3[%c0_31, %c2_32, %c0_33, %c0_34] : memref<1x4x8x256xf32, #tpu.memory_space<vmem>>, vector<1x1x8x256xf32>
    %37 = vector.shape_cast %36 : vector<1x1x8x256xf32> to vector<8x256xf32>
    %38 = arith.addf %35, %37 : vector<8x256xf32>
    %c0_35 = arith.constant 0 : index
    %c2_36 = arith.constant 2 : index
    %c0_37 = arith.constant 0 : index
    %c0_38 = arith.constant 0 : index
    %39 = vector.load %arg6[%c0_35, %c2_36, %c0_37, %c0_38] : memref<1x4x8x256xf32, #tpu.memory_space<vmem>>, vector<1x1x8x256xf32>
    %40 = vector.shape_cast %39 : vector<1x1x8x256xf32> to vector<8x256xf32>
    %41 = vector.shape_cast %38 : vector<8x256xf32> to vector<1x1x8x256xf32>
    tpu.vector_store %arg6[%c0_35, %c2_36, %c0_37, %c0_38], %41 {strides = array<i32>} : memref<1x4x8x256xf32, #tpu.memory_space<vmem>>, vector<1x1x8x256xf32>,
    %c0_39 = arith.constant 0 : index
    %c3 = arith.constant 3 : index
    %c0_40 = arith.constant 0 : index
    %c0_41 = arith.constant 0 : index
    %42 = vector.load %arg2[%c0_39, %c3, %c0_40, %c0_41] : memref<1x4x8x256xf32, #tpu.memory_space<vmem>>, vector<1x1x8x256xf32>
    %43 = vector.shape_cast %42 : vector<1x1x8x256xf32> to vector<8x256xf32>
    %c3_42 = arith.constant 3 : index
    %44 = memref.load %arg4[%c3_42] : memref<4xf32, #tpu.memory_space<smem>>
    %45 = vector.broadcast %44 : f32 to vector<8x256xf32>
    %46 = arith.mulf %43, %45 : vector<8x256xf32>
    %c3_43 = arith.constant 3 : index
    %47 = memref.load %arg5[%c3_43] : memref<4xf32, #tpu.memory_space<smem>>
    %48 = vector.broadcast %47 : f32 to vector<8x256xf32>
    %49 = arith.addf %46, %48 : vector<8x256xf32>
    %c0_44 = arith.constant 0 : index
    %c3_45 = arith.constant 3 : index
    %c0_46 = arith.constant 0 : index
    %c0_47 = arith.constant 0 : index
    %50 = vector.load %arg3[%c0_44, %c3_45, %c0_46, %c0_47] : memref<1x4x8x256xf32, #tpu.memory_space<vmem>>, vector<1x1x8x256xf32>
    %51 = vector.shape_cast %50 : vector<1x1x8x256xf32> to vector<8x256xf32>
    %52 = arith.addf %49, %51 : vector<8x256xf32>
    %c0_48 = arith.constant 0 : index
    %c3_49 = arith.constant 3 : index
    %c0_50 = arith.constant 0 : index
    %c0_51 = arith.constant 0 : index
    %53 = vector.load %arg6[%c0_48, %c3_49, %c0_50, %c0_51] : memref<1x4x8x256xf32, #tpu.memory_space<vmem>>, vector<1x1x8x256xf32>
    %54 = vector.shape_cast %53 : vector<1x1x8x256xf32> to vector<8x256xf32>
    %55 = vector.shape_cast %52 : vector<8x256xf32> to vector<1x1x8x256xf32>
    tpu.vector_store %arg6[%c0_48, %c3_49, %c0_50, %c0_51], %55 {strides = array<i32>} : memref<1x4x8x256xf32, #tpu.memory_space<vmem>>, vector<1x1x8x256xf32>,
    return
  }
  func.func @transform_0(%arg0: i32, %arg1: i32) -> (i32, i32, i32, i32) {
    %c0_i32 = arith.constant 0 : i32
    %c0_i32_0 = arith.constant 0 : i32
    %c0_i32_1 = arith.constant 0 : i32
    return %arg0, %c0_i32, %arg1, %c0_i32_0 : i32, i32, i32, i32
  }
  func.func @transform_1(%arg0: i32, %arg1: i32) -> (i32, i32, i32, i32) {
    %c0_i32 = arith.constant 0 : i32
    %c0_i32_0 = arith.constant 0 : i32
    %c0_i32_1 = arith.constant 0 : i32
    return %arg0, %c0_i32, %arg1, %c0_i32_0 : i32, i32, i32, i32
  }
  func.func @transform_2(%arg0: i32, %arg1: i32) -> i32 {
    %c0_i32 = arith.constant 0 : i32
    %c0_i32_0 = arith.constant 0 : i32
    return %c0_i32 : i32
  }
  func.func @transform_3(%arg0: i32, %arg1: i32) -> i32 {
    %c0_i32 = arith.constant 0 : i32
    %c0_i32_0 = arith.constant 0 : i32
    return %c0_i32 : i32
  }
  func.func @transform_4(%arg0: i32, %arg1: i32) -> (i32, i32, i32, i32) {
    %c0_i32 = arith.constant 0 : i32
    %c0_i32_0 = arith.constant 0 : i32
    %c0_i32_1 = arith.constant 0 : i32
    return %arg0, %c0_i32, %arg1, %c0_i32_0 : i32, i32, i32, i32
  }
}

module attributes {stable_mosaic.version = 11 : i64} {
  func.func @_bn1_act_conv2_stats_kernel(%arg0: i32, %arg1: i32, %arg2: memref<1x4x8x256xf32, #tpu.memory_space<vmem>>, %arg3: memref<8x256xf32, #tpu.memory_space<vmem>>, %arg4: memref<144xf32, #tpu.memory_space<smem>>, %arg5: memref<4xf32, #tpu.memory_space<smem>>, %arg6: memref<4xf32, #tpu.memory_space<smem>>, %arg7: memref<4xf32, #tpu.memory_space<smem>>, %arg8: memref<1x4x8x256xf32, #tpu.memory_space<vmem>>, %arg9: memref<1x4x2xf32, #tpu.memory_space<vmem>>) attributes {dimension_semantics = [#tpu.dimension_semantics<parallel>, #tpu.dimension_semantics<arbitrary>], iteration_bounds = array<i64: 2, 1>, scalar_prefetch = 0 : i64, scratch_operands = 0 : i64, tpu.core_type = #tpu.core_type<tc>, window_params = [{transform_indices = @transform_0, window_bounds = array<i64: 1, 4, 8, 256>}, {pipeline_mode = #tpu.pipeline_mode<synchronous>, transform_indices = @transform_1, window_bounds = array<i64: 8, 256>}, {transform_indices = @transform_2, window_bounds = array<i64: 144>}, {transform_indices = @transform_3, window_bounds = array<i64: 4>}, {transform_indices = @transform_4, window_bounds = array<i64: 4>}, {transform_indices = @transform_5, window_bounds = array<i64: 4>}, {transform_indices = @transform_6, window_bounds = array<i64: 1, 4, 8, 256>}, {transform_indices = @transform_7, window_bounds = array<i64: 1, 4, 2>}]} {
    %c0 = arith.constant 0 : index
    %c0_0 = arith.constant 0 : index
    %0 = vector.load %arg3[%c0, %c0_0] : memref<8x256xf32, #tpu.memory_space<vmem>>, vector<8x256xf32>
    %c0_i32 = arith.constant 0 : i32
    %1 = arith.cmpi eq, %arg1, %c0_i32 : i32
    %2 = arith.extui %1 : i1 to i32
    %c0_i32_1 = arith.constant 0 : i32
    %3 = arith.cmpi ne, %2, %c0_i32_1 : i32
    scf.if %3 {
      %cst_127 = arith.constant 0.000000e+00 : f32
      %925 = vector.broadcast %cst_127 : f32 to vector<1x4x2xf32>
      %c0_128 = arith.constant 0 : index
      %c0_129 = arith.constant 0 : index
      %c0_130 = arith.constant 0 : index
      %926 = vector.load %arg9[%c0_128, %c0_129, %c0_130] : memref<1x4x2xf32, #tpu.memory_space<vmem>>, vector<1x4x2xf32>
      tpu.vector_store %arg9[%c0_128, %c0_129, %c0_130], %925 {strides = array<i32>} : memref<1x4x2xf32, #tpu.memory_space<vmem>>, vector<1x4x2xf32>,
    } else {
    }
    %cst = arith.constant 0.000000e+00 : f32
    %4 = vector.broadcast %cst : f32 to vector<8x256xf32>
    %cst_2 = arith.constant 0.000000e+00 : f32
    %5 = vector.broadcast %cst_2 : f32 to vector<8x256xf32>
    %cst_3 = arith.constant 0.000000e+00 : f32
    %6 = vector.broadcast %cst_3 : f32 to vector<8x256xf32>
    %cst_4 = arith.constant 0.000000e+00 : f32
    %7 = vector.broadcast %cst_4 : f32 to vector<8x256xf32>
    %c0_5 = arith.constant 0 : index
    %c0_6 = arith.constant 0 : index
    %c0_7 = arith.constant 0 : index
    %c0_8 = arith.constant 0 : index
    %8 = vector.load %arg2[%c0_5, %c0_6, %c0_7, %c0_8] : memref<1x4x8x256xf32, #tpu.memory_space<vmem>>, vector<1x1x8x256xf32>
    %9 = vector.shape_cast %8 : vector<1x1x8x256xf32> to vector<8x256xf32>
    %c0_9 = arith.constant 0 : index
    %10 = memref.load %arg6[%c0_9] : memref<4xf32, #tpu.memory_space<smem>>
    %11 = vector.broadcast %10 : f32 to vector<8x256xf32>
    %12 = arith.mulf %9, %11 : vector<8x256xf32>
    %c0_10 = arith.constant 0 : index
    %13 = memref.load %arg7[%c0_10] : memref<4xf32, #tpu.memory_space<smem>>
    %14 = vector.broadcast %13 : f32 to vector<8x256xf32>
    %15 = arith.addf %12, %14 : vector<8x256xf32>
    %cst_11 = arith.constant 0.000000e+00 : f32
    %16 = vector.broadcast %cst_11 : f32 to vector<8x256xf32>
    %17 = arith.cmpf oge, %15, %16 : vector<8x256xf32>
    %cst_12 = arith.constant 2.000000e-01 : f32
    %18 = vector.broadcast %cst_12 : f32 to vector<8x256xf32>
    %19 = arith.mulf %18, %15 : vector<8x256xf32>
    %20 = arith.select %17, %15, %19 : vector<8x256xi1>, vector<8x256xf32>
    %c4 = arith.constant 4 : index
    %21 = memref.load %arg4[%c4] : memref<144xf32, #tpu.memory_space<smem>>
    %22 = vector.broadcast %21 : f32 to vector<8x256xf32>
    %23 = arith.mulf %22, %20 : vector<8x256xf32>
    %24 = arith.addf %4, %23 : vector<8x256xf32>
    %c40 = arith.constant 40 : index
    %25 = memref.load %arg4[%c40] : memref<144xf32, #tpu.memory_space<smem>>
    %26 = vector.broadcast %25 : f32 to vector<8x256xf32>
    %27 = arith.mulf %26, %20 : vector<8x256xf32>
    %28 = arith.addf %5, %27 : vector<8x256xf32>
    %c76 = arith.constant 76 : index
    %29 = memref.load %arg4[%c76] : memref<144xf32, #tpu.memory_space<smem>>
    %30 = vector.broadcast %29 : f32 to vector<8x256xf32>
    %31 = arith.mulf %30, %20 : vector<8x256xf32>
    %32 = arith.addf %6, %31 : vector<8x256xf32>
    %c112 = arith.constant 112 : index
    %33 = memref.load %arg4[%c112] : memref<144xf32, #tpu.memory_space<smem>>
    %34 = vector.broadcast %33 : f32 to vector<8x256xf32>
    %35 = arith.mulf %34, %20 : vector<8x256xf32>
    %36 = arith.addf %7, %35 : vector<8x256xf32>
    %c17_i32 = arith.constant 17 : i32
    %37 = tpu.dynamic_rotate %20 by %c17_i32 dim 1 : vector<8x256xf32>, i32 -> vector<8x256xf32>
    %38 = vector.extract_strided_slice %0 {offsets = [0, 0], sizes = [1, 256], strides = [1, 1]} : vector<8x256xf32> to vector<1x256xf32>
    %39 = vector.broadcast %38 : vector<1x256xf32> to vector<8x256xf32>
    %40 = arith.mulf %37, %39 : vector<8x256xf32>
    %c0_13 = arith.constant 0 : index
    %41 = memref.load %arg4[%c0_13] : memref<144xf32, #tpu.memory_space<smem>>
    %42 = vector.broadcast %41 : f32 to vector<8x256xf32>
    %43 = arith.mulf %42, %40 : vector<8x256xf32>
    %44 = arith.addf %24, %43 : vector<8x256xf32>
    %c36 = arith.constant 36 : index
    %45 = memref.load %arg4[%c36] : memref<144xf32, #tpu.memory_space<smem>>
    %46 = vector.broadcast %45 : f32 to vector<8x256xf32>
    %47 = arith.mulf %46, %40 : vector<8x256xf32>
    %48 = arith.addf %28, %47 : vector<8x256xf32>
    %c72 = arith.constant 72 : index
    %49 = memref.load %arg4[%c72] : memref<144xf32, #tpu.memory_space<smem>>
    %50 = vector.broadcast %49 : f32 to vector<8x256xf32>
    %51 = arith.mulf %50, %40 : vector<8x256xf32>
    %52 = arith.addf %32, %51 : vector<8x256xf32>
    %c108 = arith.constant 108 : index
    %53 = memref.load %arg4[%c108] : memref<144xf32, #tpu.memory_space<smem>>
    %54 = vector.broadcast %53 : f32 to vector<8x256xf32>
    %55 = arith.mulf %54, %40 : vector<8x256xf32>
    %56 = arith.addf %36, %55 : vector<8x256xf32>
    %c16_i32 = arith.constant 16 : i32
    %57 = tpu.dynamic_rotate %20 by %c16_i32 dim 1 : vector<8x256xf32>, i32 -> vector<8x256xf32>
    %58 = vector.extract_strided_slice %0 {offsets = [1, 0], sizes = [1, 256], strides = [1, 1]} : vector<8x256xf32> to vector<1x256xf32>
    %59 = vector.broadcast %58 : vector<1x256xf32> to vector<8x256xf32>
    %60 = arith.mulf %57, %59 : vector<8x256xf32>
    %c1 = arith.constant 1 : index
    %61 = memref.load %arg4[%c1] : memref<144xf32, #tpu.memory_space<smem>>
    %62 = vector.broadcast %61 : f32 to vector<8x256xf32>
    %63 = arith.mulf %62, %60 : vector<8x256xf32>
    %64 = arith.addf %44, %63 : vector<8x256xf32>
    %c37 = arith.constant 37 : index
    %65 = memref.load %arg4[%c37] : memref<144xf32, #tpu.memory_space<smem>>
    %66 = vector.broadcast %65 : f32 to vector<8x256xf32>
    %67 = arith.mulf %66, %60 : vector<8x256xf32>
    %68 = arith.addf %48, %67 : vector<8x256xf32>
    %c73 = arith.constant 73 : index
    %69 = memref.load %arg4[%c73] : memref<144xf32, #tpu.memory_space<smem>>
    %70 = vector.broadcast %69 : f32 to vector<8x256xf32>
    %71 = arith.mulf %70, %60 : vector<8x256xf32>
    %72 = arith.addf %52, %71 : vector<8x256xf32>
    %c109 = arith.constant 109 : index
    %73 = memref.load %arg4[%c109] : memref<144xf32, #tpu.memory_space<smem>>
    %74 = vector.broadcast %73 : f32 to vector<8x256xf32>
    %75 = arith.mulf %74, %60 : vector<8x256xf32>
    %76 = arith.addf %56, %75 : vector<8x256xf32>
    %c15_i32 = arith.constant 15 : i32
    %77 = tpu.dynamic_rotate %20 by %c15_i32 dim 1 : vector<8x256xf32>, i32 -> vector<8x256xf32>
    %78 = vector.extract_strided_slice %0 {offsets = [2, 0], sizes = [1, 256], strides = [1, 1]} : vector<8x256xf32> to vector<1x256xf32>
    %79 = vector.broadcast %78 : vector<1x256xf32> to vector<8x256xf32>
    %80 = arith.mulf %77, %79 : vector<8x256xf32>
    %c2 = arith.constant 2 : index
    %81 = memref.load %arg4[%c2] : memref<144xf32, #tpu.memory_space<smem>>
    %82 = vector.broadcast %81 : f32 to vector<8x256xf32>
    %83 = arith.mulf %82, %80 : vector<8x256xf32>
    %84 = arith.addf %64, %83 : vector<8x256xf32>
    %c38 = arith.constant 38 : index
    %85 = memref.load %arg4[%c38] : memref<144xf32, #tpu.memory_space<smem>>
    %86 = vector.broadcast %85 : f32 to vector<8x256xf32>
    %87 = arith.mulf %86, %80 : vector<8x256xf32>
    %88 = arith.addf %68, %87 : vector<8x256xf32>
    %c74 = arith.constant 74 : index
    %89 = memref.load %arg4[%c74] : memref<144xf32, #tpu.memory_space<smem>>
    %90 = vector.broadcast %89 : f32 to vector<8x256xf32>
    %91 = arith.mulf %90, %80 : vector<8x256xf32>
    %92 = arith.addf %72, %91 : vector<8x256xf32>
    %c110 = arith.constant 110 : index
    %93 = memref.load %arg4[%c110] : memref<144xf32, #tpu.memory_space<smem>>
    %94 = vector.broadcast %93 : f32 to vector<8x256xf32>
    %95 = arith.mulf %94, %80 : vector<8x256xf32>
    %96 = arith.addf %76, %95 : vector<8x256xf32>
    %c1_i32 = arith.constant 1 : i32
    %97 = tpu.dynamic_rotate %20 by %c1_i32 dim 1 : vector<8x256xf32>, i32 -> vector<8x256xf32>
    %98 = vector.extract_strided_slice %0 {offsets = [3, 0], sizes = [1, 256], strides = [1, 1]} : vector<8x256xf32> to vector<1x256xf32>
    %99 = vector.broadcast %98 : vector<1x256xf32> to vector<8x256xf32>
    %100 = arith.mulf %97, %99 : vector<8x256xf32>
    %c3 = arith.constant 3 : index
    %101 = memref.load %arg4[%c3] : memref<144xf32, #tpu.memory_space<smem>>
    %102 = vector.broadcast %101 : f32 to vector<8x256xf32>
    %103 = arith.mulf %102, %100 : vector<8x256xf32>
    %104 = arith.addf %84, %103 : vector<8x256xf32>
    %c39 = arith.constant 39 : index
    %105 = memref.load %arg4[%c39] : memref<144xf32, #tpu.memory_space<smem>>
    %106 = vector.broadcast %105 : f32 to vector<8x256xf32>
    %107 = arith.mulf %106, %100 : vector<8x256xf32>
    %108 = arith.addf %88, %107 : vector<8x256xf32>
    %c75 = arith.constant 75 : index
    %109 = memref.load %arg4[%c75] : memref<144xf32, #tpu.memory_space<smem>>
    %110 = vector.broadcast %109 : f32 to vector<8x256xf32>
    %111 = arith.mulf %110, %100 : vector<8x256xf32>
    %112 = arith.addf %92, %111 : vector<8x256xf32>
    %c111 = arith.constant 111 : index
    %113 = memref.load %arg4[%c111] : memref<144xf32, #tpu.memory_space<smem>>
    %114 = vector.broadcast %113 : f32 to vector<8x256xf32>
    %115 = arith.mulf %114, %100 : vector<8x256xf32>
    %116 = arith.addf %96, %115 : vector<8x256xf32>
    %c255_i32 = arith.constant 255 : i32
    %117 = tpu.dynamic_rotate %20 by %c255_i32 dim 1 : vector<8x256xf32>, i32 -> vector<8x256xf32>
    %118 = vector.extract_strided_slice %0 {offsets = [4, 0], sizes = [1, 256], strides = [1, 1]} : vector<8x256xf32> to vector<1x256xf32>
    %119 = vector.broadcast %118 : vector<1x256xf32> to vector<8x256xf32>
    %120 = arith.mulf %117, %119 : vector<8x256xf32>
    %c5 = arith.constant 5 : index
    %121 = memref.load %arg4[%c5] : memref<144xf32, #tpu.memory_space<smem>>
    %122 = vector.broadcast %121 : f32 to vector<8x256xf32>
    %123 = arith.mulf %122, %120 : vector<8x256xf32>
    %124 = arith.addf %104, %123 : vector<8x256xf32>
    %c41 = arith.constant 41 : index
    %125 = memref.load %arg4[%c41] : memref<144xf32, #tpu.memory_space<smem>>
    %126 = vector.broadcast %125 : f32 to vector<8x256xf32>
    %127 = arith.mulf %126, %120 : vector<8x256xf32>
    %128 = arith.addf %108, %127 : vector<8x256xf32>
    %c77 = arith.constant 77 : index
    %129 = memref.load %arg4[%c77] : memref<144xf32, #tpu.memory_space<smem>>
    %130 = vector.broadcast %129 : f32 to vector<8x256xf32>
    %131 = arith.mulf %130, %120 : vector<8x256xf32>
    %132 = arith.addf %112, %131 : vector<8x256xf32>
    %c113 = arith.constant 113 : index
    %133 = memref.load %arg4[%c113] : memref<144xf32, #tpu.memory_space<smem>>
    %134 = vector.broadcast %133 : f32 to vector<8x256xf32>
    %135 = arith.mulf %134, %120 : vector<8x256xf32>
    %136 = arith.addf %116, %135 : vector<8x256xf32>
    %c241_i32 = arith.constant 241 : i32
    %137 = tpu.dynamic_rotate %20 by %c241_i32 dim 1 : vector<8x256xf32>, i32 -> vector<8x256xf32>
    %138 = vector.extract_strided_slice %0 {offsets = [5, 0], sizes = [1, 256], strides = [1, 1]} : vector<8x256xf32> to vector<1x256xf32>
    %139 = vector.broadcast %138 : vector<1x256xf32> to vector<8x256xf32>
    %140 = arith.mulf %137, %139 : vector<8x256xf32>
    %c6 = arith.constant 6 : index
    %141 = memref.load %arg4[%c6] : memref<144xf32, #tpu.memory_space<smem>>
    %142 = vector.broadcast %141 : f32 to vector<8x256xf32>
    %143 = arith.mulf %142, %140 : vector<8x256xf32>
    %144 = arith.addf %124, %143 : vector<8x256xf32>
    %c42 = arith.constant 42 : index
    %145 = memref.load %arg4[%c42] : memref<144xf32, #tpu.memory_space<smem>>
    %146 = vector.broadcast %145 : f32 to vector<8x256xf32>
    %147 = arith.mulf %146, %140 : vector<8x256xf32>
    %148 = arith.addf %128, %147 : vector<8x256xf32>
    %c78 = arith.constant 78 : index
    %149 = memref.load %arg4[%c78] : memref<144xf32, #tpu.memory_space<smem>>
    %150 = vector.broadcast %149 : f32 to vector<8x256xf32>
    %151 = arith.mulf %150, %140 : vector<8x256xf32>
    %152 = arith.addf %132, %151 : vector<8x256xf32>
    %c114 = arith.constant 114 : index
    %153 = memref.load %arg4[%c114] : memref<144xf32, #tpu.memory_space<smem>>
    %154 = vector.broadcast %153 : f32 to vector<8x256xf32>
    %155 = arith.mulf %154, %140 : vector<8x256xf32>
    %156 = arith.addf %136, %155 : vector<8x256xf32>
    %c240_i32 = arith.constant 240 : i32
    %157 = tpu.dynamic_rotate %20 by %c240_i32 dim 1 : vector<8x256xf32>, i32 -> vector<8x256xf32>
    %158 = vector.extract_strided_slice %0 {offsets = [6, 0], sizes = [1, 256], strides = [1, 1]} : vector<8x256xf32> to vector<1x256xf32>
    %159 = vector.broadcast %158 : vector<1x256xf32> to vector<8x256xf32>
    %160 = arith.mulf %157, %159 : vector<8x256xf32>
    %c7 = arith.constant 7 : index
    %161 = memref.load %arg4[%c7] : memref<144xf32, #tpu.memory_space<smem>>
    %162 = vector.broadcast %161 : f32 to vector<8x256xf32>
    %163 = arith.mulf %162, %160 : vector<8x256xf32>
    %164 = arith.addf %144, %163 : vector<8x256xf32>
    %c43 = arith.constant 43 : index
    %165 = memref.load %arg4[%c43] : memref<144xf32, #tpu.memory_space<smem>>
    %166 = vector.broadcast %165 : f32 to vector<8x256xf32>
    %167 = arith.mulf %166, %160 : vector<8x256xf32>
    %168 = arith.addf %148, %167 : vector<8x256xf32>
    %c79 = arith.constant 79 : index
    %169 = memref.load %arg4[%c79] : memref<144xf32, #tpu.memory_space<smem>>
    %170 = vector.broadcast %169 : f32 to vector<8x256xf32>
    %171 = arith.mulf %170, %160 : vector<8x256xf32>
    %172 = arith.addf %152, %171 : vector<8x256xf32>
    %c115 = arith.constant 115 : index
    %173 = memref.load %arg4[%c115] : memref<144xf32, #tpu.memory_space<smem>>
    %174 = vector.broadcast %173 : f32 to vector<8x256xf32>
    %175 = arith.mulf %174, %160 : vector<8x256xf32>
    %176 = arith.addf %156, %175 : vector<8x256xf32>
    %c239_i32 = arith.constant 239 : i32
    %177 = tpu.dynamic_rotate %20 by %c239_i32 dim 1 : vector<8x256xf32>, i32 -> vector<8x256xf32>
    %178 = vector.extract_strided_slice %0 {offsets = [7, 0], sizes = [1, 256], strides = [1, 1]} : vector<8x256xf32> to vector<1x256xf32>
    %179 = vector.broadcast %178 : vector<1x256xf32> to vector<8x256xf32>
    %180 = arith.mulf %177, %179 : vector<8x256xf32>
    %c8 = arith.constant 8 : index
    %181 = memref.load %arg4[%c8] : memref<144xf32, #tpu.memory_space<smem>>
    %182 = vector.broadcast %181 : f32 to vector<8x256xf32>
    %183 = arith.mulf %182, %180 : vector<8x256xf32>
    %184 = arith.addf %164, %183 : vector<8x256xf32>
    %c44 = arith.constant 44 : index
    %185 = memref.load %arg4[%c44] : memref<144xf32, #tpu.memory_space<smem>>
    %186 = vector.broadcast %185 : f32 to vector<8x256xf32>
    %187 = arith.mulf %186, %180 : vector<8x256xf32>
    %188 = arith.addf %168, %187 : vector<8x256xf32>
    %c80 = arith.constant 80 : index
    %189 = memref.load %arg4[%c80] : memref<144xf32, #tpu.memory_space<smem>>
    %190 = vector.broadcast %189 : f32 to vector<8x256xf32>
    %191 = arith.mulf %190, %180 : vector<8x256xf32>
    %192 = arith.addf %172, %191 : vector<8x256xf32>
    %c116 = arith.constant 116 : index
    %193 = memref.load %arg4[%c116] : memref<144xf32, #tpu.memory_space<smem>>
    %194 = vector.broadcast %193 : f32 to vector<8x256xf32>
    %195 = arith.mulf %194, %180 : vector<8x256xf32>
    %196 = arith.addf %176, %195 : vector<8x256xf32>
    %c0_14 = arith.constant 0 : index
    %c1_15 = arith.constant 1 : index
    %c0_16 = arith.constant 0 : index
    %c0_17 = arith.constant 0 : index
    %197 = vector.load %arg2[%c0_14, %c1_15, %c0_16, %c0_17] : memref<1x4x8x256xf32, #tpu.memory_space<vmem>>, vector<1x1x8x256xf32>
    %198 = vector.shape_cast %197 : vector<1x1x8x256xf32> to vector<8x256xf32>
    %c1_18 = arith.constant 1 : index
    %199 = memref.load %arg6[%c1_18] : memref<4xf32, #tpu.memory_space<smem>>
    %200 = vector.broadcast %199 : f32 to vector<8x256xf32>
    %201 = arith.mulf %198, %200 : vector<8x256xf32>
    %c1_19 = arith.constant 1 : index
    %202 = memref.load %arg7[%c1_19] : memref<4xf32, #tpu.memory_space<smem>>
    %203 = vector.broadcast %202 : f32 to vector<8x256xf32>
    %204 = arith.addf %201, %203 : vector<8x256xf32>
    %cst_20 = arith.constant 0.000000e+00 : f32
    %205 = vector.broadcast %cst_20 : f32 to vector<8x256xf32>
    %206 = arith.cmpf oge, %204, %205 : vector<8x256xf32>
    %cst_21 = arith.constant 2.000000e-01 : f32
    %207 = vector.broadcast %cst_21 : f32 to vector<8x256xf32>
    %208 = arith.mulf %207, %204 : vector<8x256xf32>
    %209 = arith.select %206, %204, %208 : vector<8x256xi1>, vector<8x256xf32>
    %c13 = arith.constant 13 : index
    %210 = memref.load %arg4[%c13] : memref<144xf32, #tpu.memory_space<smem>>
    %211 = vector.broadcast %210 : f32 to vector<8x256xf32>
    %212 = arith.mulf %211, %209 : vector<8x256xf32>
    %213 = arith.addf %184, %212 : vector<8x256xf32>
    %c49 = arith.constant 49 : index
    %214 = memref.load %arg4[%c49] : memref<144xf32, #tpu.memory_space<smem>>
    %215 = vector.broadcast %214 : f32 to vector<8x256xf32>
    %216 = arith.mulf %215, %209 : vector<8x256xf32>
    %217 = arith.addf %188, %216 : vector<8x256xf32>
    %c85 = arith.constant 85 : index
    %218 = memref.load %arg4[%c85] : memref<144xf32, #tpu.memory_space<smem>>
    %219 = vector.broadcast %218 : f32 to vector<8x256xf32>
    %220 = arith.mulf %219, %209 : vector<8x256xf32>
    %221 = arith.addf %192, %220 : vector<8x256xf32>
    %c121 = arith.constant 121 : index
    %222 = memref.load %arg4[%c121] : memref<144xf32, #tpu.memory_space<smem>>
    %223 = vector.broadcast %222 : f32 to vector<8x256xf32>
    %224 = arith.mulf %223, %209 : vector<8x256xf32>
    %225 = arith.addf %196, %224 : vector<8x256xf32>
    %c17_i32_22 = arith.constant 17 : i32
    %226 = tpu.dynamic_rotate %209 by %c17_i32_22 dim 1 : vector<8x256xf32>, i32 -> vector<8x256xf32>
    %227 = vector.extract_strided_slice %0 {offsets = [0, 0], sizes = [1, 256], strides = [1, 1]} : vector<8x256xf32> to vector<1x256xf32>
    %228 = vector.broadcast %227 : vector<1x256xf32> to vector<8x256xf32>
    %229 = arith.mulf %226, %228 : vector<8x256xf32>
    %c9 = arith.constant 9 : index
    %230 = memref.load %arg4[%c9] : memref<144xf32, #tpu.memory_space<smem>>
    %231 = vector.broadcast %230 : f32 to vector<8x256xf32>
    %232 = arith.mulf %231, %229 : vector<8x256xf32>
    %233 = arith.addf %213, %232 : vector<8x256xf32>
    %c45 = arith.constant 45 : index
    %234 = memref.load %arg4[%c45] : memref<144xf32, #tpu.memory_space<smem>>
    %235 = vector.broadcast %234 : f32 to vector<8x256xf32>
    %236 = arith.mulf %235, %229 : vector<8x256xf32>
    %237 = arith.addf %217, %236 : vector<8x256xf32>
    %c81 = arith.constant 81 : index
    %238 = memref.load %arg4[%c81] : memref<144xf32, #tpu.memory_space<smem>>
    %239 = vector.broadcast %238 : f32 to vector<8x256xf32>
    %240 = arith.mulf %239, %229 : vector<8x256xf32>
    %241 = arith.addf %221, %240 : vector<8x256xf32>
    %c117 = arith.constant 117 : index
    %242 = memref.load %arg4[%c117] : memref<144xf32, #tpu.memory_space<smem>>
    %243 = vector.broadcast %242 : f32 to vector<8x256xf32>
    %244 = arith.mulf %243, %229 : vector<8x256xf32>
    %245 = arith.addf %225, %244 : vector<8x256xf32>
    %c16_i32_23 = arith.constant 16 : i32
    %246 = tpu.dynamic_rotate %209 by %c16_i32_23 dim 1 : vector<8x256xf32>, i32 -> vector<8x256xf32>
    %247 = vector.extract_strided_slice %0 {offsets = [1, 0], sizes = [1, 256], strides = [1, 1]} : vector<8x256xf32> to vector<1x256xf32>
    %248 = vector.broadcast %247 : vector<1x256xf32> to vector<8x256xf32>
    %249 = arith.mulf %246, %248 : vector<8x256xf32>
    %c10 = arith.constant 10 : index
    %250 = memref.load %arg4[%c10] : memref<144xf32, #tpu.memory_space<smem>>
    %251 = vector.broadcast %250 : f32 to vector<8x256xf32>
    %252 = arith.mulf %251, %249 : vector<8x256xf32>
    %253 = arith.addf %233, %252 : vector<8x256xf32>
    %c46 = arith.constant 46 : index
    %254 = memref.load %arg4[%c46] : memref<144xf32, #tpu.memory_space<smem>>
    %255 = vector.broadcast %254 : f32 to vector<8x256xf32>
    %256 = arith.mulf %255, %249 : vector<8x256xf32>
    %257 = arith.addf %237, %256 : vector<8x256xf32>
    %c82 = arith.constant 82 : index
    %258 = memref.load %arg4[%c82] : memref<144xf32, #tpu.memory_space<smem>>
    %259 = vector.broadcast %258 : f32 to vector<8x256xf32>
    %260 = arith.mulf %259, %249 : vector<8x256xf32>
    %261 = arith.addf %241, %260 : vector<8x256xf32>
    %c118 = arith.constant 118 : index
    %262 = memref.load %arg4[%c118] : memref<144xf32, #tpu.memory_space<smem>>
    %263 = vector.broadcast %262 : f32 to vector<8x256xf32>
    %264 = arith.mulf %263, %249 : vector<8x256xf32>
    %265 = arith.addf %245, %264 : vector<8x256xf32>
    %c15_i32_24 = arith.constant 15 : i32
    %266 = tpu.dynamic_rotate %209 by %c15_i32_24 dim 1 : vector<8x256xf32>, i32 -> vector<8x256xf32>
    %267 = vector.extract_strided_slice %0 {offsets = [2, 0], sizes = [1, 256], strides = [1, 1]} : vector<8x256xf32> to vector<1x256xf32>
    %268 = vector.broadcast %267 : vector<1x256xf32> to vector<8x256xf32>
    %269 = arith.mulf %266, %268 : vector<8x256xf32>
    %c11 = arith.constant 11 : index
    %270 = memref.load %arg4[%c11] : memref<144xf32, #tpu.memory_space<smem>>
    %271 = vector.broadcast %270 : f32 to vector<8x256xf32>
    %272 = arith.mulf %271, %269 : vector<8x256xf32>
    %273 = arith.addf %253, %272 : vector<8x256xf32>
    %c47 = arith.constant 47 : index
    %274 = memref.load %arg4[%c47] : memref<144xf32, #tpu.memory_space<smem>>
    %275 = vector.broadcast %274 : f32 to vector<8x256xf32>
    %276 = arith.mulf %275, %269 : vector<8x256xf32>
    %277 = arith.addf %257, %276 : vector<8x256xf32>
    %c83 = arith.constant 83 : index
    %278 = memref.load %arg4[%c83] : memref<144xf32, #tpu.memory_space<smem>>
    %279 = vector.broadcast %278 : f32 to vector<8x256xf32>
    %280 = arith.mulf %279, %269 : vector<8x256xf32>
    %281 = arith.addf %261, %280 : vector<8x256xf32>
    %c119 = arith.constant 119 : index
    %282 = memref.load %arg4[%c119] : memref<144xf32, #tpu.memory_space<smem>>
    %283 = vector.broadcast %282 : f32 to vector<8x256xf32>
    %284 = arith.mulf %283, %269 : vector<8x256xf32>
    %285 = arith.addf %265, %284 : vector<8x256xf32>
    %c1_i32_25 = arith.constant 1 : i32
    %286 = tpu.dynamic_rotate %209 by %c1_i32_25 dim 1 : vector<8x256xf32>, i32 -> vector<8x256xf32>
    %287 = vector.extract_strided_slice %0 {offsets = [3, 0], sizes = [1, 256], strides = [1, 1]} : vector<8x256xf32> to vector<1x256xf32>
    %288 = vector.broadcast %287 : vector<1x256xf32> to vector<8x256xf32>
    %289 = arith.mulf %286, %288 : vector<8x256xf32>
    %c12 = arith.constant 12 : index
    %290 = memref.load %arg4[%c12] : memref<144xf32, #tpu.memory_space<smem>>
    %291 = vector.broadcast %290 : f32 to vector<8x256xf32>
    %292 = arith.mulf %291, %289 : vector<8x256xf32>
    %293 = arith.addf %273, %292 : vector<8x256xf32>
    %c48 = arith.constant 48 : index
    %294 = memref.load %arg4[%c48] : memref<144xf32, #tpu.memory_space<smem>>
    %295 = vector.broadcast %294 : f32 to vector<8x256xf32>
    %296 = arith.mulf %295, %289 : vector<8x256xf32>
    %297 = arith.addf %277, %296 : vector<8x256xf32>
    %c84 = arith.constant 84 : index
    %298 = memref.load %arg4[%c84] : memref<144xf32, #tpu.memory_space<smem>>
    %299 = vector.broadcast %298 : f32 to vector<8x256xf32>
    %300 = arith.mulf %299, %289 : vector<8x256xf32>
    %301 = arith.addf %281, %300 : vector<8x256xf32>
    %c120 = arith.constant 120 : index
    %302 = memref.load %arg4[%c120] : memref<144xf32, #tpu.memory_space<smem>>
    %303 = vector.broadcast %302 : f32 to vector<8x256xf32>
    %304 = arith.mulf %303, %289 : vector<8x256xf32>
    %305 = arith.addf %285, %304 : vector<8x256xf32>
    %c255_i32_26 = arith.constant 255 : i32
    %306 = tpu.dynamic_rotate %209 by %c255_i32_26 dim 1 : vector<8x256xf32>, i32 -> vector<8x256xf32>
    %307 = vector.extract_strided_slice %0 {offsets = [4, 0], sizes = [1, 256], strides = [1, 1]} : vector<8x256xf32> to vector<1x256xf32>
    %308 = vector.broadcast %307 : vector<1x256xf32> to vector<8x256xf32>
    %309 = arith.mulf %306, %308 : vector<8x256xf32>
    %c14 = arith.constant 14 : index
    %310 = memref.load %arg4[%c14] : memref<144xf32, #tpu.memory_space<smem>>
    %311 = vector.broadcast %310 : f32 to vector<8x256xf32>
    %312 = arith.mulf %311, %309 : vector<8x256xf32>
    %313 = arith.addf %293, %312 : vector<8x256xf32>
    %c50 = arith.constant 50 : index
    %314 = memref.load %arg4[%c50] : memref<144xf32, #tpu.memory_space<smem>>
    %315 = vector.broadcast %314 : f32 to vector<8x256xf32>
    %316 = arith.mulf %315, %309 : vector<8x256xf32>
    %317 = arith.addf %297, %316 : vector<8x256xf32>
    %c86 = arith.constant 86 : index
    %318 = memref.load %arg4[%c86] : memref<144xf32, #tpu.memory_space<smem>>
    %319 = vector.broadcast %318 : f32 to vector<8x256xf32>
    %320 = arith.mulf %319, %309 : vector<8x256xf32>
    %321 = arith.addf %301, %320 : vector<8x256xf32>
    %c122 = arith.constant 122 : index
    %322 = memref.load %arg4[%c122] : memref<144xf32, #tpu.memory_space<smem>>
    %323 = vector.broadcast %322 : f32 to vector<8x256xf32>
    %324 = arith.mulf %323, %309 : vector<8x256xf32>
    %325 = arith.addf %305, %324 : vector<8x256xf32>
    %c241_i32_27 = arith.constant 241 : i32
    %326 = tpu.dynamic_rotate %209 by %c241_i32_27 dim 1 : vector<8x256xf32>, i32 -> vector<8x256xf32>
    %327 = vector.extract_strided_slice %0 {offsets = [5, 0], sizes = [1, 256], strides = [1, 1]} : vector<8x256xf32> to vector<1x256xf32>
    %328 = vector.broadcast %327 : vector<1x256xf32> to vector<8x256xf32>
    %329 = arith.mulf %326, %328 : vector<8x256xf32>
    %c15 = arith.constant 15 : index
    %330 = memref.load %arg4[%c15] : memref<144xf32, #tpu.memory_space<smem>>
    %331 = vector.broadcast %330 : f32 to vector<8x256xf32>
    %332 = arith.mulf %331, %329 : vector<8x256xf32>
    %333 = arith.addf %313, %332 : vector<8x256xf32>
    %c51 = arith.constant 51 : index
    %334 = memref.load %arg4[%c51] : memref<144xf32, #tpu.memory_space<smem>>
    %335 = vector.broadcast %334 : f32 to vector<8x256xf32>
    %336 = arith.mulf %335, %329 : vector<8x256xf32>
    %337 = arith.addf %317, %336 : vector<8x256xf32>
    %c87 = arith.constant 87 : index
    %338 = memref.load %arg4[%c87] : memref<144xf32, #tpu.memory_space<smem>>
    %339 = vector.broadcast %338 : f32 to vector<8x256xf32>
    %340 = arith.mulf %339, %329 : vector<8x256xf32>
    %341 = arith.addf %321, %340 : vector<8x256xf32>
    %c123 = arith.constant 123 : index
    %342 = memref.load %arg4[%c123] : memref<144xf32, #tpu.memory_space<smem>>
    %343 = vector.broadcast %342 : f32 to vector<8x256xf32>
    %344 = arith.mulf %343, %329 : vector<8x256xf32>
    %345 = arith.addf %325, %344 : vector<8x256xf32>
    %c240_i32_28 = arith.constant 240 : i32
    %346 = tpu.dynamic_rotate %209 by %c240_i32_28 dim 1 : vector<8x256xf32>, i32 -> vector<8x256xf32>
    %347 = vector.extract_strided_slice %0 {offsets = [6, 0], sizes = [1, 256], strides = [1, 1]} : vector<8x256xf32> to vector<1x256xf32>
    %348 = vector.broadcast %347 : vector<1x256xf32> to vector<8x256xf32>
    %349 = arith.mulf %346, %348 : vector<8x256xf32>
    %c16 = arith.constant 16 : index
    %350 = memref.load %arg4[%c16] : memref<144xf32, #tpu.memory_space<smem>>
    %351 = vector.broadcast %350 : f32 to vector<8x256xf32>
    %352 = arith.mulf %351, %349 : vector<8x256xf32>
    %353 = arith.addf %333, %352 : vector<8x256xf32>
    %c52 = arith.constant 52 : index
    %354 = memref.load %arg4[%c52] : memref<144xf32, #tpu.memory_space<smem>>
    %355 = vector.broadcast %354 : f32 to vector<8x256xf32>
    %356 = arith.mulf %355, %349 : vector<8x256xf32>
    %357 = arith.addf %337, %356 : vector<8x256xf32>
    %c88 = arith.constant 88 : index
    %358 = memref.load %arg4[%c88] : memref<144xf32, #tpu.memory_space<smem>>
    %359 = vector.broadcast %358 : f32 to vector<8x256xf32>
    %360 = arith.mulf %359, %349 : vector<8x256xf32>
    %361 = arith.addf %341, %360 : vector<8x256xf32>
    %c124 = arith.constant 124 : index
    %362 = memref.load %arg4[%c124] : memref<144xf32, #tpu.memory_space<smem>>
    %363 = vector.broadcast %362 : f32 to vector<8x256xf32>
    %364 = arith.mulf %363, %349 : vector<8x256xf32>
    %365 = arith.addf %345, %364 : vector<8x256xf32>
    %c239_i32_29 = arith.constant 239 : i32
    %366 = tpu.dynamic_rotate %209 by %c239_i32_29 dim 1 : vector<8x256xf32>, i32 -> vector<8x256xf32>
    %367 = vector.extract_strided_slice %0 {offsets = [7, 0], sizes = [1, 256], strides = [1, 1]} : vector<8x256xf32> to vector<1x256xf32>
    %368 = vector.broadcast %367 : vector<1x256xf32> to vector<8x256xf32>
    %369 = arith.mulf %366, %368 : vector<8x256xf32>
    %c17 = arith.constant 17 : index
    %370 = memref.load %arg4[%c17] : memref<144xf32, #tpu.memory_space<smem>>
    %371 = vector.broadcast %370 : f32 to vector<8x256xf32>
    %372 = arith.mulf %371, %369 : vector<8x256xf32>
    %373 = arith.addf %353, %372 : vector<8x256xf32>
    %c53 = arith.constant 53 : index
    %374 = memref.load %arg4[%c53] : memref<144xf32, #tpu.memory_space<smem>>
    %375 = vector.broadcast %374 : f32 to vector<8x256xf32>
    %376 = arith.mulf %375, %369 : vector<8x256xf32>
    %377 = arith.addf %357, %376 : vector<8x256xf32>
    %c89 = arith.constant 89 : index
    %378 = memref.load %arg4[%c89] : memref<144xf32, #tpu.memory_space<smem>>
    %379 = vector.broadcast %378 : f32 to vector<8x256xf32>
    %380 = arith.mulf %379, %369 : vector<8x256xf32>
    %381 = arith.addf %361, %380 : vector<8x256xf32>
    %c125 = arith.constant 125 : index
    %382 = memref.load %arg4[%c125] : memref<144xf32, #tpu.memory_space<smem>>
    %383 = vector.broadcast %382 : f32 to vector<8x256xf32>
    %384 = arith.mulf %383, %369 : vector<8x256xf32>
    %385 = arith.addf %365, %384 : vector<8x256xf32>
    %c0_30 = arith.constant 0 : index
    %c2_31 = arith.constant 2 : index
    %c0_32 = arith.constant 0 : index
    %c0_33 = arith.constant 0 : index
    %386 = vector.load %arg2[%c0_30, %c2_31, %c0_32, %c0_33] : memref<1x4x8x256xf32, #tpu.memory_space<vmem>>, vector<1x1x8x256xf32>
    %387 = vector.shape_cast %386 : vector<1x1x8x256xf32> to vector<8x256xf32>
    %c2_34 = arith.constant 2 : index
    %388 = memref.load %arg6[%c2_34] : memref<4xf32, #tpu.memory_space<smem>>
    %389 = vector.broadcast %388 : f32 to vector<8x256xf32>
    %390 = arith.mulf %387, %389 : vector<8x256xf32>
    %c2_35 = arith.constant 2 : index
    %391 = memref.load %arg7[%c2_35] : memref<4xf32, #tpu.memory_space<smem>>
    %392 = vector.broadcast %391 : f32 to vector<8x256xf32>
    %393 = arith.addf %390, %392 : vector<8x256xf32>
    %cst_36 = arith.constant 0.000000e+00 : f32
    %394 = vector.broadcast %cst_36 : f32 to vector<8x256xf32>
    %395 = arith.cmpf oge, %393, %394 : vector<8x256xf32>
    %cst_37 = arith.constant 2.000000e-01 : f32
    %396 = vector.broadcast %cst_37 : f32 to vector<8x256xf32>
    %397 = arith.mulf %396, %393 : vector<8x256xf32>
    %398 = arith.select %395, %393, %397 : vector<8x256xi1>, vector<8x256xf32>
    %c22 = arith.constant 22 : index
    %399 = memref.load %arg4[%c22] : memref<144xf32, #tpu.memory_space<smem>>
    %400 = vector.broadcast %399 : f32 to vector<8x256xf32>
    %401 = arith.mulf %400, %398 : vector<8x256xf32>
    %402 = arith.addf %373, %401 : vector<8x256xf32>
    %c58 = arith.constant 58 : index
    %403 = memref.load %arg4[%c58] : memref<144xf32, #tpu.memory_space<smem>>
    %404 = vector.broadcast %403 : f32 to vector<8x256xf32>
    %405 = arith.mulf %404, %398 : vector<8x256xf32>
    %406 = arith.addf %377, %405 : vector<8x256xf32>
    %c94 = arith.constant 94 : index
    %407 = memref.load %arg4[%c94] : memref<144xf32, #tpu.memory_space<smem>>
    %408 = vector.broadcast %407 : f32 to vector<8x256xf32>
    %409 = arith.mulf %408, %398 : vector<8x256xf32>
    %410 = arith.addf %381, %409 : vector<8x256xf32>
    %c130 = arith.constant 130 : index
    %411 = memref.load %arg4[%c130] : memref<144xf32, #tpu.memory_space<smem>>
    %412 = vector.broadcast %411 : f32 to vector<8x256xf32>
    %413 = arith.mulf %412, %398 : vector<8x256xf32>
    %414 = arith.addf %385, %413 : vector<8x256xf32>
    %c17_i32_38 = arith.constant 17 : i32
    %415 = tpu.dynamic_rotate %398 by %c17_i32_38 dim 1 : vector<8x256xf32>, i32 -> vector<8x256xf32>
    %416 = vector.extract_strided_slice %0 {offsets = [0, 0], sizes = [1, 256], strides = [1, 1]} : vector<8x256xf32> to vector<1x256xf32>
    %417 = vector.broadcast %416 : vector<1x256xf32> to vector<8x256xf32>
    %418 = arith.mulf %415, %417 : vector<8x256xf32>
    %c18 = arith.constant 18 : index
    %419 = memref.load %arg4[%c18] : memref<144xf32, #tpu.memory_space<smem>>
    %420 = vector.broadcast %419 : f32 to vector<8x256xf32>
    %421 = arith.mulf %420, %418 : vector<8x256xf32>
    %422 = arith.addf %402, %421 : vector<8x256xf32>
    %c54 = arith.constant 54 : index
    %423 = memref.load %arg4[%c54] : memref<144xf32, #tpu.memory_space<smem>>
    %424 = vector.broadcast %423 : f32 to vector<8x256xf32>
    %425 = arith.mulf %424, %418 : vector<8x256xf32>
    %426 = arith.addf %406, %425 : vector<8x256xf32>
    %c90 = arith.constant 90 : index
    %427 = memref.load %arg4[%c90] : memref<144xf32, #tpu.memory_space<smem>>
    %428 = vector.broadcast %427 : f32 to vector<8x256xf32>
    %429 = arith.mulf %428, %418 : vector<8x256xf32>
    %430 = arith.addf %410, %429 : vector<8x256xf32>
    %c126 = arith.constant 126 : index
    %431 = memref.load %arg4[%c126] : memref<144xf32, #tpu.memory_space<smem>>
    %432 = vector.broadcast %431 : f32 to vector<8x256xf32>
    %433 = arith.mulf %432, %418 : vector<8x256xf32>
    %434 = arith.addf %414, %433 : vector<8x256xf32>
    %c16_i32_39 = arith.constant 16 : i32
    %435 = tpu.dynamic_rotate %398 by %c16_i32_39 dim 1 : vector<8x256xf32>, i32 -> vector<8x256xf32>
    %436 = vector.extract_strided_slice %0 {offsets = [1, 0], sizes = [1, 256], strides = [1, 1]} : vector<8x256xf32> to vector<1x256xf32>
    %437 = vector.broadcast %436 : vector<1x256xf32> to vector<8x256xf32>
    %438 = arith.mulf %435, %437 : vector<8x256xf32>
    %c19 = arith.constant 19 : index
    %439 = memref.load %arg4[%c19] : memref<144xf32, #tpu.memory_space<smem>>
    %440 = vector.broadcast %439 : f32 to vector<8x256xf32>
    %441 = arith.mulf %440, %438 : vector<8x256xf32>
    %442 = arith.addf %422, %441 : vector<8x256xf32>
    %c55 = arith.constant 55 : index
    %443 = memref.load %arg4[%c55] : memref<144xf32, #tpu.memory_space<smem>>
    %444 = vector.broadcast %443 : f32 to vector<8x256xf32>
    %445 = arith.mulf %444, %438 : vector<8x256xf32>
    %446 = arith.addf %426, %445 : vector<8x256xf32>
    %c91 = arith.constant 91 : index
    %447 = memref.load %arg4[%c91] : memref<144xf32, #tpu.memory_space<smem>>
    %448 = vector.broadcast %447 : f32 to vector<8x256xf32>
    %449 = arith.mulf %448, %438 : vector<8x256xf32>
    %450 = arith.addf %430, %449 : vector<8x256xf32>
    %c127 = arith.constant 127 : index
    %451 = memref.load %arg4[%c127] : memref<144xf32, #tpu.memory_space<smem>>
    %452 = vector.broadcast %451 : f32 to vector<8x256xf32>
    %453 = arith.mulf %452, %438 : vector<8x256xf32>
    %454 = arith.addf %434, %453 : vector<8x256xf32>
    %c15_i32_40 = arith.constant 15 : i32
    %455 = tpu.dynamic_rotate %398 by %c15_i32_40 dim 1 : vector<8x256xf32>, i32 -> vector<8x256xf32>
    %456 = vector.extract_strided_slice %0 {offsets = [2, 0], sizes = [1, 256], strides = [1, 1]} : vector<8x256xf32> to vector<1x256xf32>
    %457 = vector.broadcast %456 : vector<1x256xf32> to vector<8x256xf32>
    %458 = arith.mulf %455, %457 : vector<8x256xf32>
    %c20 = arith.constant 20 : index
    %459 = memref.load %arg4[%c20] : memref<144xf32, #tpu.memory_space<smem>>
    %460 = vector.broadcast %459 : f32 to vector<8x256xf32>
    %461 = arith.mulf %460, %458 : vector<8x256xf32>
    %462 = arith.addf %442, %461 : vector<8x256xf32>
    %c56 = arith.constant 56 : index
    %463 = memref.load %arg4[%c56] : memref<144xf32, #tpu.memory_space<smem>>
    %464 = vector.broadcast %463 : f32 to vector<8x256xf32>
    %465 = arith.mulf %464, %458 : vector<8x256xf32>
    %466 = arith.addf %446, %465 : vector<8x256xf32>
    %c92 = arith.constant 92 : index
    %467 = memref.load %arg4[%c92] : memref<144xf32, #tpu.memory_space<smem>>
    %468 = vector.broadcast %467 : f32 to vector<8x256xf32>
    %469 = arith.mulf %468, %458 : vector<8x256xf32>
    %470 = arith.addf %450, %469 : vector<8x256xf32>
    %c128 = arith.constant 128 : index
    %471 = memref.load %arg4[%c128] : memref<144xf32, #tpu.memory_space<smem>>
    %472 = vector.broadcast %471 : f32 to vector<8x256xf32>
    %473 = arith.mulf %472, %458 : vector<8x256xf32>
    %474 = arith.addf %454, %473 : vector<8x256xf32>
    %c1_i32_41 = arith.constant 1 : i32
    %475 = tpu.dynamic_rotate %398 by %c1_i32_41 dim 1 : vector<8x256xf32>, i32 -> vector<8x256xf32>
    %476 = vector.extract_strided_slice %0 {offsets = [3, 0], sizes = [1, 256], strides = [1, 1]} : vector<8x256xf32> to vector<1x256xf32>
    %477 = vector.broadcast %476 : vector<1x256xf32> to vector<8x256xf32>
    %478 = arith.mulf %475, %477 : vector<8x256xf32>
    %c21 = arith.constant 21 : index
    %479 = memref.load %arg4[%c21] : memref<144xf32, #tpu.memory_space<smem>>
    %480 = vector.broadcast %479 : f32 to vector<8x256xf32>
    %481 = arith.mulf %480, %478 : vector<8x256xf32>
    %482 = arith.addf %462, %481 : vector<8x256xf32>
    %c57 = arith.constant 57 : index
    %483 = memref.load %arg4[%c57] : memref<144xf32, #tpu.memory_space<smem>>
    %484 = vector.broadcast %483 : f32 to vector<8x256xf32>
    %485 = arith.mulf %484, %478 : vector<8x256xf32>
    %486 = arith.addf %466, %485 : vector<8x256xf32>
    %c93 = arith.constant 93 : index
    %487 = memref.load %arg4[%c93] : memref<144xf32, #tpu.memory_space<smem>>
    %488 = vector.broadcast %487 : f32 to vector<8x256xf32>
    %489 = arith.mulf %488, %478 : vector<8x256xf32>
    %490 = arith.addf %470, %489 : vector<8x256xf32>
    %c129 = arith.constant 129 : index
    %491 = memref.load %arg4[%c129] : memref<144xf32, #tpu.memory_space<smem>>
    %492 = vector.broadcast %491 : f32 to vector<8x256xf32>
    %493 = arith.mulf %492, %478 : vector<8x256xf32>
    %494 = arith.addf %474, %493 : vector<8x256xf32>
    %c255_i32_42 = arith.constant 255 : i32
    %495 = tpu.dynamic_rotate %398 by %c255_i32_42 dim 1 : vector<8x256xf32>, i32 -> vector<8x256xf32>
    %496 = vector.extract_strided_slice %0 {offsets = [4, 0], sizes = [1, 256], strides = [1, 1]} : vector<8x256xf32> to vector<1x256xf32>
    %497 = vector.broadcast %496 : vector<1x256xf32> to vector<8x256xf32>
    %498 = arith.mulf %495, %497 : vector<8x256xf32>
    %c23 = arith.constant 23 : index
    %499 = memref.load %arg4[%c23] : memref<144xf32, #tpu.memory_space<smem>>
    %500 = vector.broadcast %499 : f32 to vector<8x256xf32>
    %501 = arith.mulf %500, %498 : vector<8x256xf32>
    %502 = arith.addf %482, %501 : vector<8x256xf32>
    %c59 = arith.constant 59 : index
    %503 = memref.load %arg4[%c59] : memref<144xf32, #tpu.memory_space<smem>>
    %504 = vector.broadcast %503 : f32 to vector<8x256xf32>
    %505 = arith.mulf %504, %498 : vector<8x256xf32>
    %506 = arith.addf %486, %505 : vector<8x256xf32>
    %c95 = arith.constant 95 : index
    %507 = memref.load %arg4[%c95] : memref<144xf32, #tpu.memory_space<smem>>
    %508 = vector.broadcast %507 : f32 to vector<8x256xf32>
    %509 = arith.mulf %508, %498 : vector<8x256xf32>
    %510 = arith.addf %490, %509 : vector<8x256xf32>
    %c131 = arith.constant 131 : index
    %511 = memref.load %arg4[%c131] : memref<144xf32, #tpu.memory_space<smem>>
    %512 = vector.broadcast %511 : f32 to vector<8x256xf32>
    %513 = arith.mulf %512, %498 : vector<8x256xf32>
    %514 = arith.addf %494, %513 : vector<8x256xf32>
    %c241_i32_43 = arith.constant 241 : i32
    %515 = tpu.dynamic_rotate %398 by %c241_i32_43 dim 1 : vector<8x256xf32>, i32 -> vector<8x256xf32>
    %516 = vector.extract_strided_slice %0 {offsets = [5, 0], sizes = [1, 256], strides = [1, 1]} : vector<8x256xf32> to vector<1x256xf32>
    %517 = vector.broadcast %516 : vector<1x256xf32> to vector<8x256xf32>
    %518 = arith.mulf %515, %517 : vector<8x256xf32>
    %c24 = arith.constant 24 : index
    %519 = memref.load %arg4[%c24] : memref<144xf32, #tpu.memory_space<smem>>
    %520 = vector.broadcast %519 : f32 to vector<8x256xf32>
    %521 = arith.mulf %520, %518 : vector<8x256xf32>
    %522 = arith.addf %502, %521 : vector<8x256xf32>
    %c60 = arith.constant 60 : index
    %523 = memref.load %arg4[%c60] : memref<144xf32, #tpu.memory_space<smem>>
    %524 = vector.broadcast %523 : f32 to vector<8x256xf32>
    %525 = arith.mulf %524, %518 : vector<8x256xf32>
    %526 = arith.addf %506, %525 : vector<8x256xf32>
    %c96 = arith.constant 96 : index
    %527 = memref.load %arg4[%c96] : memref<144xf32, #tpu.memory_space<smem>>
    %528 = vector.broadcast %527 : f32 to vector<8x256xf32>
    %529 = arith.mulf %528, %518 : vector<8x256xf32>
    %530 = arith.addf %510, %529 : vector<8x256xf32>
    %c132 = arith.constant 132 : index
    %531 = memref.load %arg4[%c132] : memref<144xf32, #tpu.memory_space<smem>>
    %532 = vector.broadcast %531 : f32 to vector<8x256xf32>
    %533 = arith.mulf %532, %518 : vector<8x256xf32>
    %534 = arith.addf %514, %533 : vector<8x256xf32>
    %c240_i32_44 = arith.constant 240 : i32
    %535 = tpu.dynamic_rotate %398 by %c240_i32_44 dim 1 : vector<8x256xf32>, i32 -> vector<8x256xf32>
    %536 = vector.extract_strided_slice %0 {offsets = [6, 0], sizes = [1, 256], strides = [1, 1]} : vector<8x256xf32> to vector<1x256xf32>
    %537 = vector.broadcast %536 : vector<1x256xf32> to vector<8x256xf32>
    %538 = arith.mulf %535, %537 : vector<8x256xf32>
    %c25 = arith.constant 25 : index
    %539 = memref.load %arg4[%c25] : memref<144xf32, #tpu.memory_space<smem>>
    %540 = vector.broadcast %539 : f32 to vector<8x256xf32>
    %541 = arith.mulf %540, %538 : vector<8x256xf32>
    %542 = arith.addf %522, %541 : vector<8x256xf32>
    %c61 = arith.constant 61 : index
    %543 = memref.load %arg4[%c61] : memref<144xf32, #tpu.memory_space<smem>>
    %544 = vector.broadcast %543 : f32 to vector<8x256xf32>
    %545 = arith.mulf %544, %538 : vector<8x256xf32>
    %546 = arith.addf %526, %545 : vector<8x256xf32>
    %c97 = arith.constant 97 : index
    %547 = memref.load %arg4[%c97] : memref<144xf32, #tpu.memory_space<smem>>
    %548 = vector.broadcast %547 : f32 to vector<8x256xf32>
    %549 = arith.mulf %548, %538 : vector<8x256xf32>
    %550 = arith.addf %530, %549 : vector<8x256xf32>
    %c133 = arith.constant 133 : index
    %551 = memref.load %arg4[%c133] : memref<144xf32, #tpu.memory_space<smem>>
    %552 = vector.broadcast %551 : f32 to vector<8x256xf32>
    %553 = arith.mulf %552, %538 : vector<8x256xf32>
    %554 = arith.addf %534, %553 : vector<8x256xf32>
    %c239_i32_45 = arith.constant 239 : i32
    %555 = tpu.dynamic_rotate %398 by %c239_i32_45 dim 1 : vector<8x256xf32>, i32 -> vector<8x256xf32>
    %556 = vector.extract_strided_slice %0 {offsets = [7, 0], sizes = [1, 256], strides = [1, 1]} : vector<8x256xf32> to vector<1x256xf32>
    %557 = vector.broadcast %556 : vector<1x256xf32> to vector<8x256xf32>
    %558 = arith.mulf %555, %557 : vector<8x256xf32>
    %c26 = arith.constant 26 : index
    %559 = memref.load %arg4[%c26] : memref<144xf32, #tpu.memory_space<smem>>
    %560 = vector.broadcast %559 : f32 to vector<8x256xf32>
    %561 = arith.mulf %560, %558 : vector<8x256xf32>
    %562 = arith.addf %542, %561 : vector<8x256xf32>
    %c62 = arith.constant 62 : index
    %563 = memref.load %arg4[%c62] : memref<144xf32, #tpu.memory_space<smem>>
    %564 = vector.broadcast %563 : f32 to vector<8x256xf32>
    %565 = arith.mulf %564, %558 : vector<8x256xf32>
    %566 = arith.addf %546, %565 : vector<8x256xf32>
    %c98 = arith.constant 98 : index
    %567 = memref.load %arg4[%c98] : memref<144xf32, #tpu.memory_space<smem>>
    %568 = vector.broadcast %567 : f32 to vector<8x256xf32>
    %569 = arith.mulf %568, %558 : vector<8x256xf32>
    %570 = arith.addf %550, %569 : vector<8x256xf32>
    %c134 = arith.constant 134 : index
    %571 = memref.load %arg4[%c134] : memref<144xf32, #tpu.memory_space<smem>>
    %572 = vector.broadcast %571 : f32 to vector<8x256xf32>
    %573 = arith.mulf %572, %558 : vector<8x256xf32>
    %574 = arith.addf %554, %573 : vector<8x256xf32>
    %c0_46 = arith.constant 0 : index
    %c3_47 = arith.constant 3 : index
    %c0_48 = arith.constant 0 : index
    %c0_49 = arith.constant 0 : index
    %575 = vector.load %arg2[%c0_46, %c3_47, %c0_48, %c0_49] : memref<1x4x8x256xf32, #tpu.memory_space<vmem>>, vector<1x1x8x256xf32>
    %576 = vector.shape_cast %575 : vector<1x1x8x256xf32> to vector<8x256xf32>
    %c3_50 = arith.constant 3 : index
    %577 = memref.load %arg6[%c3_50] : memref<4xf32, #tpu.memory_space<smem>>
    %578 = vector.broadcast %577 : f32 to vector<8x256xf32>
    %579 = arith.mulf %576, %578 : vector<8x256xf32>
    %c3_51 = arith.constant 3 : index
    %580 = memref.load %arg7[%c3_51] : memref<4xf32, #tpu.memory_space<smem>>
    %581 = vector.broadcast %580 : f32 to vector<8x256xf32>
    %582 = arith.addf %579, %581 : vector<8x256xf32>
    %cst_52 = arith.constant 0.000000e+00 : f32
    %583 = vector.broadcast %cst_52 : f32 to vector<8x256xf32>
    %584 = arith.cmpf oge, %582, %583 : vector<8x256xf32>
    %cst_53 = arith.constant 2.000000e-01 : f32
    %585 = vector.broadcast %cst_53 : f32 to vector<8x256xf32>
    %586 = arith.mulf %585, %582 : vector<8x256xf32>
    %587 = arith.select %584, %582, %586 : vector<8x256xi1>, vector<8x256xf32>
    %c31 = arith.constant 31 : index
    %588 = memref.load %arg4[%c31] : memref<144xf32, #tpu.memory_space<smem>>
    %589 = vector.broadcast %588 : f32 to vector<8x256xf32>
    %590 = arith.mulf %589, %587 : vector<8x256xf32>
    %591 = arith.addf %562, %590 : vector<8x256xf32>
    %c67 = arith.constant 67 : index
    %592 = memref.load %arg4[%c67] : memref<144xf32, #tpu.memory_space<smem>>
    %593 = vector.broadcast %592 : f32 to vector<8x256xf32>
    %594 = arith.mulf %593, %587 : vector<8x256xf32>
    %595 = arith.addf %566, %594 : vector<8x256xf32>
    %c103 = arith.constant 103 : index
    %596 = memref.load %arg4[%c103] : memref<144xf32, #tpu.memory_space<smem>>
    %597 = vector.broadcast %596 : f32 to vector<8x256xf32>
    %598 = arith.mulf %597, %587 : vector<8x256xf32>
    %599 = arith.addf %570, %598 : vector<8x256xf32>
    %c139 = arith.constant 139 : index
    %600 = memref.load %arg4[%c139] : memref<144xf32, #tpu.memory_space<smem>>
    %601 = vector.broadcast %600 : f32 to vector<8x256xf32>
    %602 = arith.mulf %601, %587 : vector<8x256xf32>
    %603 = arith.addf %574, %602 : vector<8x256xf32>
    %c17_i32_54 = arith.constant 17 : i32
    %604 = tpu.dynamic_rotate %587 by %c17_i32_54 dim 1 : vector<8x256xf32>, i32 -> vector<8x256xf32>
    %605 = vector.extract_strided_slice %0 {offsets = [0, 0], sizes = [1, 256], strides = [1, 1]} : vector<8x256xf32> to vector<1x256xf32>
    %606 = vector.broadcast %605 : vector<1x256xf32> to vector<8x256xf32>
    %607 = arith.mulf %604, %606 : vector<8x256xf32>
    %c27 = arith.constant 27 : index
    %608 = memref.load %arg4[%c27] : memref<144xf32, #tpu.memory_space<smem>>
    %609 = vector.broadcast %608 : f32 to vector<8x256xf32>
    %610 = arith.mulf %609, %607 : vector<8x256xf32>
    %611 = arith.addf %591, %610 : vector<8x256xf32>
    %c63 = arith.constant 63 : index
    %612 = memref.load %arg4[%c63] : memref<144xf32, #tpu.memory_space<smem>>
    %613 = vector.broadcast %612 : f32 to vector<8x256xf32>
    %614 = arith.mulf %613, %607 : vector<8x256xf32>
    %615 = arith.addf %595, %614 : vector<8x256xf32>
    %c99 = arith.constant 99 : index
    %616 = memref.load %arg4[%c99] : memref<144xf32, #tpu.memory_space<smem>>
    %617 = vector.broadcast %616 : f32 to vector<8x256xf32>
    %618 = arith.mulf %617, %607 : vector<8x256xf32>
    %619 = arith.addf %599, %618 : vector<8x256xf32>
    %c135 = arith.constant 135 : index
    %620 = memref.load %arg4[%c135] : memref<144xf32, #tpu.memory_space<smem>>
    %621 = vector.broadcast %620 : f32 to vector<8x256xf32>
    %622 = arith.mulf %621, %607 : vector<8x256xf32>
    %623 = arith.addf %603, %622 : vector<8x256xf32>
    %c16_i32_55 = arith.constant 16 : i32
    %624 = tpu.dynamic_rotate %587 by %c16_i32_55 dim 1 : vector<8x256xf32>, i32 -> vector<8x256xf32>
    %625 = vector.extract_strided_slice %0 {offsets = [1, 0], sizes = [1, 256], strides = [1, 1]} : vector<8x256xf32> to vector<1x256xf32>
    %626 = vector.broadcast %625 : vector<1x256xf32> to vector<8x256xf32>
    %627 = arith.mulf %624, %626 : vector<8x256xf32>
    %c28 = arith.constant 28 : index
    %628 = memref.load %arg4[%c28] : memref<144xf32, #tpu.memory_space<smem>>
    %629 = vector.broadcast %628 : f32 to vector<8x256xf32>
    %630 = arith.mulf %629, %627 : vector<8x256xf32>
    %631 = arith.addf %611, %630 : vector<8x256xf32>
    %c64 = arith.constant 64 : index
    %632 = memref.load %arg4[%c64] : memref<144xf32, #tpu.memory_space<smem>>
    %633 = vector.broadcast %632 : f32 to vector<8x256xf32>
    %634 = arith.mulf %633, %627 : vector<8x256xf32>
    %635 = arith.addf %615, %634 : vector<8x256xf32>
    %c100 = arith.constant 100 : index
    %636 = memref.load %arg4[%c100] : memref<144xf32, #tpu.memory_space<smem>>
    %637 = vector.broadcast %636 : f32 to vector<8x256xf32>
    %638 = arith.mulf %637, %627 : vector<8x256xf32>
    %639 = arith.addf %619, %638 : vector<8x256xf32>
    %c136 = arith.constant 136 : index
    %640 = memref.load %arg4[%c136] : memref<144xf32, #tpu.memory_space<smem>>
    %641 = vector.broadcast %640 : f32 to vector<8x256xf32>
    %642 = arith.mulf %641, %627 : vector<8x256xf32>
    %643 = arith.addf %623, %642 : vector<8x256xf32>
    %c15_i32_56 = arith.constant 15 : i32
    %644 = tpu.dynamic_rotate %587 by %c15_i32_56 dim 1 : vector<8x256xf32>, i32 -> vector<8x256xf32>
    %645 = vector.extract_strided_slice %0 {offsets = [2, 0], sizes = [1, 256], strides = [1, 1]} : vector<8x256xf32> to vector<1x256xf32>
    %646 = vector.broadcast %645 : vector<1x256xf32> to vector<8x256xf32>
    %647 = arith.mulf %644, %646 : vector<8x256xf32>
    %c29 = arith.constant 29 : index
    %648 = memref.load %arg4[%c29] : memref<144xf32, #tpu.memory_space<smem>>
    %649 = vector.broadcast %648 : f32 to vector<8x256xf32>
    %650 = arith.mulf %649, %647 : vector<8x256xf32>
    %651 = arith.addf %631, %650 : vector<8x256xf32>
    %c65 = arith.constant 65 : index
    %652 = memref.load %arg4[%c65] : memref<144xf32, #tpu.memory_space<smem>>
    %653 = vector.broadcast %652 : f32 to vector<8x256xf32>
    %654 = arith.mulf %653, %647 : vector<8x256xf32>
    %655 = arith.addf %635, %654 : vector<8x256xf32>
    %c101 = arith.constant 101 : index
    %656 = memref.load %arg4[%c101] : memref<144xf32, #tpu.memory_space<smem>>
    %657 = vector.broadcast %656 : f32 to vector<8x256xf32>
    %658 = arith.mulf %657, %647 : vector<8x256xf32>
    %659 = arith.addf %639, %658 : vector<8x256xf32>
    %c137 = arith.constant 137 : index
    %660 = memref.load %arg4[%c137] : memref<144xf32, #tpu.memory_space<smem>>
    %661 = vector.broadcast %660 : f32 to vector<8x256xf32>
    %662 = arith.mulf %661, %647 : vector<8x256xf32>
    %663 = arith.addf %643, %662 : vector<8x256xf32>
    %c1_i32_57 = arith.constant 1 : i32
    %664 = tpu.dynamic_rotate %587 by %c1_i32_57 dim 1 : vector<8x256xf32>, i32 -> vector<8x256xf32>
    %665 = vector.extract_strided_slice %0 {offsets = [3, 0], sizes = [1, 256], strides = [1, 1]} : vector<8x256xf32> to vector<1x256xf32>
    %666 = vector.broadcast %665 : vector<1x256xf32> to vector<8x256xf32>
    %667 = arith.mulf %664, %666 : vector<8x256xf32>
    %c30 = arith.constant 30 : index
    %668 = memref.load %arg4[%c30] : memref<144xf32, #tpu.memory_space<smem>>
    %669 = vector.broadcast %668 : f32 to vector<8x256xf32>
    %670 = arith.mulf %669, %667 : vector<8x256xf32>
    %671 = arith.addf %651, %670 : vector<8x256xf32>
    %c66 = arith.constant 66 : index
    %672 = memref.load %arg4[%c66] : memref<144xf32, #tpu.memory_space<smem>>
    %673 = vector.broadcast %672 : f32 to vector<8x256xf32>
    %674 = arith.mulf %673, %667 : vector<8x256xf32>
    %675 = arith.addf %655, %674 : vector<8x256xf32>
    %c102 = arith.constant 102 : index
    %676 = memref.load %arg4[%c102] : memref<144xf32, #tpu.memory_space<smem>>
    %677 = vector.broadcast %676 : f32 to vector<8x256xf32>
    %678 = arith.mulf %677, %667 : vector<8x256xf32>
    %679 = arith.addf %659, %678 : vector<8x256xf32>
    %c138 = arith.constant 138 : index
    %680 = memref.load %arg4[%c138] : memref<144xf32, #tpu.memory_space<smem>>
    %681 = vector.broadcast %680 : f32 to vector<8x256xf32>
    %682 = arith.mulf %681, %667 : vector<8x256xf32>
    %683 = arith.addf %663, %682 : vector<8x256xf32>
    %c255_i32_58 = arith.constant 255 : i32
    %684 = tpu.dynamic_rotate %587 by %c255_i32_58 dim 1 : vector<8x256xf32>, i32 -> vector<8x256xf32>
    %685 = vector.extract_strided_slice %0 {offsets = [4, 0], sizes = [1, 256], strides = [1, 1]} : vector<8x256xf32> to vector<1x256xf32>
    %686 = vector.broadcast %685 : vector<1x256xf32> to vector<8x256xf32>
    %687 = arith.mulf %684, %686 : vector<8x256xf32>
    %c32 = arith.constant 32 : index
    %688 = memref.load %arg4[%c32] : memref<144xf32, #tpu.memory_space<smem>>
    %689 = vector.broadcast %688 : f32 to vector<8x256xf32>
    %690 = arith.mulf %689, %687 : vector<8x256xf32>
    %691 = arith.addf %671, %690 : vector<8x256xf32>
    %c68 = arith.constant 68 : index
    %692 = memref.load %arg4[%c68] : memref<144xf32, #tpu.memory_space<smem>>
    %693 = vector.broadcast %692 : f32 to vector<8x256xf32>
    %694 = arith.mulf %693, %687 : vector<8x256xf32>
    %695 = arith.addf %675, %694 : vector<8x256xf32>
    %c104 = arith.constant 104 : index
    %696 = memref.load %arg4[%c104] : memref<144xf32, #tpu.memory_space<smem>>
    %697 = vector.broadcast %696 : f32 to vector<8x256xf32>
    %698 = arith.mulf %697, %687 : vector<8x256xf32>
    %699 = arith.addf %679, %698 : vector<8x256xf32>
    %c140 = arith.constant 140 : index
    %700 = memref.load %arg4[%c140] : memref<144xf32, #tpu.memory_space<smem>>
    %701 = vector.broadcast %700 : f32 to vector<8x256xf32>
    %702 = arith.mulf %701, %687 : vector<8x256xf32>
    %703 = arith.addf %683, %702 : vector<8x256xf32>
    %c241_i32_59 = arith.constant 241 : i32
    %704 = tpu.dynamic_rotate %587 by %c241_i32_59 dim 1 : vector<8x256xf32>, i32 -> vector<8x256xf32>
    %705 = vector.extract_strided_slice %0 {offsets = [5, 0], sizes = [1, 256], strides = [1, 1]} : vector<8x256xf32> to vector<1x256xf32>
    %706 = vector.broadcast %705 : vector<1x256xf32> to vector<8x256xf32>
    %707 = arith.mulf %704, %706 : vector<8x256xf32>
    %c33 = arith.constant 33 : index
    %708 = memref.load %arg4[%c33] : memref<144xf32, #tpu.memory_space<smem>>
    %709 = vector.broadcast %708 : f32 to vector<8x256xf32>
    %710 = arith.mulf %709, %707 : vector<8x256xf32>
    %711 = arith.addf %691, %710 : vector<8x256xf32>
    %c69 = arith.constant 69 : index
    %712 = memref.load %arg4[%c69] : memref<144xf32, #tpu.memory_space<smem>>
    %713 = vector.broadcast %712 : f32 to vector<8x256xf32>
    %714 = arith.mulf %713, %707 : vector<8x256xf32>
    %715 = arith.addf %695, %714 : vector<8x256xf32>
    %c105 = arith.constant 105 : index
    %716 = memref.load %arg4[%c105] : memref<144xf32, #tpu.memory_space<smem>>
    %717 = vector.broadcast %716 : f32 to vector<8x256xf32>
    %718 = arith.mulf %717, %707 : vector<8x256xf32>
    %719 = arith.addf %699, %718 : vector<8x256xf32>
    %c141 = arith.constant 141 : index
    %720 = memref.load %arg4[%c141] : memref<144xf32, #tpu.memory_space<smem>>
    %721 = vector.broadcast %720 : f32 to vector<8x256xf32>
    %722 = arith.mulf %721, %707 : vector<8x256xf32>
    %723 = arith.addf %703, %722 : vector<8x256xf32>
    %c240_i32_60 = arith.constant 240 : i32
    %724 = tpu.dynamic_rotate %587 by %c240_i32_60 dim 1 : vector<8x256xf32>, i32 -> vector<8x256xf32>
    %725 = vector.extract_strided_slice %0 {offsets = [6, 0], sizes = [1, 256], strides = [1, 1]} : vector<8x256xf32> to vector<1x256xf32>
    %726 = vector.broadcast %725 : vector<1x256xf32> to vector<8x256xf32>
    %727 = arith.mulf %724, %726 : vector<8x256xf32>
    %c34 = arith.constant 34 : index
    %728 = memref.load %arg4[%c34] : memref<144xf32, #tpu.memory_space<smem>>
    %729 = vector.broadcast %728 : f32 to vector<8x256xf32>
    %730 = arith.mulf %729, %727 : vector<8x256xf32>
    %731 = arith.addf %711, %730 : vector<8x256xf32>
    %c70 = arith.constant 70 : index
    %732 = memref.load %arg4[%c70] : memref<144xf32, #tpu.memory_space<smem>>
    %733 = vector.broadcast %732 : f32 to vector<8x256xf32>
    %734 = arith.mulf %733, %727 : vector<8x256xf32>
    %735 = arith.addf %715, %734 : vector<8x256xf32>
    %c106 = arith.constant 106 : index
    %736 = memref.load %arg4[%c106] : memref<144xf32, #tpu.memory_space<smem>>
    %737 = vector.broadcast %736 : f32 to vector<8x256xf32>
    %738 = arith.mulf %737, %727 : vector<8x256xf32>
    %739 = arith.addf %719, %738 : vector<8x256xf32>
    %c142 = arith.constant 142 : index
    %740 = memref.load %arg4[%c142] : memref<144xf32, #tpu.memory_space<smem>>
    %741 = vector.broadcast %740 : f32 to vector<8x256xf32>
    %742 = arith.mulf %741, %727 : vector<8x256xf32>
    %743 = arith.addf %723, %742 : vector<8x256xf32>
    %c239_i32_61 = arith.constant 239 : i32
    %744 = tpu.dynamic_rotate %587 by %c239_i32_61 dim 1 : vector<8x256xf32>, i32 -> vector<8x256xf32>
    %745 = vector.extract_strided_slice %0 {offsets = [7, 0], sizes = [1, 256], strides = [1, 1]} : vector<8x256xf32> to vector<1x256xf32>
    %746 = vector.broadcast %745 : vector<1x256xf32> to vector<8x256xf32>
    %747 = arith.mulf %744, %746 : vector<8x256xf32>
    %c35 = arith.constant 35 : index
    %748 = memref.load %arg4[%c35] : memref<144xf32, #tpu.memory_space<smem>>
    %749 = vector.broadcast %748 : f32 to vector<8x256xf32>
    %750 = arith.mulf %749, %747 : vector<8x256xf32>
    %751 = arith.addf %731, %750 : vector<8x256xf32>
    %c71 = arith.constant 71 : index
    %752 = memref.load %arg4[%c71] : memref<144xf32, #tpu.memory_space<smem>>
    %753 = vector.broadcast %752 : f32 to vector<8x256xf32>
    %754 = arith.mulf %753, %747 : vector<8x256xf32>
    %755 = arith.addf %735, %754 : vector<8x256xf32>
    %c107 = arith.constant 107 : index
    %756 = memref.load %arg4[%c107] : memref<144xf32, #tpu.memory_space<smem>>
    %757 = vector.broadcast %756 : f32 to vector<8x256xf32>
    %758 = arith.mulf %757, %747 : vector<8x256xf32>
    %759 = arith.addf %739, %758 : vector<8x256xf32>
    %c143 = arith.constant 143 : index
    %760 = memref.load %arg4[%c143] : memref<144xf32, #tpu.memory_space<smem>>
    %761 = vector.broadcast %760 : f32 to vector<8x256xf32>
    %762 = arith.mulf %761, %747 : vector<8x256xf32>
    %763 = arith.addf %743, %762 : vector<8x256xf32>
    %764 = tpu.iota {dimensions = array<i32: 0>} : vector<4x2xi32>
    %765 = tpu.iota {dimensions = array<i32: 1>} : vector<4x2xi32>
    %cst_62 = arith.constant 0.000000e+00 : f32
    %766 = vector.broadcast %cst_62 : f32 to vector<4x2xf32>
    %c0_63 = arith.constant 0 : index
    %767 = memref.load %arg5[%c0_63] : memref<4xf32, #tpu.memory_space<smem>>
    %768 = vector.broadcast %767 : f32 to vector<8x256xf32>
    %769 = arith.addf %751, %768 : vector<8x256xf32>
    %c0_64 = arith.constant 0 : index
    %c0_65 = arith.constant 0 : index
    %c0_66 = arith.constant 0 : index
    %c0_67 = arith.constant 0 : index
    %770 = vector.load %arg8[%c0_64, %c0_65, %c0_66, %c0_67] : memref<1x4x8x256xf32, #tpu.memory_space<vmem>>, vector<1x1x8x256xf32>
    %771 = vector.shape_cast %770 : vector<1x1x8x256xf32> to vector<8x256xf32>
    %772 = vector.shape_cast %769 : vector<8x256xf32> to vector<1x1x8x256xf32>
    tpu.vector_store %arg8[%c0_64, %c0_65, %c0_66, %c0_67], %772 {strides = array<i32>} : memref<1x4x8x256xf32, #tpu.memory_space<vmem>>, vector<1x1x8x256xf32>,
    %cst_68 = arith.constant dense<0.000000e+00> : vector<8xf32>
    %773 = vector.multi_reduction <add>, %751, %cst_68 [1] : vector<8x256xf32> to vector<8xf32>
    %774 = vector.shape_cast %773 : vector<8xf32> to vector<8x1xf32>
    %cst_69 = arith.constant dense<0.000000e+00> : vector<1xf32>
    %775 = vector.multi_reduction <add>, %774, %cst_69 [0] : vector<8x1xf32> to vector<1xf32>
    %776 = vector.shape_cast %775 : vector<1xf32> to vector<1x1xf32>
    %777 = arith.mulf %751, %751 : vector<8x256xf32>
    %cst_70 = arith.constant dense<0.000000e+00> : vector<8xf32>
    %778 = vector.multi_reduction <add>, %777, %cst_70 [1] : vector<8x256xf32> to vector<8xf32>
    %779 = vector.shape_cast %778 : vector<8xf32> to vector<8x1xf32>
    %cst_71 = arith.constant dense<0.000000e+00> : vector<1xf32>
    %780 = vector.multi_reduction <add>, %779, %cst_71 [0] : vector<8x1xf32> to vector<1xf32>
    %781 = vector.shape_cast %780 : vector<1xf32> to vector<1x1xf32>
    %cst_72 = arith.constant 2.048000e+03 : f32
    %782 = arith.mulf %767, %cst_72 : f32
    %783 = vector.broadcast %782 : f32 to vector<1x1xf32>
    %784 = arith.addf %776, %783 : vector<1x1xf32>
    %cst_73 = arith.constant 2.000000e+00 : f32
    %785 = arith.mulf %cst_73, %767 : f32
    %786 = vector.broadcast %785 : f32 to vector<1x1xf32>
    %787 = arith.mulf %786, %776 : vector<1x1xf32>
    %788 = arith.addf %781, %787 : vector<1x1xf32>
    %789 = arith.mulf %767, %767 : f32
    %cst_74 = arith.constant 2.048000e+03 : f32
    %790 = arith.mulf %789, %cst_74 : f32
    %791 = vector.broadcast %790 : f32 to vector<1x1xf32>
    %792 = arith.addf %788, %791 : vector<1x1xf32>
    %c0_i32_75 = arith.constant 0 : i32
    %793 = vector.broadcast %c0_i32_75 : i32 to vector<4x2xi32>
    %794 = arith.cmpi eq, %764, %793 : vector<4x2xi32>
    %c0_i32_76 = arith.constant 0 : i32
    %795 = vector.broadcast %c0_i32_76 : i32 to vector<4x2xi32>
    %796 = arith.cmpi eq, %765, %795 : vector<4x2xi32>
    %797 = vector.shape_cast %784 : vector<1x1xf32> to vector<1x1xf32>
    %798 = vector.broadcast %797 : vector<1x1xf32> to vector<4x2xf32>
    %799 = vector.shape_cast %792 : vector<1x1xf32> to vector<1x1xf32>
    %800 = vector.broadcast %799 : vector<1x1xf32> to vector<4x2xf32>
    %801 = arith.select %796, %798, %800 : vector<4x2xi1>, vector<4x2xf32>
    %cst_77 = arith.constant 0.000000e+00 : f32
    %802 = vector.broadcast %cst_77 : f32 to vector<4x2xf32>
    %803 = arith.select %794, %801, %802 : vector<4x2xi1>, vector<4x2xf32>
    %804 = arith.addf %766, %803 : vector<4x2xf32>
    %c1_78 = arith.constant 1 : index
    %805 = memref.load %arg5[%c1_78] : memref<4xf32, #tpu.memory_space<smem>>
    %806 = vector.broadcast %805 : f32 to vector<8x256xf32>
    %807 = arith.addf %755, %806 : vector<8x256xf32>
    %c0_79 = arith.constant 0 : index
    %c1_80 = arith.constant 1 : index
    %c0_81 = arith.constant 0 : index
    %c0_82 = arith.constant 0 : index
    %808 = vector.load %arg8[%c0_79, %c1_80, %c0_81, %c0_82] : memref<1x4x8x256xf32, #tpu.memory_space<vmem>>, vector<1x1x8x256xf32>
    %809 = vector.shape_cast %808 : vector<1x1x8x256xf32> to vector<8x256xf32>
    %810 = vector.shape_cast %807 : vector<8x256xf32> to vector<1x1x8x256xf32>
    tpu.vector_store %arg8[%c0_79, %c1_80, %c0_81, %c0_82], %810 {strides = array<i32>} : memref<1x4x8x256xf32, #tpu.memory_space<vmem>>, vector<1x1x8x256xf32>,
    %cst_83 = arith.constant dense<0.000000e+00> : vector<8xf32>
    %811 = vector.multi_reduction <add>, %755, %cst_83 [1] : vector<8x256xf32> to vector<8xf32>
    %812 = vector.shape_cast %811 : vector<8xf32> to vector<8x1xf32>
    %cst_84 = arith.constant dense<0.000000e+00> : vector<1xf32>
    %813 = vector.multi_reduction <add>, %812, %cst_84 [0] : vector<8x1xf32> to vector<1xf32>
    %814 = vector.shape_cast %813 : vector<1xf32> to vector<1x1xf32>
    %815 = arith.mulf %755, %755 : vector<8x256xf32>
    %cst_85 = arith.constant dense<0.000000e+00> : vector<8xf32>
    %816 = vector.multi_reduction <add>, %815, %cst_85 [1] : vector<8x256xf32> to vector<8xf32>
    %817 = vector.shape_cast %816 : vector<8xf32> to vector<8x1xf32>
    %cst_86 = arith.constant dense<0.000000e+00> : vector<1xf32>
    %818 = vector.multi_reduction <add>, %817, %cst_86 [0] : vector<8x1xf32> to vector<1xf32>
    %819 = vector.shape_cast %818 : vector<1xf32> to vector<1x1xf32>
    %cst_87 = arith.constant 2.048000e+03 : f32
    %820 = arith.mulf %805, %cst_87 : f32
    %821 = vector.broadcast %820 : f32 to vector<1x1xf32>
    %822 = arith.addf %814, %821 : vector<1x1xf32>
    %cst_88 = arith.constant 2.000000e+00 : f32
    %823 = arith.mulf %cst_88, %805 : f32
    %824 = vector.broadcast %823 : f32 to vector<1x1xf32>
    %825 = arith.mulf %824, %814 : vector<1x1xf32>
    %826 = arith.addf %819, %825 : vector<1x1xf32>
    %827 = arith.mulf %805, %805 : f32
    %cst_89 = arith.constant 2.048000e+03 : f32
    %828 = arith.mulf %827, %cst_89 : f32
    %829 = vector.broadcast %828 : f32 to vector<1x1xf32>
    %830 = arith.addf %826, %829 : vector<1x1xf32>
    %c1_i32_90 = arith.constant 1 : i32
    %831 = vector.broadcast %c1_i32_90 : i32 to vector<4x2xi32>
    %832 = arith.cmpi eq, %764, %831 : vector<4x2xi32>
    %c0_i32_91 = arith.constant 0 : i32
    %833 = vector.broadcast %c0_i32_91 : i32 to vector<4x2xi32>
    %834 = arith.cmpi eq, %765, %833 : vector<4x2xi32>
    %835 = vector.shape_cast %822 : vector<1x1xf32> to vector<1x1xf32>
    %836 = vector.broadcast %835 : vector<1x1xf32> to vector<4x2xf32>
    %837 = vector.shape_cast %830 : vector<1x1xf32> to vector<1x1xf32>
    %838 = vector.broadcast %837 : vector<1x1xf32> to vector<4x2xf32>
    %839 = arith.select %834, %836, %838 : vector<4x2xi1>, vector<4x2xf32>
    %cst_92 = arith.constant 0.000000e+00 : f32
    %840 = vector.broadcast %cst_92 : f32 to vector<4x2xf32>
    %841 = arith.select %832, %839, %840 : vector<4x2xi1>, vector<4x2xf32>
    %842 = arith.addf %804, %841 : vector<4x2xf32>
    %c2_93 = arith.constant 2 : index
    %843 = memref.load %arg5[%c2_93] : memref<4xf32, #tpu.memory_space<smem>>
    %844 = vector.broadcast %843 : f32 to vector<8x256xf32>
    %845 = arith.addf %759, %844 : vector<8x256xf32>
    %c0_94 = arith.constant 0 : index
    %c2_95 = arith.constant 2 : index
    %c0_96 = arith.constant 0 : index
    %c0_97 = arith.constant 0 : index
    %846 = vector.load %arg8[%c0_94, %c2_95, %c0_96, %c0_97] : memref<1x4x8x256xf32, #tpu.memory_space<vmem>>, vector<1x1x8x256xf32>
    %847 = vector.shape_cast %846 : vector<1x1x8x256xf32> to vector<8x256xf32>
    %848 = vector.shape_cast %845 : vector<8x256xf32> to vector<1x1x8x256xf32>
    tpu.vector_store %arg8[%c0_94, %c2_95, %c0_96, %c0_97], %848 {strides = array<i32>} : memref<1x4x8x256xf32, #tpu.memory_space<vmem>>, vector<1x1x8x256xf32>,
    %cst_98 = arith.constant dense<0.000000e+00> : vector<8xf32>
    %849 = vector.multi_reduction <add>, %759, %cst_98 [1] : vector<8x256xf32> to vector<8xf32>
    %850 = vector.shape_cast %849 : vector<8xf32> to vector<8x1xf32>
    %cst_99 = arith.constant dense<0.000000e+00> : vector<1xf32>
    %851 = vector.multi_reduction <add>, %850, %cst_99 [0] : vector<8x1xf32> to vector<1xf32>
    %852 = vector.shape_cast %851 : vector<1xf32> to vector<1x1xf32>
    %853 = arith.mulf %759, %759 : vector<8x256xf32>
    %cst_100 = arith.constant dense<0.000000e+00> : vector<8xf32>
    %854 = vector.multi_reduction <add>, %853, %cst_100 [1] : vector<8x256xf32> to vector<8xf32>
    %855 = vector.shape_cast %854 : vector<8xf32> to vector<8x1xf32>
    %cst_101 = arith.constant dense<0.000000e+00> : vector<1xf32>
    %856 = vector.multi_reduction <add>, %855, %cst_101 [0] : vector<8x1xf32> to vector<1xf32>
    %857 = vector.shape_cast %856 : vector<1xf32> to vector<1x1xf32>
    %cst_102 = arith.constant 2.048000e+03 : f32
    %858 = arith.mulf %843, %cst_102 : f32
    %859 = vector.broadcast %858 : f32 to vector<1x1xf32>
    %860 = arith.addf %852, %859 : vector<1x1xf32>
    %cst_103 = arith.constant 2.000000e+00 : f32
    %861 = arith.mulf %cst_103, %843 : f32
    %862 = vector.broadcast %861 : f32 to vector<1x1xf32>
    %863 = arith.mulf %862, %852 : vector<1x1xf32>
    %864 = arith.addf %857, %863 : vector<1x1xf32>
    %865 = arith.mulf %843, %843 : f32
    %cst_104 = arith.constant 2.048000e+03 : f32
    %866 = arith.mulf %865, %cst_104 : f32
    %867 = vector.broadcast %866 : f32 to vector<1x1xf32>
    %868 = arith.addf %864, %867 : vector<1x1xf32>
    %c2_i32 = arith.constant 2 : i32
    %869 = vector.broadcast %c2_i32 : i32 to vector<4x2xi32>
    %870 = arith.cmpi eq, %764, %869 : vector<4x2xi32>
    %c0_i32_105 = arith.constant 0 : i32
    %871 = vector.broadcast %c0_i32_105 : i32 to vector<4x2xi32>
    %872 = arith.cmpi eq, %765, %871 : vector<4x2xi32>
    %873 = vector.shape_cast %860 : vector<1x1xf32> to vector<1x1xf32>
    %874 = vector.broadcast %873 : vector<1x1xf32> to vector<4x2xf32>
    %875 = vector.shape_cast %868 : vector<1x1xf32> to vector<1x1xf32>
    %876 = vector.broadcast %875 : vector<1x1xf32> to vector<4x2xf32>
    %877 = arith.select %872, %874, %876 : vector<4x2xi1>, vector<4x2xf32>
    %cst_106 = arith.constant 0.000000e+00 : f32
    %878 = vector.broadcast %cst_106 : f32 to vector<4x2xf32>
    %879 = arith.select %870, %877, %878 : vector<4x2xi1>, vector<4x2xf32>
    %880 = arith.addf %842, %879 : vector<4x2xf32>
    %c3_107 = arith.constant 3 : index
    %881 = memref.load %arg5[%c3_107] : memref<4xf32, #tpu.memory_space<smem>>
    %882 = vector.broadcast %881 : f32 to vector<8x256xf32>
    %883 = arith.addf %763, %882 : vector<8x256xf32>
    %c0_108 = arith.constant 0 : index
    %c3_109 = arith.constant 3 : index
    %c0_110 = arith.constant 0 : index
    %c0_111 = arith.constant 0 : index
    %884 = vector.load %arg8[%c0_108, %c3_109, %c0_110, %c0_111] : memref<1x4x8x256xf32, #tpu.memory_space<vmem>>, vector<1x1x8x256xf32>
    %885 = vector.shape_cast %884 : vector<1x1x8x256xf32> to vector<8x256xf32>
    %886 = vector.shape_cast %883 : vector<8x256xf32> to vector<1x1x8x256xf32>
    tpu.vector_store %arg8[%c0_108, %c3_109, %c0_110, %c0_111], %886 {strides = array<i32>} : memref<1x4x8x256xf32, #tpu.memory_space<vmem>>, vector<1x1x8x256xf32>,
    %cst_112 = arith.constant dense<0.000000e+00> : vector<8xf32>
    %887 = vector.multi_reduction <add>, %763, %cst_112 [1] : vector<8x256xf32> to vector<8xf32>
    %888 = vector.shape_cast %887 : vector<8xf32> to vector<8x1xf32>
    %cst_113 = arith.constant dense<0.000000e+00> : vector<1xf32>
    %889 = vector.multi_reduction <add>, %888, %cst_113 [0] : vector<8x1xf32> to vector<1xf32>
    %890 = vector.shape_cast %889 : vector<1xf32> to vector<1x1xf32>
    %891 = arith.mulf %763, %763 : vector<8x256xf32>
    %cst_114 = arith.constant dense<0.000000e+00> : vector<8xf32>
    %892 = vector.multi_reduction <add>, %891, %cst_114 [1] : vector<8x256xf32> to vector<8xf32>
    %893 = vector.shape_cast %892 : vector<8xf32> to vector<8x1xf32>
    %cst_115 = arith.constant dense<0.000000e+00> : vector<1xf32>
    %894 = vector.multi_reduction <add>, %893, %cst_115 [0] : vector<8x1xf32> to vector<1xf32>
    %895 = vector.shape_cast %894 : vector<1xf32> to vector<1x1xf32>
    %cst_116 = arith.constant 2.048000e+03 : f32
    %896 = arith.mulf %881, %cst_116 : f32
    %897 = vector.broadcast %896 : f32 to vector<1x1xf32>
    %898 = arith.addf %890, %897 : vector<1x1xf32>
    %cst_117 = arith.constant 2.000000e+00 : f32
    %899 = arith.mulf %cst_117, %881 : f32
    %900 = vector.broadcast %899 : f32 to vector<1x1xf32>
    %901 = arith.mulf %900, %890 : vector<1x1xf32>
    %902 = arith.addf %895, %901 : vector<1x1xf32>
    %903 = arith.mulf %881, %881 : f32
    %cst_118 = arith.constant 2.048000e+03 : f32
    %904 = arith.mulf %903, %cst_118 : f32
    %905 = vector.broadcast %904 : f32 to vector<1x1xf32>
    %906 = arith.addf %902, %905 : vector<1x1xf32>
    %c3_i32 = arith.constant 3 : i32
    %907 = vector.broadcast %c3_i32 : i32 to vector<4x2xi32>
    %908 = arith.cmpi eq, %764, %907 : vector<4x2xi32>
    %c0_i32_119 = arith.constant 0 : i32
    %909 = vector.broadcast %c0_i32_119 : i32 to vector<4x2xi32>
    %910 = arith.cmpi eq, %765, %909 : vector<4x2xi32>
    %911 = vector.shape_cast %898 : vector<1x1xf32> to vector<1x1xf32>
    %912 = vector.broadcast %911 : vector<1x1xf32> to vector<4x2xf32>
    %913 = vector.shape_cast %906 : vector<1x1xf32> to vector<1x1xf32>
    %914 = vector.broadcast %913 : vector<1x1xf32> to vector<4x2xf32>
    %915 = arith.select %910, %912, %914 : vector<4x2xi1>, vector<4x2xf32>
    %cst_120 = arith.constant 0.000000e+00 : f32
    %916 = vector.broadcast %cst_120 : f32 to vector<4x2xf32>
    %917 = arith.select %908, %915, %916 : vector<4x2xi1>, vector<4x2xf32>
    %918 = arith.addf %880, %917 : vector<4x2xf32>
    %c0_121 = arith.constant 0 : index
    %c0_122 = arith.constant 0 : index
    %c0_123 = arith.constant 0 : index
    %919 = vector.load %arg9[%c0_121, %c0_122, %c0_123] : memref<1x4x2xf32, #tpu.memory_space<vmem>>, vector<1x4x2xf32>
    %920 = vector.shape_cast %919 : vector<1x4x2xf32> to vector<4x2xf32>
    %921 = arith.addf %920, %918 : vector<4x2xf32>
    %c0_124 = arith.constant 0 : index
    %c0_125 = arith.constant 0 : index
    %c0_126 = arith.constant 0 : index
    %922 = vector.load %arg9[%c0_124, %c0_125, %c0_126] : memref<1x4x2xf32, #tpu.memory_space<vmem>>, vector<1x4x2xf32>
    %923 = vector.shape_cast %922 : vector<1x4x2xf32> to vector<4x2xf32>
    %924 = vector.shape_cast %921 : vector<4x2xf32> to vector<1x4x2xf32>
    tpu.vector_store %arg9[%c0_124, %c0_125, %c0_126], %924 {strides = array<i32>} : memref<1x4x2xf32, #tpu.memory_space<vmem>>, vector<1x4x2xf32>,
    return
  }
  func.func @transform_0(%arg0: i32, %arg1: i32) -> (i32, i32, i32, i32) {
    %c0_i32 = arith.constant 0 : i32
    %c0_i32_0 = arith.constant 0 : i32
    %c0_i32_1 = arith.constant 0 : i32
    return %arg0, %c0_i32, %arg1, %c0_i32_0 : i32, i32, i32, i32
  }
  func.func @transform_1(%arg0: i32, %arg1: i32) -> (i32, i32) {
    %c0_i32 = arith.constant 0 : i32
    %c0_i32_0 = arith.constant 0 : i32
    %c0_i32_1 = arith.constant 0 : i32
    return %c0_i32, %c0_i32_0 : i32, i32
  }
  func.func @transform_2(%arg0: i32, %arg1: i32) -> i32 {
    %c0_i32 = arith.constant 0 : i32
    %c0_i32_0 = arith.constant 0 : i32
    return %c0_i32 : i32
  }
  func.func @transform_3(%arg0: i32, %arg1: i32) -> i32 {
    %c0_i32 = arith.constant 0 : i32
    %c0_i32_0 = arith.constant 0 : i32
    return %c0_i32 : i32
  }
  func.func @transform_4(%arg0: i32, %arg1: i32) -> i32 {
    %c0_i32 = arith.constant 0 : i32
    %c0_i32_0 = arith.constant 0 : i32
    return %c0_i32 : i32
  }
  func.func @transform_5(%arg0: i32, %arg1: i32) -> i32 {
    %c0_i32 = arith.constant 0 : i32
    %c0_i32_0 = arith.constant 0 : i32
    return %c0_i32 : i32
  }
  func.func @transform_6(%arg0: i32, %arg1: i32) -> (i32, i32, i32, i32) {
    %c0_i32 = arith.constant 0 : i32
    %c0_i32_0 = arith.constant 0 : i32
    %c0_i32_1 = arith.constant 0 : i32
    return %arg0, %c0_i32, %arg1, %c0_i32_0 : i32, i32, i32, i32
  }
  func.func @transform_7(%arg0: i32, %arg1: i32) -> (i32, i32, i32) {
    %c0_i32 = arith.constant 0 : i32
    %c0_i32_0 = arith.constant 0 : i32
    %c0_i32_1 = arith.constant 0 : i32
    return %arg0, %c0_i32, %c0_i32_0 : i32, i32, i32
  }
}

</mosaic_0001>

<bundles_post_ra>
// kernel: residual_block_2d.5
= control target key start
LH: loop header
LB: loop body
LE: loop exit
PB: predicated region body
PF: predicated region fallthrough
CT: control target
= control target key end

     0   :  { %9 = vsyncpa [#allocation3], 0  ;;  %s791_s0 = inlined_call_operand.vmem [shape: f32[2,4,8,256], index: 0, kind: input, shape index: {}, may-alias: {0,4}]   ;;  %s792_s1 = inlined_call_operand.vmem [shape: f32[2,4,8,256], index: 1, kind: input, shape index: {}]   ;;  %s793_s2 = inlined_call_operand.vmem [shape: f32[4], index: 2, kind: input, shape index: {}]   ;;  %s794_s3 = inlined_call_operand.vmem [shape: f32[4], index: 3, kind: input, shape index: {}]   ;;  %s795_s4 = inlined_call_operand.vmem [shape: f32[2,4,8,256], index: 4, kind: output, shape index: {}, may-alias: {0,4}]  }
   0x1   :  { %10 = vsyncpa [#allocation5], 0  ;;  %s682_s15 = smov 0   ;;  %s684_s16 = smov 0  }
   0x2   :  { %s686_s17 = smov 0  }
   0x3 LB: > { %s504_s18 = sadd.s32 4294967295, %s653_s17   ;;  %s28_s19 = sadd.s32 1, %s649_s16  ;;  %s653_s17 = sphi %s686_s17, %s16_s17   ;;  %s649_s16 = sphi %s684_s16, %s805_s16   ;;  %s645_s15 = sphi %s682_s15, %s804_s15  }
   0x4   : > { %p30_p0 = scmp.ge.s32.totalorder %s28_s19, 2  ;;  %p506_p1 = scmp.ge.s32.totalorder %s653_s17, 1 }
   0x5   : > { %p159_p2 = scmp.lt.s32.totalorder %s653_s17, 3  ;;  %p707_p4 = scmp.eq.s32.totalorder %s504_s18, 0 }
   0x6   : > { %s807_s19 = smov (%p30_p0, %s28_s19), 0  ;;  %s172_s24 = sshll.u32 %s793_s2, 4  ;;  %s173_s24 = int_to_ptr.vmem [resolvable:$true] %s172_s24 }
   0x7   : > { %p703_p3 = pnand %p506_p1, %p159_p2  ;;  %s183_s27 = sshll.u32 %s794_s3, 4  ;;  %s184_s27 = int_to_ptr.vmem [resolvable:$true] %s183_s27 }
   0x8   : > { %s800_s21 = scalar_select %p707_p4, 1, 0 }
   0x9   : > { %s799_s20 = scalar_select %p703_p3, 1, 0 }
   0xa   : > { %p556_p5 = pneg %p703_p3  ;;  %s593_s29 = scalar_lea.vmem %s173_s24, 16 }
   0xb   : > { %p594_p7 = scmp.ne.s32.totalorder %s173_s24, %s593_s29  ;;  %p601_p11 = scmp.lt.s32.totalorder %s173_s24, %s173_s24 }
   0xc   : > { %p721_p6 = pnand %p707_p4, %p556_p5  ;;  %p602_p12 = scmp.lt.s32.totalorder %s593_s29, %s593_s29 }
   0xe   : > { %p595_p8 = pneg %p721_p6  ;;  %p603_p13 = por %p602_p12, %p601_p11 }
  0x10   : > { %p596_p9 = pnand %p595_p8, %p594_p7 }
  0x12   : > { %p597_p10 = pneg %p596_p9 }
  0x14   : > { %p604_p0 = pnand %p603_p13, %p597_p10 }
  0x16   : > { %607 = shalt.err (!%p604_p0)
}
  0x17   : > { %s655_s30 = smov [#allocation2]   ;;  %s608_s5 = scalar_lea.vmem %s184_s27, 16 }
  0x18   : > { %559 = dma.vmem_to_smem (!%p721_p6), %s173_s24, 16, %s655_s30, [#allocation3]  }
  0x19   : > { %p609_p1 = scmp.ne.s32.totalorder %s184_s27, %s608_s5  ;;  %p616_p4 = scmp.lt.s32.totalorder %s184_s27, %s184_s27 }
  0x1a   : > { %p617_p3 = scmp.lt.s32.totalorder %s608_s5, %s608_s5 }
  0x1b   : > { %p611_p2 = pnand %p609_p1, %p595_p8 }
  0x1c   : > { %p618_p7 = por %p617_p3, %p616_p4 }
  0x1d   : > { %p612_p5 = pneg %p611_p2 }
  0x1f   : > { %p619_p9 = pnand %p618_p7, %p612_p5 }
  0x21   : > { %622 = shalt.err (!%p619_p9)
}
  0x22   : > { %s656_s6 = smov [#allocation4]   ;;  %p802_p10 = scmp.ne.s32.totalorder %s799_s20, 0 }
  0x23   : > { %562 = dma.vmem_to_smem (!%p721_p6), %s184_s27, 16, %s656_s6, [#allocation5]  }
  0x24   : > { %220 = sbr.rel (%p802_p10) target bundleno = 102 (0x66), region = 36  ;;  %p803_p11 = scmp.ne.s32.totalorder (!%p802_p10), %s800_s21, 0 }
  0x29   : > { %636 = dma.done.wait (%p803_p11), [#allocation3], 16  }
  0x2a   : > { %638 = vsyncadd (%p803_p11), [#allocation3], 4294967280 }
  0x2b   : > { %640 = dma.done.wait (%p803_p11), [#allocation5], 16  }
  0x2c   : > { %642 = vsyncadd (%p803_p11), [#allocation5], 4294967280 }
  0x2d   : > { %230 = sfence }
  0x2e   : > { %p268_p3 = scmp.lt.s32.totalorder %s645_s15, 1  ;;  %s297_s7 = sld [smem:[#allocation2]] }
  0x2f   : > { %s301_s8 = sld [smem:[#allocation4]] }
  0x30   : > { %s809_s15 = smov (!%p268_p3, %s645_s15), 1  ;;  %s521_s22 = sld [smem:[#allocation2 + $0x1]] }
  0x31   : > { %s545_s9 = sshll.u32 %s809_s15, 6  ;;  %s522_s23 = sld [smem:[#allocation4 + $0x1]] }
  0x32   : > { %s746_s12 = scalar_lea.vmem %s791_s0, %s545_s9  ;;  %s751_s18 = scalar_lea.vmem %s792_s1, %s545_s9 }
  0x33   : > { %v295_v0 = vld [vmem:[%s746_s12] sm:$0xff]  ;;  %v296_v1 = vld [vmem:[%s746_s12 + $0x8] sm:$0xff]  ;;  %s760_s21 = scalar_lea.vmem %s795_s4, %s545_s9  ;;  %v523_v18 = vld [vmem:[%s751_s18 + $0x10] sm:$0xff]  ;;  %s529_s24 = sld [smem:[#allocation2 + $0x2]] }
  0x34   : > { %v298_v2 = vstv %s297_s7  ;;  %v305_v6 = vld [vmem:[%s751_s18] sm:$0xff]  ;;  %v306_v7 = vld [vmem:[%s751_s18 + $0x8] sm:$0xff]  ;;  %v524_v19 = vld [vmem:[%s751_s18 + $0x18] sm:$0xff]  ;;  %s530_s25 = sld [smem:[#allocation4 + $0x2]] }
  0x35   : > { %v299_v3 = vmul.f32 %v298_v2, %v295_v0  ;;  %v302_v4 = vstv %s301_s8  ;;  %v300_v5 = vmul.f32 %v298_v2, %v296_v1  ;;  %v531_v30 = vld [vmem:[%s751_s18 + $0x20] sm:$0xff]  ;;  %v532_v31 = vld [vmem:[%s751_s18 + $0x28] sm:$0xff]  ;;  %s537_s26 = sld [smem:[#allocation2 + $0x3]]  ;;  %v539_v42 = vld [vmem:[%s751_s18 + $0x30] sm:$0xff] }
  0x36   : > { %v315_v12 = vstv %s521_s22  ;;  %s538_s27 = sld [smem:[#allocation4 + $0x3]]  ;;  %v540_v43 = vld [vmem:[%s751_s18 + $0x38] sm:$0xff] }
  0x37   : > { %v303_v8 = vadd.f32 %v302_v4, %v299_v3  ;;  %v304_v9 = vadd.f32 %v302_v4, %v300_v5  ;;  %v319_v15 = vstv %s522_s23 }
  0x39   : > { %v307_v10 = vadd.f32 %v305_v6, %v303_v8  ;;  %v308_v11 = vadd.f32 %v306_v7, %v304_v9  ;;  %v334_v24 = vstv %s529_s24 }
  0x3a   : > { %v338_v27 = vstv %s530_s25 }
  0x3b   : > { %309 = vst [vmem:[%s760_s21] sm:$0xff] %v307_v10  ;;  %310 = vst [vmem:[%s760_s21 + $0x8] sm:$0xff] %v308_v11  ;;  %v353_v36 = vstv %s537_s26 }
  0x3c   : > { %v357_v39 = vstv %s538_s27 }
  0x42   : > { %v519_v13 = vld [vmem:[%s746_s12 + $0x10] sm:$0xff]  ;;  %v520_v14 = vld [vmem:[%s746_s12 + $0x18] sm:$0xff] }
  0x43   : > { %v316_v16 = vmul.f32 %v519_v13, %v315_v12  ;;  %v317_v17 = vmul.f32 %v520_v14, %v315_v12 }
  0x45   : > { %v320_v20 = vadd.f32 %v319_v15, %v316_v16  ;;  %v321_v21 = vadd.f32 %v319_v15, %v317_v17 }
  0x47   : > { %v325_v22 = vadd.f32 %v523_v18, %v320_v20  ;;  %v326_v23 = vadd.f32 %v524_v19, %v321_v21 }
  0x49   : > { %525 = vst [vmem:[%s760_s21 + $0x10] sm:$0xff] %v325_v22  ;;  %526 = vst [vmem:[%s760_s21 + $0x18] sm:$0xff] %v326_v23 }
  0x50   : > { %v527_v25 = vld [vmem:[%s746_s12 + $0x20] sm:$0xff]  ;;  %v528_v26 = vld [vmem:[%s746_s12 + $0x28] sm:$0xff] }
  0x51   : > { %v335_v28 = vmul.f32 %v527_v25, %v334_v24  ;;  %v336_v29 = vmul.f32 %v528_v26, %v334_v24 }
  0x53   : > { %v339_v32 = vadd.f32 %v338_v27, %v335_v28  ;;  %v340_v33 = vadd.f32 %v338_v27, %v336_v29 }
  0x55   : > { %v344_v34 = vadd.f32 %v531_v30, %v339_v32  ;;  %v345_v35 = vadd.f32 %v532_v31, %v340_v33 }
  0x57   : > { %533 = vst [vmem:[%s760_s21 + $0x20] sm:$0xff] %v344_v34  ;;  %534 = vst [vmem:[%s760_s21 + $0x28] sm:$0xff] %v345_v35 }
  0x5e   : > { %v535_v37 = vld [vmem:[%s746_s12 + $0x30] sm:$0xff]  ;;  %v536_v38 = vld [vmem:[%s746_s12 + $0x38] sm:$0xff] }
  0x5f   : > { %v354_v40 = vmul.f32 %v535_v37, %v353_v36  ;;  %v355_v41 = vmul.f32 %v536_v38, %v353_v36 }
  0x61   : > { %v358_v44 = vadd.f32 %v357_v39, %v354_v40  ;;  %v359_v45 = vadd.f32 %v357_v39, %v355_v41 }
  0x63   : > { %v363_v46 = vadd.f32 %v539_v42, %v358_v44  ;;  %v364_v47 = vadd.f32 %v540_v43, %v359_v45 }
  0x65   : > { %541 = vst [vmem:[%s760_s21 + $0x30] sm:$0xff] %v363_v46  ;;  %542 = vst [vmem:[%s760_s21 + $0x38] sm:$0xff] %v364_v47 }
  0x66 PF: > { %s16_s17 = sadd.s32 1, %s653_s17   ;;  %s804_s15 = smov %s649_s16 }
  0x67   : > { %p13_p4 = scmp.ge.s32.totalorder %s16_s17, 4   ;;  %s805_s16 = smov %s807_s19 }
  0x69   :  { %15 = sbr.rel (!%p13_p4) target bundleno = 3 (0x3), region = 87 }
  0x6e   :  { %397 = vsyncpa [#allocation3], 1 }
  0x6f   :  { %399 = vsyncpa [#allocation3 + $0x1], 1 }
  0x70   :  { %400 = vsyncpa [#allocation5], 1 }

// kernel: residual_block_2d.3
= control target key start
LH: loop header
LB: loop body
LE: loop exit
PB: predicated region body
PF: predicated region fallthrough
CT: control target
= control target key end

     0   :  { %s3772_s0 = inlined_call_operand.vmem [shape: f32[2,4,8,256], index: 0, kind: input, shape index: {}]   ;;  %s3773_s1 = inlined_call_operand.vmem [shape: f32[8,256], index: 1, kind: input, shape index: {}]   ;;  %s3774_s2 = inlined_call_operand.vmem [shape: f32[144], index: 2, kind: input, shape index: {}]   ;;  %s3775_s3 = inlined_call_operand.vmem [shape: f32[4], index: 3, kind: input, shape index: {}]   ;;  %s3776_s4 = inlined_call_operand.vmem [shape: f32[2,4,8,256], index: 4, kind: output, shape index: {0}]   ;;  %s3777_s5 = inlined_call_operand.vmem [shape: f32[2,4,2], index: 5, kind: output, shape index: {1}]  }
   0x1   :  { %3927 = sst [smem:[#allocation115_spill]] %s3772_s0 }
   0x2   :  { %3928 = sst [smem:[#allocation116_spill]] %s3773_s1 }
   0x3   :  { %3929 = sst [smem:[#allocation117_spill]] %s3774_s2 }
   0x4   :  { %3930 = sst [smem:[#allocation118_spill]] %s3775_s3 }
   0x5   :  { %3931 = sst [smem:[#allocation119_spill]] %s3776_s4 }
   0x6   :  { %3932 = sst [smem:[#allocation120_spill]] %s3777_s5 }
   0x7   :  { %11 = vsyncpa [#allocation3], 0 }
   0x8   :  { %12 = vsyncpa [#allocation5], 0  ;;  %s2167_s18 = smov 0   ;;  %s2169_s19 = smov 0  }
   0x9   :  { %s2171_s20 = smov 0  }
   0xa LB: > { %3933 = sst [smem:[#allocation8_spill]] %s2120_s19  ;;  %s1832_s21 = sadd.s32 4294967295, %s2124_s20   ;;  %s2124_s20 = sphi %s2171_s20, %s18_s20   ;;  %s2120_s19 = sphi %s2169_s19, %s4432_s19   ;;  %s2116_s18 = sphi %s2167_s18, %s4431_s18  }
   0xb   : > { %3934 = sst [smem:[#allocation9_spill]] %s2124_s20  ;;  %s30_s22 = sadd.s32 1, %s2120_s19 }
   0xc   : > { %p32_p0 = scmp.ge.s32.totalorder %s30_s22, 2  ;;  %p1834_p1 = scmp.ge.s32.totalorder %s2124_s20, 1 }
   0xd   : > { %p180_p2 = scmp.lt.s32.totalorder %s2124_s20, 3  ;;  %p2192_p4 = scmp.eq.s32.totalorder %s1832_s21, 0 }
   0xe   : > { %s4434_s22 = smov (%p32_p0, %s30_s22), 0  ;;  %s3938_s2 = sld [smem:[#allocation117_spill]] }
   0xf   : > { %3935 = sst [smem:[#allocation10_spill]] %s4434_s22  ;;  %p2188_p3 = pnand %p1834_p1, %p180_p2 }
  0x10   : > { %s3937_s24 = scalar_select %p2192_p4, 1, 0 }
  0x11   : > { %s3936_s23 = scalar_select %p2188_p3, 1, 0 }
  0x12   : > { %p2016_p5 = pneg %p2188_p3  ;;  %s3939_s3 = sld [smem:[#allocation118_spill]] }
  0x14   : > { %s196_s27 = sshll.u32 %s3938_s2, 4  ;;  %p2206_p6 = pnand %p2192_p4, %p2016_p5  ;;  %s197_s27 = int_to_ptr.vmem [resolvable:$true] %s196_s27 }
  0x15   : > { %s2064_s7 = scalar_lea.vmem %s197_s27, 32  ;;  %p2072_p11 = scmp.lt.s32.totalorder %s197_s27, %s197_s27 }
  0x16   : > { %p2065_p7 = scmp.ne.s32.totalorder %s197_s27, %s2064_s7  ;;  %p2066_p8 = pneg %p2206_p6 }
  0x17   : > { %p2073_p12 = scmp.lt.s32.totalorder %s2064_s7, %s2064_s7 }
  0x18   : > { %s207_s30 = sshll.u32 %s3939_s3, 4  ;;  %p2067_p9 = pnand %p2066_p8, %p2065_p7  ;;  %s208_s30 = int_to_ptr.vmem [resolvable:$true] %s207_s30 }
  0x19   : > { %p2074_p13 = por %p2073_p12, %p2072_p11 }
  0x1a   : > { %p2068_p10 = pneg %p2067_p9 }
  0x1c   : > { %p2075_p0 = pnand %p2074_p13, %p2068_p10 }
  0x1e   : > { %2078 = shalt.err (!%p2075_p0)
}
  0x1f   : > { %s2126_s8 = smov [#allocation2]   ;;  %s2079_s9 = scalar_lea.vmem %s208_s30, 16 }
  0x20   : > { %2019 = dma.vmem_to_smem (!%p2206_p6), %s197_s27, 32, %s2126_s8, [#allocation3]  }
  0x21   : > { %p2080_p1 = scmp.ne.s32.totalorder %s208_s30, %s2079_s9  ;;  %p2087_p4 = scmp.lt.s32.totalorder %s208_s30, %s208_s30 }
  0x22   : > { %p2088_p3 = scmp.lt.s32.totalorder %s2079_s9, %s2079_s9 }
  0x23   : > { %p2082_p2 = pnand %p2080_p1, %p2066_p8 }
  0x24   : > { %p2089_p7 = por %p2088_p3, %p2087_p4 }
  0x25   : > { %p2083_p5 = pneg %p2082_p2 }
  0x27   : > { %p2090_p9 = pnand %p2089_p7, %p2083_p5 }
  0x29   : > { %2093 = shalt.err (!%p2090_p9)
}
  0x2a   : > { %s2127_s10 = smov [#allocation4]   ;;  %p3941_p10 = scmp.ne.s32.totalorder %s3936_s23, 0 }
  0x2b   : > { %2022 = dma.vmem_to_smem (!%p2206_p6), %s208_s30, 16, %s2127_s10, [#allocation5]  }
  0x2c   : > { %232 = sbr.rel (%p3941_p10) target bundleno = 680 (0x2a8), region = 36 }
  0x31   : > { %p3942_p11 = scmp.ne.s32.totalorder %s3937_s24, 0 }
  0x33   : > { %2107 = dma.done.wait (%p3942_p11), [#allocation3], 32  }
  0x34   : > { %2109 = vsyncadd (%p3942_p11), [#allocation3], 4294967264 }
  0x35   : > { %2111 = dma.done.wait (%p3942_p11), [#allocation5], 16  }
  0x36   : > { %2113 = vsyncadd (%p3942_p11), [#allocation5], 4294967280 }
  0x37   : > { %242 = sfence }
  0x38   : > { %p277_p3 = scmp.lt.s32.totalorder %s2116_s18, 1  ;;  %s3944_s0 = sld [smem:[#allocation115_spill]]  ;;  %v337_v6 = vlaneseq  ;;  %vm305_vm8 = vcmask 11264  }
  0x39   : > { %s3786_s15 = smov 16   ;;  %s3788_s16 = smov 17  }
  0x3a   : > { %s4436_s18 = smov (!%p277_p3, %s2116_s18), 1  ;;  %s2248_s17 = sld [smem:[#allocation2 + $0x1]]  ;;  %v2464_v7 = vshrl.u32 %v337_v6, 7  ;;  %v2513_v15 = vand.u32 127, %v337_v6 }
  0x3b   : > { %3943 = sst [smem:[#allocation11_spill]] %s4436_s18  ;;  %s3781_s11 = sshll.u32 %s4436_s18, 6 }
  0x3c   : > { %s2254_s21 = sld [smem:[#allocation2 + $0x25]]  ;;  %s3784_s26 = smov 15   ;;  %4018 = vst [vmem:[#allocation77_spill] sm:$0xff] %v2464_v7  ;;  %v385_v8 = vsub.s32 1, %v2464_v7  ;;  %v344_v10 = vsub.s32 0, %v2464_v7  ;;  %v426_v12 = vsub.s32 2, %v2464_v7 }
  0x3d   : > { %s2256_s23 = sld [smem:[#allocation2 + $0x49]]  ;;  %s3782_s6 = smov 1   ;;  %v467_v14 = vsub.s32 3, %v2464_v7  ;;  %v508_v22 = vsub.s32 4, %v2464_v7  ;;  %v549_v34 = vsub.s32 5, %v2464_v7  ;;  %v590_v42 = vsub.s32 6, %v2464_v7 }
  0x3e   : > { %s2236_s14 = scalar_lea.vmem %s3944_s0, %s3781_s11  ;;  %s2258_s24 = sld [smem:[#allocation2 + $0x6d]]  ;;  %v631_v50 = vsub.s32 7, %v2464_v7  ;;  %vm380_vm0 = vcmp.lt.s32.totalorder %v2513_v15, 16  ;;  %vm339_vm1 = vcmp.lt.s32.totalorder %v2513_v15, 17  ;;  %vm421_vm2 = vcmp.lt.s32.totalorder %v2513_v15, 15 }
  0x3f   : > { %3945 = sst [smem:[#allocation12_spill]] %s2236_s14  ;;  %v2239_v0 = vld [vmem:[%s2236_s14] sm:$0xff]  ;;  %v2246_v1 = vld [vmem:[%s2236_s14 + $0x8] sm:$0xff]  ;;  %s3790_s12 = smov 127   ;;  %v2329_v2 = vld [vmem:[%s2236_s14 + $0x18] sm:$0xff]  ;;  %vm462_vm3 = vcmp.lt.s32.totalorder %v2513_v15, 1 }
  0x40   : > { %376 = vrot.lane.b32.xlu1 %v2239_v0, %s3786_s15  ;;  %333 = vrot.lane.b32.xlu0 %v2239_v0, %s3788_s16  ;;  %3946 = sst [smem:[#allocation13_spill]] %s2248_s17  ;;  %s3796_s3 = smov 112   ;;  %v2332_v3 = vld [vmem:[%s2236_s14 + $0x10] sm:$0xff]  ;;  %v2431_v4 = vld [vmem:[%s2236_s14 + $0x28] sm:$0xff]  ;;  %vm503_vm4 = vcmp.lt.s32.totalorder %v2513_v15, 127  ;;  %vm544_vm5 = vcmp.lt.s32.totalorder %v2513_v15, 113 }
  0x41   : > { %s2260_s25 = sld [smem:[#allocation2 + $0x4]]  ;;  %s3803_s5 = smov 111   ;;  %v2434_v5 = vld [vmem:[%s2236_s14 + $0x20] sm:$0xff]  ;;  %v394_v23 = vstv %s2248_s17  ;;  %v2631_v59 = vld [vmem:[%s2236_s14 + $0x38] sm:$0xff]  ;;  %v2634_v60 = vld [vmem:[%s2236_s14 + $0x30] sm:$0xff]  ;;  %vm585_vm6 = vcmp.lt.s32.totalorder %v2513_v15, 112 }
  0x42   : > { %3947 = sst [smem:[#allocation14_spill]] %s2254_s21  ;;  %v400_v24 = vstv %s2254_s21  ;;  %vm626_vm7 = vcmp.lt.s32.totalorder %v2513_v15, 111  ;;  %vm1552_vm9 = vcmp.eq.s32.totalorder %v2513_v15, 0 }
  0x43   : > { %3948 = sst [smem:[#allocation15_spill]] %s2256_s23  ;;  %v406_v27 = vstv %s2256_s23  ;;  %s4109_s23 = smov 1  }
  0x44   : > { %378 = vrot.lane.b32.xlu1 %v2246_v1, %s3786_s15  ;;  %335 = vrot.lane.b32.xlu0 %v2246_v1, %s3788_s16  ;;  %3949 = sst [smem:[#allocation16_spill]] %s2258_s24  ;;  %s3792_s15 = smov 113  }
  0x45   : > { %s2266_s27 = sld [smem:[#allocation2 + $0x28]] }
  0x46   : > { %s2268_s28 = sld [smem:[#allocation2 + $0x4c]] }
  0x47   : > { %s2270_s29 = sld [smem:[#allocation2 + $0x70]]  ;;  %v310_v19 = vstv %s2260_s25 }
  0x48   : > { %419 = vrot.lane.b32.xlu1 %v2246_v1, %s3784_s26  ;;  %417 = vrot.lane.b32.xlu0 %v2239_v0, %s3784_s26  ;;  %s2272_s30 = sld [smem:[#allocation2]]  ;;  %v2558_v32 = vmul.f32 %v310_v19, %v2246_v1  ;;  %v2561_v33 = vmul.f32 %v310_v19, %v2239_v0 }
  0x49   : > { %s2278_s7 = sld [smem:[#allocation2 + $0x24]] }
  0x4a   : > { %s2280_s8 = sld [smem:[#allocation2 + $0x48]] }
  0x4b   : > { %s2282_s9 = sld [smem:[#allocation2 + $0x6c]]  ;;  %v316_v25 = vstv %s2266_s27 }
  0x4c   : > { %460 = vrot.lane.b32.xlu1 %v2246_v1, %s3782_s6  ;;  %458 = vrot.lane.b32.xlu0 %v2239_v0, %s3782_s6  ;;  %s2284_s10 = sld [smem:[#allocation2 + $0x2]]  ;;  %v322_v26 = vstv %s2268_s28  ;;  %v2567_v35 = vmul.f32 %v316_v25, %v2246_v1  ;;  %v2573_v37 = vmul.f32 %v316_v25, %v2239_v0 }
  0x4d   : > { %s2290_s13 = sld [smem:[#allocation2 + $0x26]]  ;;  %v328_v28 = vstv %s2270_s29  ;;  %v2570_v36 = vmul.f32 %v322_v26, %v2246_v1  ;;  %v2584_v40 = vmul.f32 %v322_v26, %v2239_v0 }
  0x4e   : > { %3950 = sst [smem:[#allocation17_spill]] %s2272_s30  ;;  %v2581_v39 = vmul.f32 %v328_v28, %v2246_v1  ;;  %v2596_v46 = vmul.f32 %v328_v28, %v2239_v0 }
  0x4f   : > { %3951 = sst [smem:[#allocation18_spill]] %s2278_s7 }
  0x50   : > { %3952 = sst [smem:[#allocation19_spill]] %s2280_s8  ;;  %501 = vrot.lane.b32.xlu1 %v2246_v1, %s3790_s12  ;;  %499 = vrot.lane.b32.xlu0 %v2239_v0, %s3790_s12  ;;  %s4100_s8 = smov 15  }
  0x51   : > { %3953 = sst [smem:[#allocation20_spill]] %s2282_s9 }
  0x52   : > { %3954 = sst [smem:[#allocation21_spill]] %s2284_s10 }
  0x53   : > { %3955 = sst [smem:[#allocation22_spill]] %s2290_s13 }
  0x54   : > { %s2292_s11 = sld [smem:[#allocation2 + $0x4a]]  ;;  %542 = vrot.lane.b32.xlu1 %v2246_v1, %s3792_s15  ;;  %540 = vrot.lane.b32.xlu0 %v2239_v0, %s3792_s15 }
  0x55   : > { %s2294_s6 = sld [smem:[#allocation2 + $0x6e]] }
  0x56   : > { %s2296_s26 = sld [smem:[#allocation2 + $0x3]] }
  0x57   : > { %s2302_s16 = sld [smem:[#allocation2 + $0x27]] }
  0x58   : > { %s2304_s12 = sld [smem:[#allocation2 + $0x4b]]  ;;  %583 = vrot.lane.b32.xlu1 %v2246_v1, %s3796_s3  ;;  %581 = vrot.lane.b32.xlu0 %v2239_v0, %s3796_s3 }
  0x59   : > { %s2306_s0 = sld [smem:[#allocation2 + $0x6f]] }
  0x5a   : > { %3956 = sst [smem:[#allocation23_spill]] %s2292_s11 }
  0x5b   : > { %3957 = sst [smem:[#allocation24_spill]] %s2294_s6 }
  0x5c   : > { %3958 = sst [smem:[#allocation25_spill]] %s2296_s26  ;;  %624 = vrot.lane.b32.xlu1 %v2246_v1, %s3803_s5  ;;  %622 = vrot.lane.b32.xlu0 %v2239_v0, %s3803_s5 }
  0x5d   : > { %3959 = sst [smem:[#allocation26_spill]] %s2302_s16 }
  0x5e   : > { %3960 = sst [smem:[#allocation27_spill]] %s2304_s12 }
  0x5f   : > { %3961 = sst [smem:[#allocation28_spill]] %s2306_s0 }
  0x60   : > { %s2308_s2 = sld [smem:[#allocation2 + $0x5]] }
  0x61   : > { %s2314_s22 = sld [smem:[#allocation2 + $0x29]] }
  0x62   : > { %s2316_s15 = sld [smem:[#allocation2 + $0x4d]] }
  0x63   : > { %s2318_s19 = sld [smem:[#allocation2 + $0x71]] }
  0x64   : > { %s2320_s20 = sld [smem:[#allocation2 + $0x6]] }
  0x65   : > { %s2326_s4 = sld [smem:[#allocation2 + $0x2a]] }
  0x66   : > { %3962 = sst [smem:[#allocation29_spill]] %s2308_s2  ;;  %s3976_s2 = smov 16  }
  0x67   : > { %3963 = sst [smem:[#allocation30_spill]] %s2314_s22 }
  0x68   : > { %3964 = sst [smem:[#allocation31_spill]] %s2316_s15 }
  0x69   : > { %3965 = sst [smem:[#allocation32_spill]] %s2318_s19 }
  0x6a   : > { %3966 = sst [smem:[#allocation33_spill]] %s2320_s20  ;;  %s3971_s20 = smov 17  }
  0x6b   : > { %3967 = sst [smem:[#allocation34_spill]] %s2326_s4  ;;  %692 = vrot.lane.b32.xlu1 %v2329_v2, %s3971_s20  ;;  %690 = vrot.lane.b32.xlu0 %v2332_v3, %s3971_s20 }
  0x6c   : > { %s2334_s3 = sld [smem:[#allocation2 + $0x4e]] }
  0x6d   : > { %s2336_s18 = sld [smem:[#allocation2 + $0x72]] }
  0x6e   : > { %s2338_s19 = sld [smem:[#allocation2 + $0x7]] }
  0x6f   : > { %s2344_s15 = sld [smem:[#allocation2 + $0x2b]]  ;;  %724 = vrot.lane.b32.xlu1 %v2329_v2, %s3976_s2  ;;  %722 = vrot.lane.b32.xlu0 %v2332_v3, %s3976_s2 }
  0x70   : > { %s2346_s5 = sld [smem:[#allocation2 + $0x4f]] }
  0x71   : > { %s2348_s4 = sld [smem:[#allocation2 + $0x73]] }
  0x72   : > { %3968 = sst [smem:[#allocation35_spill]] %s2334_s3 }
  0x73   : > { %3969 = sst [smem:[#allocation36_spill]] %s2336_s18 }
  0x74   : > { %3970 = sst [smem:[#allocation37_spill]] %s2338_s19 }
  0x75   : > { %3972 = sst [smem:[#allocation38_spill]] %s2344_s15  ;;  %s3981_s15 = smov 15  }
  0x76   : > { %3973 = sst [smem:[#allocation39_spill]] %s2346_s5  ;;  %756 = vrot.lane.b32.xlu1 %v2329_v2, %s3981_s15  ;;  %754 = vrot.lane.b32.xlu0 %v2332_v3, %s3981_s15 }
  0x77   : > { %3974 = sst [smem:[#allocation40_spill]] %s2348_s4 }
  0x78   : > { %s2350_s22 = sld [smem:[#allocation2 + $0x8]] }
  0x79   : > { %s2356_s19 = sld [smem:[#allocation2 + $0x2c]] }
  0x7a   : > { %s2358_s18 = sld [smem:[#allocation2 + $0x50]] }
  0x7b   : > { %s2360_s3 = sld [smem:[#allocation2 + $0x74]] }
  0x7c   : > { %s2362_s0 = sld [smem:[#allocation2 + $0xd]] }
  0x7d   : > { %s2370_s4 = sld [smem:[#allocation2 + $0x55]] }
  0x7e   : > { %3975 = sst [smem:[#allocation41_spill]] %s2350_s22 }
  0x7f   : > { %3977 = sst [smem:[#allocation42_spill]] %s2356_s19  ;;  %s3986_s19 = smov 1  }
  0x80   : > { %3978 = sst [smem:[#allocation43_spill]] %s2358_s18  ;;  %788 = vrot.lane.b32.xlu1 %v2329_v2, %s3986_s19  ;;  %786 = vrot.lane.b32.xlu0 %v2332_v3, %s3986_s19 }
  0x81   : > { %3979 = sst [smem:[#allocation44_spill]] %s2360_s3 }
  0x82   : > { %3980 = sst [smem:[#allocation45_spill]] %s2362_s0 }
  0x83   : > { %s2368_s22 = sld [smem:[#allocation2 + $0x31]] }
  0x84   : > { %3983 = sst [smem:[#allocation47_spill]] %s2370_s4 }
  0x85   : > { %s2372_s5 = sld [smem:[#allocation2 + $0x79]] }
  0x86   : > { %s2374_s12 = sld [smem:[#allocation2 + $0x9]] }
  0x87   : > { %s2380_s3 = sld [smem:[#allocation2 + $0x2d]] }
  0x88   : > { %s2382_s18 = sld [smem:[#allocation2 + $0x51]] }
  0x89   : > { %3982 = sst [smem:[#allocation46_spill]] %s2368_s22  ;;  %s3991_s22 = smov 127  }
  0x8a   : > { %s2384_s0 = sld [smem:[#allocation2 + $0x75]]  ;;  %820 = vrot.lane.b32.xlu1 %v2329_v2, %s3991_s22  ;;  %818 = vrot.lane.b32.xlu0 %v2332_v3, %s3991_s22 }
  0x8b   : > { %3984 = sst [smem:[#allocation48_spill]] %s2372_s5 }
  0x8c   : > { %3985 = sst [smem:[#allocation49_spill]] %s2374_s12 }
  0x8d   : > { %3987 = sst [smem:[#allocation50_spill]] %s2380_s3  ;;  %s3996_s3 = smov 113  }
  0x8e   : > { %3988 = sst [smem:[#allocation51_spill]] %s2382_s18  ;;  %852 = vrot.lane.b32.xlu1 %v2329_v2, %s3996_s3  ;;  %850 = vrot.lane.b32.xlu0 %v2332_v3, %s3996_s3 }
  0x8f   : > { %s2386_s16 = sld [smem:[#allocation2 + $0xa]] }
  0x90   : > { %3989 = sst [smem:[#allocation52_spill]] %s2384_s0 }
  0x91   : > { %s2392_s12 = sld [smem:[#allocation2 + $0x2e]] }
  0x92   : > { %s2394_s5 = sld [smem:[#allocation2 + $0x52]] }
  0x93   : > { %s2396_s4 = sld [smem:[#allocation2 + $0x76]] }
  0x94   : > { %s2398_s26 = sld [smem:[#allocation2 + $0xb]] }
  0x95   : > { %3990 = sst [smem:[#allocation53_spill]] %s2386_s16 }
  0x96   : > { %s2404_s16 = sld [smem:[#allocation2 + $0x2f]] }
  0x97   : > { %3992 = sst [smem:[#allocation54_spill]] %s2392_s12 }
  0x98   : > { %3993 = sst [smem:[#allocation55_spill]] %s2394_s5  ;;  %s4001_s5 = smov 112  }
  0x99   : > { %3994 = sst [smem:[#allocation56_spill]] %s2396_s4  ;;  %884 = vrot.lane.b32.xlu1 %v2329_v2, %s4001_s5  ;;  %882 = vrot.lane.b32.xlu0 %v2332_v3, %s4001_s5 }
  0x9a   : > { %3995 = sst [smem:[#allocation57_spill]] %s2398_s26 }
  0x9b   : > { %s2406_s0 = sld [smem:[#allocation2 + $0x53]] }
  0x9c   : > { %3997 = sst [smem:[#allocation58_spill]] %s2404_s16  ;;  %s4006_s16 = smov 111  }
  0x9d   : > { %s2408_s18 = sld [smem:[#allocation2 + $0x77]]  ;;  %916 = vrot.lane.b32.xlu1 %v2329_v2, %s4006_s16  ;;  %914 = vrot.lane.b32.xlu0 %v2332_v3, %s4006_s16 }
  0x9e   : > { %s2410_s12 = sld [smem:[#allocation2 + $0xc]] }
  0x9f   : > { %s2416_s26 = sld [smem:[#allocation2 + $0x30]] }
  0xa0   : > { %s2418_s4 = sld [smem:[#allocation2 + $0x54]] }
  0xa1   : > { %3998 = sst [smem:[#allocation59_spill]] %s2406_s0  ;;  %975 = vrot.lane.b32.xlu1 %v2431_v4, %s3971_s20  ;;  %973 = vrot.lane.b32.xlu0 %v2434_v5, %s3971_s20 }
  0xa2   : > { %s2420_s6 = sld [smem:[#allocation2 + $0x78]] }
  0xa3   : > { %3999 = sst [smem:[#allocation60_spill]] %s2408_s18 }
  0xa4   : > { %4000 = sst [smem:[#allocation61_spill]] %s2410_s12 }
  0xa5   : > { %4002 = sst [smem:[#allocation62_spill]] %s2416_s26  ;;  %1007 = vrot.lane.b32.xlu1 %v2431_v4, %s3976_s2  ;;  %1005 = vrot.lane.b32.xlu0 %v2434_v5, %s3976_s2 }
  0xa6   : > { %4003 = sst [smem:[#allocation63_spill]] %s2418_s4 }
  0xa7   : > { %s2422_s11 = sld [smem:[#allocation2 + $0xe]] }
  0xa8   : > { %4004 = sst [smem:[#allocation64_spill]] %s2420_s6 }
  0xa9   : > { %s2428_s12 = sld [smem:[#allocation2 + $0x32]]  ;;  %1039 = vrot.lane.b32.xlu1 %v2431_v4, %s3981_s15  ;;  %1037 = vrot.lane.b32.xlu0 %v2434_v5, %s3981_s15 }
  0xaa   : > { %s2436_s18 = sld [smem:[#allocation2 + $0x56]] }
  0xab   : > { %s2438_s26 = sld [smem:[#allocation2 + $0x7a]] }
  0xac   : > { %s2440_s4 = sld [smem:[#allocation2 + $0xf]] }
  0xad   : > { %4005 = sst [smem:[#allocation65_spill]] %s2422_s11  ;;  %1071 = vrot.lane.b32.xlu1 %v2431_v4, %s3986_s19  ;;  %1069 = vrot.lane.b32.xlu0 %v2434_v5, %s3986_s19 }
  0xae   : > { %s2446_s11 = sld [smem:[#allocation2 + $0x33]] }
  0xaf   : > { %4007 = sst [smem:[#allocation66_spill]] %s2428_s12 }
  0xb0   : > { %4008 = sst [smem:[#allocation67_spill]] %s2436_s18 }
  0xb1   : > { %4009 = sst [smem:[#allocation68_spill]] %s2438_s26  ;;  %1103 = vrot.lane.b32.xlu1 %v2431_v4, %s3991_s22  ;;  %1101 = vrot.lane.b32.xlu0 %v2434_v5, %s3991_s22 }
  0xb2   : > { %4010 = sst [smem:[#allocation69_spill]] %s2440_s4  ;;  %v334_v19 = vpop.permute.xlu0 %333 }
  0xb3   : > { %s2448_s6 = sld [smem:[#allocation2 + $0x57]] }
  0xb4   : > { %4011 = sst [smem:[#allocation70_spill]] %s2446_s11 }
  0xb5   : > { %s2450_s12 = sld [smem:[#allocation2 + $0x7b]]  ;;  %1135 = vrot.lane.b32.xlu1 %v2431_v4, %s3996_s3  ;;  %1133 = vrot.lane.b32.xlu0 %v2434_v5, %s3996_s3 }
  0xb6   : > { %s2452_s0 = sld [smem:[#allocation2 + $0x10]]  ;;  %v336_v47 = vpop.permute.xlu0 %335 }
  0xb7   : > { %s2458_s4 = sld [smem:[#allocation2 + $0x34]]  ;;  %v340_v56 = vsel %vm339_vm1, %v334_v19, %v336_v47  ;;  %v341_v45 = vsel %vm339_vm1, %v336_v47, %v334_v19 }
  0xb8   : > { %s2460_s26 = sld [smem:[#allocation2 + $0x58]] }
  0xb9   : > { %4012 = sst [smem:[#allocation71_spill]] %s2448_s6  ;;  %1167 = vrot.lane.b32.xlu1 %v2431_v4, %s4001_s5  ;;  %1165 = vrot.lane.b32.xlu0 %v2434_v5, %s4001_s5 }
  0xba   : > { %s2462_s18 = sld [smem:[#allocation2 + $0x7c]]  ;;  %v418_v31 = vpop.permute.xlu0 %417 }
  0xbb   : > { %4013 = sst [smem:[#allocation72_spill]] %s2450_s12 }
  0xbc   : > { %4014 = sst [smem:[#allocation73_spill]] %s2452_s0 }
  0xbd   : > { %4015 = sst [smem:[#allocation74_spill]] %s2458_s4  ;;  %1199 = vrot.lane.b32.xlu1 %v2431_v4, %s4006_s16  ;;  %1197 = vrot.lane.b32.xlu0 %v2434_v5, %s4006_s16 }
  0xbe   : > { %4016 = sst [smem:[#allocation75_spill]] %s2460_s26 }
  0xbf   : > { %s2466_s6 = sld [smem:[#allocation2 + $0x11]] }
  0xc0   : > { %4017 = sst [smem:[#allocation76_spill]] %s2462_s18 }
  0xc1   : > { %s2472_s0 = sld [smem:[#allocation2 + $0x35]]  ;;  %1258 = vrot.lane.b32.xlu1 %v2631_v59, %s3971_s20  ;;  %1256 = vrot.lane.b32.xlu0 %v2634_v60, %s3971_s20 }
  0xc2   : > { %s2474_s12 = sld [smem:[#allocation2 + $0x59]] }
  0xc3   : > { %s2476_s11 = sld [smem:[#allocation2 + $0x7d]] }
  0xc4   : > { %s2479_s26 = sld [smem:[#allocation2 + $0x16]] }
  0xc5   : > { %4019 = sst [smem:[#allocation78_spill]] %s2466_s6  ;;  %1290 = vrot.lane.b32.xlu1 %v2631_v59, %s3976_s2  ;;  %1288 = vrot.lane.b32.xlu0 %v2634_v60, %s3976_s2 }
  0xc6   : > { %s4023_s1 = sld [smem:[#allocation116_spill]] }
  0xc7   : > { %4020 = sst [smem:[#allocation79_spill]] %s2472_s0 }
  0xc8   : > { %4021 = sst [smem:[#allocation80_spill]] %s2474_s12 }
  0xc9   : > { %4022 = sst [smem:[#allocation81_spill]] %s2476_s11  ;;  %1322 = vrot.lane.b32.xlu1 %v2631_v59, %s4100_s8  ;;  %1320 = vrot.lane.b32.xlu0 %v2634_v60, %s4100_s8 }
  0xca   : > { %s2491_s12 = sld [smem:[#allocation2 + $0x3a]]  ;;  %v950_v26 = vstv %s2479_s26 }
  0xcb   : > { %s2499_s15 = sld [smem:[#allocation2 + $0x5e]]  ;;  %v2771_v62 = vmul.f32 %v2434_v5, %v950_v26  ;;  %v2774_v63 = vmul.f32 %v2431_v4, %v950_v26 }
  0xcc   : > { %v2488_v9 = vld [vmem:[%s4023_s1] sm:$0xff]  ;;  %v2496_v11 = vld [vmem:[%s4023_s1 + $0x8] sm:$0xff]  ;;  %s2501_s19 = sld [smem:[#allocation2 + $0x82]] }
  0xcd   : > { %v2504_v13 = vrot.slane %v2488_v9, %v385_v8  ;;  %s2507_s18 = sld [smem:[#allocation2 + $0x12]]  ;;  %v2516_v16 = vrot.slane %v2496_v11, %v385_v8  ;;  %v2519_v17 = vrot.slane %v2488_v9, %v344_v10  ;;  %v2522_v18 = vrot.slane %v2496_v11, %v344_v10  ;;  %4105 = vst [vmem:[#allocation101_spill] sm:$0xff] %v2771_v62 }
  0xce   : > { %s2524_s0 = sld [smem:[#allocation2 + $0x36]]  ;;  %v2528_v20 = vrot.slane %v2488_v9, %v426_v12  ;;  %v2531_v21 = vrot.slane %v2496_v11, %v426_v12  ;;  %v2545_v29 = vrot.slane %v2488_v9, %v467_v14  ;;  %v2548_v30 = vrot.slane %v2496_v11, %v467_v14  ;;  %4106 = vst [vmem:[#allocation102_spill] sm:$0xff] %v2774_v63 }
  0xcf   : > { %4024 = vst [vmem:[#allocation82_spill] sm:$0xff] %v2504_v13  ;;  %4025 = vst [vmem:[#allocation83_spill] sm:$0xff] %v2516_v16  ;;  %s2534_s11 = sld [smem:[#allocation2 + $0x5a]]  ;;  %v2576_v38 = vrot.slane %v2488_v9, %v508_v22  ;;  %v2587_v41 = vrot.slane %v2496_v11, %v508_v22  ;;  %v2606_v48 = vrot.slane %v2488_v9, %v549_v34  ;;  %1354 = vrot.lane.b32.xlu1 %v2631_v59, %s4109_s23 }
  0xd0   : > { %4026 = vst [vmem:[#allocation84_spill] sm:$0xff] %v2522_v18  ;;  %s2540_s6 = sld [smem:[#allocation2 + $0x7e]]  ;;  %v2609_v49 = vrot.slane %v2496_v11, %v549_v34  ;;  %v2623_v57 = vrot.slane %v2488_v9, %v590_v42  ;;  %v2626_v58 = vrot.slane %v2496_v11, %v590_v42  ;;  %v2649_v8 = vrot.slane %v2488_v9, %v631_v50 }
  0xd1   : > { %s2550_s25 = sld [smem:[#allocation2 + $0x13]]  ;;  %v2652_v10 = vrot.slane %v2496_v11, %v631_v50  ;;  %v956_v0 = vstv %s2491_s12  ;;  %1352 = vrot.lane.b32.xlu0 %v2634_v60, %s4109_s23 }
  0xd2   : > { %s2564_s27 = sld [smem:[#allocation2 + $0x37]]  ;;  %4059 = vst [vmem:[#allocation95_spill] sm:$0xff] %v2649_v8  ;;  %v2785_v26 = vmul.f32 %v2434_v5, %v956_v0  ;;  %v968_v61 = vstv %s2501_s19  ;;  %s4131_s19 = smov 113  }
  0xd3   : > { %s2578_s28 = sld [smem:[#allocation2 + $0x5b]]  ;;  %4061 = vst [vmem:[#allocation96_spill] sm:$0xff] %v2652_v10  ;;  %v2847_v12 = vmul.f32 %v2434_v5, %v968_v61 }
  0xd4   : > { %s2590_s1 = sld [smem:[#allocation2 + $0x7f]]  ;;  %4114 = vst [vmem:[#allocation103_spill] sm:$0xff] %v2785_v26 }
  0xd5   : > { %4027 = sst [smem:[#allocation85_spill]] %s2534_s11  ;;  %s4127_s11 = smov 127   ;;  %4132 = vst [vmem:[#allocation107_spill] sm:$0xff] %v2847_v12 }
  0xd6   : > { %4028 = sst [smem:[#allocation86_spill]] %s2540_s6  ;;  %1386 = vrot.lane.b32.xlu1 %v2631_v59, %s4127_s11  ;;  %1384 = vrot.lane.b32.xlu0 %v2634_v60, %s4127_s11 }
  0xd7   : > { %4029 = sst [smem:[#allocation87_spill]] %s2550_s25 }
  0xd8   : > { %4030 = sst [smem:[#allocation88_spill]] %s2564_s27 }
  0xd9   : > { %4031 = sst [smem:[#allocation89_spill]] %s2578_s28 }
  0xda   : > { %4033 = sst [smem:[#allocation90_spill]] %s2590_s1  ;;  %1418 = vrot.lane.b32.xlu1 %v2631_v59, %s4131_s19  ;;  %1416 = vrot.lane.b32.xlu0 %v2634_v60, %s4131_s19 }
  0xdb   : > { %s2598_s17 = sld [smem:[#allocation2 + $0x14]] }
  0xdc   : > { %s2612_s3 = sld [smem:[#allocation2 + $0x38]] }
  0xdd   : > { %s2618_s5 = sld [smem:[#allocation2 + $0x5c]] }
  0xde   : > { %s2628_s28 = sld [smem:[#allocation2 + $0x80]] }
  0xdf   : > { %s4050_s24 = sld [smem:[#allocation45_spill]] }
  0xe0   : > { %s2640_s10 = sld [smem:[#allocation2 + $0x15]] }
  0xe1   : > { %4037 = sst [smem:[#allocation91_spill]] %s2598_s17 }
  0xe2   : > { %4041 = sst [smem:[#allocation92_spill]] %s2612_s3 }
  0xe3   : > { %4044 = sst [smem:[#allocation93_spill]] %s2618_s5 }
  0xe4   : > { %4047 = sst [smem:[#allocation94_spill]] %s2628_s28 }
  0xe5   : > { %s4055_s5 = sld [smem:[#allocation46_spill]]  ;;  %v667_v22 = vstv %s4050_s24 }
  0xe6   : > { %4054 = sst [smem:[#allocation45_spill]] %s2640_s10  ;;  %v2681_v11 = vmul.f32 %v2332_v3, %v667_v22  ;;  %v2684_v50 = vmul.f32 %v2329_v2, %v667_v22 }
  0xe7   : > { %s2654_s30 = sld [smem:[#allocation2 + $0x39]] }
  0xe8   : > { %s2660_s16 = sld [smem:[#allocation2 + $0x5d]] }
  0xe9   : > { %s4066_s17 = sld [smem:[#allocation47_spill]] }
  0xea   : > { %s2666_s9 = sld [smem:[#allocation2 + $0x81]] }
  0xeb   : > { %v673_v34 = vstv %s4055_s5  ;;  %s4068_s27 = sld [smem:[#allocation48_spill]] }
  0xec   : > { %s2672_s29 = sld [smem:[#allocation2 + $0x17]]  ;;  %v2689_v42 = vmul.f32 %v2332_v3, %v673_v34  ;;  %v2692_v9 = vmul.f32 %v2329_v2, %v673_v34  ;;  %v377_v34 = vpop.permute.xlu1 %376 }
  0xed   : > { %4062 = sst [smem:[#allocation46_spill]] %s2654_s30 }
  0xee   : > { %4065 = sst [smem:[#allocation97_spill]] %s2660_s16 }
  0xef   : > { %s2686_s7 = sld [smem:[#allocation2 + $0x3b]]  ;;  %v679_v25 = vstv %s4066_s17 }
  0xf0   : > { %4067 = sst [smem:[#allocation47_spill]] %s2666_s9  ;;  %v2715_v22 = vmul.f32 %v2332_v3, %v679_v25  ;;  %v2718_v6 = vmul.f32 %v2329_v2, %v679_v25  ;;  %v379_v55 = vpop.permute.xlu1 %378 }
  0xf1   : > { %v685_v28 = vstv %s4068_s27  ;;  %s2696_s10 = sld [smem:[#allocation2 + $0x5f]] }
  0xf2   : > { %4072 = sst [smem:[#allocation48_spill]] %s2672_s29  ;;  %v2747_v25 = vmul.f32 %v2332_v3, %v685_v28  ;;  %v2750_v1 = vmul.f32 %v2329_v2, %v685_v28  ;;  %v2788_v28 = vmul.f32 %v2431_v4, %v956_v0  ;;  %v962_v2 = vstv %s2499_s15 }
  0xf3   : > { %s2708_s16 = sld [smem:[#allocation2 + $0x18]]  ;;  %v2817_v0 = vmul.f32 %v2434_v5, %v962_v2  ;;  %v2820_v54 = vmul.f32 %v2431_v4, %v962_v2  ;;  %v2850_v3 = vmul.f32 %v2431_v4, %v968_v61  ;;  %v381_v4 = vsel %vm380_vm0, %v377_v34, %v379_v55 }
  0xf4   : > { %s2722_s5 = sld [smem:[#allocation2 + $0x3c]]  ;;  %4116 = vst [vmem:[#allocation104_spill] sm:$0xff] %v2788_v28  ;;  %v382_v61 = vsel %vm380_vm0, %v379_v55, %v377_v34  ;;  %v392_v51 = vmul.f32 %v2516_v16, %v381_v4  ;;  %v350_v55 = vmul.f32 %v2519_v17, %v341_v45  ;;  %v351_v34 = vmul.f32 %v2522_v18, %v340_v56  ;;  %v420_v52 = vpop.permute.xlu1 %419 }
  0xf5   : > { %4078 = sst [smem:[#allocation98_spill]] %s2686_s7  ;;  %4129 = vst [vmem:[#allocation105_spill] sm:$0xff] %v2817_v0  ;;  %4130 = vst [vmem:[#allocation106_spill] sm:$0xff] %v2820_v54 }
  0xf6   : > { %s2702_s7 = sld [smem:[#allocation2 + $0x83]]  ;;  %4133 = vst [vmem:[#allocation108_spill] sm:$0xff] %v2850_v3  ;;  %v402_v2 = vmul.f32 %v400_v24, %v392_v51  ;;  %v408_v7 = vmul.f32 %v406_v27, %v392_v51 }
  0xf7   : > { %s2728_s2 = sld [smem:[#allocation2 + $0x60]] }
  0xf8   : > { %s2734_s20 = sld [smem:[#allocation2 + $0x84]] }
  0xf9   : > { %4088 = sst [smem:[#allocation99_spill]] %s2708_s16 }
  0xfa   : > { %s2740_s21 = sld [smem:[#allocation2 + $0x19]] }
  0xfb   : > { %s2754_s22 = sld [smem:[#allocation2 + $0x3d]] }
  0xfc   : > { %s2760_s14 = sld [smem:[#allocation2 + $0x61]] }
  0xfd   : > { %s2766_s8 = sld [smem:[#allocation2 + $0x85]] }
  0xfe   : > { %s4107_s26 = sld [smem:[#allocation87_spill]] }
  0xff   : > { %s2776_s12 = sld [smem:[#allocation2 + $0x1a]] }
 0x100   : > { %s4110_s17 = sld [smem:[#allocation88_spill]] }
 0x101   : > { %s4112_s13 = sld [smem:[#allocation90_spill]] }
 0x102   : > { %s4113_s1 = sld [smem:[#allocation91_spill]] }
 0x103   : > { %4104 = sst [smem:[#allocation100_spill]] %s2766_s8 }
 0x104   : > { %s4115_s28 = sld [smem:[#allocation92_spill]] }
 0x105   : > { %4108 = sst [smem:[#allocation87_spill]] %s2776_s12 }
 0x106   : > { %s4117_s4 = sld [smem:[#allocation93_spill]] }
 0x107   : > { %s2792_s25 = sld [smem:[#allocation2 + $0x3e]] }
 0x108   : > { %s4120_s23 = sld [smem:[#allocation45_spill]] }
 0x109   : > { %s2798_s3 = sld [smem:[#allocation2 + $0x62]] }
 0x10a   : > { %s4122_s24 = sld [smem:[#allocation97_spill]] }
 0x10b   : > { %s4123_s27 = sld [smem:[#allocation47_spill]] }
 0x10c   : > { %s4124_s9 = sld [smem:[#allocation48_spill]] }
 0x10d   : > { %4119 = sst [smem:[#allocation88_spill]] %s2792_s25 }
 0x10e   : > { %s2804_s15 = sld [smem:[#allocation2 + $0x86]] }
 0x10f   : > { %4121 = sst [smem:[#allocation90_spill]] %s2798_s3 }
 0x110   : > { %s2810_s6 = sld [smem:[#allocation2 + $0x1f]] }
 0x111   : > { %s4128_s29 = sld [smem:[#allocation99_spill]] }
 0x112   : > { %s2824_s16 = sld [smem:[#allocation2 + $0x43]] }
 0x113   : > { %s2830_s11 = sld [smem:[#allocation2 + $0x67]] }
 0x114   : > { %4125 = sst [smem:[#allocation91_spill]] %s2804_s15  ;;  %s4139_s15 = smov 112  }
 0x115   : > { %s2836_s30 = sld [smem:[#allocation2 + $0x8b]]  ;;  %1450 = vrot.lane.b32.xlu1 %v2631_v59, %s4139_s15  ;;  %1448 = vrot.lane.b32.xlu0 %v2634_v60, %s4139_s15 }
 0x116   : > { %v1233_v14 = vstv %s2810_s6  ;;  %s4140_s3 = sld [smem:[#allocation16_spill]] }
 0x117   : > { %v2860_v44 = vmul.f32 %v2634_v60, %v1233_v14  ;;  %v2863_v43 = vmul.f32 %v2631_v59, %v1233_v14  ;;  %v391_v14 = vmul.f32 %v2504_v13, %v382_v61  ;;  %s4141_s25 = sld [smem:[#allocation17_spill]]  ;;  %v396_v61 = vmul.f32 %v394_v23, %v392_v51 }
 0x118   : > { %v1239_v5 = vstv %s2824_s16  ;;  %s4143_s12 = sld [smem:[#allocation18_spill]] }
 0x119   : > { %4134 = vst [vmem:[#allocation109_spill] sm:$0xff] %v2860_v44  ;;  %4135 = vst [vmem:[#allocation110_spill] sm:$0xff] %v2863_v43  ;;  %v2886_v47 = vmul.f32 %v2634_v60, %v1239_v5  ;;  %v2889_v45 = vmul.f32 %v2631_v59, %v1239_v5  ;;  %v1245_v56 = vstv %s2830_s11  ;;  %s4145_s8 = sld [smem:[#allocation19_spill]]  ;;  %v395_v4 = vmul.f32 %v394_v23, %v391_v14  ;;  %s4153_s11 = smov 111  }
 0x11a   : > { %s4146_s15 = sld [smem:[#allocation20_spill]]  ;;  %v401_v53 = vmul.f32 %v400_v24, %v391_v14  ;;  %v407_v5 = vmul.f32 %v406_v27, %v391_v14  ;;  %1482 = vrot.lane.b32.xlu1 %v2631_v59, %s4153_s11  ;;  %1480 = vrot.lane.b32.xlu0 %v2634_v60, %s4153_s11 }
 0x11b   : > { %4142 = vst [vmem:[#allocation111_spill] sm:$0xff] %v2886_v47  ;;  %4144 = vst [vmem:[#allocation112_spill] sm:$0xff] %v2889_v45  ;;  %s4168_s6 = sld [smem:[#allocation25_spill]] }
 0x11c   : > { %v4147_v47 = vstv %s4140_s3  ;;  %s4158_s3 = sld [smem:[#allocation21_spill]] }
 0x11d   : > { %v413_v19 = vmul.f32 %v4147_v47, %v391_v14  ;;  %v4148_v44 = vmov %v4147_v47  ;;  %v4149_v43 = vstv %s4141_s25  ;;  %s4159_s25 = sld [smem:[#allocation22_spill]] }
 0x11e   : > { %v414_v45 = vmul.f32 %v4148_v44, %v392_v51  ;;  %v354_v12 = vmul.f32 %v4149_v43, %v350_v55  ;;  %v4150_v0 = vmov %v4149_v43  ;;  %v4151_v3 = vstv %s4143_s12  ;;  %s4161_s12 = sld [smem:[#allocation24_spill]] }
 0x11f   : > { %v355_v23 = vmul.f32 %v4150_v0, %v351_v34  ;;  %v360_v54 = vmul.f32 %v4151_v3, %v350_v55  ;;  %v4152_v26 = vmov %v4151_v3  ;;  %v4154_v24 = vstv %s4145_s8  ;;  %v459_v0 = vpop.permute.xlu0 %458  ;;  %s4160_s8 = sld [smem:[#allocation23_spill]] }
 0x120   : > { %v361_v62 = vmul.f32 %v4152_v26, %v351_v34  ;;  %v366_v28 = vmul.f32 %v4154_v24, %v350_v55  ;;  %v4155_v63 = vmov %v4154_v24  ;;  %v4156_v27 = vstv %s4146_s15  ;;  %v461_v26 = vpop.permute.xlu1 %460  ;;  %s4171_s19 = sld [smem:[#allocation26_spill]] }
 0x121   : > { %v367_v16 = vmul.f32 %v4155_v63, %v351_v34  ;;  %v372_v13 = vmul.f32 %v4156_v27, %v350_v55  ;;  %v4157_v14 = vmov %v4156_v27  ;;  %v356_v43 = vadd.f32 %v354_v12, %v2561_v33  ;;  %s4174_s16 = sld [smem:[#allocation27_spill]] }
 0x122   : > { %v373_v47 = vmul.f32 %v4157_v14, %v351_v34  ;;  %v357_v44 = vadd.f32 %v355_v23, %v2558_v32  ;;  %v362_v51 = vadd.f32 %v360_v54, %v2573_v37  ;;  %v363_v3 = vadd.f32 %v361_v62, %v2567_v35  ;;  %s4175_s15 = sld [smem:[#allocation28_spill]] }
 0x123   : > { %v368_v24 = vadd.f32 %v366_v28, %v2584_v40  ;;  %v369_v63 = vadd.f32 %v367_v16, %v2570_v36  ;;  %v374_v55 = vadd.f32 %v372_v13, %v2596_v46  ;;  %v397_v18 = vadd.f32 %v395_v4, %v356_v43  ;;  %v500_v36 = vpop.permute.xlu0 %499  ;;  %s4184_s11 = sld [smem:[#allocation29_spill]] }
 0x124   : > { %v375_v34 = vadd.f32 %v373_v47, %v2581_v39  ;;  %v398_v27 = vadd.f32 %v396_v61, %v357_v44  ;;  %v404_v14 = vadd.f32 %v402_v2, %v363_v3  ;;  %v403_v33 = vadd.f32 %v401_v53, %v362_v51 }
 0x125   : > { %v410_v12 = vadd.f32 %v408_v7, %v369_v63  ;;  %v409_v23 = vadd.f32 %v407_v5, %v368_v24  ;;  %v415_v37 = vadd.f32 %v413_v19, %v374_v55  ;;  %v422_v35 = vsel %vm421_vm2, %v418_v31, %v420_v52  ;;  %v502_v7 = vpop.permute.xlu1 %501 }
 0x126   : > { %v416_v32 = vadd.f32 %v414_v45, %v375_v34  ;;  %v423_v40 = vsel %vm421_vm2, %v420_v52, %v418_v31  ;;  %v463_v13 = vsel %vm462_vm3, %v459_v0, %v461_v26  ;;  %v464_v16 = vsel %vm462_vm3, %v461_v26, %v459_v0 }
 0x127   : > { %v432_v39 = vmul.f32 %v2528_v20, %v423_v40  ;;  %v433_v31 = vmul.f32 %v2531_v21, %v422_v35  ;;  %v473_v46 = vmul.f32 %v2545_v29, %v464_v16  ;;  %v474_v52 = vmul.f32 %v2548_v30, %v463_v13  ;;  %v541_v63 = vpop.permute.xlu0 %540 }
 0x128   : > { %v504_v53 = vsel %vm503_vm4, %v500_v36, %v502_v7  ;;  %v505_v54 = vsel %vm503_vm4, %v502_v7, %v500_v36  ;;  %v2956_v62 = vmul.f32 %v2634_v60, %v1245_v56  ;;  %v2959_v28 = vmul.f32 %v2631_v59, %v1245_v56 }
 0x129   : > { %v4164_v2 = vstv %s4158_s3  ;;  %v4166_v61 = vstv %s4159_s25  ;;  %v4169_v44 = vstv %s4160_s8  ;;  %v4172_v60 = vstv %s4161_s12  ;;  %v543_v24 = vpop.permute.xlu1 %542  ;;  %s4185_s3 = sld [smem:[#allocation30_spill]] }
 0x12a   : > { %4162 = vst [vmem:[#allocation113_spill] sm:$0xff] %v2956_v62  ;;  %4163 = vst [vmem:[#allocation114_spill] sm:$0xff] %v2959_v28  ;;  %v436_v45 = vmul.f32 %v4164_v2, %v432_v39  ;;  %v4165_v19 = vmov %v4164_v2  ;;  %v442_v5 = vmul.f32 %v4166_v61, %v432_v39  ;;  %v4167_v47 = vmov %v4166_v61  ;;  %s4186_s25 = sld [smem:[#allocation31_spill]] }
 0x12b   : > { %v437_v4 = vmul.f32 %v4165_v19, %v433_v31  ;;  %v443_v43 = vmul.f32 %v4167_v47, %v433_v31  ;;  %v448_v51 = vmul.f32 %v4169_v44, %v432_v39  ;;  %v4170_v3 = vmov %v4169_v44  ;;  %s4187_s8 = sld [smem:[#allocation32_spill]] }
 0x12c   : > { %v449_v26 = vmul.f32 %v4170_v3, %v433_v31  ;;  %v454_v0 = vmul.f32 %v4172_v60, %v432_v39  ;;  %v4173_v59 = vmov %v4172_v60  ;;  %v438_v55 = vadd.f32 %v436_v45, %v397_v18  ;;  %s4192_s12 = sld [smem:[#allocation33_spill]] }
 0x12d   : > { %v455_v56 = vmul.f32 %v4173_v59, %v433_v31  ;;  %v439_v34 = vadd.f32 %v437_v4, %v398_v27  ;;  %v444_v35 = vadd.f32 %v442_v5, %v403_v33  ;;  %v445_v40 = vadd.f32 %v443_v43, %v404_v14 }
 0x12e   : > { %v450_v13 = vadd.f32 %v448_v51, %v409_v23  ;;  %v451_v16 = vadd.f32 %v449_v26, %v410_v12  ;;  %v456_v7 = vadd.f32 %v454_v0, %v415_v37  ;;  %v4176_v2 = vstv %s4168_s6  ;;  %v584_v23 = vpop.permute.xlu1 %583  ;;  %v582_v12 = vpop.permute.xlu0 %581  ;;  %s4195_s6 = sld [smem:[#allocation34_spill]] }
 0x12f   : > { %v457_v36 = vadd.f32 %v455_v56, %v416_v32  ;;  %v477_v19 = vmul.f32 %v4176_v2, %v473_v46  ;;  %v4177_v61 = vmov %v4176_v2  ;;  %v4178_v47 = vstv %s4171_s19  ;;  %s4198_s19 = sld [smem:[#allocation35_spill]] }
 0x130   : > { %v478_v39 = vmul.f32 %v4177_v61, %v474_v52  ;;  %v483_v44 = vmul.f32 %v4178_v47, %v473_v46  ;;  %v4179_v31 = vmov %v4178_v47  ;;  %v4180_v60 = vstv %s4174_s16  ;;  %s4199_s16 = sld [smem:[#allocation36_spill]] }
 0x131   : > { %v484_v3 = vmul.f32 %v4179_v31, %v474_v52  ;;  %v489_v59 = vmul.f32 %v4180_v60, %v473_v46  ;;  %v4181_v62 = vmov %v4180_v60  ;;  %v4182_v18 = vstv %s4175_s15  ;;  %s4208_s15 = sld [smem:[#allocation37_spill]] }
 0x132   : > { %v490_v28 = vmul.f32 %v4181_v62, %v474_v52  ;;  %v495_v27 = vmul.f32 %v4182_v18, %v473_v46  ;;  %v4183_v33 = vmov %v4182_v18  ;;  %v479_v37 = vadd.f32 %v477_v19, %v438_v55 }
 0x133   : > { %v496_v14 = vmul.f32 %v4183_v33, %v474_v52  ;;  %v480_v32 = vadd.f32 %v478_v39, %v439_v34  ;;  %v485_v45 = vadd.f32 %v483_v44, %v444_v35  ;;  %v486_v4 = vadd.f32 %v484_v3, %v445_v40  ;;  %v625_v34 = vpop.permute.xlu1 %624  ;;  %v623_v35 = vpop.permute.xlu0 %622 }
 0x134   : > { %v491_v5 = vadd.f32 %v489_v59, %v450_v13  ;;  %v492_v43 = vadd.f32 %v490_v28, %v451_v16  ;;  %v497_v51 = vadd.f32 %v495_v27, %v456_v7  ;;  %v514_v46 = vmul.f32 %v2576_v38, %v504_v53 }
 0x135   : > { %v498_v26 = vadd.f32 %v496_v14, %v457_v36  ;;  %v515_v52 = vmul.f32 %v2587_v41, %v505_v54  ;;  %v545_v62 = vsel %vm544_vm5, %v541_v63, %v543_v24  ;;  %v546_v28 = vsel %vm544_vm5, %v543_v24, %v541_v63 }
 0x136   : > { %v555_v0 = vmul.f32 %v2606_v48, %v545_v62  ;;  %v556_v56 = vmul.f32 %v2609_v49, %v546_v28  ;;  %v586_v55 = vsel %vm585_vm6, %v582_v12, %v584_v23  ;;  %v587_v53 = vsel %vm585_vm6, %v584_v23, %v582_v12 }
 0x137   : > { %v4188_v54 = vstv %s4184_s11  ;;  %v4190_v7 = vstv %s4185_s3  ;;  %v4193_v63 = vstv %s4186_s25  ;;  %v4196_v47 = vstv %s4187_s8  ;;  %v693_v62 = vpop.permute.xlu1 %692  ;;  %v691_v28 = vpop.permute.xlu0 %690  ;;  %s4209_s11 = sld [smem:[#allocation38_spill]] }
 0x138   : > { %v518_v40 = vmul.f32 %v4188_v54, %v514_v46  ;;  %v4189_v13 = vmov %v4188_v54  ;;  %v524_v36 = vmul.f32 %v4190_v7, %v514_v46  ;;  %v4191_v2 = vmov %v4190_v7  ;;  %s4210_s3 = sld [smem:[#allocation39_spill]] }
 0x139   : > { %v519_v16 = vmul.f32 %v4189_v13, %v515_v52  ;;  %v525_v24 = vmul.f32 %v4191_v2, %v515_v52  ;;  %v530_v19 = vmul.f32 %v4193_v63, %v514_v46  ;;  %v4194_v61 = vmov %v4193_v63  ;;  %s4211_s25 = sld [smem:[#allocation40_spill]] }
 0x13a   : > { %v531_v39 = vmul.f32 %v4194_v61, %v515_v52  ;;  %v536_v44 = vmul.f32 %v4196_v47, %v514_v46  ;;  %v4197_v31 = vmov %v4196_v47  ;;  %v520_v60 = vadd.f32 %v518_v40, %v479_v37  ;;  %s4216_s8 = sld [smem:[#allocation41_spill]] }
 0x13b   : > { %v537_v3 = vmul.f32 %v4197_v31, %v515_v52  ;;  %v521_v59 = vadd.f32 %v519_v16, %v480_v32  ;;  %v526_v18 = vadd.f32 %v524_v36, %v485_v45  ;;  %v527_v27 = vadd.f32 %v525_v24, %v486_v4  ;;  %v725_v31 = vpop.permute.xlu1 %724 }
 0x13c   : > { %v532_v33 = vadd.f32 %v530_v19, %v491_v5  ;;  %v533_v14 = vadd.f32 %v531_v39, %v492_v43  ;;  %v538_v23 = vadd.f32 %v536_v44, %v497_v51  ;;  %v4200_v54 = vstv %s4192_s12  ;;  %s4219_s12 = sld [smem:[#allocation42_spill]] }
 0x13d   : > { %v539_v12 = vadd.f32 %v537_v3, %v498_v26  ;;  %v559_v13 = vmul.f32 %v4200_v54, %v555_v0  ;;  %v4201_v7 = vmov %v4200_v54  ;;  %v4202_v2 = vstv %s4195_s6  ;;  %v723_v3 = vpop.permute.xlu0 %722  ;;  %s4222_s6 = sld [smem:[#allocation43_spill]] }
 0x13e   : > { %v560_v46 = vmul.f32 %v4201_v7, %v556_v56  ;;  %v565_v63 = vmul.f32 %v4202_v2, %v555_v0  ;;  %v4203_v52 = vmov %v4202_v2  ;;  %v4204_v37 = vstv %s4198_s19  ;;  %s4223_s19 = sld [smem:[#allocation44_spill]] }
 0x13f   : > { %v566_v61 = vmul.f32 %v4203_v52, %v556_v56  ;;  %v571_v40 = vmul.f32 %v4204_v37, %v555_v0  ;;  %v4205_v32 = vmov %v4204_v37  ;;  %v4206_v45 = vstv %s4199_s16  ;;  %s4232_s16 = sld [smem:[#allocation49_spill]] }
 0x140   : > { %v572_v16 = vmul.f32 %v4205_v32, %v556_v56  ;;  %v577_v4 = vmul.f32 %v4206_v45, %v555_v0  ;;  %v4207_v5 = vmov %v4206_v45  ;;  %v561_v51 = vadd.f32 %v559_v13, %v520_v60 }
 0x141   : > { %v578_v43 = vmul.f32 %v4207_v5, %v556_v56  ;;  %v562_v26 = vadd.f32 %v560_v46, %v521_v59  ;;  %v567_v36 = vadd.f32 %v565_v63, %v526_v18  ;;  %v568_v24 = vadd.f32 %v566_v61, %v527_v27 }
 0x142   : > { %v573_v19 = vadd.f32 %v571_v40, %v532_v33  ;;  %v574_v39 = vadd.f32 %v572_v16, %v533_v14  ;;  %v579_v47 = vadd.f32 %v577_v4, %v538_v23  ;;  %v596_v0 = vmul.f32 %v2623_v57, %v586_v55  ;;  %v755_v40 = vpop.permute.xlu0 %754 }
 0x143   : > { %v580_v44 = vadd.f32 %v578_v43, %v539_v12  ;;  %v597_v56 = vmul.f32 %v2626_v58, %v587_v53  ;;  %v627_v60 = vsel %vm626_vm7, %v623_v35, %v625_v34  ;;  %v628_v59 = vsel %vm626_vm7, %v625_v34, %v623_v35 }
 0x144   : > { %v637_v18 = vmul.f32 %v2649_v8, %v627_v60  ;;  %v638_v27 = vmul.f32 %v2652_v10, %v628_v59  ;;  %v694_v33 = vsel %vm339_vm1, %v691_v28, %v693_v62  ;;  %v695_v14 = vsel %vm339_vm1, %v693_v62, %v691_v28  ;;  %v757_v28 = vpop.permute.xlu1 %756 }
 0x145   : > { %v4212_v23 = vstv %s4208_s15  ;;  %v4214_v54 = vstv %s4209_s11  ;;  %v4217_v34 = vstv %s4210_s3  ;;  %v4220_v52 = vstv %s4211_s25  ;;  %s4233_s15 = sld [smem:[#allocation50_spill]] }
 0x146   : > { %v600_v55 = vmul.f32 %v4212_v23, %v596_v0  ;;  %v4213_v12 = vmov %v4212_v23  ;;  %v606_v13 = vmul.f32 %v4214_v54, %v596_v0  ;;  %v4215_v7 = vmov %v4214_v54  ;;  %s4234_s11 = sld [smem:[#allocation51_spill]] }
 0x147   : > { %v601_v53 = vmul.f32 %v4213_v12, %v597_v56  ;;  %v607_v46 = vmul.f32 %v4215_v7, %v597_v56  ;;  %v612_v35 = vmul.f32 %v4217_v34, %v596_v0  ;;  %v4218_v2 = vmov %v4217_v34  ;;  %s4235_s3 = sld [smem:[#allocation52_spill]] }
 0x148   : > { %v613_v63 = vmul.f32 %v4218_v2, %v597_v56  ;;  %v618_v61 = vmul.f32 %v4220_v52, %v596_v0  ;;  %v4221_v37 = vmov %v4220_v52  ;;  %v602_v32 = vadd.f32 %v600_v55, %v561_v51  ;;  %s4243_s25 = sld [smem:[#allocation53_spill]] }
 0x149   : > { %v619_v62 = vmul.f32 %v4221_v37, %v597_v56  ;;  %v603_v16 = vadd.f32 %v601_v53, %v562_v26  ;;  %v608_v45 = vadd.f32 %v606_v13, %v567_v36  ;;  %v609_v4 = vadd.f32 %v607_v46, %v568_v24 }
 0x14a   : > { %v614_v5 = vadd.f32 %v612_v35, %v573_v19  ;;  %v615_v43 = vadd.f32 %v613_v63, %v574_v39  ;;  %v620_v60 = vadd.f32 %v618_v61, %v579_v47  ;;  %v4224_v23 = vstv %s4216_s8  ;;  %v3082_v19 = vpop.permute.xlu1 %788  ;;  %v3084_v39 = vpop.permute.xlu0 %786  ;;  %s4246_s8 = sld [smem:[#allocation54_spill]] }
 0x14b   : > { %v621_v59 = vadd.f32 %v619_v62, %v580_v44  ;;  %v641_v12 = vmul.f32 %v4224_v23, %v637_v18  ;;  %v4225_v54 = vmov %v4224_v23  ;;  %v4226_v7 = vstv %s4219_s12  ;;  %s4249_s12 = sld [smem:[#allocation55_spill]] }
 0x14c   : > { %v642_v0 = vmul.f32 %v4225_v54, %v638_v27  ;;  %v647_v34 = vmul.f32 %v4226_v7, %v637_v18  ;;  %v4227_v56 = vmov %v4226_v7  ;;  %v4228_v52 = vstv %s4222_s6  ;;  %s4250_s6 = sld [smem:[#allocation56_spill]] }
 0x14d   : > { %v648_v2 = vmul.f32 %v4227_v56, %v638_v27  ;;  %v653_v37 = vmul.f32 %v4228_v52, %v637_v18  ;;  %v4229_v10 = vmov %v4228_v52  ;;  %v4230_v51 = vstv %s4223_s19  ;;  %s4259_s19 = sld [smem:[#allocation57_spill]] }
 0x14e   : > { %v654_v8 = vmul.f32 %v4229_v10, %v638_v27  ;;  %v659_v26 = vmul.f32 %v4230_v51, %v637_v18  ;;  %v4231_v36 = vmov %v4230_v51  ;;  %v643_v47 = vadd.f32 %v641_v12, %v602_v32 }
 0x14f   : > { %v660_v24 = vmul.f32 %v4231_v36, %v638_v27  ;;  %v644_v44 = vadd.f32 %v642_v0, %v603_v16  ;;  %v649_v55 = vadd.f32 %v647_v34, %v608_v45  ;;  %v650_v53 = vadd.f32 %v648_v2, %v609_v4  ;;  %v4237_v4 = vld [vmem:[#allocation82_spill] sm:$0xff] }
 0x150   : > { %v655_v13 = vadd.f32 %v653_v37, %v614_v5  ;;  %v656_v46 = vadd.f32 %v654_v8, %v615_v43  ;;  %v661_v35 = vadd.f32 %v659_v26, %v620_v60  ;;  %v670_v18 = vadd.f32 %v2681_v11, %v643_v47  ;;  %v4238_v5 = vld [vmem:[#allocation83_spill] sm:$0xff] }
 0x151   : > { %v662_v63 = vadd.f32 %v660_v24, %v621_v59  ;;  %v671_v61 = vadd.f32 %v2684_v50, %v644_v44  ;;  %v677_v10 = vadd.f32 %v2692_v9, %v650_v53  ;;  %v676_v27 = vadd.f32 %v2689_v42, %v649_v55  ;;  %v821_v50 = vpop.permute.xlu1 %820  ;;  %v819_v9 = vpop.permute.xlu0 %818  ;;  %v4236_v42 = vld [vmem:[#allocation84_spill] sm:$0xff] }
 0x152   : > { %v683_v62 = vadd.f32 %v2718_v6, %v656_v46  ;;  %v682_v8 = vadd.f32 %v2715_v22, %v655_v13  ;;  %v688_v16 = vadd.f32 %v2747_v25, %v661_v35  ;;  %v696_v11 = vmul.f32 %v695_v14, %v2519_v17 }
 0x153   : > { %v689_v32 = vadd.f32 %v2750_v1, %v662_v63  ;;  %v697_v45 = vmul.f32 %v694_v33, %v4236_v42  ;;  %v726_v6 = vsel %vm380_vm0, %v723_v3, %v725_v31  ;;  %v727_v1 = vsel %vm380_vm0, %v725_v31, %v723_v3 }
 0x154   : > { %v728_v22 = vmul.f32 %v727_v1, %v4237_v4  ;;  %v729_v43 = vmul.f32 %v726_v6, %v4238_v5  ;;  %v758_v25 = vsel %vm421_vm2, %v755_v40, %v757_v28  ;;  %v759_v60 = vsel %vm421_vm2, %v757_v28, %v755_v40 }
 0x155   : > { %v4239_v59 = vstv %s4232_s16  ;;  %v4241_v12 = vstv %s4233_s15  ;;  %v4244_v31 = vstv %s4234_s11  ;;  %v4247_v2 = vstv %s4235_s3  ;;  %v3122_v24 = vpop.permute.xlu1 %852  ;;  %v3124_v47 = vpop.permute.xlu0 %850  ;;  %s4260_s16 = sld [smem:[#allocation58_spill]] }
 0x156   : > { %v700_v14 = vmul.f32 %v4239_v59, %v696_v11  ;;  %v4240_v23 = vmov %v4239_v59  ;;  %v706_v54 = vmul.f32 %v4241_v12, %v696_v11  ;;  %v4242_v0 = vmov %v4241_v12  ;;  %s4261_s15 = sld [smem:[#allocation59_spill]] }
 0x157   : > { %v701_v33 = vmul.f32 %v4240_v23, %v697_v45  ;;  %v707_v7 = vmul.f32 %v4242_v0, %v697_v45  ;;  %v712_v3 = vmul.f32 %v4244_v31, %v696_v11  ;;  %v4245_v34 = vmov %v4244_v31  ;;  %s4262_s11 = sld [smem:[#allocation60_spill]] }
 0x158   : > { %v713_v56 = vmul.f32 %v4245_v34, %v697_v45  ;;  %v718_v52 = vmul.f32 %v4247_v2, %v696_v11  ;;  %v4248_v37 = vmov %v4247_v2  ;;  %v702_v40 = vadd.f32 %v700_v14, %v670_v18  ;;  %s4265_s3 = sld [smem:[#allocation61_spill]] }
 0x159   : > { %v719_v28 = vmul.f32 %v4248_v37, %v697_v45  ;;  %v703_v51 = vadd.f32 %v701_v33, %v671_v61  ;;  %v708_v26 = vadd.f32 %v706_v54, %v676_v27  ;;  %v709_v36 = vadd.f32 %v707_v7, %v677_v10  ;;  %v883_v2 = vpop.permute.xlu0 %882 }
 0x15a   : > { %v714_v44 = vadd.f32 %v712_v3, %v682_v8  ;;  %v715_v55 = vadd.f32 %v713_v56, %v683_v62  ;;  %v720_v53 = vadd.f32 %v718_v52, %v688_v16  ;;  %v4251_v46 = vstv %s4243_s25  ;;  %v885_v56 = vpop.permute.xlu1 %884  ;;  %s4268_s25 = sld [smem:[#allocation62_spill]] }
 0x15b   : > { %v721_v13 = vadd.f32 %v719_v28, %v689_v32  ;;  %v732_v35 = vmul.f32 %v4251_v46, %v728_v22  ;;  %v4252_v63 = vmov %v4251_v46  ;;  %v4253_v45 = vstv %s4246_s8  ;;  %s4273_s8 = sld [smem:[#allocation63_spill]] }
 0x15c   : > { %v733_v11 = vmul.f32 %v4252_v63, %v729_v43  ;;  %v738_v6 = vmul.f32 %v4253_v45, %v728_v22  ;;  %v4254_v18 = vmov %v4253_v45  ;;  %v4255_v61 = vstv %s4249_s12  ;;  %s4274_s12 = sld [smem:[#allocation64_spill]] }
 0x15d   : > { %v739_v1 = vmul.f32 %v4254_v18, %v729_v43  ;;  %v744_v59 = vmul.f32 %v4255_v61, %v728_v22  ;;  %v4256_v27 = vmov %v4255_v61  ;;  %v4257_v14 = vstv %s4250_s6  ;;  %s4283_s6 = sld [smem:[#allocation65_spill]] }
 0x15e   : > { %v745_v10 = vmul.f32 %v4256_v27, %v729_v43  ;;  %v750_v23 = vmul.f32 %v4257_v14, %v728_v22  ;;  %v4258_v33 = vmov %v4257_v14  ;;  %v734_v8 = vadd.f32 %v732_v35, %v702_v40 }
 0x15f   : > { %v751_v12 = vmul.f32 %v4258_v33, %v729_v43  ;;  %v735_v62 = vadd.f32 %v733_v11, %v703_v51  ;;  %v740_v16 = vadd.f32 %v738_v6, %v708_v26  ;;  %v741_v32 = vadd.f32 %v739_v1, %v709_v36 }
 0x160   : > { %v746_v54 = vadd.f32 %v744_v59, %v714_v44  ;;  %v747_v0 = vadd.f32 %v745_v10, %v715_v55  ;;  %v752_v7 = vadd.f32 %v750_v23, %v720_v53  ;;  %v760_v3 = vmul.f32 %v759_v60, %v2528_v20 }
 0x161   : > { %v753_v31 = vadd.f32 %v751_v12, %v721_v13  ;;  %v761_v22 = vmul.f32 %v758_v25, %v2531_v21  ;;  %v790_v43 = vsel %vm462_vm3, %v3084_v39, %v3082_v19  ;;  %v791_v34 = vsel %vm462_vm3, %v3082_v19, %v3084_v39 }
 0x162   : > { %v792_v52 = vmul.f32 %v791_v34, %v2545_v29  ;;  %v793_v60 = vmul.f32 %v790_v43, %v2548_v30  ;;  %v822_v25 = vsel %vm503_vm4, %v819_v9, %v821_v50  ;;  %v823_v37 = vsel %vm503_vm4, %v821_v50, %v819_v9 }
 0x163   : > { %v4263_v28 = vstv %s4259_s19  ;;  %v4266_v36 = vstv %s4260_s16  ;;  %v4269_v55 = vstv %s4261_s15  ;;  %v4271_v35 = vstv %s4262_s11  ;;  %s4284_s19 = sld [smem:[#allocation66_spill]] }
 0x164   : > { %v764_v40 = vmul.f32 %v4263_v28, %v760_v3  ;;  %v4264_v51 = vmov %v4263_v28  ;;  %v770_v19 = vmul.f32 %v4266_v36, %v760_v3  ;;  %v4267_v39 = vmov %v4266_v36  ;;  %v915_v28 = vpop.permute.xlu0 %914  ;;  %s4285_s16 = sld [smem:[#allocation67_spill]] }
 0x165   : > { %v765_v26 = vmul.f32 %v4264_v51, %v761_v22  ;;  %v771_v44 = vmul.f32 %v4267_v39, %v761_v22  ;;  %v776_v53 = vmul.f32 %v4269_v55, %v760_v3  ;;  %v4270_v13 = vmov %v4269_v55  ;;  %s4286_s15 = sld [smem:[#allocation68_spill]] }
 0x166   : > { %v777_v46 = vmul.f32 %v4270_v13, %v761_v22  ;;  %v782_v63 = vmul.f32 %v4271_v35, %v760_v3  ;;  %v4272_v11 = vmov %v4271_v35  ;;  %v766_v9 = vadd.f32 %v764_v40, %v734_v8  ;;  %s4291_s11 = sld [smem:[#allocation69_spill]] }
 0x167   : > { %v783_v50 = vmul.f32 %v4272_v11, %v761_v22  ;;  %v767_v45 = vadd.f32 %v765_v26, %v735_v62  ;;  %v772_v6 = vadd.f32 %v770_v19, %v740_v16  ;;  %v773_v18 = vadd.f32 %v771_v44, %v741_v32  ;;  %v917_v22 = vpop.permute.xlu1 %916 }
 0x168   : > { %v778_v1 = vadd.f32 %v776_v53, %v746_v54  ;;  %v779_v61 = vadd.f32 %v777_v46, %v747_v0  ;;  %v784_v59 = vadd.f32 %v782_v63, %v752_v7  ;;  %v4275_v10 = vstv %s4265_s3  ;;  %s4292_s3 = sld [smem:[#allocation70_spill]] }
 0x169   : > { %v785_v27 = vadd.f32 %v783_v50, %v753_v31  ;;  %v796_v14 = vmul.f32 %v4275_v10, %v792_v52  ;;  %v4276_v23 = vmov %v4275_v10  ;;  %v4277_v12 = vstv %s4268_s25  ;;  %s4295_s25 = sld [smem:[#allocation71_spill]] }
 0x16a   : > { %v797_v33 = vmul.f32 %v4276_v23, %v793_v60  ;;  %v802_v3 = vmul.f32 %v4277_v12, %v792_v52  ;;  %v4278_v43 = vmov %v4277_v12  ;;  %v4279_v8 = vstv %s4273_s8  ;;  %s4298_s8 = sld [smem:[#allocation72_spill]] }
 0x16b   : > { %v803_v34 = vmul.f32 %v4278_v43, %v793_v60  ;;  %v808_v40 = vmul.f32 %v4279_v8, %v792_v52  ;;  %v4280_v62 = vmov %v4279_v8  ;;  %v4281_v16 = vstv %s4274_s12  ;;  %s4307_s12 = sld [smem:[#allocation73_spill]] }
 0x16c   : > { %v809_v51 = vmul.f32 %v4280_v62, %v793_v60  ;;  %v814_v32 = vmul.f32 %v4281_v16, %v792_v52  ;;  %v4282_v54 = vmov %v4281_v16  ;;  %v798_v7 = vadd.f32 %v796_v14, %v766_v9 }
 0x16d   : > { %v815_v0 = vmul.f32 %v4282_v54, %v793_v60  ;;  %v799_v31 = vadd.f32 %v797_v33, %v767_v45  ;;  %v804_v26 = vadd.f32 %v802_v3, %v772_v6  ;;  %v805_v36 = vadd.f32 %v803_v34, %v773_v18 }
 0x16e   : > { %v810_v19 = vadd.f32 %v808_v40, %v778_v1  ;;  %v811_v39 = vadd.f32 %v809_v51, %v779_v61  ;;  %v816_v44 = vadd.f32 %v814_v32, %v784_v59  ;;  %v824_v53 = vmul.f32 %v822_v25, %v2576_v38 }
 0x16f   : > { %v817_v55 = vadd.f32 %v815_v0, %v785_v27  ;;  %v825_v52 = vmul.f32 %v823_v37, %v2587_v41  ;;  %v854_v60 = vsel %vm544_vm5, %v3124_v47, %v3122_v24  ;;  %v855_v13 = vsel %vm544_vm5, %v3122_v24, %v3124_v47  ;;  %v976_v24 = vpop.permute.xlu1 %975  ;;  %v974_v47 = vpop.permute.xlu0 %973 }
 0x170   : > { %v856_v46 = vmul.f32 %v854_v60, %v2606_v48  ;;  %v857_v35 = vmul.f32 %v855_v13, %v2609_v49  ;;  %v886_v25 = vsel %vm585_vm6, %v883_v2, %v885_v56  ;;  %v887_v37 = vsel %vm585_vm6, %v885_v56, %v883_v2 }
 0x171   : > { %v4287_v63 = vstv %s4283_s6  ;;  %v4289_v45 = vstv %s4284_s19  ;;  %v4293_v61 = vstv %s4285_s16  ;;  %v4296_v56 = vstv %s4286_s15  ;;  %s4308_s6 = sld [smem:[#allocation74_spill]] }
 0x172   : > { %v828_v11 = vmul.f32 %v4287_v63, %v824_v53  ;;  %v4288_v50 = vmov %v4287_v63  ;;  %v834_v6 = vmul.f32 %v4289_v45, %v824_v53  ;;  %v4290_v18 = vmov %v4289_v45  ;;  %s4309_s19 = sld [smem:[#allocation75_spill]] }
 0x173   : > { %v829_v9 = vmul.f32 %v4288_v50, %v825_v52  ;;  %v835_v1 = vmul.f32 %v4290_v18, %v825_v52  ;;  %v840_v59 = vmul.f32 %v4293_v61, %v824_v53  ;;  %v4294_v27 = vmov %v4293_v61  ;;  %s4310_s16 = sld [smem:[#allocation76_spill]] }
 0x174   : > { %v841_v10 = vmul.f32 %v4294_v27, %v825_v52  ;;  %v846_v2 = vmul.f32 %v4296_v56, %v824_v53  ;;  %v4297_v14 = vmov %v4296_v56  ;;  %v830_v33 = vadd.f32 %v828_v11, %v798_v7  ;;  %v1008_v11 = vpop.permute.xlu1 %1007  ;;  %s4317_s15 = sld [smem:[#allocation78_spill]] }
 0x175   : > { %v847_v23 = vmul.f32 %v4297_v14, %v825_v52  ;;  %v831_v12 = vadd.f32 %v829_v9, %v799_v31  ;;  %v836_v3 = vadd.f32 %v834_v6, %v804_v26  ;;  %v837_v43 = vadd.f32 %v835_v1, %v805_v36  ;;  %v1006_v9 = vpop.permute.xlu0 %1005 }
 0x176   : > { %v842_v34 = vadd.f32 %v840_v59, %v810_v19  ;;  %v843_v8 = vadd.f32 %v841_v10, %v811_v39  ;;  %v848_v40 = vadd.f32 %v846_v2, %v816_v44  ;;  %v4299_v51 = vstv %s4291_s11  ;;  %v4311_v10 = vld [vmem:[#allocation95_spill] sm:$0xff]  ;;  %v4312_v2 = vld [vmem:[#allocation96_spill] sm:$0xff]  ;;  %s4320_s11 = sld [smem:[#allocation79_spill]] }
 0x177   : > { %v849_v62 = vadd.f32 %v847_v23, %v817_v55  ;;  %v860_v16 = vmul.f32 %v4299_v51, %v856_v46  ;;  %v4300_v32 = vmov %v4299_v51  ;;  %v4301_v0 = vstv %s4292_s3  ;;  %s4323_s3 = sld [smem:[#allocation80_spill]] }
 0x178   : > { %v861_v54 = vmul.f32 %v4300_v32, %v857_v35  ;;  %v866_v60 = vmul.f32 %v4301_v0, %v856_v46  ;;  %v4302_v13 = vmov %v4301_v0  ;;  %v4303_v63 = vstv %s4295_s25  ;;  %s4324_s25 = sld [smem:[#allocation81_spill]] }
 0x179   : > { %v867_v53 = vmul.f32 %v4302_v13, %v857_v35  ;;  %v872_v50 = vmul.f32 %v4303_v63, %v856_v46  ;;  %v4304_v52 = vmov %v4303_v63  ;;  %v4305_v7 = vstv %s4298_s8  ;;  %v1038_v63 = vpop.permute.xlu0 %1037  ;;  %s4339_s8 = sld [smem:[#allocation85_spill]] }
 0x17a   : > { %v873_v45 = vmul.f32 %v4304_v52, %v857_v35  ;;  %v878_v31 = vmul.f32 %v4305_v7, %v856_v46  ;;  %v4306_v26 = vmov %v4305_v7  ;;  %v862_v19 = vadd.f32 %v860_v16, %v830_v33 }
 0x17b   : > { %v879_v36 = vmul.f32 %v4306_v26, %v857_v35  ;;  %v863_v39 = vadd.f32 %v861_v54, %v831_v12  ;;  %v868_v44 = vadd.f32 %v866_v60, %v836_v3  ;;  %v869_v55 = vadd.f32 %v867_v53, %v837_v43  ;;  %v1040_v53 = vpop.permute.xlu1 %1039 }
 0x17c   : > { %v874_v6 = vadd.f32 %v872_v50, %v842_v34  ;;  %v875_v18 = vadd.f32 %v873_v45, %v843_v8  ;;  %v880_v1 = vadd.f32 %v878_v31, %v848_v40  ;;  %v888_v46 = vmul.f32 %v886_v25, %v2623_v57 }
 0x17d   : > { %v881_v61 = vadd.f32 %v879_v36, %v849_v62  ;;  %v889_v35 = vmul.f32 %v887_v37, %v2626_v58  ;;  %v918_v59 = vsel %vm626_vm7, %v915_v28, %v917_v22  ;;  %v919_v27 = vsel %vm626_vm7, %v917_v22, %v915_v28 }
 0x17e   : > { %v920_v56 = vmul.f32 %v918_v59, %v4311_v10  ;;  %v921_v14 = vmul.f32 %v919_v27, %v4312_v2  ;;  %v977_v23 = vsel %vm339_vm1, %v974_v47, %v976_v24  ;;  %v978_v33 = vsel %vm339_vm1, %v976_v24, %v974_v47 }
 0x17f   : > { %v4313_v12 = vstv %s4307_s12  ;;  %v4315_v43 = vstv %s4308_s6  ;;  %v4318_v22 = vstv %s4309_s19  ;;  %v4321_v16 = vstv %s4310_s16  ;;  %s4342_s12 = sld [smem:[#allocation86_spill]] }
 0x180   : > { %v892_v25 = vmul.f32 %v4313_v12, %v888_v46  ;;  %v4314_v3 = vmov %v4313_v12  ;;  %v898_v34 = vmul.f32 %v4315_v43, %v888_v46  ;;  %v4316_v8 = vmov %v4315_v43  ;;  %s4351_s6 = sld [smem:[#allocation89_spill]] }
 0x181   : > { %v893_v37 = vmul.f32 %v4314_v3, %v889_v35  ;;  %v899_v40 = vmul.f32 %v4316_v8, %v889_v35  ;;  %v904_v28 = vmul.f32 %v4318_v22, %v888_v46  ;;  %v4319_v62 = vmov %v4318_v22  ;;  %s3518_s19 = sld [smem:[#allocation2 + $0x42]] }
 0x182   : > { %v905_v51 = vmul.f32 %v4319_v62, %v889_v35  ;;  %v910_v32 = vmul.f32 %v4321_v16, %v888_v46  ;;  %v4322_v54 = vmov %v4321_v16  ;;  %v894_v47 = vadd.f32 %v892_v25, %v862_v19  ;;  %s3530_s16 = sld [smem:[#allocation2 + $0x66]] }
 0x183   : > { %v911_v24 = vmul.f32 %v4322_v54, %v889_v35  ;;  %v895_v0 = vadd.f32 %v893_v37, %v863_v39  ;;  %v900_v60 = vadd.f32 %v898_v34, %v868_v44  ;;  %v901_v13 = vadd.f32 %v899_v40, %v869_v55 }
 0x184   : > { %v906_v50 = vadd.f32 %v904_v28, %v874_v6  ;;  %v907_v52 = vadd.f32 %v905_v51, %v875_v18  ;;  %v912_v45 = vadd.f32 %v910_v32, %v880_v1  ;;  %v4325_v31 = vstv %s4317_s15  ;;  %v4333_v28 = vld [vmem:[#allocation102_spill] sm:$0xff]  ;;  %v4334_v51 = vld [vmem:[#allocation104_spill] sm:$0xff]  ;;  %v4335_v32 = vld [vmem:[#allocation101_spill] sm:$0xff]  ;;  %s3532_s15 = sld [smem:[#allocation2 + $0x8a]] }
 0x185   : > { %v913_v7 = vadd.f32 %v911_v24, %v881_v61  ;;  %v924_v26 = vmul.f32 %v4325_v31, %v920_v56  ;;  %v4326_v36 = vmov %v4325_v31  ;;  %v4327_v59 = vstv %s4320_s11  ;;  %v4336_v24 = vld [vmem:[#allocation103_spill] sm:$0xff]  ;;  %s3534_s11 = sld [smem:[#allocation2 + $0x20]] }
 0x186   : > { %v925_v46 = vmul.f32 %v4326_v36, %v921_v14  ;;  %v930_v27 = vmul.f32 %v4327_v59, %v920_v56  ;;  %v4328_v35 = vmov %v4327_v59  ;;  %v4329_v19 = vstv %s4323_s3  ;;  %s3536_s3 = sld [smem:[#allocation2 + $0x44]] }
 0x187   : > { %v931_v12 = vmul.f32 %v4328_v35, %v921_v14  ;;  %v936_v25 = vmul.f32 %v4329_v19, %v920_v56  ;;  %v4330_v39 = vmov %v4329_v19  ;;  %v4331_v44 = vstv %s4324_s25  ;;  %s3548_s25 = sld [smem:[#allocation2 + $0x68]] }
 0x188   : > { %v937_v3 = vmul.f32 %v4330_v39, %v921_v14  ;;  %v942_v55 = vmul.f32 %v4331_v44, %v920_v56  ;;  %v4332_v37 = vmov %v4331_v44  ;;  %v926_v6 = vadd.f32 %v924_v26, %v894_v47  ;;  %v1072_v56 = vpop.permute.xlu1 %1071  ;;  %v4337_v47 = vld [vmem:[#allocation106_spill] sm:$0xff] }
 0x189   : > { %v943_v43 = vmul.f32 %v4332_v37, %v921_v14  ;;  %v927_v18 = vadd.f32 %v925_v46, %v895_v0  ;;  %v932_v1 = vadd.f32 %v930_v27, %v900_v60  ;;  %v933_v61 = vadd.f32 %v931_v12, %v901_v13  ;;  %v1070_v14 = vpop.permute.xlu0 %1069  ;;  %v4338_v60 = vld [vmem:[#allocation108_spill] sm:$0xff] }
 0x18a   : > { %v938_v34 = vadd.f32 %v936_v25, %v906_v50  ;;  %v939_v8 = vadd.f32 %v937_v3, %v907_v52  ;;  %v944_v40 = vadd.f32 %v942_v55, %v912_v45  ;;  %v953_v54 = vadd.f32 %v4335_v32, %v926_v6  ;;  %v4340_v50 = vld [vmem:[#allocation105_spill] sm:$0xff]  ;;  %v4341_v45 = vld [vmem:[#allocation107_spill] sm:$0xff] }
 0x18b   : > { %v945_v22 = vadd.f32 %v943_v43, %v913_v7  ;;  %v954_v62 = vadd.f32 %v4333_v28, %v927_v18  ;;  %v960_v16 = vadd.f32 %v4334_v51, %v933_v61  ;;  %v959_v31 = vadd.f32 %v4336_v24, %v932_v1 }
 0x18c   : > { %v966_v0 = vadd.f32 %v4337_v47, %v939_v8  ;;  %v965_v52 = vadd.f32 %v4340_v50, %v938_v34  ;;  %v971_v7 = vadd.f32 %v4341_v45, %v944_v40  ;;  %v979_v26 = vmul.f32 %v978_v33, %v2519_v17 }
 0x18d   : > { %v972_v13 = vadd.f32 %v4338_v60, %v945_v22  ;;  %v980_v36 = vmul.f32 %v977_v23, %v4236_v42  ;;  %v1009_v46 = vsel %vm380_vm0, %v1006_v9, %v1008_v11  ;;  %v1010_v59 = vsel %vm380_vm0, %v1008_v11, %v1006_v9  ;;  %v1104_v22 = vpop.permute.xlu1 %1103  ;;  %v1102_v28 = vpop.permute.xlu0 %1101 }
 0x18e   : > { %v1011_v27 = vmul.f32 %v1010_v59, %v4237_v4  ;;  %v1012_v35 = vmul.f32 %v1009_v46, %v4238_v5  ;;  %v1041_v12 = vsel %vm421_vm2, %v1038_v63, %v1040_v53  ;;  %v1042_v19 = vsel %vm421_vm2, %v1040_v53, %v1038_v63 }
 0x18f   : > { %v4343_v25 = vstv %s2507_s18  ;;  %v4345_v3 = vstv %s2524_s0  ;;  %v4347_v11 = vstv %s4339_s8  ;;  %v4349_v18 = vstv %s4342_s12  ;;  %s4360_s18 = sld [smem:[#allocation94_spill]] }
 0x190   : > { %v983_v33 = vmul.f32 %v4343_v25, %v979_v26  ;;  %v4344_v39 = vmov %v4343_v25  ;;  %v989_v44 = vmul.f32 %v4345_v3, %v979_v26  ;;  %v4346_v55 = vmov %v4345_v3  ;;  %s3436_s0 = sld [smem:[#allocation2 + $0x63]] }
 0x191   : > { %v984_v23 = vmul.f32 %v4344_v39, %v980_v36  ;;  %v990_v37 = vmul.f32 %v4346_v55, %v980_v36  ;;  %v995_v9 = vmul.f32 %v4347_v11, %v979_v26  ;;  %v4348_v43 = vmov %v4347_v11  ;;  %s3550_s8 = sld [smem:[#allocation2 + $0x8c]] }
 0x192   : > { %v996_v6 = vmul.f32 %v4348_v43, %v980_v36  ;;  %v1001_v1 = vmul.f32 %v4349_v18, %v979_v26  ;;  %v4350_v61 = vmov %v4349_v18  ;;  %v985_v63 = vadd.f32 %v983_v33, %v953_v54  ;;  %v1134_v18 = vpop.permute.xlu0 %1133  ;;  %s3552_s12 = sld [smem:[#allocation2 + $0x21]] }
 0x193   : > { %v1002_v53 = vmul.f32 %v4350_v61, %v980_v36  ;;  %v986_v34 = vadd.f32 %v984_v23, %v954_v62  ;;  %v991_v8 = vadd.f32 %v989_v44, %v959_v31  ;;  %v992_v40 = vadd.f32 %v990_v37, %v960_v16 }
 0x194   : > { %v997_v51 = vadd.f32 %v995_v9, %v965_v52  ;;  %v998_v32 = vadd.f32 %v996_v6, %v966_v0  ;;  %v1003_v24 = vadd.f32 %v1001_v1, %v971_v7  ;;  %v4352_v60 = vstv %s4107_s26  ;;  %v1136_v6 = vpop.permute.xlu1 %1135  ;;  %s3501_s26 = sld [smem:[#allocation2 + $0x89]] }
 0x195   : > { %v1004_v47 = vadd.f32 %v1002_v53, %v972_v13  ;;  %v1015_v50 = vmul.f32 %v4352_v60, %v1011_v27  ;;  %v4353_v45 = vmov %v4352_v60  ;;  %v4354_v46 = vstv %s4110_s17  ;;  %s3480_s17 = sld [smem:[#allocation2 + $0x1d]] }
 0x196   : > { %v1016_v26 = vmul.f32 %v4353_v45, %v1012_v35  ;;  %v1021_v59 = vmul.f32 %v4354_v46, %v1011_v27  ;;  %v4355_v36 = vmov %v4354_v46  ;;  %v4356_v54 = vstv %s4351_s6  ;;  %s3554_s6 = sld [smem:[#allocation2 + $0x45]] }
 0x197   : > { %v1022_v25 = vmul.f32 %v4355_v36, %v1012_v35  ;;  %v1027_v33 = vmul.f32 %v4356_v54, %v1011_v27  ;;  %v4357_v62 = vmov %v4356_v54  ;;  %v4358_v31 = vstv %s4112_s13  ;;  %s4365_s13 = sld [smem:[#allocation46_spill]] }
 0x198   : > { %v1028_v39 = vmul.f32 %v4357_v62, %v1012_v35  ;;  %v1033_v16 = vmul.f32 %v4358_v31, %v1011_v27  ;;  %v4359_v23 = vmov %v4358_v31  ;;  %v1017_v52 = vadd.f32 %v1015_v50, %v985_v63 }
 0x199   : > { %v1034_v3 = vmul.f32 %v4359_v23, %v1012_v35  ;;  %v1018_v0 = vadd.f32 %v1016_v26, %v986_v34  ;;  %v1023_v7 = vadd.f32 %v1021_v59, %v991_v8  ;;  %v1024_v13 = vadd.f32 %v1022_v25, %v992_v40 }
 0x19a   : > { %v1029_v44 = vadd.f32 %v1027_v33, %v997_v51  ;;  %v1030_v55 = vadd.f32 %v1028_v39, %v998_v32  ;;  %v1035_v37 = vadd.f32 %v1033_v16, %v1003_v24  ;;  %v1043_v9 = vmul.f32 %v1042_v19, %v2528_v20 }
 0x19b   : > { %v1036_v11 = vadd.f32 %v1034_v3, %v1004_v47  ;;  %v1044_v27 = vmul.f32 %v1041_v12, %v2531_v21  ;;  %v1073_v35 = vsel %vm462_vm3, %v1070_v14, %v1072_v56  ;;  %v1074_v43 = vsel %vm462_vm3, %v1072_v56, %v1070_v14 }
 0x19c   : > { %v1075_v1 = vmul.f32 %v1074_v43, %v2545_v29  ;;  %v1076_v61 = vmul.f32 %v1073_v35, %v2548_v30  ;;  %v1105_v53 = vsel %vm503_vm4, %v1102_v28, %v1104_v22  ;;  %v1106_v19 = vsel %vm503_vm4, %v1104_v22, %v1102_v28 }
 0x19d   : > { %v4361_v12 = vstv %s4113_s1  ;;  %v4363_v40 = vstv %s4115_s28  ;;  %v4366_v32 = vstv %s4117_s4  ;;  %v4368_v50 = vstv %s4360_s18  ;;  %s4378_s1 = sld [smem:[#allocation98_spill]] }
 0x19e   : > { %v1047_v63 = vmul.f32 %v4361_v12, %v1043_v9  ;;  %v4362_v34 = vmov %v4361_v12  ;;  %v1053_v56 = vmul.f32 %v4363_v40, %v1043_v9  ;;  %v4364_v14 = vmov %v4363_v40  ;;  %v1166_v12 = vpop.permute.xlu0 %1165  ;;  %s4395_s4 = sld [smem:[#allocation12_spill]] }
 0x19f   : > { %v1048_v8 = vmul.f32 %v4362_v34, %v1044_v27  ;;  %v1054_v51 = vmul.f32 %v4364_v14, %v1044_v27  ;;  %v1059_v24 = vmul.f32 %v4366_v32, %v1043_v9  ;;  %v4367_v47 = vmov %v4366_v32  ;;  %s3446_s28 = sld [smem:[#allocation2 + $0x87]] }
 0x1a0   : > { %v1060_v60 = vmul.f32 %v4367_v47, %v1044_v27  ;;  %v1065_v45 = vmul.f32 %v4368_v50, %v1043_v9  ;;  %v4369_v26 = vmov %v4368_v50  ;;  %v1049_v28 = vadd.f32 %v1047_v63, %v1017_v52  ;;  %s3574_s18 = sld [smem:[#allocation2 + $0x69]] }
 0x1a1   : > { %v1066_v22 = vmul.f32 %v4369_v26, %v1044_v27  ;;  %v1050_v46 = vadd.f32 %v1048_v8, %v1018_v0  ;;  %v1055_v59 = vadd.f32 %v1053_v56, %v1023_v7  ;;  %v1056_v36 = vadd.f32 %v1054_v51, %v1024_v13  ;;  %v1168_v27 = vpop.permute.xlu1 %1167 }
 0x1a2   : > { %v1061_v25 = vadd.f32 %v1059_v24, %v1029_v44  ;;  %v1062_v54 = vadd.f32 %v1060_v60, %v1030_v55  ;;  %v1067_v33 = vadd.f32 %v1065_v45, %v1035_v37  ;;  %v4370_v39 = vstv %s4120_s23  ;;  %s3506_s23 = sld [smem:[#allocation2 + $0x1e]] }
 0x1a3   : > { %v1068_v62 = vadd.f32 %v1066_v22, %v1036_v11  ;;  %v1079_v31 = vmul.f32 %v4370_v39, %v1075_v1  ;;  %v4371_v16 = vmov %v4370_v39  ;;  %v4372_v3 = vstv %s4365_s13  ;;  %s3576_s13 = sld [smem:[#allocation2 + $0x8d]] }
 0x1a4   : > { %v1080_v23 = vmul.f32 %v4371_v16, %v1076_v61  ;;  %v1085_v9 = vmul.f32 %v4372_v3, %v1075_v1  ;;  %v4373_v35 = vmov %v4372_v3  ;;  %v4374_v52 = vstv %s4122_s24  ;;  %s4406_s24 = sld [smem:[#allocation87_spill]] }
 0x1a5   : > { %v1086_v43 = vmul.f32 %v4373_v35, %v1076_v61  ;;  %v1091_v63 = vmul.f32 %v4374_v52, %v1075_v1  ;;  %v4375_v0 = vmov %v4374_v52  ;;  %v4376_v7 = vstv %s4123_s27  ;;  %s3490_s27 = sld [smem:[#allocation2 + $0x41]] }
 0x1a6   : > { %v1092_v34 = vmul.f32 %v4375_v0, %v1076_v61  ;;  %v1097_v13 = vmul.f32 %v4376_v7, %v1075_v1  ;;  %v4377_v44 = vmov %v4376_v7  ;;  %v1081_v37 = vadd.f32 %v1079_v31, %v1049_v28 }
 0x1a7   : > { %v1098_v55 = vmul.f32 %v4377_v44, %v1076_v61  ;;  %v1082_v11 = vadd.f32 %v1080_v23, %v1050_v46  ;;  %v1087_v8 = vadd.f32 %v1085_v9, %v1055_v59  ;;  %v1088_v40 = vadd.f32 %v1086_v43, %v1056_v36 }
 0x1a8   : > { %v1093_v56 = vadd.f32 %v1091_v63, %v1061_v25  ;;  %v1094_v14 = vadd.f32 %v1092_v34, %v1062_v54  ;;  %v1099_v51 = vadd.f32 %v1097_v13, %v1067_v33  ;;  %v1107_v24 = vmul.f32 %v1105_v53, %v2576_v38 }
 0x1a9   : > { %v1100_v32 = vadd.f32 %v1098_v55, %v1068_v62  ;;  %v1108_v1 = vmul.f32 %v1106_v19, %v2587_v41  ;;  %v1137_v61 = vsel %vm544_vm5, %v1134_v18, %v1136_v6  ;;  %v1138_v47 = vsel %vm544_vm5, %v1136_v6, %v1134_v18  ;;  %v1200_v6 = vpop.permute.xlu1 %1199  ;;  %v1198_v18 = vpop.permute.xlu0 %1197 }
 0x1aa   : > { %v1139_v60 = vmul.f32 %v1137_v61, %v2606_v48  ;;  %v1140_v50 = vmul.f32 %v1138_v47, %v2609_v49  ;;  %v1169_v45 = vsel %vm585_vm6, %v1166_v12, %v1168_v27  ;;  %v1170_v53 = vsel %vm585_vm6, %v1168_v27, %v1166_v12 }
 0x1ab   : > { %v4379_v26 = vstv %s4124_s9  ;;  %v4381_v46 = vstv %s4378_s1  ;;  %v4383_v54 = vstv %s2696_s10  ;;  %v4385_v31 = vstv %s2702_s7  ;;  %s3424_s7 = sld [smem:[#allocation2 + $0x1b]] }
 0x1ac   : > { %v1111_v22 = vmul.f32 %v4379_v26, %v1107_v24  ;;  %v4380_v19 = vmov %v4379_v26  ;;  %v1117_v59 = vmul.f32 %v4381_v46, %v1107_v24  ;;  %v4382_v36 = vmov %v4381_v46  ;;  %s3428_s9 = sld [smem:[#allocation2 + $0x3f]] }
 0x1ad   : > { %v1112_v28 = vmul.f32 %v4380_v19, %v1108_v1  ;;  %v1118_v25 = vmul.f32 %v4382_v36, %v1108_v1  ;;  %v1123_v33 = vmul.f32 %v4383_v54, %v1107_v24  ;;  %v4384_v62 = vmov %v4383_v54  ;;  %s4396_s10 = sld [smem:[#allocation100_spill]] }
 0x1ae   : > { %v1124_v39 = vmul.f32 %v4384_v62, %v1108_v1  ;;  %v1129_v16 = vmul.f32 %v4385_v31, %v1107_v24  ;;  %v4386_v23 = vmov %v4385_v31  ;;  %v1113_v9 = vadd.f32 %v1111_v22, %v1081_v37  ;;  %v3422_v22 = vpop.permute.xlu1 %1258  ;;  %s3596_s1 = sld [smem:[#allocation2 + $0x46]] }
 0x1af   : > { %v1130_v3 = vmul.f32 %v4386_v23, %v1108_v1  ;;  %v1114_v35 = vadd.f32 %v1112_v28, %v1082_v11  ;;  %v1119_v43 = vadd.f32 %v1117_v59, %v1087_v8  ;;  %v1120_v27 = vadd.f32 %v1118_v25, %v1088_v40  ;;  %v3426_v28 = vpop.permute.xlu0 %1256 }
 0x1b0   : > { %v1125_v12 = vadd.f32 %v1123_v33, %v1093_v56  ;;  %v1126_v52 = vadd.f32 %v1124_v39, %v1094_v14  ;;  %v1131_v63 = vadd.f32 %v1129_v16, %v1099_v51  ;;  %v4387_v34 = vstv %s4128_s29  ;;  %v2062_v16 = vld [vmem:[%s4395_s4 + $0x30] sm:$0xff]  ;;  %s3456_s29 = sld [smem:[#allocation2 + $0x1c]] }
 0x1b1   : > { %v1132_v0 = vadd.f32 %v1130_v3, %v1100_v32  ;;  %v1143_v7 = vmul.f32 %v4387_v34, %v1139_v60  ;;  %v4388_v13 = vmov %v4387_v34  ;;  %v4389_v55 = vstv %s2722_s5  ;;  %s3466_s5 = sld [smem:[#allocation2 + $0x40]] }
 0x1b2   : > { %v1144_v44 = vmul.f32 %v4388_v13, %v1140_v50  ;;  %v1149_v61 = vmul.f32 %v4389_v55, %v1139_v60  ;;  %v4390_v47 = vmov %v4389_v55  ;;  %v4391_v26 = vstv %s2728_s2  ;;  %s3496_s2 = sld [smem:[#allocation2 + $0x65]] }
 0x1b3   : > { %v1150_v24 = vmul.f32 %v4390_v47, %v1140_v50  ;;  %v1155_v19 = vmul.f32 %v4391_v26, %v1139_v60  ;;  %v4392_v1 = vmov %v4391_v26  ;;  %v4393_v37 = vstv %s2734_s20  ;;  %s3470_s20 = sld [smem:[#allocation2 + $0x88]] }
 0x1b4   : > { %v1156_v46 = vmul.f32 %v4392_v1, %v1140_v50  ;;  %v1161_v11 = vmul.f32 %v4393_v37, %v1139_v60  ;;  %v4394_v8 = vmov %v4393_v37  ;;  %v1145_v56 = vadd.f32 %v1143_v7, %v1113_v9  ;;  %v1289_v37 = vpop.permute.xlu0 %1288 }
 0x1b5   : > { %v1162_v40 = vmul.f32 %v4394_v8, %v1140_v50  ;;  %v1146_v14 = vadd.f32 %v1144_v44, %v1114_v35  ;;  %v1151_v51 = vadd.f32 %v1149_v61, %v1119_v43  ;;  %v1152_v32 = vadd.f32 %v1150_v24, %v1120_v27 }
 0x1b6   : > { %v1157_v59 = vadd.f32 %v1155_v19, %v1125_v12  ;;  %v1158_v36 = vadd.f32 %v1156_v46, %v1126_v52  ;;  %v1163_v60 = vadd.f32 %v1161_v11, %v1131_v63  ;;  %v1171_v25 = vmul.f32 %v1169_v45, %v2623_v57  ;;  %v1291_v46 = vpop.permute.xlu1 %1290 }
 0x1b7   : > { %v1164_v50 = vadd.f32 %v1162_v40, %v1132_v0  ;;  %v1172_v54 = vmul.f32 %v1170_v53, %v2626_v58  ;;  %v1201_v33 = vsel %vm626_vm7, %v1198_v18, %v1200_v6  ;;  %v1202_v62 = vsel %vm626_vm7, %v1200_v6, %v1198_v18  ;;  %v2063_v53 = vld [vmem:[%s4395_s4 + $0x38] sm:$0xff]  ;;  %s3602_s4 = sld [smem:[#allocation2 + $0x47]] }
 0x1b8   : > { %v1203_v39 = vmul.f32 %v1201_v33, %v4311_v10  ;;  %v1204_v31 = vmul.f32 %v1202_v62, %v4312_v2  ;;  %v4397_v45 = vstv %s2836_s30  ;;  %v4399_v35 = vstv %s2740_s21  ;;  %s4408_s30 = sld [smem:[#allocation88_spill]] }
 0x1b9   : > { %v1252_v23 = vmul.f32 %v2062_v16, %v4397_v45  ;;  %v4398_v3 = vmov %v4397_v45  ;;  %v1175_v43 = vmul.f32 %v4399_v35, %v1171_v25  ;;  %v4400_v27 = vmov %v4399_v35  ;;  %s4410_s21 = sld [smem:[#allocation91_spill]] }
 0x1ba   : > { %v1253_v9 = vmul.f32 %v2063_v53, %v4398_v3  ;;  %v1176_v6 = vmul.f32 %v4400_v27, %v1172_v54  ;;  %v4401_v18 = vstv %s2754_s22  ;;  %v4403_v0 = vstv %s2760_s14  ;;  %s4409_s22 = sld [smem:[#allocation90_spill]] }
 0x1bb   : > { %v1181_v12 = vmul.f32 %v4401_v18, %v1171_v25  ;;  %v4402_v52 = vmov %v4401_v18  ;;  %v1187_v34 = vmul.f32 %v4403_v0, %v1171_v25  ;;  %v4404_v7 = vmov %v4403_v0  ;;  %s3468_s14 = sld [smem:[#allocation2 + $0x64]] }
 0x1bc   : > { %v1182_v63 = vmul.f32 %v4402_v52, %v1172_v54  ;;  %v1188_v13 = vmul.f32 %v4404_v7, %v1172_v54  ;;  %v4405_v44 = vstv %s4396_s10  ;;  %v1177_v24 = vadd.f32 %v1175_v43, %v1145_v56  ;;  %s3620_s10 = sld [smem:[#allocation2 + $0x23]] }
 0x1bd   : > { %v1193_v55 = vmul.f32 %v4405_v44, %v1171_v25  ;;  %v4407_v61 = vmov %v4405_v44  ;;  %v1178_v26 = vadd.f32 %v1176_v6, %v1146_v14  ;;  %v1183_v19 = vadd.f32 %v1181_v12, %v1151_v51 }
 0x1be   : > { %v1194_v47 = vmul.f32 %v4407_v61, %v1172_v54  ;;  %v1184_v1 = vadd.f32 %v1182_v63, %v1152_v32  ;;  %v1189_v11 = vadd.f32 %v1187_v34, %v1157_v59  ;;  %v1190_v8 = vadd.f32 %v1188_v13, %v1158_v36  ;;  %v4419_v34 = vld [vmem:[#allocation110_spill] sm:$0xff]  ;;  %v4420_v13 = vld [vmem:[#allocation112_spill] sm:$0xff]  ;;  %v1321_v61 = vpop.permute.xlu0 %1320 }
 0x1bf   : > { %v1195_v40 = vadd.f32 %v1193_v55, %v1163_v60  ;;  %v4411_v54 = vstv %s4406_s24  ;;  %v4413_v62 = vstv %s4408_s30  ;;  %v4417_v36 = vstv %s4410_s21  ;;  %s4425_s24 = sld [smem:[#allocation11_spill]] }
 0x1c0   : > { %v1196_v25 = vadd.f32 %v1194_v47, %v1164_v50  ;;  %v1207_v33 = vmul.f32 %v4411_v54, %v1203_v39  ;;  %v4412_v56 = vmov %v4411_v54  ;;  %v1213_v51 = vmul.f32 %v4413_v62, %v1203_v39  ;;  %v4421_v47 = vld [vmem:[#allocation114_spill] sm:$0xff]  ;;  %v4424_v54 = vld [vmem:[#allocation113_spill] sm:$0xff]  ;;  %s3659_s30 = sld [smem:[#allocation4 + $0x2]] }
 0x1c1   : > { %v1208_v14 = vmul.f32 %v4412_v56, %v1204_v31  ;;  %v4414_v16 = vmov %v4413_v62  ;;  %v4415_v45 = vstv %s4409_s22  ;;  %v1225_v60 = vmul.f32 %v4417_v36, %v1203_v39  ;;  %s3668_s22 = sld [smem:[#allocation2 + $0x8f]] }
 0x1c2   : > { %v1214_v32 = vmul.f32 %v4414_v16, %v1204_v31  ;;  %v1219_v53 = vmul.f32 %v4415_v45, %v1203_v39  ;;  %v4416_v3 = vmov %v4415_v45  ;;  %v4418_v50 = vmov %v4417_v36 }
 0x1c3   : > { %v1220_v59 = vmul.f32 %v4416_v3, %v1204_v31  ;;  %v1226_v35 = vmul.f32 %v4418_v50, %v1204_v31  ;;  %v1209_v43 = vadd.f32 %v1207_v33, %v1177_v24  ;;  %v1210_v27 = vadd.f32 %v1208_v14, %v1178_v26  ;;  %v1323_v31 = vpop.permute.xlu1 %1322 }
 0x1c4   : > { %v1215_v6 = vadd.f32 %v1213_v51, %v1183_v19  ;;  %v1216_v18 = vadd.f32 %v1214_v32, %v1184_v1  ;;  %v1221_v12 = vadd.f32 %v1219_v53, %v1189_v11  ;;  %v1227_v63 = vadd.f32 %v1225_v60, %v1195_v40  ;;  %v4422_v11 = vld [vmem:[#allocation109_spill] sm:$0xff]  ;;  %v4423_v40 = vld [vmem:[#allocation111_spill] sm:$0xff] }
 0x1c5   : > { %v1222_v52 = vadd.f32 %v1220_v59, %v1190_v8  ;;  %v1228_v0 = vadd.f32 %v1226_v35, %v1196_v25  ;;  %v1237_v7 = vadd.f32 %v4419_v34, %v1210_v27  ;;  %v1265_v55 = vstv %s3424_s7  ;;  %s3612_s7 = sld [smem:[#allocation4 + $0x1]]  ;;  %s4426_s21 = sshll.u32 %s4425_s24, 6 }
 0x1c6   : > { %v1243_v44 = vadd.f32 %v4420_v13, %v1216_v18  ;;  %v1271_v39 = vstv %s3428_s9  ;;  %v1277_v19 = vstv %s3436_s0  ;;  %v1283_v1 = vstv %s3446_s28  ;;  %s3614_s9 = sld [smem:[#allocation2 + $0x22]] }
 0x1c7   : > { %v1249_v24 = vadd.f32 %v4421_v47, %v1222_v52  ;;  %v1255_v26 = vadd.f32 %v1253_v9, %v1228_v0  ;;  %v1236_v8 = vadd.f32 %v4422_v11, %v1209_v43  ;;  %v1242_v25 = vadd.f32 %v4423_v40, %v1215_v6  ;;  %v1355_v35 = vpop.permute.xlu1 %1354  ;;  %s3634_s0 = sld [smem:[#allocation4]] }
 0x1c8   : > { %v1248_v33 = vadd.f32 %v4424_v54, %v1221_v12  ;;  %v1254_v56 = vadd.f32 %v1252_v23, %v1227_v63  ;;  %v1260_v9 = vsel %vm339_vm1, %v3426_v28, %v3422_v22  ;;  %v1261_v14 = vsel %vm339_vm1, %v3422_v22, %v3426_v28  ;;  %s3636_s28 = sld [smem:[#allocation2 + $0x6a]] }
 0x1c9   : > { %v1297_v62 = vstv %s3456_s29  ;;  %v1303_v51 = vstv %s3466_s5  ;;  %v1262_v16 = vmul.f32 %v1261_v14, %v2519_v17  ;;  %v1263_v23 = vmul.f32 %v1260_v9, %v4236_v42  ;;  %v1353_v17 = vpop.permute.xlu0 %1352  ;;  %s3642_s29 = sld [smem:[#allocation2 + $0x6b]] }
 0x1ca   : > { %v1309_v32 = vstv %s3468_s14  ;;  %v1315_v45 = vstv %s3470_s20  ;;  %v1292_v53 = vsel %vm380_vm0, %v1289_v37, %v1291_v46  ;;  %v1293_v3 = vsel %vm380_vm0, %v1291_v46, %v1289_v37  ;;  %s3663_s5 = sld [smem:[#allocation2 + $0x8e]] }
 0x1cb   : > { %v1329_v59 = vstv %s3480_s17  ;;  %v1335_v36 = vstv %s3490_s27  ;;  %v1266_v60 = vmul.f32 %v1265_v55, %v1262_v16  ;;  %v1267_v22 = vmul.f32 %v1265_v55, %v1263_v23  ;;  %v1387_v40 = vpop.permute.xlu1 %1386  ;;  %s4427_s17 = sld [smem:[#allocation119_spill]] }
 0x1cc   : > { %v1272_v28 = vmul.f32 %v1271_v39, %v1262_v16  ;;  %v1273_v50 = vmul.f32 %v1271_v39, %v1263_v23  ;;  %v1278_v43 = vmul.f32 %v1277_v19, %v1262_v16  ;;  %v1279_v42 = vmul.f32 %v1277_v19, %v1263_v23 }
 0x1cd   : > { %v1284_v27 = vmul.f32 %v1283_v1, %v1262_v16  ;;  %v1285_v6 = vmul.f32 %v1283_v1, %v1263_v23  ;;  %v1268_v18 = vadd.f32 %v1266_v60, %v1236_v8  ;;  %v1269_v46 = vadd.f32 %v1267_v22, %v1237_v7 }
 0x1ce   : > { %v1274_v37 = vadd.f32 %v1272_v28, %v1242_v25  ;;  %v1275_v12 = vadd.f32 %v1273_v50, %v1243_v44  ;;  %v1280_v52 = vadd.f32 %v1278_v43, %v1248_v33  ;;  %v1281_v63 = vadd.f32 %v1279_v42, %v1249_v24 }
 0x1cf   : > { %v1286_v0 = vadd.f32 %v1284_v27, %v1254_v56  ;;  %v1287_v34 = vadd.f32 %v1285_v6, %v1255_v26  ;;  %v1294_v13 = vmul.f32 %v1293_v3, %v4237_v4  ;;  %v1295_v55 = vmul.f32 %v1292_v53, %v4238_v5  ;;  %v1385_v4 = vpop.permute.xlu0 %1384  ;;  %v1419_v27 = vpop.permute.xlu1 %1418 }
 0x1d0   : > { %v1341_v39 = vstv %s3496_s2  ;;  %v1347_v47 = vstv %s3501_s26  ;;  %v1324_v7 = vsel %vm421_vm2, %v1321_v61, %v1323_v31  ;;  %v1325_v44 = vsel %vm421_vm2, %v1323_v31, %v1321_v61  ;;  %s3682_s2 = sld [smem:[#allocation4 + $0x3]]  ;;  %s1845_s26 = sshll.u32 %s4425_s24, 2 }
 0x1d1   : > { %v1361_v19 = vstv %s3506_s23  ;;  %v1367_v1 = vstv %s3518_s19  ;;  %v1298_v11 = vmul.f32 %v1297_v62, %v1294_v13  ;;  %v1299_v24 = vmul.f32 %v1297_v62, %v1295_v55  ;;  %s3676_s27 = scalar_lea.vmem %s4427_s17, %s4426_s21 }
 0x1d2   : > { %v1304_v8 = vmul.f32 %v1303_v51, %v1294_v13  ;;  %v1305_v26 = vmul.f32 %v1303_v51, %v1295_v55  ;;  %v1310_v25 = vmul.f32 %v1309_v32, %v1294_v13  ;;  %v1311_v5 = vmul.f32 %v1309_v32, %v1295_v55 }
 0x1d3   : > { %v1316_v54 = vmul.f32 %v1315_v45, %v1294_v13  ;;  %v1317_v33 = vmul.f32 %v1315_v45, %v1295_v55  ;;  %v1300_v56 = vadd.f32 %v1298_v11, %v1268_v18  ;;  %v1301_v31 = vadd.f32 %v1299_v24, %v1269_v46 }
 0x1d4   : > { %v1306_v61 = vadd.f32 %v1304_v8, %v1274_v37  ;;  %v1307_v9 = vadd.f32 %v1305_v26, %v1275_v12  ;;  %v1312_v14 = vadd.f32 %v1310_v25, %v1280_v52  ;;  %v1313_v62 = vadd.f32 %v1311_v5, %v1281_v63  ;;  %v1451_v5 = vpop.permute.xlu1 %1450 }
 0x1d5   : > { %v1318_v51 = vadd.f32 %v1316_v54, %v1286_v0  ;;  %v1319_v16 = vadd.f32 %v1317_v33, %v1287_v34  ;;  %v1326_v23 = vmul.f32 %v1325_v44, %v2528_v20  ;;  %v1327_v32 = vmul.f32 %v1324_v7, %v2531_v21  ;;  %v1417_v21 = vpop.permute.xlu0 %1416 }
 0x1d6   : > { %v1373_v45 = vstv %s3530_s16  ;;  %v1379_v53 = vstv %s3532_s15  ;;  %v1356_v3 = vsel %vm462_vm3, %v1353_v17, %v1355_v35  ;;  %v1357_v60 = vsel %vm462_vm3, %v1355_v35, %v1353_v17  ;;  %s4428_s16 = sld [smem:[#allocation120_spill]] }
 0x1d7   : > { %v1393_v22 = vstv %s3534_s11  ;;  %v1399_v28 = vstv %s3536_s3  ;;  %v1330_v50 = vmul.f32 %v1329_v59, %v1326_v23  ;;  %v1331_v43 = vmul.f32 %v1329_v59, %v1327_v32  ;;  %s1583_s11 = smul.f32 2048.0, %s3612_s7 }
 0x1d8   : > { %v1336_v42 = vmul.f32 %v1335_v36, %v1326_v23  ;;  %v1337_v20 = vmul.f32 %v1335_v36, %v1327_v32  ;;  %v1342_v6 = vmul.f32 %v1341_v39, %v1326_v23  ;;  %v1343_v18 = vmul.f32 %v1341_v39, %v1327_v32  ;;  %s1543_s3 = smul.f32 2.0, %s3634_s0 }
 0x1d9   : > { %v1348_v46 = vmul.f32 %v1347_v47, %v1326_v23  ;;  %v1349_v37 = vmul.f32 %v1347_v47, %v1327_v32  ;;  %v1332_v35 = vadd.f32 %v1330_v50, %v1300_v56  ;;  %v1333_v17 = vadd.f32 %v1331_v43, %v1301_v31  ;;  %v1449_v54 = vpop.permute.xlu0 %1448  ;;  %v1483_v43 = vpop.permute.xlu1 %1482 }
 0x1da   : > { %v1338_v12 = vadd.f32 %v1336_v42, %v1306_v61  ;;  %v1339_v59 = vadd.f32 %v1337_v20, %v1307_v9  ;;  %v1344_v52 = vadd.f32 %v1342_v6, %v1312_v14  ;;  %v1345_v36 = vadd.f32 %v1343_v18, %v1313_v62 }
 0x1db   : > { %v1350_v63 = vadd.f32 %v1348_v46, %v1318_v51  ;;  %v1351_v0 = vadd.f32 %v1349_v37, %v1319_v16  ;;  %v1358_v34 = vmul.f32 %v1357_v60, %v2545_v29  ;;  %v1359_v13 = vmul.f32 %v1356_v3, %v2548_v30 }
 0x1dc   : > { %v1405_v55 = vstv %s3548_s25  ;;  %v1411_v39 = vstv %s3550_s8  ;;  %v1388_v47 = vsel %vm503_vm4, %v1385_v4, %v1387_v40  ;;  %v1389_v7 = vsel %vm503_vm4, %v1387_v40, %v1385_v4  ;;  %s3713_s15 = scalar_lea.vmem %s4428_s16, %s1845_s26  ;;  %s1586_s25 = smul.f32 2.0, %s3612_s7 }
 0x1dd   : > { %v1425_v44 = vstv %s3552_s12  ;;  %v1431_v11 = vstv %s3554_s6  ;;  %v1362_v24 = vmul.f32 %v1361_v19, %v1358_v34  ;;  %v1363_v8 = vmul.f32 %v1361_v19, %v1359_v13  ;;  %v1481_v42 = vpop.permute.xlu0 %1480  ;;  %s1547_s8 = smul.f32 %s3634_s0, %s3634_s0 }
 0x1de   : > { %v1368_v26 = vmul.f32 %v1367_v1, %v1358_v34  ;;  %v1369_v25 = vmul.f32 %v1367_v1, %v1359_v13  ;;  %v1374_v29 = vmul.f32 %v1373_v45, %v1358_v34  ;;  %v1375_v30 = vmul.f32 %v1373_v45, %v1359_v13  ;;  %s1590_s12 = smul.f32 %s3612_s7, %s3612_s7 }
 0x1df   : > { %v1380_v33 = vmul.f32 %v1379_v53, %v1358_v34  ;;  %v1381_v56 = vmul.f32 %v1379_v53, %v1359_v13  ;;  %v1364_v31 = vadd.f32 %v1362_v24, %v1332_v35  ;;  %v1365_v61 = vadd.f32 %v1363_v8, %v1333_v17  ;;  %s1540_s6 = smul.f32 2048.0, %s3634_s0 }
 0x1e0   : > { %v1370_v9 = vadd.f32 %v1368_v26, %v1338_v12  ;;  %v1371_v14 = vadd.f32 %v1369_v25, %v1339_v59  ;;  %v3588_v62 = vadd.f32 %v1374_v29, %v1344_v52  ;;  %v3590_v40 = vadd.f32 %v1375_v30, %v1345_v36 }
 0x1e1   : > { %v3592_v4 = vadd.f32 %v1380_v33, %v1350_v63  ;;  %v3594_v19 = vadd.f32 %v1381_v56, %v1351_v0  ;;  %v1390_v1 = vmul.f32 %v1388_v47, %v2576_v38  ;;  %v1391_v51 = vmul.f32 %v1389_v7, %v2587_v41 }
 0x1e2   : > { %v1437_v16 = vstv %s3574_s18  ;;  %v1443_v23 = vstv %s3576_s13  ;;  %v1420_v32 = vsel %vm544_vm5, %v1417_v21, %v1419_v27  ;;  %v1421_v45 = vsel %vm544_vm5, %v1419_v27, %v1417_v21  ;;  %s1628_s18 = smul.f32 2.0, %s3659_s30 }
 0x1e3   : > { %v1452_v53 = vsel %vm585_vm6, %v1449_v54, %v1451_v5  ;;  %v1453_v3 = vsel %vm585_vm6, %v1451_v5, %v1449_v54  ;;  %v1394_v38 = vmul.f32 %v1393_v22, %v1390_v1  ;;  %v1395_v41 = vmul.f32 %v1393_v22, %v1391_v51  ;;  %s3726_s13 = smul.f32 2048.0, %s1547_s8 }
 0x1e4   : > { %v1400_v60 = vmul.f32 %v1399_v28, %v1390_v1  ;;  %v1401_v50 = vmul.f32 %v1399_v28, %v1391_v51  ;;  %v1406_v20 = vmul.f32 %v1405_v55, %v1390_v1  ;;  %v1407_v6 = vmul.f32 %v1405_v55, %v1391_v51 }
 0x1e5   : > { %v3616_v18 = vmul.f32 %v1411_v39, %v1390_v1  ;;  %v3618_v27 = vmul.f32 %v1411_v39, %v1391_v51  ;;  %v1422_v21 = vmul.f32 %v1420_v32, %v2606_v48  ;;  %v1423_v46 = vmul.f32 %v1421_v45, %v2609_v49 }
 0x1e6   : > { %v3625_v22 = vmul.f32 %v1452_v53, %v2623_v57  ;;  %v3628_v28 = vmul.f32 %v1453_v3, %v2626_v58  ;;  %v1484_v37 = vsel %vm626_vm7, %v1481_v42, %v1483_v43  ;;  %v1485_v35 = vsel %vm626_vm7, %v1483_v43, %v1481_v42 }
 0x1e7   : > { %v1402_v17 = vadd.f32 %v1400_v60, %v1370_v9  ;;  %v1403_v12 = vadd.f32 %v1401_v50, %v1371_v14  ;;  %v1426_v48 = vmul.f32 %v1425_v44, %v1422_v21  ;;  %v1427_v49 = vmul.f32 %v1425_v44, %v1423_v46 }
 0x1e8   : > { %v1432_v57 = vmul.f32 %v1431_v11, %v1422_v21  ;;  %v1433_v59 = vmul.f32 %v1431_v11, %v1423_v46  ;;  %v1438_v58 = vmul.f32 %v1437_v16, %v1422_v21  ;;  %v1439_v52 = vmul.f32 %v1437_v16, %v1423_v46 }
 0x1e9   : > { %v3638_v36 = vmul.f32 %v1443_v23, %v1422_v21  ;;  %v3640_v63 = vmul.f32 %v1443_v23, %v1423_v46  ;;  %v3645_v0 = vmul.f32 %v1484_v37, %v4311_v10  ;;  %v3648_v34 = vmul.f32 %v1485_v35, %v4312_v2 }
 0x1ea   : > { %v1434_v13 = vadd.f32 %v1432_v57, %v1402_v17  ;;  %v1435_v55 = vadd.f32 %v1433_v59, %v1403_v12  ;;  %v1463_v39 = vstv %s3596_s1  ;;  %v1495_v47 = vstv %s3602_s4  ;;  %s3728_s1 = smul.f32 2048.0, %s1590_s12 }
 0x1eb   : > { %v1557_v7 = vstv %s3612_s7  ;;  %v1396_v44 = vadd.f32 %v1394_v38, %v1364_v31  ;;  %v1464_v11 = vmul.f32 %v1463_v39, %v3625_v22  ;;  %v1465_v24 = vmul.f32 %v1463_v39, %v3628_v28  ;;  %s1632_s4 = smul.f32 %s3659_s30, %s3659_s30 }
 0x1ec   : > { %v1496_v8 = vmul.f32 %v1495_v47, %v3645_v0  ;;  %v1497_v26 = vmul.f32 %v1495_v47, %v3648_v34  ;;  %v1397_v10 = vadd.f32 %v1395_v41, %v1365_v61  ;;  %v1457_v5 = vstv %s3614_s9  ;;  %s1625_s9 = smul.f32 2048.0, %s3659_s30 }
 0x1ed   : > { %v1428_v25 = vadd.f32 %v1426_v48, %v1396_v44  ;;  %v1489_v2 = vstv %s3620_s10  ;;  %v1466_v54 = vadd.f32 %v1464_v11, %v1434_v13  ;;  %v1467_v29 = vadd.f32 %v1465_v24, %v1435_v55  ;;  %s1670_s10 = smul.f32 2.0, %s3682_s2 }
 0x1ee   : > { %v1458_v30 = vmul.f32 %v1457_v5, %v3625_v22  ;;  %v1459_v33 = vmul.f32 %v1457_v5, %v3628_v28  ;;  %v1429_v56 = vadd.f32 %v1427_v49, %v1397_v10  ;;  %v1490_v31 = vmul.f32 %v1489_v2, %v3645_v0  ;;  %s1633_s7 = smul.f32 2048.0, %s1632_s4 }
 0x1ef   : > { %v1491_v61 = vmul.f32 %v1489_v2, %v3648_v34  ;;  %v1515_v9 = vstv %s3634_s0  ;;  %v1498_v14 = vadd.f32 %v1496_v8, %v1466_v54  ;;  %v1499_v1 = vadd.f32 %v1497_v26, %v1467_v29  ;;  %s1674_s0 = smul.f32 %s3682_s2, %s3682_s2 }
 0x1f0   : > { %v1460_v51 = vadd.f32 %v1458_v30, %v1428_v25  ;;  %v1408_v16 = vadd.f32 %v1406_v20, %v3588_v62  ;;  %v1461_v23 = vadd.f32 %v1459_v33, %v1429_v56  ;;  %v1409_v32 = vadd.f32 %v1407_v6, %v3590_v40 }
 0x1f1   : > { %v1469_v45 = vstv %s3636_s28  ;;  %v1501_v53 = vstv %s3642_s29  ;;  %v1559_v3 = vadd.f32 %v1557_v7, %v1499_v1  ;;  %v1563_v38 = vadd.f32 %v1499_v1, %v1498_v14  ;;  %s1667_s28 = smul.f32 2048.0, %s3682_s2 }
 0x1f2   : > { %v1558_v41 = vadd.f32 %v1557_v7, %v1498_v14  ;;  %v1492_v60 = vadd.f32 %v1490_v31, %v1460_v51  ;;  %v1493_v50 = vadd.f32 %v1491_v61, %v1461_v23  ;;  %v1440_v62 = vadd.f32 %v1438_v58, %v1408_v16  ;;  %s1675_s29 = smul.f32 2048.0, %s1674_s0 }
 0x1f3   : > { %v1441_v43 = vadd.f32 %v1439_v52, %v1409_v32  ;;  %v1470_v42 = vmul.f32 %v1469_v45, %v3625_v22  ;;  %1997 = vst [vmem:[%s3676_s27 + $0x18] sm:$0xff] %v1559_v3  ;;  %1564 = vadd.xlane.f32.xlu1 %v1563_v38  ;;  %v1471_v20 = vmul.f32 %v1469_v45, %v3628_v28  ;;  %v1599_v17 = vstv %s3659_s30 }
 0x1f4   : > { %1996 = vst [vmem:[%s3676_s27 + $0x10] sm:$0xff] %v1558_v41  ;;  %v1516_v40 = vadd.f32 %v1515_v9, %v1492_v60  ;;  %v1502_v6 = vmul.f32 %v1501_v53, %v3645_v0  ;;  %v1503_v21 = vmul.f32 %v1501_v53, %v3648_v34  ;;  %v1517_v46 = vadd.f32 %v1515_v9, %v1493_v50 }
 0x1f5   : > { %v1520_v37 = vadd.f32 %v1493_v50, %v1492_v60  ;;  %v1472_v35 = vadd.f32 %v1470_v42, %v1440_v62  ;;  %v1473_v12 = vadd.f32 %v1471_v20, %v1441_v43  ;;  %v1529_v48 = vmul.f32 %v1492_v60, %v1492_v60 }
 0x1f6   : > { %1518 = vst [vmem:[%s3676_s27] sm:$0xff] %v1516_v40  ;;  %v1530_v49 = vmul.f32 %v1493_v50, %v1493_v50  ;;  %v1414_v57 = vadd.f32 %v3616_v18, %v3592_v4  ;;  %1519 = vst [vmem:[%s3676_s27 + $0x8] sm:$0xff] %v1517_v46  ;;  %v1415_v58 = vadd.f32 %v3618_v27, %v3594_v19  ;;  %v1475_v52 = vstv %s3663_s5 }
 0x1f7   : > { %1521 = vadd.xlane.f32.xlu0 %v1520_v37  ;;  %v1504_v59 = vadd.f32 %v1502_v6, %v1472_v35  ;;  %v1507_v13 = vstv %s3668_s22  ;;  %v1505_v55 = vadd.f32 %v1503_v21, %v1473_v12  ;;  %v1476_v7 = vmul.f32 %v1475_v52, %v3625_v22 }
 0x1f8   : > { %v1531_v39 = vadd.f32 %v1530_v49, %v1529_v48  ;;  %v1446_v47 = vadd.f32 %v3638_v36, %v1414_v57  ;;  %v1447_v4 = vadd.f32 %v3640_v63, %v1415_v58  ;;  %v1477_v18 = vmul.f32 %v1475_v52, %v3628_v28 }
 0x1f9   : > { %v1600_v44 = vadd.f32 %v1599_v17, %v1504_v59  ;;  %v1508_v11 = vmul.f32 %v1507_v13, %v3645_v0  ;;  %v1601_v24 = vadd.f32 %v1599_v17, %v1505_v55  ;;  %v1605_v8 = vadd.f32 %v1505_v55, %v1504_v59 }
 0x1fa   : > { %v1478_v19 = vadd.f32 %v1476_v7, %v1446_v47  ;;  %v1509_v27 = vmul.f32 %v1507_v13, %v3648_v34  ;;  %v1479_v26 = vadd.f32 %v1477_v18, %v1447_v4  ;;  %v1641_v10 = vstv %s3682_s2 }
 0x1fb   : > { %1999 = vst [vmem:[%s3676_s27 + $0x20] sm:$0xff] %v1600_v44  ;;  %1532 = vadd.xlane.f32.xlu0 %v1531_v39  ;;  %v1572_v36 = vmul.f32 %v1498_v14, %v1498_v14  ;;  %v1573_v25 = vmul.f32 %v1499_v1, %v1499_v1  ;;  %2000 = vst [vmem:[%s3676_s27 + $0x28] sm:$0xff] %v1601_v24  ;;  %1606 = vadd.xlane.f32.xlu1 %v1605_v8  ;;  %v2136_v31 = vmov 0.0   ;;  %v1544_v57 = vstv %s1543_s3 }
 0x1fc   : > { %v1510_v22 = vadd.f32 %v1508_v11, %v1478_v19  ;;  %v1614_v63 = vmul.f32 %v1504_v59, %v1504_v59  ;;  %v1615_v28 = vmul.f32 %v1505_v55, %v1505_v55  ;;  %v1511_v0 = vadd.f32 %v1509_v27, %v1479_v26  ;;  %306 = vst.msk [vmem:[%s3713_s15] sm:$0xf] %vm305_vm8, %v2136_v31 }
 0x1fd   : > { %v1574_v5 = vadd.f32 %v1573_v25, %v1572_v36  ;;  %v1587_v24 = vstv %s1586_s25  ;;  %v1584_v27 = vstv %s1583_s11  ;;  %v1541_v25 = vstv %s1540_s6 }
 0x1fe   : > { %v1642_v2 = vadd.f32 %v1641_v10, %v1510_v22  ;;  %v1616_v54 = vadd.f32 %v1615_v28, %v1614_v63  ;;  %v1656_v29 = vmul.f32 %v1510_v22, %v1510_v22  ;;  %v1643_v34 = vadd.f32 %v1641_v10, %v1511_v0 }
 0x1ff   : > { %v1647_v30 = vadd.f32 %v1511_v0, %v1510_v22  ;;  %1575 = vadd.xlane.f32.xlu0 %v1574_v5  ;;  %v1657_v33 = vmul.f32 %v1511_v0, %v1511_v0  ;;  %v1549_v22 = vstv %s3726_s13 }
 0x200   : > { %2002 = vst [vmem:[%s3676_s27 + $0x30] sm:$0xff] %v1642_v2  ;;  %2003 = vst [vmem:[%s3676_s27 + $0x38] sm:$0xff] %v1643_v34  ;;  %v1592_v34 = vstv %s3728_s1 }
 0x201   : > { %1648 = vadd.xlane.f32.xlu1 %v1647_v30  ;;  %v1658_v56 = vadd.f32 %v1657_v33, %v1656_v29  ;;  %v1629_v29 = vstv %s1628_s18 }
 0x203   : > { %1617 = vadd.xlane.f32.xlu0 %v1616_v54 }
 0x207   : > { %1659 = vadd.xlane.f32.xlu0 %v1658_v56  ;;  %v4429_v56 = vld [vmem:[#allocation77_spill] sm:$0xff] }
 0x208   : > { %vm1594_vm10 = vcmp.eq.s32.totalorder %v4429_v56, 1  ;;  %vm1551_vm11 = vcmp.eq.s32.totalorder %v4429_v56, 0  ;;  %vm1636_vm12 = vcmp.eq.s32.totalorder %v4429_v56, 2  ;;  %vm1678_vm13 = vcmp.eq.s32.totalorder %v4429_v56, 3 }
 0x27c   : > { %v1565_v61 = vpop.xlane.xlu1 %1564 }
 0x27d   : > { %v1566_v9 = vrot.slane %v1565_v61, 4 }
 0x27f   : > { %v1567_v14 = vadd.f32 %v1566_v9, %v1565_v61 }
 0x280   : > { %v1522_v1 = vpop.xlane.xlu0 %1521 }
 0x281   : > { %v1523_v51 = vrot.slane %v1522_v1, 4  ;;  %v1568_v16 = vrot.slane %v1567_v14, 2 }
 0x283   : > { %v1524_v23 = vadd.f32 %v1523_v51, %v1522_v1  ;;  %v1569_v41 = vadd.f32 %v1568_v16, %v1567_v14  ;;  %v1671_v14 = vstv %s1670_s10 }
 0x284   : > { %v1533_v32 = vpop.xlane.xlu0 %1532  ;;  %v1607_v53 = vpop.xlane.xlu1 %1606 }
 0x285   : > { %v1525_v45 = vrot.slane %v1524_v23, 2  ;;  %v1534_v3 = vrot.slane %v1533_v32, 4  ;;  %v1608_v38 = vrot.slane %v1607_v53, 4  ;;  %v1570_v46 = vrot.slane %v1569_v41, 1 }
 0x287   : > { %v1526_v60 = vadd.f32 %v1525_v45, %v1524_v23  ;;  %v1535_v50 = vadd.f32 %v1534_v3, %v1533_v32  ;;  %v1609_v62 = vadd.f32 %v1608_v38, %v1607_v53  ;;  %v1571_v55 = vadd.f32 %v1570_v46, %v1569_v41 }
 0x288   : > { %v1576_v43 = vpop.xlane.xlu0 %1575  ;;  %v1626_v53 = vstv %s1625_s9  ;;  %v1634_v3 = vstv %s1633_s7 }
 0x289   : > { %v1527_v42 = vrot.slane %v1526_v60, 1  ;;  %v1536_v40 = vrot.slane %v1535_v50, 2  ;;  %v1577_v20 = vrot.slane %v1576_v43, 4  ;;  %v1610_v6 = vrot.slane %v1609_v62, 2 }
 0x28a   : > { %v1649_v21 = vpop.xlane.xlu1 %1648  ;;  %v1588_v0 = vmul.f32 %v1587_v24, %v1571_v55  ;;  %v1585_v9 = vadd.f32 %v1584_v27, %v1571_v55 }
 0x28b   : > { %v1537_v37 = vadd.f32 %v1536_v40, %v1535_v50  ;;  %v1650_v35 = vrot.slane %v1649_v21, 4  ;;  %v1578_v17 = vadd.f32 %v1577_v20, %v1576_v43  ;;  %v1528_v12 = vadd.f32 %v1527_v42, %v1526_v60 }
 0x28c   : > { %v1611_v48 = vadd.f32 %v1610_v6, %v1609_v62  ;;  %v1618_v49 = vpop.xlane.xlu0 %1617  ;;  %v1668_v62 = vstv %s1667_s28 }
 0x28d   : > { %v1538_v59 = vrot.slane %v1537_v37, 1  ;;  %v1651_v58 = vadd.f32 %v1650_v35, %v1649_v21  ;;  %v1579_v52 = vrot.slane %v1578_v17, 2  ;;  %v1619_v13 = vrot.slane %v1618_v49, 4 }
 0x28e   : > { %v1545_v7 = vmul.f32 %v1544_v57, %v1528_v12  ;;  %v1612_v44 = vrot.slane %v1611_v48, 1  ;;  %v1542_v16 = vadd.f32 %v1541_v25, %v1528_v12  ;;  %v1676_v21 = vstv %s1675_s29 }
 0x28f   : > { %v1539_v39 = vadd.f32 %v1538_v59, %v1537_v37  ;;  %v1652_v47 = vrot.slane %v1651_v58, 2  ;;  %v1580_v4 = vadd.f32 %v1579_v52, %v1578_v17  ;;  %v1620_v18 = vadd.f32 %v1619_v13, %v1618_v49 }
 0x290   : > { %v1660_v11 = vpop.xlane.xlu0 %1659  ;;  %v1613_v5 = vadd.f32 %v1612_v44, %v1611_v48 }
 0x291   : > { %v1653_v8 = vadd.f32 %v1652_v47, %v1651_v58  ;;  %v1661_v19 = vrot.slane %v1660_v11, 4  ;;  %v1546_v26 = vadd.f32 %v1545_v7, %v1539_v39  ;;  %v1581_v10 = vrot.slane %v1580_v4, 1  ;;  %v1682_v58 = vld [vmem:[%s3713_s15] sm:$0xf] }
 0x292   : > { %v1621_v36 = vrot.slane %v1620_v18, 2  ;;  %v1630_v23 = vmul.f32 %v1629_v29, %v1613_v5  ;;  %v1627_v20 = vadd.f32 %v1626_v53, %v1613_v5 }
 0x293   : > { %v1654_v63 = vrot.slane %v1653_v8, 1  ;;  %v1662_v28 = vadd.f32 %v1661_v19, %v1660_v11  ;;  %v1582_v2 = vadd.f32 %v1581_v10, %v1580_v4  ;;  %v1550_v33 = vadd.f32 %v1549_v22, %v1546_v26 }
 0x294   : > { %v1622_v54 = vadd.f32 %v1621_v36, %v1620_v18 }
 0x295   : > { %v1663_v30 = vrot.slane %v1662_v28, 2  ;;  %v1589_v31 = vadd.f32 %v1588_v0, %v1582_v2  ;;  %v1655_v1 = vadd.f32 %v1654_v63, %v1653_v8  ;;  %v1553_v41 = vsel %vm1552_vm9, %v1542_v16, %v1550_v33 }
 0x296   : > { %v1623_v61 = vrot.slane %v1622_v54, 1  ;;  %v1554_v46 = vsel %vm1551_vm11, %v1553_v41, 0.0 }
 0x297   : > { %v1664_v51 = vadd.f32 %v1663_v30, %v1662_v28  ;;  %v1593_v32 = vadd.f32 %v1592_v34, %v1589_v31  ;;  %v1672_v43 = vmul.f32 %v1671_v14, %v1655_v1  ;;  %v1669_v12 = vadd.f32 %v1668_v62, %v1655_v1 }
 0x298   : > { %v1624_v45 = vadd.f32 %v1623_v61, %v1622_v54 }
 0x299   : > { %v1665_v38 = vrot.slane %v1664_v51, 1  ;;  %v1595_v60 = vsel %vm1552_vm9, %v1585_v9, %v1593_v32 }
 0x29a   : > { %v1631_v50 = vadd.f32 %v1630_v23, %v1624_v45  ;;  %v1596_v42 = vsel %vm1594_vm10, %v1595_v60, 0.0 }
 0x29b   : > { %v1666_v40 = vadd.f32 %v1665_v38, %v1664_v51  ;;  %v1597_v35 = vadd.f32 %v1596_v42, %v1554_v46 }
 0x29c   : > { %v1635_v6 = vadd.f32 %v1634_v3, %v1631_v50 }
 0x29d   : > { %v1673_v37 = vadd.f32 %v1672_v43, %v1666_v40 }
 0x29e   : > { %v1637_v17 = vsel %vm1552_vm9, %v1627_v20, %v1635_v6 }
 0x29f   : > { %v1638_v48 = vsel %vm1636_vm12, %v1637_v17, 0.0  ;;  %v1677_v49 = vadd.f32 %v1676_v21, %v1673_v37 }
 0x2a0   : > { %v1639_v57 = vadd.f32 %v1638_v48, %v1597_v35 }
 0x2a1   : > { %v1679_v59 = vsel %vm1552_vm9, %v1669_v12, %v1677_v49 }
 0x2a2   : > { %v1680_v52 = vsel %vm1678_vm13, %v1679_v59, 0.0 }
 0x2a3   : > { %v1681_v13 = vadd.f32 %v1680_v52, %v1639_v57 }
 0x2a5   : > { %v1683_v55 = vadd.f32 %v1682_v58, %v1681_v13 }
 0x2a7   : > { %1685 = vst.msk [vmem:[%s3713_s15] sm:$0xf] %vm305_vm8, %v1683_v55 }
 0x2a8 PF: > { %s4430_s24 = sld [smem:[#allocation9_spill]] }
 0x2a9   : > { %s4431_s18 = sld [smem:[#allocation8_spill]] }
 0x2aa   : > { %s4432_s19 = sld [smem:[#allocation10_spill]] }
 0x2ae   : > { %s18_s20 = sadd.s32 1, %s4430_s24  }
 0x2af   : > { %p15_p4 = scmp.ge.s32.totalorder %s18_s20, 4  }
 0x2b1   :  { %17 = sbr.rel (!%p15_p4) target bundleno = 10 (0xa), region = 97 }
 0x2b6   :  { %1729 = vsyncpa [#allocation3], 1 }
 0x2b7   :  { %1731 = vsyncpa [#allocation3 + $0x1], 1 }
 0x2b8   :  { %1732 = vsyncpa [#allocation5], 1 }

// kernel: residual_block_2d.4
= control target key start
LH: loop header
LB: loop body
LE: loop exit
PB: predicated region body
PF: predicated region fallthrough
CT: control target
= control target key end

     0   :  { %s4051_s0 = inlined_call_operand.vmem [shape: f32[2,4,8,256], index: 0, kind: input, shape index: {}]   ;;  %s4052_s1 = inlined_call_operand.vmem [shape: f32[8,256], index: 1, kind: input, shape index: {}]   ;;  %s4053_s2 = inlined_call_operand.vmem [shape: f32[144], index: 2, kind: input, shape index: {}]   ;;  %s4054_s3 = inlined_call_operand.vmem [shape: f32[4], index: 3, kind: input, shape index: {}]   ;;  %s4055_s4 = inlined_call_operand.vmem [shape: f32[4], index: 4, kind: input, shape index: {}]   ;;  %s4056_s5 = inlined_call_operand.vmem [shape: f32[4], index: 5, kind: input, shape index: {}]   ;;  %s4057_s6 = inlined_call_operand.vmem [shape: f32[2,4,8,256], index: 6, kind: output, shape index: {0}]   ;;  %s4058_s7 = inlined_call_operand.vmem [shape: f32[2,4,2], index: 7, kind: output, shape index: {1}]  }
   0x1   :  { %4209 = sst [smem:[#allocation120_spill]] %s4051_s0 }
   0x2   :  { %4210 = sst [smem:[#allocation121_spill]] %s4052_s1 }
   0x3   :  { %4211 = sst [smem:[#allocation122_spill]] %s4053_s2 }
   0x4   :  { %4212 = sst [smem:[#allocation123_spill]] %s4054_s3 }
   0x5   :  { %4213 = sst [smem:[#allocation124_spill]] %s4055_s4 }
   0x6   :  { %4214 = sst [smem:[#allocation125_spill]] %s4056_s5 }
   0x7   :  { %4215 = sst [smem:[#allocation126_spill]] %s4057_s6 }
   0x8   :  { %4216 = sst [smem:[#allocation127_spill]] %s4058_s7 }
   0x9   :  { %13 = vsyncpa [#allocation3], 0 }
   0xa   :  { %14 = vsyncpa [#allocation5], 0 }
   0xb   :  { %15 = vsyncpa [#allocation8], 0  ;;  %s2395_s24 = smov 0   ;;  %s2397_s25 = smov 0  }
   0xc   :  { %s2399_s26 = smov 0  }
   0xd LB: > { %4217 = sst [smem:[#allocation12_spill]] %s2336_s25  ;;  %s1986_s30 = sadd.s32 4294967295, %s2340_s26   ;;  %s2340_s26 = sphi %s2399_s26, %s21_s26   ;;  %s2336_s25 = sphi %s2397_s25, %s4723_s25   ;;  %s2332_s24 = sphi %s2395_s24, %s4722_s24  }
   0xe   : > { %4218 = sst [smem:[#allocation13_spill]] %s2340_s26  ;;  %p1988_p0 = scmp.ge.s32.totalorder %s2340_s26, 1 }
   0xf   : > { %s4219_s3 = sld [smem:[#allocation123_spill]]  ;;  %p225_p1 = scmp.lt.s32.totalorder %s2340_s26, 3 }
  0x10   : > { %p2416_p2 = scmp.eq.s32.totalorder %s1986_s30, 0  ;;  %s33_s10 = sadd.s32 1, %s2336_s25 }
  0x11   : > { %p2420_p3 = pnand %p1988_p0, %p225_p1  ;;  %s4222_s2 = sld [smem:[#allocation122_spill]] }
  0x12   : > { %s4220_s8 = scalar_select %p2416_p2, 1, 0 }
  0x13   : > { %s4221_s9 = scalar_select %p2420_p3, 1, 0 }
  0x14   : > { %p2188_p4 = pneg %p2420_p3  ;;  %p2436_p6 = scmp.ge.s32.totalorder %s33_s10, 2 }
  0x15   : > { %s252_s29 = sshll.u32 %s4219_s3, 4  ;;  %s4225_s4 = sld [smem:[#allocation124_spill]]  ;;  %s253_s29 = int_to_ptr.vmem [resolvable:$true] %s252_s29 }
  0x16   : > { %p2432_p5 = pnand %p2416_p2, %p2188_p4  ;;  %s2246_s19 = scalar_lea.vmem %s253_s29, 16 }
  0x17   : > { %s241_s13 = sshll.u32 %s4222_s2, 4  ;;  %p2247_p7 = scmp.ne.s32.totalorder %s253_s29, %s2246_s19  ;;  %s242_s13 = int_to_ptr.vmem [resolvable:$true] %s241_s13 }
  0x18   : > { %p2248_p8 = pneg %p2432_p5  ;;  %p2254_p11 = scmp.lt.s32.totalorder %s253_s29, %s253_s29 }
  0x19   : > { %p2255_p12 = scmp.lt.s32.totalorder %s2246_s19, %s2246_s19 }
  0x1a   : > { %p2249_p9 = pnand %p2248_p8, %p2247_p7 }
  0x1b   : > { %s263_s18 = sshll.u32 %s4225_s4, 4  ;;  %p2256_p13 = por %p2255_p12, %p2254_p11  ;;  %s264_s18 = int_to_ptr.vmem [resolvable:$true] %s263_s18 }
  0x1c   : > { %p2250_p10 = pneg %p2249_p9 }
  0x1e   : > { %p2257_p0 = pnand %p2256_p13, %p2250_p10 }
  0x20   : > { %2260 = shalt.err (!%p2257_p0)
}
  0x21   : > { %s2342_s20 = smov [#allocation4]   ;;  %s4725_s10 = smov (%p2436_p6, %s33_s10), 0 }
  0x22   : > { %2194 = dma.vmem_to_smem (!%p2432_p5), %s253_s29, 16, %s2342_s20, [#allocation5]  }
  0x23   : > { %4226 = sst [smem:[#allocation14_spill]] %s4725_s10  ;;  %s2261_s21 = scalar_lea.vmem %s242_s13, 32 }
  0x24   : > { %p2262_p1 = scmp.ne.s32.totalorder %s242_s13, %s2261_s21  ;;  %p2269_p9 = scmp.lt.s32.totalorder %s242_s13, %s242_s13 }
  0x25   : > { %p2270_p2 = scmp.lt.s32.totalorder %s2261_s21, %s2261_s21 }
  0x26   : > { %p2264_p4 = pnand %p2262_p1, %p2248_p8 }
  0x27   : > { %p2271_p11 = por %p2270_p2, %p2269_p9 }
  0x28   : > { %p2265_p7 = pneg %p2264_p4 }
  0x2a   : > { %p2272_p10 = pnand %p2271_p11, %p2265_p7 }
  0x2c   : > { %2275 = shalt.err (!%p2272_p10)
}
  0x2d   : > { %s2343_s22 = smov [#allocation2]   ;;  %s2276_s23 = scalar_lea.vmem %s264_s18, 16 }
  0x2e   : > { %2191 = dma.vmem_to_smem (!%p2432_p5), %s242_s13, 32, %s2343_s22, [#allocation3]  }
  0x2f   : > { %p2277_p6 = scmp.ne.s32.totalorder %s264_s18, %s2276_s23  ;;  %p2284_p0 = scmp.lt.s32.totalorder %s264_s18, %s264_s18 }
  0x30   : > { %p2285_p1 = scmp.lt.s32.totalorder %s2276_s23, %s2276_s23 }
  0x31   : > { %p2279_p12 = pnand %p2277_p6, %p2248_p8 }
  0x32   : > { %p2286_p4 = por %p2285_p1, %p2284_p0 }
  0x33   : > { %p2280_p13 = pneg %p2279_p12 }
  0x35   : > { %p2287_p3 = pnand %p2286_p4, %p2280_p13 }
  0x37   : > { %2290 = shalt.err (!%p2287_p3)
}
  0x38   : > { %s2344_s27 = smov [#allocation6]   ;;  %s4227_s5 = sld [smem:[#allocation125_spill]] }
  0x39   : > { %2197 = dma.vmem_to_smem (!%p2432_p5), %s264_s18, 16, %s2344_s27, [#allocation5]  }
  0x3e   : > { %s274_s30 = sshll.u32 %s4227_s5, 4  ;;  %s275_s30 = int_to_ptr.vmem [resolvable:$true] %s274_s30 }
  0x3f   : > { %s2291_s11 = scalar_lea.vmem %s275_s30, 16  ;;  %p2299_p11 = scmp.lt.s32.totalorder %s275_s30, %s275_s30 }
  0x40   : > { %p2292_p2 = scmp.ne.s32.totalorder %s275_s30, %s2291_s11  ;;  %p2300_p10 = scmp.lt.s32.totalorder %s2291_s11, %s2291_s11 }
  0x42   : > { %p2294_p7 = pnand %p2292_p2, %p2248_p8  ;;  %p2301_p6 = por %p2300_p10, %p2299_p11 }
  0x44   : > { %p2295_p9 = pneg %p2294_p7 }
  0x46   : > { %p2302_p3 = pnand %p2301_p6, %p2295_p9 }
  0x48   : > { %2305 = shalt.err (!%p2302_p3)
}
  0x49   : > { %s2345_s12 = smov [#allocation7]   ;;  %p4228_p12 = scmp.ne.s32.totalorder %s4221_s9, 0 }
  0x4a   : > { %2200 = dma.vmem_to_smem (!%p2432_p5), %s275_s30, 16, %s2345_s12, [#allocation8]  }
  0x4b   : > { %299 = sbr.rel (%p4228_p12) target bundleno = 722 (0x2d2), region = 44 }
  0x50   : > { %p4229_p13 = scmp.ne.s32.totalorder %s4220_s8, 0 }
  0x52   : > { %2319 = dma.done.wait (%p4229_p13), [#allocation3], 32  }
  0x53   : > { %2321 = vsyncadd (%p4229_p13), [#allocation3], 4294967264 }
  0x54   : > { %2323 = dma.done.wait (%p4229_p13), [#allocation5], 32  }
  0x55   : > { %2325 = vsyncadd (%p4229_p13), [#allocation5], 4294967264 }
  0x56   : > { %2327 = dma.done.wait (%p4229_p13), [#allocation8], 16  }
  0x57   : > { %2329 = vsyncadd (%p4229_p13), [#allocation8], 4294967280 }
  0x58   : > { %317 = sfence }
  0x59   : > { %p356_p5 = scmp.lt.s32.totalorder %s2332_s24, 1  ;;  %s388_s9 = sld [smem:[#allocation6]]  ;;  %v430_v36 = vlaneseq }
  0x5a   : > { %s392_s13 = sld [smem:[#allocation7]]  ;;  %s4063_s20 = smov 16  }
  0x5b   : > { %s4727_s24 = smov (!%p356_p5, %s2332_s24), 1  ;;  %s4231_s0 = sld [smem:[#allocation120_spill]]  ;;  %v2741_v41 = vshrl.u32 %v430_v36, 7  ;;  %v2781_v52 = vand.u32 127, %v430_v36 }
  0x5c   : > { %4230 = sst [smem:[#allocation15_spill]] %s4727_s24  ;;  %s4062_s14 = sshll.u32 %s4727_s24, 6 }
  0x5d   : > { %s2500_s8 = sld [smem:[#allocation6 + $0x1]]  ;;  %s4065_s21 = smov 17   ;;  %4303 = vst [vmem:[#allocation79_spill] sm:$0xff] %v2741_v41  ;;  %v478_v45 = vsub.s32 1, %v2741_v41  ;;  %v437_v49 = vsub.s32 0, %v2741_v41  ;;  %v519_v50 = vsub.s32 2, %v2741_v41 }
  0x5e   : > { %s2502_s18 = sld [smem:[#allocation7 + $0x1]]  ;;  %s4072_s3 = smov 127   ;;  %vm473_vm8 = vcmp.lt.s32.totalorder %v2781_v52, 16  ;;  %vm432_vm9 = vcmp.lt.s32.totalorder %v2781_v52, 17  ;;  %vm514_vm10 = vcmp.lt.s32.totalorder %v2781_v52, 15  ;;  %vm555_vm11 = vcmp.lt.s32.totalorder %v2781_v52, 1 }
  0x5f   : > { %v389_v1 = vstv %s388_s9  ;;  %s2506_s19 = sld [smem:[#allocation6 + $0x2]]  ;;  %s4067_s9 = smov 15   ;;  %vm596_vm12 = vcmp.lt.s32.totalorder %v2781_v52, 127  ;;  %vm637_vm13 = vcmp.lt.s32.totalorder %v2781_v52, 113  ;;  %vm678_vm14 = vcmp.lt.s32.totalorder %v2781_v52, 112 }
  0x60   : > { %v393_v4 = vstv %s392_s13  ;;  %s2512_s22 = sld [smem:[#allocation7 + $0x2]]  ;;  %s4075_s10 = smov 113   ;;  %vm719_vm15 = vcmp.lt.s32.totalorder %v2781_v52, 111 }
  0x61   : > { %s2496_s17 = scalar_lea.vmem %s4231_s0, %s4062_s14  ;;  %s2516_s23 = sld [smem:[#allocation6 + $0x3]] }
  0x62   : > { %v386_v0 = vld [vmem:[%s2496_s17] sm:$0xff]  ;;  %v387_v2 = vld [vmem:[%s2496_s17 + $0x8] sm:$0xff]  ;;  %s2518_s27 = sld [smem:[#allocation7 + $0x3]]  ;;  %v2040_v12 = vld [vmem:[%s2496_s17 + $0x18] sm:$0xff]  ;;  %s4081_s7 = smov 112  }
  0x63   : > { %v390_v3 = vmul.f32 %v389_v1, %v386_v0  ;;  %v391_v5 = vmul.f32 %v389_v1, %v387_v2  ;;  %s2520_s28 = sld [smem:[#allocation2 + $0x1]]  ;;  %v760_v13 = vstv %s2500_s8  ;;  %v2039_v14 = vld [vmem:[%s2496_s17 + $0x10] sm:$0xff]  ;;  %v2080_v24 = vld [vmem:[%s2496_s17 + $0x28] sm:$0xff]  ;;  %v2079_v26 = vld [vmem:[%s2496_s17 + $0x20] sm:$0xff]  ;;  %v560_v0 = vsub.s32 3, %v2741_v41 }
  0x64   : > { %s2526_s29 = sld [smem:[#allocation2 + $0x25]]  ;;  %v762_v15 = vmul.f32 %v2040_v12, %v760_v13  ;;  %v761_v16 = vmul.f32 %v2039_v14, %v760_v13  ;;  %v764_v17 = vstv %s2502_s18  ;;  %v2120_v37 = vld [vmem:[%s2496_s17 + $0x38] sm:$0xff]  ;;  %v2119_v39 = vld [vmem:[%s2496_s17 + $0x30] sm:$0xff] }
  0x65   : > { %v394_v6 = vadd.f32 %v393_v4, %v390_v3  ;;  %v395_v7 = vadd.f32 %v393_v4, %v391_v5  ;;  %s2528_s30 = sld [smem:[#allocation2 + $0x49]]  ;;  %v1057_v25 = vstv %s2506_s19  ;;  %v601_v4 = vsub.s32 4, %v2741_v41 }
  0x66   : > { %s2530_s11 = sld [smem:[#allocation2 + $0x6d]]  ;;  %v766_v18 = vadd.f32 %v764_v17, %v762_v15  ;;  %v765_v19 = vadd.f32 %v764_v17, %v761_v16  ;;  %v1059_v27 = vmul.f32 %v2080_v24, %v1057_v25  ;;  %v1058_v28 = vmul.f32 %v2079_v26, %v1057_v25 }
  0x67   : > { %vm396_vm0 = vcmp.ge.f32.partialorder %v394_v6, 0.0  ;;  %v398_v8 = vmul.f32 0.2, %v394_v6  ;;  %v399_v9 = vmul.f32 0.2, %v395_v7  ;;  %vm397_vm1 = vcmp.ge.f32.partialorder %v395_v7, 0.0 }
  0x68   : > { %s2532_s12 = sld [smem:[#allocation2 + $0x4]]  ;;  %v770_v20 = vmul.f32 0.2, %v766_v18  ;;  %v769_v21 = vmul.f32 0.2, %v765_v19  ;;  %vm768_vm2 = vcmp.ge.f32.partialorder %v766_v18, 0.0  ;;  %v1061_v29 = vstv %s2512_s22 }
  0x69   : > { %v2504_v10 = vsel %vm396_vm0, %v394_v6, %v398_v8  ;;  %v2514_v11 = vsel %vm397_vm1, %v395_v7, %v399_v9  ;;  %4232 = sst [smem:[#allocation16_spill]] %s2520_s28  ;;  %vm767_vm3 = vcmp.ge.f32.partialorder %v765_v19, 0.0  ;;  %v1063_v30 = vadd.f32 %v1061_v29, %v1059_v27  ;;  %s4287_s22 = smov 112  }
  0x6a   : > { %469 = vrot.lane.b32.xlu1 %v2504_v10, %s4063_s20  ;;  %426 = vrot.lane.b32.xlu0 %v2504_v10, %s4065_s21  ;;  %4233 = sst [smem:[#allocation17_spill]] %s2526_s29  ;;  %v2604_v22 = vsel %vm768_vm2, %v766_v18, %v770_v20  ;;  %v2606_v23 = vsel %vm767_vm3, %v765_v19, %v769_v21  ;;  %v1062_v31 = vadd.f32 %v1061_v29, %v1058_v28  ;;  %v1354_v38 = vstv %s2516_s23 }
  0x6b   : > { %4234 = sst [smem:[#allocation18_spill]] %s2528_s30  ;;  %v1067_v32 = vmul.f32 0.2, %v1063_v30  ;;  %vm1065_vm4 = vcmp.ge.f32.partialorder %v1063_v30, 0.0  ;;  %v1356_v40 = vmul.f32 %v2120_v37, %v1354_v38  ;;  %v1358_v42 = vstv %s2518_s27 }
  0x6c   : > { %4235 = sst [smem:[#allocation19_spill]] %s2530_s11  ;;  %v1066_v33 = vmul.f32 0.2, %v1062_v31  ;;  %vm1064_vm5 = vcmp.ge.f32.partialorder %v1062_v31, 0.0  ;;  %v1355_v43 = vmul.f32 %v2119_v39, %v1354_v38  ;;  %v487_v61 = vstv %s2520_s28 }
  0x6d   : > { %s2538_s13 = sld [smem:[#allocation2 + $0x28]]  ;;  %v2708_v34 = vsel %vm1065_vm4, %v1063_v30, %v1067_v32  ;;  %v1360_v44 = vadd.f32 %v1358_v42, %v1356_v40  ;;  %v493_v62 = vstv %s2526_s29  ;;  %v499_v2 = vstv %s2528_s30 }
  0x6e   : > { %471 = vrot.lane.b32.xlu1 %v2514_v11, %s4063_s20  ;;  %428 = vrot.lane.b32.xlu0 %v2514_v11, %s4065_s21  ;;  %s2540_s15 = sld [smem:[#allocation2 + $0x4c]]  ;;  %s4069_s20 = smov 1   ;;  %v2710_v35 = vsel %vm1064_vm5, %v1062_v31, %v1066_v33  ;;  %v1359_v46 = vadd.f32 %v1358_v42, %v1355_v43  ;;  %v403_v58 = vstv %s2532_s12  ;;  %v642_v8 = vsub.s32 5, %v2741_v41 }
  0x6f   : > { %s2542_s16 = sld [smem:[#allocation2 + $0x70]]  ;;  %v1364_v51 = vmul.f32 0.2, %v1360_v44  ;;  %vm1362_vm6 = vcmp.ge.f32.partialorder %v1360_v44, 0.0  ;;  %v2829_v6 = vmul.f32 %v403_v58, %v2514_v11  ;;  %v2844_v13 = vmul.f32 %v403_v58, %v2504_v10 }
  0x70   : > { %s2544_s14 = sld [smem:[#allocation2]]  ;;  %v1363_v55 = vmul.f32 0.2, %v1359_v46  ;;  %vm1361_vm7 = vcmp.ge.f32.partialorder %v1359_v46, 0.0  ;;  %v683_v18 = vsub.s32 6, %v2741_v41  ;;  %v724_v30 = vsub.s32 7, %v2741_v41 }
  0x71   : > { %s2550_s21 = sld [smem:[#allocation2 + $0x24]]  ;;  %v2819_v1 = vsel %vm1362_vm6, %v1360_v44, %v1364_v51  ;;  %vm384_vm0 = vcmask 11264   ;;  %vm1687_vm1 = vcmp.eq.s32.totalorder %v2781_v52, 0 }
  0x72   : > { %512 = vrot.lane.b32.xlu1 %v2514_v11, %s4067_s9  ;;  %510 = vrot.lane.b32.xlu0 %v2504_v10, %s4067_s9  ;;  %s2552_s0 = sld [smem:[#allocation2 + $0x48]]  ;;  %4316 = vst [vmem:[#allocation91_spill] sm:$0xff] %v2819_v1  ;;  %v2826_v5 = vsel %vm1361_vm7, %v1359_v46, %v1363_v55 }
  0x73   : > { %s2557_s9 = sld [smem:[#allocation2 + $0x6c]]  ;;  %v409_v63 = vstv %s2538_s13  ;;  %4318 = vst [vmem:[#allocation93_spill] sm:$0xff] %v2826_v5 }
  0x74   : > { %s2559_s2 = sld [smem:[#allocation2 + $0x2]]  ;;  %v415_v3 = vstv %s2540_s15  ;;  %v2841_v12 = vmul.f32 %v409_v63, %v2514_v11  ;;  %v2847_v14 = vmul.f32 %v409_v63, %v2504_v10 }
  0x75   : > { %s2565_s4 = sld [smem:[#allocation2 + $0x26]]  ;;  %v421_v7 = vstv %s2542_s16  ;;  %v2852_v15 = vmul.f32 %v415_v3, %v2514_v11  ;;  %v2867_v20 = vmul.f32 %v415_v3, %v2504_v10 }
  0x76   : > { %4236 = sst [smem:[#allocation20_spill]] %s2544_s14  ;;  %553 = vrot.lane.b32.xlu1 %v2514_v11, %s4069_s20  ;;  %551 = vrot.lane.b32.xlu0 %v2504_v10, %s4069_s20  ;;  %v2864_v19 = vmul.f32 %v421_v7, %v2514_v11  ;;  %v2870_v21 = vmul.f32 %v421_v7, %v2504_v10 }
  0x77   : > { %4237 = sst [smem:[#allocation21_spill]] %s2550_s21 }
  0x78   : > { %4238 = sst [smem:[#allocation22_spill]] %s2552_s0 }
  0x79   : > { %4239 = sst [smem:[#allocation23_spill]] %s2557_s9 }
  0x7a   : > { %4240 = sst [smem:[#allocation24_spill]] %s2559_s2  ;;  %594 = vrot.lane.b32.xlu1 %v2514_v11, %s4072_s3  ;;  %592 = vrot.lane.b32.xlu0 %v2504_v10, %s4072_s3  ;;  %s4399_s2 = smov 1  }
  0x7b   : > { %4241 = sst [smem:[#allocation25_spill]] %s2565_s4 }
  0x7c   : > { %s2567_s20 = sld [smem:[#allocation2 + $0x4a]] }
  0x7d   : > { %s2570_s8 = sld [smem:[#allocation2 + $0x6e]] }
  0x7e   : > { %s2572_s5 = sld [smem:[#allocation2 + $0x3]]  ;;  %635 = vrot.lane.b32.xlu1 %v2514_v11, %s4075_s10  ;;  %633 = vrot.lane.b32.xlu0 %v2504_v10, %s4075_s10 }
  0x7f   : > { %s2578_s25 = sld [smem:[#allocation2 + $0x27]] }
  0x80   : > { %s2580_s3 = sld [smem:[#allocation2 + $0x4b]] }
  0x81   : > { %s2582_s26 = sld [smem:[#allocation2 + $0x6f]] }
  0x82   : > { %4242 = sst [smem:[#allocation26_spill]] %s2567_s20  ;;  %676 = vrot.lane.b32.xlu1 %v2514_v11, %s4081_s7  ;;  %674 = vrot.lane.b32.xlu0 %v2504_v10, %s4081_s7  ;;  %s4272_s20 = smov 1  }
  0x83   : > { %4243 = sst [smem:[#allocation27_spill]] %s2570_s8 }
  0x84   : > { %4244 = sst [smem:[#allocation28_spill]] %s2572_s5  ;;  %s4262_s5 = smov 16  }
  0x85   : > { %4245 = sst [smem:[#allocation29_spill]] %s2578_s25 }
  0x86   : > { %4246 = sst [smem:[#allocation30_spill]] %s2580_s3 }
  0x87   : > { %4247 = sst [smem:[#allocation31_spill]] %s2582_s26 }
  0x88   : > { %s2584_s18 = sld [smem:[#allocation2 + $0x5]] }
  0x89   : > { %s2590_s6 = sld [smem:[#allocation2 + $0x29]] }
  0x8a   : > { %s2592_s10 = sld [smem:[#allocation2 + $0x4d]] }
  0x8b   : > { %s2594_s24 = sld [smem:[#allocation2 + $0x71]] }
  0x8c   : > { %s2596_s26 = sld [smem:[#allocation2 + $0x6]] }
  0x8d   : > { %s2602_s7 = sld [smem:[#allocation2 + $0x2a]] }
  0x8e   : > { %4248 = sst [smem:[#allocation32_spill]] %s2584_s18  ;;  %s4088_s18 = smov 111  }
  0x8f   : > { %4249 = sst [smem:[#allocation33_spill]] %s2590_s6  ;;  %717 = vrot.lane.b32.xlu1 %v2514_v11, %s4088_s18  ;;  %715 = vrot.lane.b32.xlu0 %v2504_v10, %s4088_s18 }
  0x90   : > { %4250 = sst [smem:[#allocation34_spill]] %s2592_s10 }
  0x91   : > { %4251 = sst [smem:[#allocation35_spill]] %s2594_s24 }
  0x92   : > { %4252 = sst [smem:[#allocation36_spill]] %s2596_s26  ;;  %s4257_s26 = smov 17  }
  0x93   : > { %4253 = sst [smem:[#allocation37_spill]] %s2602_s7  ;;  %799 = vrot.lane.b32.xlu1 %v2604_v22, %s4257_s26  ;;  %797 = vrot.lane.b32.xlu0 %v2606_v23, %s4257_s26 }
  0x94   : > { %s2608_s10 = sld [smem:[#allocation2 + $0x4e]] }
  0x95   : > { %s2610_s6 = sld [smem:[#allocation2 + $0x72]] }
  0x96   : > { %s2612_s24 = sld [smem:[#allocation2 + $0x7]] }
  0x97   : > { %s2618_s3 = sld [smem:[#allocation2 + $0x2b]]  ;;  %831 = vrot.lane.b32.xlu1 %v2604_v22, %s4262_s5  ;;  %829 = vrot.lane.b32.xlu0 %v2606_v23, %s4262_s5 }
  0x98   : > { %s2620_s18 = sld [smem:[#allocation2 + $0x4f]] }
  0x99   : > { %s2622_s7 = sld [smem:[#allocation2 + $0x73]] }
  0x9a   : > { %4254 = sst [smem:[#allocation38_spill]] %s2608_s10 }
  0x9b   : > { %4255 = sst [smem:[#allocation39_spill]] %s2610_s6 }
  0x9c   : > { %4256 = sst [smem:[#allocation40_spill]] %s2612_s24 }
  0x9d   : > { %4258 = sst [smem:[#allocation41_spill]] %s2618_s3 }
  0x9e   : > { %4259 = sst [smem:[#allocation42_spill]] %s2620_s18 }
  0x9f   : > { %4260 = sst [smem:[#allocation43_spill]] %s2622_s7  ;;  %s4267_s7 = smov 15  }
  0xa0   : > { %s2624_s25 = sld [smem:[#allocation2 + $0x8]]  ;;  %863 = vrot.lane.b32.xlu1 %v2604_v22, %s4267_s7  ;;  %861 = vrot.lane.b32.xlu0 %v2606_v23, %s4267_s7 }
  0xa1   : > { %s2630_s24 = sld [smem:[#allocation2 + $0x2c]] }
  0xa2   : > { %s2632_s6 = sld [smem:[#allocation2 + $0x50]] }
  0xa3   : > { %s2634_s3 = sld [smem:[#allocation2 + $0x74]] }
  0xa4   : > { %s2636_s18 = sld [smem:[#allocation2 + $0xd]]  ;;  %895 = vrot.lane.b32.xlu1 %v2604_v22, %s4272_s20  ;;  %893 = vrot.lane.b32.xlu0 %v2606_v23, %s4272_s20 }
  0xa5   : > { %s2644_s10 = sld [smem:[#allocation2 + $0x55]] }
  0xa6   : > { %4261 = sst [smem:[#allocation44_spill]] %s2624_s25 }
  0xa7   : > { %4263 = sst [smem:[#allocation45_spill]] %s2630_s24 }
  0xa8   : > { %4264 = sst [smem:[#allocation46_spill]] %s2632_s6 }
  0xa9   : > { %4265 = sst [smem:[#allocation47_spill]] %s2634_s3 }
  0xaa   : > { %4266 = sst [smem:[#allocation48_spill]] %s2636_s18 }
  0xab   : > { %s2642_s25 = sld [smem:[#allocation2 + $0x31]] }
  0xac   : > { %4269 = sst [smem:[#allocation50_spill]] %s2644_s10 }
  0xad   : > { %s2646_s8 = sld [smem:[#allocation2 + $0x79]] }
  0xae   : > { %s2648_s24 = sld [smem:[#allocation2 + $0x9]] }
  0xaf   : > { %s2654_s3 = sld [smem:[#allocation2 + $0x2d]] }
  0xb0   : > { %s2656_s6 = sld [smem:[#allocation2 + $0x51]] }
  0xb1   : > { %4268 = sst [smem:[#allocation49_spill]] %s2642_s25 }
  0xb2   : > { %s2661_s25 = sld [smem:[#allocation2 + $0x75]] }
  0xb3   : > { %4270 = sst [smem:[#allocation51_spill]] %s2646_s8  ;;  %s4277_s8 = smov 127  }
  0xb4   : > { %4271 = sst [smem:[#allocation52_spill]] %s2648_s24  ;;  %927 = vrot.lane.b32.xlu1 %v2604_v22, %s4277_s8  ;;  %925 = vrot.lane.b32.xlu0 %v2606_v23, %s4277_s8 }
  0xb5   : > { %4273 = sst [smem:[#allocation53_spill]] %s2654_s3 }
  0xb6   : > { %4274 = sst [smem:[#allocation54_spill]] %s2656_s6 }
  0xb7   : > { %s2663_s10 = sld [smem:[#allocation2 + $0xa]] }
  0xb8   : > { %4275 = sst [smem:[#allocation55_spill]] %s2661_s25  ;;  %s4282_s25 = smov 113  }
  0xb9   : > { %s2669_s24 = sld [smem:[#allocation2 + $0x2e]]  ;;  %959 = vrot.lane.b32.xlu1 %v2604_v22, %s4282_s25  ;;  %957 = vrot.lane.b32.xlu0 %v2606_v23, %s4282_s25 }
  0xba   : > { %s2671_s3 = sld [smem:[#allocation2 + $0x52]] }
  0xbb   : > { %s2674_s6 = sld [smem:[#allocation2 + $0x76]] }
  0xbc   : > { %s2676_s19 = sld [smem:[#allocation2 + $0xb]] }
  0xbd   : > { %4276 = sst [smem:[#allocation56_spill]] %s2663_s10  ;;  %991 = vrot.lane.b32.xlu1 %v2604_v22, %s4287_s22  ;;  %989 = vrot.lane.b32.xlu0 %v2606_v23, %s4287_s22 }
  0xbe   : > { %s2682_s10 = sld [smem:[#allocation2 + $0x2f]] }
  0xbf   : > { %4278 = sst [smem:[#allocation57_spill]] %s2669_s24 }
  0xc0   : > { %4279 = sst [smem:[#allocation58_spill]] %s2671_s3 }
  0xc1   : > { %4280 = sst [smem:[#allocation59_spill]] %s2674_s6 }
  0xc2   : > { %4281 = sst [smem:[#allocation60_spill]] %s2676_s19 }
  0xc3   : > { %s2684_s24 = sld [smem:[#allocation2 + $0x53]] }
  0xc4   : > { %4283 = sst [smem:[#allocation61_spill]] %s2682_s10 }
  0xc5   : > { %s2686_s18 = sld [smem:[#allocation2 + $0x77]] }
  0xc6   : > { %s2688_s3 = sld [smem:[#allocation2 + $0xc]] }
  0xc7   : > { %s2694_s19 = sld [smem:[#allocation2 + $0x30]] }
  0xc8   : > { %s2696_s6 = sld [smem:[#allocation2 + $0x54]] }
  0xc9   : > { %4284 = sst [smem:[#allocation62_spill]] %s2684_s24 }
  0xca   : > { %s2698_s10 = sld [smem:[#allocation2 + $0x78]] }
  0xcb   : > { %4285 = sst [smem:[#allocation63_spill]] %s2686_s18 }
  0xcc   : > { %4286 = sst [smem:[#allocation64_spill]] %s2688_s3  ;;  %s4292_s3 = smov 111  }
  0xcd   : > { %4288 = sst [smem:[#allocation65_spill]] %s2694_s19  ;;  %1023 = vrot.lane.b32.xlu1 %v2604_v22, %s4292_s3  ;;  %1021 = vrot.lane.b32.xlu0 %v2606_v23, %s4292_s3 }
  0xce   : > { %4289 = sst [smem:[#allocation66_spill]] %s2696_s6 }
  0xcf   : > { %s2700_s18 = sld [smem:[#allocation2 + $0xe]] }
  0xd0   : > { %4290 = sst [smem:[#allocation67_spill]] %s2698_s10 }
  0xd1   : > { %s2706_s24 = sld [smem:[#allocation2 + $0x32]]  ;;  %1096 = vrot.lane.b32.xlu1 %v2708_v34, %s4257_s26  ;;  %1094 = vrot.lane.b32.xlu0 %v2710_v35, %s4257_s26 }
  0xd2   : > { %s2712_s6 = sld [smem:[#allocation2 + $0x56]] }
  0xd3   : > { %s2714_s10 = sld [smem:[#allocation2 + $0x7a]] }
  0xd4   : > { %s2716_s19 = sld [smem:[#allocation2 + $0xf]] }
  0xd5   : > { %4291 = sst [smem:[#allocation68_spill]] %s2700_s18  ;;  %1128 = vrot.lane.b32.xlu1 %v2708_v34, %s4262_s5  ;;  %1126 = vrot.lane.b32.xlu0 %v2710_v35, %s4262_s5 }
  0xd6   : > { %s2722_s18 = sld [smem:[#allocation2 + $0x33]] }
  0xd7   : > { %4293 = sst [smem:[#allocation69_spill]] %s2706_s24 }
  0xd8   : > { %4294 = sst [smem:[#allocation70_spill]] %s2712_s6 }
  0xd9   : > { %4295 = sst [smem:[#allocation71_spill]] %s2714_s10  ;;  %1160 = vrot.lane.b32.xlu1 %v2708_v34, %s4267_s7  ;;  %1158 = vrot.lane.b32.xlu0 %v2710_v35, %s4267_s7 }
  0xda   : > { %4296 = sst [smem:[#allocation72_spill]] %s2716_s19 }
  0xdb   : > { %s2724_s24 = sld [smem:[#allocation2 + $0x57]] }
  0xdc   : > { %4297 = sst [smem:[#allocation73_spill]] %s2722_s18  ;;  %v427_v63 = vpop.permute.xlu0 %426 }
  0xdd   : > { %s2726_s3 = sld [smem:[#allocation2 + $0x7b]]  ;;  %1192 = vrot.lane.b32.xlu1 %v2708_v34, %s4272_s20  ;;  %1190 = vrot.lane.b32.xlu0 %v2710_v35, %s4272_s20 }
  0xde   : > { %s2730_s6 = sld [smem:[#allocation2 + $0x10]] }
  0xdf   : > { %s2737_s19 = sld [smem:[#allocation2 + $0x34]] }
  0xe0   : > { %s2739_s10 = sld [smem:[#allocation2 + $0x58]]  ;;  %v429_v28 = vpop.permute.xlu0 %428 }
  0xe1   : > { %4298 = sst [smem:[#allocation74_spill]] %s2724_s24  ;;  %1224 = vrot.lane.b32.xlu1 %v2708_v34, %s4277_s8  ;;  %1222 = vrot.lane.b32.xlu0 %v2710_v35, %s4277_s8  ;;  %v433_v40 = vsel %vm432_vm9, %v427_v63, %v429_v28  ;;  %v434_v10 = vsel %vm432_vm9, %v429_v28, %v427_v63 }
  0xe2   : > { %s2743_s24 = sld [smem:[#allocation2 + $0x7c]] }
  0xe3   : > { %4299 = sst [smem:[#allocation75_spill]] %s2726_s3 }
  0xe4   : > { %4300 = sst [smem:[#allocation76_spill]] %s2730_s6  ;;  %v511_v9 = vpop.permute.xlu0 %510 }
  0xe5   : > { %4301 = sst [smem:[#allocation77_spill]] %s2737_s19  ;;  %1256 = vrot.lane.b32.xlu1 %v2708_v34, %s4282_s25  ;;  %1254 = vrot.lane.b32.xlu0 %v2710_v35, %s4282_s25 }
  0xe6   : > { %4302 = sst [smem:[#allocation78_spill]] %s2739_s10 }
  0xe7   : > { %s2746_s23 = sld [smem:[#allocation2 + $0x11]] }
  0xe8   : > { %4304 = sst [smem:[#allocation80_spill]] %s2743_s24 }
  0xe9   : > { %s2752_s17 = sld [smem:[#allocation2 + $0x35]]  ;;  %1288 = vrot.lane.b32.xlu1 %v2708_v34, %s4287_s22  ;;  %1286 = vrot.lane.b32.xlu0 %v2710_v35, %s4287_s22 }
  0xea   : > { %s2754_s19 = sld [smem:[#allocation2 + $0x59]] }
  0xeb   : > { %s2757_s10 = sld [smem:[#allocation2 + $0x7d]] }
  0xec   : > { %s4309_s1 = sld [smem:[#allocation121_spill]] }
  0xed   : > { %4305 = sst [smem:[#allocation81_spill]] %s2746_s23 }
  0xee   : > { %s2777_s24 = sld [smem:[#allocation2 + $0x3a]] }
  0xef   : > { %4306 = sst [smem:[#allocation82_spill]] %s2752_s17 }
  0xf0   : > { %4307 = sst [smem:[#allocation83_spill]] %s2754_s19 }
  0xf1   : > { %4308 = sst [smem:[#allocation84_spill]] %s2757_s10 }
  0xf2   : > { %v2762_v47 = vld [vmem:[%s4309_s1] sm:$0xff]  ;;  %v2767_v48 = vld [vmem:[%s4309_s1 + $0x8] sm:$0xff]  ;;  %s2770_s17 = sld [smem:[#allocation2 + $0x16]] }
  0xf3   : > { %s2779_s27 = sld [smem:[#allocation2 + $0x5e]]  ;;  %v2784_v53 = vrot.slane %v2762_v47, %v478_v45  ;;  %v2787_v54 = vrot.slane %v2767_v48, %v478_v45  ;;  %v2792_v56 = vrot.slane %v2762_v47, %v437_v49  ;;  %v2795_v57 = vrot.slane %v2767_v48, %v437_v49 }
  0xf4   : > { %s2789_s6 = sld [smem:[#allocation2 + $0x82]]  ;;  %v2805_v59 = vrot.slane %v2762_v47, %v519_v50  ;;  %v2808_v60 = vrot.slane %v2767_v48, %v519_v50  ;;  %v2855_v16 = vrot.slane %v2762_v47, %v560_v0  ;;  %v2858_v17 = vrot.slane %v2767_v48, %v560_v0 }
  0xf5   : > { %4310 = vst [vmem:[#allocation85_spill] sm:$0xff] %v2784_v53  ;;  %4311 = vst [vmem:[#allocation86_spill] sm:$0xff] %v2787_v54  ;;  %s2797_s23 = sld [smem:[#allocation2 + $0x12]]  ;;  %v2873_v24 = vrot.slane %v2762_v47, %v601_v4  ;;  %v2880_v27 = vrot.slane %v2767_v48, %v601_v4  ;;  %v2883_v11 = vrot.slane %v2762_v47, %v642_v8  ;;  %v1077_v45 = vstv %s2777_s24 }
  0xf6   : > { %4312 = vst [vmem:[#allocation87_spill] sm:$0xff] %v2795_v57  ;;  %s2810_s1 = sld [smem:[#allocation2 + $0x36]]  ;;  %v2894_v29 = vrot.slane %v2767_v48, %v642_v8  ;;  %v2902_v33 = vrot.slane %v2762_v47, %v683_v18  ;;  %v2905_v36 = vrot.slane %v2767_v48, %v683_v18  ;;  %v2928_v50 = vrot.slane %v2762_v47, %v724_v30 }
  0xf7   : > { %s2816_s20 = sld [smem:[#allocation2 + $0x5a]]  ;;  %v2931_v51 = vrot.slane %v2767_v48, %v724_v30 }
  0xf8   : > { %s2824_s12 = sld [smem:[#allocation2 + $0x7e]]  ;;  %4350 = vst [vmem:[#allocation102_spill] sm:$0xff] %v2928_v50  ;;  %v1071_v4 = vstv %s2770_s17  ;;  %s4417_s17 = smov 127  }
  0xf9   : > { %s2833_s13 = sld [smem:[#allocation2 + $0x13]]  ;;  %4352 = vst [vmem:[#allocation103_spill] sm:$0xff] %v2931_v51  ;;  %v3050_v43 = vmul.f32 %v1071_v4, %v2710_v35  ;;  %v3053_v44 = vmul.f32 %v1071_v4, %v2708_v34  ;;  %v3064_v4 = vmul.f32 %v1077_v45, %v2710_v35 }
  0xfa   : > { %s2849_s15 = sld [smem:[#allocation2 + $0x37]]  ;;  %v1089_v42 = vstv %s2789_s6  ;;  %s4421_s6 = smov 113  }
  0xfb   : > { %4313 = sst [smem:[#allocation88_spill]] %s2797_s23  ;;  %4395 = vst [vmem:[#allocation106_spill] sm:$0xff] %v3050_v43  ;;  %4396 = vst [vmem:[#allocation107_spill] sm:$0xff] %v3053_v44  ;;  %v3126_v55 = vmul.f32 %v1089_v42, %v2710_v35 }
  0xfc   : > { %4314 = sst [smem:[#allocation89_spill]] %s2810_s1  ;;  %4404 = vst [vmem:[#allocation108_spill] sm:$0xff] %v3064_v4 }
  0xfd   : > { %4315 = sst [smem:[#allocation90_spill]] %s2816_s20  ;;  %4422 = vst [vmem:[#allocation112_spill] sm:$0xff] %v3126_v55 }
  0xfe   : > { %4317 = sst [smem:[#allocation92_spill]] %s2824_s12 }
  0xff   : > { %4319 = sst [smem:[#allocation94_spill]] %s2833_s13 }
 0x100   : > { %4320 = sst [smem:[#allocation95_spill]] %s2849_s15 }
 0x101   : > { %s2861_s16 = sld [smem:[#allocation2 + $0x5b]] }
 0x102   : > { %s2875_s11 = sld [smem:[#allocation2 + $0x7f]] }
 0x103   : > { %s2885_s25 = sld [smem:[#allocation2 + $0x14]] }
 0x104   : > { %s2897_s15 = sld [smem:[#allocation2 + $0x38]] }
 0x105   : > { %s2907_s9 = sld [smem:[#allocation2 + $0x5c]] }
 0x106   : > { %s4340_s4 = sld [smem:[#allocation48_spill]] }
 0x107   : > { %4321 = sst [smem:[#allocation96_spill]] %s2861_s16 }
 0x108   : > { %4322 = sst [smem:[#allocation97_spill]] %s2875_s11 }
 0x109   : > { %4326 = sst [smem:[#allocation98_spill]] %s2885_s25 }
 0x10a   : > { %4332 = sst [smem:[#allocation99_spill]] %s2897_s15 }
 0x10b   : > { %4335 = sst [smem:[#allocation100_spill]] %s2907_s9  ;;  %s4345_s9 = smov 111  }
 0x10c   : > { %s2913_s15 = sld [smem:[#allocation2 + $0x80]]  ;;  %1320 = vrot.lane.b32.xlu1 %v2708_v34, %s4345_s9  ;;  %1318 = vrot.lane.b32.xlu0 %v2710_v35, %s4345_s9  ;;  %v774_v0 = vstv %s4340_s4 }
 0x10d   : > { %s2919_s23 = sld [smem:[#allocation2 + $0x15]]  ;;  %v2960_v48 = vmul.f32 %v774_v0, %v2606_v23  ;;  %v2963_v30 = vmul.f32 %v774_v0, %v2604_v22 }
 0x10e   : > { %s4346_s29 = sld [smem:[#allocation49_spill]] }
 0x10f   : > { %s2933_s11 = sld [smem:[#allocation2 + $0x39]] }
 0x110   : > { %s2939_s9 = sld [smem:[#allocation2 + $0x5d]]  ;;  %1393 = vrot.lane.b32.xlu1 %v2819_v1, %s4257_s26  ;;  %1391 = vrot.lane.b32.xlu0 %v2826_v5, %s4257_s26 }
 0x111   : > { %s4357_s22 = sld [smem:[#allocation50_spill]] }
 0x112   : > { %4339 = sst [smem:[#allocation101_spill]] %s2913_s15 }
 0x113   : > { %4344 = sst [smem:[#allocation48_spill]] %s2919_s23 }
 0x114   : > { %v780_v8 = vstv %s4346_s29  ;;  %s2945_s25 = sld [smem:[#allocation2 + $0x81]]  ;;  %1425 = vrot.lane.b32.xlu1 %v2819_v1, %s4262_s5  ;;  %1423 = vrot.lane.b32.xlu0 %v2826_v5, %s4262_s5 }
 0x115   : > { %4353 = sst [smem:[#allocation49_spill]] %s2933_s11  ;;  %v2968_v18 = vmul.f32 %v780_v8, %v2606_v23  ;;  %v2971_v47 = vmul.f32 %v780_v8, %v2604_v22  ;;  %v470_v8 = vpop.permute.xlu1 %469 }
 0x116   : > { %4356 = sst [smem:[#allocation104_spill]] %s2939_s9 }
 0x117   : > { %s4359_s23 = sld [smem:[#allocation51_spill]]  ;;  %v786_v3 = vstv %s4357_s22 }
 0x118   : > { %s2951_s12 = sld [smem:[#allocation2 + $0x17]]  ;;  %v2994_v0 = vmul.f32 %v786_v3, %v2606_v23  ;;  %v2997_v49 = vmul.f32 %v786_v3, %v2604_v22  ;;  %1457 = vrot.lane.b32.xlu1 %v2819_v1, %s4267_s7  ;;  %1455 = vrot.lane.b32.xlu0 %v2826_v5, %s4267_s7 }
 0x119   : > { %s2965_s21 = sld [smem:[#allocation2 + $0x3b]]  ;;  %v472_v39 = vpop.permute.xlu1 %471 }
 0x11a   : > { %4358 = sst [smem:[#allocation50_spill]] %s2945_s25 }
 0x11b   : > { %s2975_s30 = sld [smem:[#allocation2 + $0x5f]] }
 0x11c   : > { %s2987_s9 = sld [smem:[#allocation2 + $0x18]]  ;;  %1489 = vrot.lane.b32.xlu1 %v2819_v1, %s4399_s2  ;;  %1487 = vrot.lane.b32.xlu0 %v2826_v5, %s4399_s2 }
 0x11d   : > { %v792_v7 = vstv %s4359_s23  ;;  %s3001_s16 = sld [smem:[#allocation2 + $0x3c]]  ;;  %v513_v32 = vpop.permute.xlu1 %512 }
 0x11e   : > { %4363 = sst [smem:[#allocation51_spill]] %s2951_s12  ;;  %v3026_v3 = vmul.f32 %v792_v7, %v2606_v23  ;;  %v3029_v46 = vmul.f32 %v792_v7, %v2604_v22  ;;  %v3067_v7 = vmul.f32 %v1077_v45, %v2708_v34  ;;  %v1083_v22 = vstv %s2779_s27 }
 0x11f   : > { %4369 = sst [smem:[#allocation105_spill]] %s2965_s21  ;;  %v3096_v45 = vmul.f32 %v1083_v22, %v2710_v35  ;;  %v3099_v38 = vmul.f32 %v1083_v22, %v2708_v34  ;;  %v3129_v23 = vmul.f32 %v1089_v42, %v2708_v34  ;;  %v474_v34 = vsel %vm473_vm8, %v470_v8, %v472_v39 }
 0x120   : > { %s2981_s21 = sld [smem:[#allocation2 + $0x83]]  ;;  %4406 = vst [vmem:[#allocation109_spill] sm:$0xff] %v3067_v7  ;;  %1521 = vrot.lane.b32.xlu1 %v2819_v1, %s4417_s17  ;;  %1519 = vrot.lane.b32.xlu0 %v2826_v5, %s4417_s17  ;;  %v475_v42 = vsel %vm473_vm8, %v472_v39, %v470_v8  ;;  %v485_v31 = vmul.f32 %v2787_v54, %v474_v34 }
 0x121   : > { %s3007_s5 = sld [smem:[#allocation2 + $0x60]]  ;;  %4418 = vst [vmem:[#allocation110_spill] sm:$0xff] %v3096_v45  ;;  %4419 = vst [vmem:[#allocation111_spill] sm:$0xff] %v3099_v38  ;;  %v443_v39 = vmul.f32 %v2792_v56, %v434_v10  ;;  %v444_v8 = vmul.f32 %v2795_v57, %v433_v40 }
 0x122   : > { %s3013_s26 = sld [smem:[#allocation2 + $0x84]]  ;;  %4423 = vst [vmem:[#allocation113_spill] sm:$0xff] %v3129_v23  ;;  %v495_v22 = vmul.f32 %v493_v62, %v485_v31  ;;  %v501_v41 = vmul.f32 %v499_v2, %v485_v31 }
 0x123   : > { %s3019_s20 = sld [smem:[#allocation2 + $0x19]] }
 0x124   : > { %s3033_s18 = sld [smem:[#allocation2 + $0x3d]]  ;;  %1553 = vrot.lane.b32.xlu1 %v2819_v1, %s4421_s6  ;;  %1551 = vrot.lane.b32.xlu0 %v2826_v5, %s4421_s6 }
 0x125   : > { %s3039_s28 = sld [smem:[#allocation2 + $0x61]] }
 0x126   : > { %s4390_s7 = sld [smem:[#allocation88_spill]] }
 0x127   : > { %s3045_s1 = sld [smem:[#allocation2 + $0x85]] }
 0x128   : > { %s4392_s4 = sld [smem:[#allocation89_spill]] }
 0x129   : > { %s4397_s24 = sld [smem:[#allocation94_spill]] }
 0x12a   : > { %s3055_s8 = sld [smem:[#allocation2 + $0x1a]] }
 0x12b   : > { %s4400_s22 = sld [smem:[#allocation95_spill]] }
 0x12c   : > { %s4401_s12 = sld [smem:[#allocation96_spill]] }
 0x12d   : > { %4391 = sst [smem:[#allocation88_spill]] %s3045_s1 }
 0x12e   : > { %s4402_s10 = sld [smem:[#allocation97_spill]] }
 0x12f   : > { %s4403_s19 = sld [smem:[#allocation98_spill]] }
 0x130   : > { %4398 = sst [smem:[#allocation89_spill]] %s3055_s8 }
 0x131   : > { %s4405_s15 = sld [smem:[#allocation99_spill]] }
 0x132   : > { %s3071_s0 = sld [smem:[#allocation2 + $0x3e]] }
 0x133   : > { %s4410_s2 = sld [smem:[#allocation48_spill]] }
 0x134   : > { %s3077_s23 = sld [smem:[#allocation2 + $0x62]] }
 0x135   : > { %s4412_s25 = sld [smem:[#allocation104_spill]] }
 0x136   : > { %s4413_s14 = sld [smem:[#allocation50_spill]] }
 0x137   : > { %s4414_s8 = sld [smem:[#allocation51_spill]] }
 0x138   : > { %4409 = sst [smem:[#allocation94_spill]] %s3071_s0 }
 0x139   : > { %s3083_s27 = sld [smem:[#allocation2 + $0x86]] }
 0x13a   : > { %4411 = sst [smem:[#allocation95_spill]] %s3077_s23 }
 0x13b   : > { %s3089_s3 = sld [smem:[#allocation2 + $0x1f]] }
 0x13c   : > { %s3103_s29 = sld [smem:[#allocation2 + $0x43]] }
 0x13d   : > { %s3109_s17 = sld [smem:[#allocation2 + $0x67]] }
 0x13e   : > { %s3115_s11 = sld [smem:[#allocation2 + $0x8b]] }
 0x13f   : > { %4415 = sst [smem:[#allocation96_spill]] %s3083_s27  ;;  %s4429_s27 = smov 112  }
 0x140   : > { %s4430_s23 = sld [smem:[#allocation19_spill]]  ;;  %1585 = vrot.lane.b32.xlu1 %v2819_v1, %s4429_s27  ;;  %1583 = vrot.lane.b32.xlu0 %v2826_v5, %s4429_s27 }
 0x141   : > { %v1368_v58 = vstv %s3089_s3  ;;  %s4431_s0 = sld [smem:[#allocation20_spill]] }
 0x142   : > { %v3139_v26 = vmul.f32 %v1368_v58, %v2826_v5  ;;  %v3142_v25 = vmul.f32 %v1368_v58, %v2819_v1  ;;  %v1374_v35 = vstv %s3103_s29  ;;  %v484_v58 = vmul.f32 %v2784_v53, %v475_v42  ;;  %s4433_s13 = sld [smem:[#allocation21_spill]] }
 0x143   : > { %v3165_v28 = vmul.f32 %v1374_v35, %v2826_v5  ;;  %v3168_v10 = vmul.f32 %v1374_v35, %v2819_v1  ;;  %v1380_v40 = vstv %s3109_s17  ;;  %s4435_s1 = sld [smem:[#allocation22_spill]]  ;;  %v489_v42 = vmul.f32 %v487_v61, %v485_v31  ;;  %s4443_s17 = smov 111  }
 0x144   : > { %4424 = vst [vmem:[#allocation114_spill] sm:$0xff] %v3139_v26  ;;  %4425 = vst [vmem:[#allocation115_spill] sm:$0xff] %v3142_v25  ;;  %v488_v34 = vmul.f32 %v487_v61, %v484_v58  ;;  %s4436_s27 = sld [smem:[#allocation23_spill]]  ;;  %v494_v37 = vmul.f32 %v493_v62, %v484_v58  ;;  %v500_v35 = vmul.f32 %v499_v2, %v484_v58  ;;  %1617 = vrot.lane.b32.xlu1 %v2819_v1, %s4443_s17 }
 0x145   : > { %4432 = vst [vmem:[#allocation116_spill] sm:$0xff] %v3165_v28  ;;  %4434 = vst [vmem:[#allocation117_spill] sm:$0xff] %v3168_v10  ;;  %1615 = vrot.lane.b32.xlu0 %v2826_v5, %s4443_s17  ;;  %s4458_s3 = sld [smem:[#allocation28_spill]] }
 0x146   : > { %v4437_v28 = vstv %s4430_s23  ;;  %s4451_s23 = sld [smem:[#allocation27_spill]] }
 0x147   : > { %v506_v63 = vmul.f32 %v4437_v28, %v484_v58  ;;  %v4438_v26 = vmov %v4437_v28  ;;  %v4439_v25 = vstv %s4431_s0  ;;  %s4448_s0 = sld [smem:[#allocation24_spill]] }
 0x148   : > { %v507_v10 = vmul.f32 %v4438_v26, %v485_v31  ;;  %v447_v55 = vmul.f32 %v4439_v25, %v443_v39  ;;  %v4440_v45 = vmov %v4439_v25  ;;  %v4441_v23 = vstv %s4433_s13  ;;  %s4450_s13 = sld [smem:[#allocation26_spill]] }
 0x149   : > { %v448_v61 = vmul.f32 %v4440_v45, %v444_v8  ;;  %v453_v38 = vmul.f32 %v4441_v23, %v443_v39  ;;  %v4442_v4 = vmov %v4441_v23  ;;  %v4444_v62 = vstv %s4435_s1  ;;  %v552_v45 = vpop.permute.xlu0 %551  ;;  %s4449_s1 = sld [smem:[#allocation25_spill]] }
 0x14a   : > { %v454_v43 = vmul.f32 %v4442_v4, %v444_v8  ;;  %v459_v7 = vmul.f32 %v4444_v62, %v443_v39  ;;  %v4445_v44 = vmov %v4444_v62  ;;  %v4446_v2 = vstv %s4436_s27  ;;  %v554_v4 = vpop.permute.xlu1 %553  ;;  %s4461_s6 = sld [smem:[#allocation29_spill]] }
 0x14b   : > { %v460_v54 = vmul.f32 %v4445_v44, %v444_v8  ;;  %v465_v53 = vmul.f32 %v4446_v2, %v443_v39  ;;  %v4447_v58 = vmov %v4446_v2  ;;  %v449_v25 = vadd.f32 %v447_v55, %v2844_v13  ;;  %s4464_s29 = sld [smem:[#allocation30_spill]] }
 0x14c   : > { %v466_v28 = vmul.f32 %v4447_v58, %v444_v8  ;;  %v450_v26 = vadd.f32 %v448_v61, %v2829_v6  ;;  %v455_v31 = vadd.f32 %v453_v38, %v2847_v14  ;;  %v456_v23 = vadd.f32 %v454_v43, %v2841_v12  ;;  %s4465_s27 = sld [smem:[#allocation31_spill]] }
 0x14d   : > { %v461_v62 = vadd.f32 %v459_v7, %v2867_v20  ;;  %v462_v44 = vadd.f32 %v460_v54, %v2852_v15  ;;  %v467_v39 = vadd.f32 %v465_v53, %v2870_v21  ;;  %v490_v57 = vadd.f32 %v488_v34, %v449_v25  ;;  %v593_v15 = vpop.permute.xlu0 %592  ;;  %s4474_s17 = sld [smem:[#allocation32_spill]] }
 0x14e   : > { %v468_v8 = vadd.f32 %v466_v28, %v2864_v19  ;;  %v491_v2 = vadd.f32 %v489_v42, %v450_v26  ;;  %v497_v58 = vadd.f32 %v495_v22, %v456_v23  ;;  %v496_v13 = vadd.f32 %v494_v37, %v455_v31 }
 0x14f   : > { %v503_v55 = vadd.f32 %v501_v41, %v462_v44  ;;  %v502_v61 = vadd.f32 %v500_v35, %v461_v62  ;;  %v508_v14 = vadd.f32 %v506_v63, %v467_v39  ;;  %v515_v12 = vsel %vm514_vm10, %v511_v9, %v513_v32  ;;  %v595_v41 = vpop.permute.xlu1 %594 }
 0x150   : > { %v509_v6 = vadd.f32 %v507_v10, %v468_v8  ;;  %v516_v20 = vsel %vm514_vm10, %v513_v32, %v511_v9  ;;  %v556_v53 = vsel %vm555_vm11, %v552_v45, %v554_v4  ;;  %v557_v54 = vsel %vm555_vm11, %v554_v4, %v552_v45 }
 0x151   : > { %v525_v19 = vmul.f32 %v2805_v59, %v516_v20  ;;  %v526_v9 = vmul.f32 %v2808_v60, %v515_v12  ;;  %v566_v21 = vmul.f32 %v2855_v16, %v557_v54  ;;  %v567_v32 = vmul.f32 %v2858_v17, %v556_v53  ;;  %v634_v8 = vpop.permute.xlu0 %633 }
 0x152   : > { %v597_v37 = vsel %vm596_vm12, %v593_v15, %v595_v41  ;;  %v598_v38 = vsel %vm596_vm12, %v595_v41, %v593_v15  ;;  %v3235_v43 = vmul.f32 %v1380_v40, %v2826_v5  ;;  %v3238_v7 = vmul.f32 %v1380_v40, %v2819_v1 }
 0x153   : > { %v4454_v22 = vstv %s4448_s0  ;;  %v4456_v42 = vstv %s4449_s1  ;;  %v4459_v26 = vstv %s4450_s13  ;;  %v4462_v45 = vstv %s4451_s23  ;;  %v636_v39 = vpop.permute.xlu1 %635  ;;  %s4475_s0 = sld [smem:[#allocation33_spill]] }
 0x154   : > { %4452 = vst [vmem:[#allocation118_spill] sm:$0xff] %v3235_v43  ;;  %4453 = vst [vmem:[#allocation119_spill] sm:$0xff] %v3238_v7  ;;  %v529_v10 = vmul.f32 %v4454_v22, %v525_v19  ;;  %v4455_v63 = vmov %v4454_v22  ;;  %v535_v35 = vmul.f32 %v4456_v42, %v525_v19  ;;  %v4457_v28 = vmov %v4456_v42  ;;  %s4476_s1 = sld [smem:[#allocation34_spill]] }
 0x155   : > { %v530_v34 = vmul.f32 %v4455_v63, %v526_v9  ;;  %v536_v25 = vmul.f32 %v4457_v28, %v526_v9  ;;  %v541_v31 = vmul.f32 %v4459_v26, %v525_v19  ;;  %v4460_v23 = vmov %v4459_v26  ;;  %s4477_s13 = sld [smem:[#allocation35_spill]] }
 0x156   : > { %v542_v4 = vmul.f32 %v4460_v23, %v526_v9  ;;  %v547_v62 = vmul.f32 %v4462_v45, %v525_v19  ;;  %v4463_v40 = vmov %v4462_v45  ;;  %v531_v12 = vadd.f32 %v529_v10, %v490_v57  ;;  %s4482_s23 = sld [smem:[#allocation36_spill]] }
 0x157   : > { %v548_v44 = vmul.f32 %v4463_v40, %v526_v9  ;;  %v532_v20 = vadd.f32 %v530_v34, %v491_v2  ;;  %v537_v53 = vadd.f32 %v535_v35, %v496_v13  ;;  %v538_v54 = vadd.f32 %v536_v25, %v497_v58 }
 0x158   : > { %v543_v41 = vadd.f32 %v541_v31, %v502_v61  ;;  %v544_v15 = vadd.f32 %v542_v4, %v503_v55  ;;  %v549_v22 = vadd.f32 %v547_v62, %v508_v14  ;;  %v4466_v42 = vstv %s4458_s3  ;;  %v677_v61 = vpop.permute.xlu1 %676  ;;  %v675_v55 = vpop.permute.xlu0 %674  ;;  %s4485_s3 = sld [smem:[#allocation37_spill]] }
 0x159   : > { %v550_v63 = vadd.f32 %v548_v44, %v509_v6  ;;  %v570_v28 = vmul.f32 %v4466_v42, %v566_v21  ;;  %v4467_v26 = vmov %v4466_v42  ;;  %v4468_v23 = vstv %s4461_s6  ;;  %s4488_s6 = sld [smem:[#allocation38_spill]] }
 0x15a   : > { %v571_v19 = vmul.f32 %v4467_v26, %v567_v32  ;;  %v576_v45 = vmul.f32 %v4468_v23, %v566_v21  ;;  %v4469_v9 = vmov %v4468_v23  ;;  %v4470_v43 = vstv %s4464_s29  ;;  %s4489_s29 = sld [smem:[#allocation39_spill]] }
 0x15b   : > { %v577_v40 = vmul.f32 %v4469_v9, %v567_v32  ;;  %v582_v7 = vmul.f32 %v4470_v43, %v566_v21  ;;  %v4471_v1 = vmov %v4470_v43  ;;  %v4472_v57 = vstv %s4465_s27  ;;  %s4498_s27 = sld [smem:[#allocation40_spill]] }
 0x15c   : > { %v583_v5 = vmul.f32 %v4471_v1, %v567_v32  ;;  %v588_v2 = vmul.f32 %v4472_v57, %v566_v21  ;;  %v4473_v13 = vmov %v4472_v57  ;;  %v572_v14 = vadd.f32 %v570_v28, %v531_v12  ;;  %v718_v44 = vpop.permute.xlu1 %717  ;;  %v716_v12 = vpop.permute.xlu0 %715 }
 0x15d   : > { %v589_v58 = vmul.f32 %v4473_v13, %v567_v32  ;;  %v573_v6 = vadd.f32 %v571_v19, %v532_v20  ;;  %v578_v10 = vadd.f32 %v576_v45, %v537_v53  ;;  %v579_v34 = vadd.f32 %v577_v40, %v538_v54 }
 0x15e   : > { %v584_v35 = vadd.f32 %v582_v7, %v543_v41  ;;  %v585_v25 = vadd.f32 %v583_v5, %v544_v15  ;;  %v590_v31 = vadd.f32 %v588_v2, %v549_v22  ;;  %v607_v1 = vmul.f32 %v2873_v24, %v597_v37 }
 0x15f   : > { %v591_v43 = vadd.f32 %v589_v58, %v550_v63  ;;  %v608_v21 = vmul.f32 %v2880_v27, %v598_v38  ;;  %v638_v32 = vsel %vm637_vm13, %v634_v8, %v636_v39  ;;  %v639_v5 = vsel %vm637_vm13, %v636_v39, %v634_v8 }
 0x160   : > { %v648_v7 = vmul.f32 %v2883_v11, %v638_v32  ;;  %v649_v4 = vmul.f32 %v2894_v29, %v639_v5  ;;  %v679_v62 = vsel %vm678_vm14, %v675_v55, %v677_v61  ;;  %v680_v37 = vsel %vm678_vm14, %v677_v61, %v675_v55  ;;  %v800_v32 = vpop.permute.xlu1 %799  ;;  %v798_v5 = vpop.permute.xlu0 %797 }
 0x161   : > { %v4478_v38 = vstv %s4474_s17  ;;  %v4480_v41 = vstv %s4475_s0  ;;  %v4483_v8 = vstv %s4476_s1  ;;  %v4486_v26 = vstv %s4477_s13  ;;  %s4499_s17 = sld [smem:[#allocation41_spill]] }
 0x162   : > { %v611_v20 = vmul.f32 %v4478_v38, %v607_v1  ;;  %v4479_v53 = vmov %v4478_v38  ;;  %v617_v15 = vmul.f32 %v4480_v41, %v607_v1  ;;  %v4481_v22 = vmov %v4480_v41  ;;  %s4500_s0 = sld [smem:[#allocation42_spill]] }
 0x163   : > { %v612_v54 = vmul.f32 %v4479_v53, %v608_v21  ;;  %v618_v39 = vmul.f32 %v4481_v22, %v608_v21  ;;  %v623_v63 = vmul.f32 %v4483_v8, %v607_v1  ;;  %v4484_v42 = vmov %v4483_v8  ;;  %s4501_s1 = sld [smem:[#allocation43_spill]] }
 0x164   : > { %v624_v28 = vmul.f32 %v4484_v42, %v608_v21  ;;  %v629_v19 = vmul.f32 %v4486_v26, %v607_v1  ;;  %v4487_v23 = vmov %v4486_v26  ;;  %v613_v9 = vadd.f32 %v611_v20, %v572_v14  ;;  %s4506_s13 = sld [smem:[#allocation44_spill]] }
 0x165   : > { %v630_v45 = vmul.f32 %v4487_v23, %v608_v21  ;;  %v614_v40 = vadd.f32 %v612_v54, %v573_v6  ;;  %v619_v57 = vadd.f32 %v617_v15, %v578_v10  ;;  %v620_v2 = vadd.f32 %v618_v39, %v579_v34  ;;  %v832_v23 = vpop.permute.xlu1 %831 }
 0x166   : > { %v625_v13 = vadd.f32 %v623_v63, %v584_v35  ;;  %v626_v58 = vadd.f32 %v624_v28, %v585_v25  ;;  %v631_v61 = vadd.f32 %v629_v19, %v590_v31  ;;  %v4490_v38 = vstv %s4482_s23  ;;  %s4509_s23 = sld [smem:[#allocation45_spill]] }
 0x167   : > { %v632_v55 = vadd.f32 %v630_v45, %v591_v43  ;;  %v652_v53 = vmul.f32 %v4490_v38, %v648_v7  ;;  %v4491_v41 = vmov %v4490_v38  ;;  %v4492_v22 = vstv %s4485_s3  ;;  %v830_v45 = vpop.permute.xlu0 %829  ;;  %s4512_s3 = sld [smem:[#allocation46_spill]] }
 0x168   : > { %v653_v1 = vmul.f32 %v4491_v41, %v649_v4  ;;  %v658_v8 = vmul.f32 %v4492_v22, %v648_v7  ;;  %v4493_v21 = vmov %v4492_v22  ;;  %v4494_v14 = vstv %s4488_s6  ;;  %s4513_s6 = sld [smem:[#allocation47_spill]] }
 0x169   : > { %v659_v42 = vmul.f32 %v4493_v21, %v649_v4  ;;  %v664_v20 = vmul.f32 %v4494_v14, %v648_v7  ;;  %v4495_v6 = vmov %v4494_v14  ;;  %v4496_v10 = vstv %s4489_s29  ;;  %s4522_s29 = sld [smem:[#allocation52_spill]] }
 0x16a   : > { %v665_v54 = vmul.f32 %v4495_v6, %v649_v4  ;;  %v670_v34 = vmul.f32 %v4496_v10, %v648_v7  ;;  %v4497_v35 = vmov %v4496_v10  ;;  %v654_v31 = vadd.f32 %v652_v53, %v613_v9 }
 0x16b   : > { %v671_v25 = vmul.f32 %v4497_v35, %v649_v4  ;;  %v655_v43 = vadd.f32 %v653_v1, %v614_v40  ;;  %v660_v15 = vadd.f32 %v658_v8, %v619_v57  ;;  %v661_v39 = vadd.f32 %v659_v42, %v620_v2 }
 0x16c   : > { %v666_v63 = vadd.f32 %v664_v20, %v625_v13  ;;  %v667_v28 = vadd.f32 %v665_v54, %v626_v58  ;;  %v672_v26 = vadd.f32 %v670_v34, %v631_v61  ;;  %v689_v7 = vmul.f32 %v2902_v33, %v679_v62  ;;  %v862_v20 = vpop.permute.xlu0 %861 }
 0x16d   : > { %v673_v19 = vadd.f32 %v671_v25, %v632_v55  ;;  %v690_v4 = vmul.f32 %v2905_v36, %v680_v37  ;;  %v720_v9 = vsel %vm719_vm15, %v716_v12, %v718_v44  ;;  %v721_v40 = vsel %vm719_vm15, %v718_v44, %v716_v12 }
 0x16e   : > { %v730_v57 = vmul.f32 %v2928_v50, %v720_v9  ;;  %v731_v2 = vmul.f32 %v2931_v51, %v721_v40  ;;  %v801_v13 = vsel %vm432_vm9, %v798_v5, %v800_v32  ;;  %v802_v58 = vsel %vm432_vm9, %v800_v32, %v798_v5  ;;  %v864_v5 = vpop.permute.xlu1 %863 }
 0x16f   : > { %v4502_v61 = vstv %s4498_s27  ;;  %v4504_v38 = vstv %s4499_s17  ;;  %v4507_v44 = vstv %s4500_s0  ;;  %v4510_v21 = vstv %s4501_s1  ;;  %s4523_s27 = sld [smem:[#allocation53_spill]] }
 0x170   : > { %v693_v62 = vmul.f32 %v4502_v61, %v689_v7  ;;  %v4503_v55 = vmov %v4502_v61  ;;  %v699_v53 = vmul.f32 %v4504_v38, %v689_v7  ;;  %v4505_v41 = vmov %v4504_v38  ;;  %s4524_s17 = sld [smem:[#allocation54_spill]] }
 0x171   : > { %v694_v37 = vmul.f32 %v4503_v55, %v690_v4  ;;  %v700_v1 = vmul.f32 %v4505_v41, %v690_v4  ;;  %v705_v12 = vmul.f32 %v4507_v44, %v689_v7  ;;  %v4508_v22 = vmov %v4507_v44  ;;  %s4525_s0 = sld [smem:[#allocation55_spill]] }
 0x172   : > { %v706_v8 = vmul.f32 %v4508_v22, %v690_v4  ;;  %v711_v42 = vmul.f32 %v4510_v21, %v689_v7  ;;  %v4511_v14 = vmov %v4510_v21  ;;  %v695_v6 = vadd.f32 %v693_v62, %v654_v31  ;;  %s4533_s1 = sld [smem:[#allocation56_spill]] }
 0x173   : > { %v712_v32 = vmul.f32 %v4511_v14, %v690_v4  ;;  %v696_v54 = vadd.f32 %v694_v37, %v655_v43  ;;  %v701_v10 = vadd.f32 %v699_v53, %v660_v15  ;;  %v702_v34 = vadd.f32 %v700_v1, %v661_v39 }
 0x174   : > { %v707_v35 = vadd.f32 %v705_v12, %v666_v63  ;;  %v708_v25 = vadd.f32 %v706_v8, %v667_v28  ;;  %v713_v9 = vadd.f32 %v711_v42, %v672_v26  ;;  %v4514_v61 = vstv %s4506_s13  ;;  %v3361_v63 = vpop.permute.xlu1 %895  ;;  %v3363_v28 = vpop.permute.xlu0 %893  ;;  %s4536_s13 = sld [smem:[#allocation57_spill]] }
 0x175   : > { %v714_v40 = vadd.f32 %v712_v32, %v673_v19  ;;  %v734_v55 = vmul.f32 %v4514_v61, %v730_v57  ;;  %v4515_v38 = vmov %v4514_v61  ;;  %v4516_v41 = vstv %s4509_s23  ;;  %s4539_s23 = sld [smem:[#allocation58_spill]] }
 0x176   : > { %v735_v7 = vmul.f32 %v4515_v38, %v731_v2  ;;  %v740_v44 = vmul.f32 %v4516_v41, %v730_v57  ;;  %v4517_v4 = vmov %v4516_v41  ;;  %v4518_v21 = vstv %s4512_s3  ;;  %s4540_s3 = sld [smem:[#allocation59_spill]] }
 0x177   : > { %v741_v22 = vmul.f32 %v4517_v4, %v731_v2  ;;  %v746_v14 = vmul.f32 %v4518_v21, %v730_v57  ;;  %v4519_v51 = vmov %v4518_v21  ;;  %v4520_v31 = vstv %s4513_s6  ;;  %s4549_s6 = sld [smem:[#allocation60_spill]] }
 0x178   : > { %v747_v50 = vmul.f32 %v4519_v51, %v731_v2  ;;  %v752_v43 = vmul.f32 %v4520_v31, %v730_v57  ;;  %v4521_v15 = vmov %v4520_v31  ;;  %v736_v26 = vadd.f32 %v734_v55, %v695_v6 }
 0x179   : > { %v753_v39 = vmul.f32 %v4521_v15, %v731_v2  ;;  %v737_v19 = vadd.f32 %v735_v7, %v696_v54  ;;  %v742_v62 = vadd.f32 %v740_v44, %v701_v10  ;;  %v743_v37 = vadd.f32 %v741_v22, %v702_v34  ;;  %v4527_v34 = vld [vmem:[#allocation85_spill] sm:$0xff] }
 0x17a   : > { %v748_v53 = vadd.f32 %v746_v14, %v707_v35  ;;  %v749_v1 = vadd.f32 %v747_v50, %v708_v25  ;;  %v754_v12 = vadd.f32 %v752_v43, %v713_v9  ;;  %v777_v57 = vadd.f32 %v2960_v48, %v736_v26  ;;  %v4528_v35 = vld [vmem:[#allocation86_spill] sm:$0xff] }
 0x17b   : > { %v755_v8 = vadd.f32 %v753_v39, %v714_v40  ;;  %v778_v42 = vadd.f32 %v2963_v30, %v737_v19  ;;  %v784_v51 = vadd.f32 %v2971_v47, %v743_v37  ;;  %v783_v2 = vadd.f32 %v2968_v18, %v742_v62  ;;  %v928_v30 = vpop.permute.xlu1 %927  ;;  %v926_v47 = vpop.permute.xlu0 %925  ;;  %v4526_v18 = vld [vmem:[#allocation87_spill] sm:$0xff] }
 0x17c   : > { %v790_v32 = vadd.f32 %v2997_v49, %v749_v1  ;;  %v789_v50 = vadd.f32 %v2994_v0, %v748_v53  ;;  %v795_v54 = vadd.f32 %v3026_v3, %v754_v12  ;;  %v803_v48 = vmul.f32 %v802_v58, %v2792_v56 }
 0x17d   : > { %v796_v6 = vadd.f32 %v3029_v46, %v755_v8  ;;  %v804_v10 = vmul.f32 %v801_v13, %v4526_v18  ;;  %v833_v49 = vsel %vm473_vm8, %v830_v45, %v832_v23  ;;  %v834_v46 = vsel %vm473_vm8, %v832_v23, %v830_v45 }
 0x17e   : > { %v835_v0 = vmul.f32 %v834_v46, %v4527_v34  ;;  %v836_v25 = vmul.f32 %v833_v49, %v4528_v35  ;;  %v865_v3 = vsel %vm514_vm10, %v862_v20, %v864_v5  ;;  %v866_v9 = vsel %vm514_vm10, %v864_v5, %v862_v20 }
 0x17f   : > { %v4529_v40 = vstv %s4522_s29  ;;  %v4531_v55 = vstv %s4523_s27  ;;  %v4534_v23 = vstv %s4524_s17  ;;  %v4537_v22 = vstv %s4525_s0  ;;  %v3401_v39 = vpop.permute.xlu1 %959  ;;  %v3403_v26 = vpop.permute.xlu0 %957  ;;  %s4550_s29 = sld [smem:[#allocation61_spill]] }
 0x180   : > { %v807_v58 = vmul.f32 %v4529_v40, %v803_v48  ;;  %v4530_v61 = vmov %v4529_v40  ;;  %v813_v38 = vmul.f32 %v4531_v55, %v803_v48  ;;  %v4532_v7 = vmov %v4531_v55  ;;  %s4551_s27 = sld [smem:[#allocation62_spill]] }
 0x181   : > { %v808_v13 = vmul.f32 %v4530_v61, %v804_v10  ;;  %v814_v41 = vmul.f32 %v4532_v7, %v804_v10  ;;  %v819_v45 = vmul.f32 %v4534_v23, %v803_v48  ;;  %v4535_v44 = vmov %v4534_v23  ;;  %s4552_s17 = sld [smem:[#allocation63_spill]] }
 0x182   : > { %v820_v4 = vmul.f32 %v4535_v44, %v804_v10  ;;  %v825_v21 = vmul.f32 %v4537_v22, %v803_v48  ;;  %v4538_v14 = vmov %v4537_v22  ;;  %v809_v20 = vadd.f32 %v807_v58, %v777_v57  ;;  %s4555_s0 = sld [smem:[#allocation64_spill]] }
 0x183   : > { %v826_v5 = vmul.f32 %v4538_v14, %v804_v10  ;;  %v810_v31 = vadd.f32 %v808_v13, %v778_v42  ;;  %v815_v43 = vadd.f32 %v813_v38, %v783_v2  ;;  %v816_v15 = vadd.f32 %v814_v41, %v784_v51  ;;  %v990_v22 = vpop.permute.xlu0 %989 }
 0x184   : > { %v821_v19 = vadd.f32 %v819_v45, %v789_v50  ;;  %v822_v62 = vadd.f32 %v820_v4, %v790_v32  ;;  %v827_v37 = vadd.f32 %v825_v21, %v795_v54  ;;  %v4541_v1 = vstv %s4533_s1  ;;  %v992_v4 = vpop.permute.xlu1 %991  ;;  %s4558_s1 = sld [smem:[#allocation65_spill]] }
 0x185   : > { %v828_v53 = vadd.f32 %v826_v5, %v796_v6  ;;  %v839_v12 = vmul.f32 %v4541_v1, %v835_v0  ;;  %v4542_v8 = vmov %v4541_v1  ;;  %v4543_v10 = vstv %s4536_s13  ;;  %s4563_s13 = sld [smem:[#allocation66_spill]] }
 0x186   : > { %v840_v48 = vmul.f32 %v4542_v8, %v836_v25  ;;  %v845_v49 = vmul.f32 %v4543_v10, %v835_v0  ;;  %v4544_v57 = vmov %v4543_v10  ;;  %v4545_v42 = vstv %s4539_s23  ;;  %s4564_s23 = sld [smem:[#allocation67_spill]] }
 0x187   : > { %v846_v46 = vmul.f32 %v4544_v57, %v836_v25  ;;  %v851_v40 = vmul.f32 %v4545_v42, %v835_v0  ;;  %v4546_v2 = vmov %v4545_v42  ;;  %v4547_v58 = vstv %s4540_s3  ;;  %s4573_s3 = sld [smem:[#allocation68_spill]] }
 0x188   : > { %v852_v51 = vmul.f32 %v4546_v2, %v836_v25  ;;  %v857_v61 = vmul.f32 %v4547_v58, %v835_v0  ;;  %v4548_v13 = vmov %v4547_v58  ;;  %v841_v50 = vadd.f32 %v839_v12, %v809_v20 }
 0x189   : > { %v858_v55 = vmul.f32 %v4548_v13, %v836_v25  ;;  %v842_v32 = vadd.f32 %v840_v48, %v810_v31  ;;  %v847_v54 = vadd.f32 %v845_v49, %v815_v43  ;;  %v848_v6 = vadd.f32 %v846_v46, %v816_v15 }
 0x18a   : > { %v853_v38 = vadd.f32 %v851_v40, %v821_v19  ;;  %v854_v7 = vadd.f32 %v852_v51, %v822_v62  ;;  %v859_v41 = vadd.f32 %v857_v61, %v827_v37  ;;  %v867_v45 = vmul.f32 %v866_v9, %v2805_v59 }
 0x18b   : > { %v860_v23 = vadd.f32 %v858_v55, %v828_v53  ;;  %v868_v0 = vmul.f32 %v865_v3, %v2808_v60  ;;  %v897_v25 = vsel %vm555_vm11, %v3363_v28, %v3361_v63  ;;  %v898_v44 = vsel %vm555_vm11, %v3361_v63, %v3363_v28 }
 0x18c   : > { %v899_v21 = vmul.f32 %v898_v44, %v2855_v16  ;;  %v900_v9 = vmul.f32 %v897_v25, %v2858_v17  ;;  %v929_v3 = vsel %vm596_vm12, %v926_v47, %v928_v30  ;;  %v930_v14 = vsel %vm596_vm12, %v928_v30, %v926_v47 }
 0x18d   : > { %v4553_v5 = vstv %s4549_s6  ;;  %v4556_v15 = vstv %s4550_s29  ;;  %v4559_v62 = vstv %s4551_s27  ;;  %v4561_v12 = vstv %s4552_s17  ;;  %s4574_s6 = sld [smem:[#allocation69_spill]] }
 0x18e   : > { %v871_v20 = vmul.f32 %v4553_v5, %v867_v45  ;;  %v4554_v31 = vmov %v4553_v5  ;;  %v877_v63 = vmul.f32 %v4556_v15, %v867_v45  ;;  %v4557_v28 = vmov %v4556_v15  ;;  %v1022_v5 = vpop.permute.xlu0 %1021  ;;  %s4575_s29 = sld [smem:[#allocation70_spill]] }
 0x18f   : > { %v872_v43 = vmul.f32 %v4554_v31, %v868_v0  ;;  %v878_v19 = vmul.f32 %v4557_v28, %v868_v0  ;;  %v883_v37 = vmul.f32 %v4559_v62, %v867_v45  ;;  %v4560_v53 = vmov %v4559_v62  ;;  %s4576_s27 = sld [smem:[#allocation71_spill]] }
 0x190   : > { %v884_v1 = vmul.f32 %v4560_v53, %v868_v0  ;;  %v889_v8 = vmul.f32 %v4561_v12, %v867_v45  ;;  %v4562_v48 = vmov %v4561_v12  ;;  %v873_v47 = vadd.f32 %v871_v20, %v841_v50  ;;  %s4581_s17 = sld [smem:[#allocation72_spill]] }
 0x191   : > { %v890_v30 = vmul.f32 %v4562_v48, %v868_v0  ;;  %v874_v10 = vadd.f32 %v872_v43, %v842_v32  ;;  %v879_v49 = vadd.f32 %v877_v63, %v847_v54  ;;  %v880_v57 = vadd.f32 %v878_v19, %v848_v6  ;;  %v1024_v0 = vpop.permute.xlu1 %1023 }
 0x192   : > { %v885_v46 = vadd.f32 %v883_v37, %v853_v38  ;;  %v886_v42 = vadd.f32 %v884_v1, %v854_v7  ;;  %v891_v40 = vadd.f32 %v889_v8, %v859_v41  ;;  %v4565_v51 = vstv %s4555_s0  ;;  %s4582_s0 = sld [smem:[#allocation73_spill]] }
 0x193   : > { %v892_v2 = vadd.f32 %v890_v30, %v860_v23  ;;  %v903_v58 = vmul.f32 %v4565_v51, %v899_v21  ;;  %v4566_v61 = vmov %v4565_v51  ;;  %v4567_v55 = vstv %s4558_s1  ;;  %s4585_s1 = sld [smem:[#allocation74_spill]] }
 0x194   : > { %v904_v13 = vmul.f32 %v4566_v61, %v900_v9  ;;  %v909_v45 = vmul.f32 %v4567_v55, %v899_v21  ;;  %v4568_v25 = vmov %v4567_v55  ;;  %v4569_v50 = vstv %s4563_s13  ;;  %s4588_s13 = sld [smem:[#allocation75_spill]] }
 0x195   : > { %v910_v44 = vmul.f32 %v4568_v25, %v900_v9  ;;  %v915_v20 = vmul.f32 %v4569_v50, %v899_v21  ;;  %v4570_v32 = vmov %v4569_v50  ;;  %v4571_v54 = vstv %s4564_s23  ;;  %s4597_s23 = sld [smem:[#allocation76_spill]] }
 0x196   : > { %v916_v31 = vmul.f32 %v4570_v32, %v900_v9  ;;  %v921_v6 = vmul.f32 %v4571_v54, %v899_v21  ;;  %v4572_v38 = vmov %v4571_v54  ;;  %v905_v41 = vadd.f32 %v903_v58, %v873_v47 }
 0x197   : > { %v922_v7 = vmul.f32 %v4572_v38, %v900_v9  ;;  %v906_v23 = vadd.f32 %v904_v13, %v874_v10  ;;  %v911_v43 = vadd.f32 %v909_v45, %v879_v49  ;;  %v912_v15 = vadd.f32 %v910_v44, %v880_v57 }
 0x198   : > { %v917_v63 = vadd.f32 %v915_v20, %v885_v46  ;;  %v918_v28 = vadd.f32 %v916_v31, %v886_v42  ;;  %v923_v19 = vadd.f32 %v921_v6, %v891_v40  ;;  %v931_v37 = vmul.f32 %v929_v3, %v2873_v24 }
 0x199   : > { %v924_v62 = vadd.f32 %v922_v7, %v892_v2  ;;  %v932_v21 = vmul.f32 %v930_v14, %v2880_v27  ;;  %v961_v9 = vsel %vm637_vm13, %v3403_v26, %v3401_v39  ;;  %v962_v53 = vsel %vm637_vm13, %v3401_v39, %v3403_v26  ;;  %v1097_v39 = vpop.permute.xlu1 %1096  ;;  %v1095_v26 = vpop.permute.xlu0 %1094 }
 0x19a   : > { %v963_v1 = vmul.f32 %v961_v9, %v2883_v11  ;;  %v964_v12 = vmul.f32 %v962_v53, %v2894_v29  ;;  %v993_v3 = vsel %vm678_vm14, %v990_v22, %v992_v4  ;;  %v994_v14 = vsel %vm678_vm14, %v992_v4, %v990_v22 }
 0x19b   : > { %v4577_v8 = vstv %s4573_s3  ;;  %v4579_v10 = vstv %s4574_s6  ;;  %v4583_v42 = vstv %s4575_s29  ;;  %v4586_v4 = vstv %s4576_s27  ;;  %s4598_s3 = sld [smem:[#allocation77_spill]] }
 0x19c   : > { %v935_v48 = vmul.f32 %v4577_v8, %v931_v37  ;;  %v4578_v30 = vmov %v4577_v8  ;;  %v941_v49 = vmul.f32 %v4579_v10, %v931_v37  ;;  %v4580_v57 = vmov %v4579_v10  ;;  %s4599_s6 = sld [smem:[#allocation78_spill]] }
 0x19d   : > { %v936_v47 = vmul.f32 %v4578_v30, %v932_v21  ;;  %v942_v46 = vmul.f32 %v4580_v57, %v932_v21  ;;  %v947_v40 = vmul.f32 %v4583_v42, %v931_v37  ;;  %v4584_v2 = vmov %v4583_v42  ;;  %s4600_s29 = sld [smem:[#allocation80_spill]] }
 0x19e   : > { %v948_v51 = vmul.f32 %v4584_v2, %v932_v21  ;;  %v953_v22 = vmul.f32 %v4586_v4, %v931_v37  ;;  %v4587_v58 = vmov %v4586_v4  ;;  %v937_v13 = vadd.f32 %v935_v48, %v905_v41  ;;  %v1129_v48 = vpop.permute.xlu1 %1128  ;;  %s4607_s27 = sld [smem:[#allocation81_spill]] }
 0x19f   : > { %v954_v61 = vmul.f32 %v4587_v58, %v932_v21  ;;  %v938_v55 = vadd.f32 %v936_v47, %v906_v23  ;;  %v943_v45 = vadd.f32 %v941_v49, %v911_v43  ;;  %v944_v25 = vadd.f32 %v942_v46, %v912_v15  ;;  %v1127_v47 = vpop.permute.xlu0 %1126 }
 0x1a0   : > { %v949_v44 = vadd.f32 %v947_v40, %v917_v63  ;;  %v950_v50 = vadd.f32 %v948_v51, %v918_v28  ;;  %v955_v20 = vadd.f32 %v953_v22, %v923_v19  ;;  %v4589_v31 = vstv %s4581_s17  ;;  %v4601_v51 = vld [vmem:[#allocation102_spill] sm:$0xff]  ;;  %v4602_v22 = vld [vmem:[#allocation103_spill] sm:$0xff]  ;;  %s4610_s17 = sld [smem:[#allocation82_spill]] }
 0x1a1   : > { %v956_v32 = vadd.f32 %v954_v61, %v924_v62  ;;  %v967_v54 = vmul.f32 %v4589_v31, %v963_v1  ;;  %v4590_v6 = vmov %v4589_v31  ;;  %v4591_v7 = vstv %s4582_s0  ;;  %s4613_s0 = sld [smem:[#allocation83_spill]] }
 0x1a2   : > { %v968_v38 = vmul.f32 %v4590_v6, %v964_v12  ;;  %v973_v9 = vmul.f32 %v4591_v7, %v963_v1  ;;  %v4592_v53 = vmov %v4591_v7  ;;  %v4593_v8 = vstv %s4585_s1  ;;  %s4614_s1 = sld [smem:[#allocation84_spill]] }
 0x1a3   : > { %v974_v37 = vmul.f32 %v4592_v53, %v964_v12  ;;  %v979_v30 = vmul.f32 %v4593_v8, %v963_v1  ;;  %v4594_v21 = vmov %v4593_v8  ;;  %v4595_v41 = vstv %s4588_s13  ;;  %v1159_v8 = vpop.permute.xlu0 %1158  ;;  %s4629_s13 = sld [smem:[#allocation90_spill]] }
 0x1a4   : > { %v980_v10 = vmul.f32 %v4594_v21, %v964_v12  ;;  %v985_v23 = vmul.f32 %v4595_v41, %v963_v1  ;;  %v4596_v43 = vmov %v4595_v41  ;;  %v969_v63 = vadd.f32 %v967_v54, %v937_v13 }
 0x1a5   : > { %v986_v15 = vmul.f32 %v4596_v43, %v964_v12  ;;  %v970_v28 = vadd.f32 %v968_v38, %v938_v55  ;;  %v975_v19 = vadd.f32 %v973_v9, %v943_v45  ;;  %v976_v62 = vadd.f32 %v974_v37, %v944_v25  ;;  %v1161_v37 = vpop.permute.xlu1 %1160 }
 0x1a6   : > { %v981_v49 = vadd.f32 %v979_v30, %v949_v44  ;;  %v982_v57 = vadd.f32 %v980_v10, %v950_v50  ;;  %v987_v46 = vadd.f32 %v985_v23, %v955_v20  ;;  %v995_v1 = vmul.f32 %v993_v3, %v2902_v33 }
 0x1a7   : > { %v988_v42 = vadd.f32 %v986_v15, %v956_v32  ;;  %v996_v12 = vmul.f32 %v994_v14, %v2905_v36  ;;  %v1025_v40 = vsel %vm719_vm15, %v1022_v5, %v1024_v0  ;;  %v1026_v2 = vsel %vm719_vm15, %v1024_v0, %v1022_v5 }
 0x1a8   : > { %v1027_v4 = vmul.f32 %v1025_v40, %v4601_v51  ;;  %v1028_v58 = vmul.f32 %v1026_v2, %v4602_v22  ;;  %v1098_v61 = vsel %vm432_vm9, %v1095_v26, %v1097_v39  ;;  %v1099_v13 = vsel %vm432_vm9, %v1097_v39, %v1095_v26 }
 0x1a9   : > { %v4603_v55 = vstv %s4597_s23  ;;  %v4605_v25 = vstv %s4598_s3  ;;  %v4608_v0 = vstv %s4599_s6  ;;  %v4611_v54 = vstv %s4600_s29  ;;  %s4632_s23 = sld [smem:[#allocation92_spill]] }
 0x1aa   : > { %v999_v3 = vmul.f32 %v4603_v55, %v995_v1  ;;  %v4604_v45 = vmov %v4603_v55  ;;  %v1005_v44 = vmul.f32 %v4605_v25, %v995_v1  ;;  %v4606_v50 = vmov %v4605_v25  ;;  %s3797_s3 = sld [smem:[#allocation2 + $0x42]] }
 0x1ab   : > { %v1000_v14 = vmul.f32 %v4604_v45, %v996_v12  ;;  %v1006_v20 = vmul.f32 %v4606_v50, %v996_v12  ;;  %v1011_v5 = vmul.f32 %v4608_v0, %v995_v1  ;;  %v4609_v32 = vmov %v4608_v0  ;;  %s3809_s6 = sld [smem:[#allocation2 + $0x66]] }
 0x1ac   : > { %v1012_v31 = vmul.f32 %v4609_v32, %v996_v12  ;;  %v1017_v6 = vmul.f32 %v4611_v54, %v995_v1  ;;  %v4612_v38 = vmov %v4611_v54  ;;  %v1001_v26 = vadd.f32 %v999_v3, %v969_v63  ;;  %s3811_s29 = sld [smem:[#allocation2 + $0x8a]] }
 0x1ad   : > { %v1018_v39 = vmul.f32 %v4612_v38, %v996_v12  ;;  %v1002_v7 = vadd.f32 %v1000_v14, %v970_v28  ;;  %v1007_v9 = vadd.f32 %v1005_v44, %v975_v19  ;;  %v1008_v53 = vadd.f32 %v1006_v20, %v976_v62 }
 0x1ae   : > { %v1013_v30 = vadd.f32 %v1011_v5, %v981_v49  ;;  %v1014_v21 = vadd.f32 %v1012_v31, %v982_v57  ;;  %v1019_v10 = vadd.f32 %v1017_v6, %v987_v46  ;;  %v4615_v23 = vstv %s4607_s27  ;;  %v4623_v5 = vld [vmem:[#allocation107_spill] sm:$0xff]  ;;  %v4624_v31 = vld [vmem:[#allocation109_spill] sm:$0xff]  ;;  %v4625_v6 = vld [vmem:[#allocation106_spill] sm:$0xff]  ;;  %s3813_s27 = sld [smem:[#allocation2 + $0x20]] }
 0x1af   : > { %v1020_v41 = vadd.f32 %v1018_v39, %v988_v42  ;;  %v1031_v43 = vmul.f32 %v4615_v23, %v1027_v4  ;;  %v4616_v15 = vmov %v4615_v23  ;;  %v4617_v40 = vstv %s4610_s17  ;;  %v4626_v39 = vld [vmem:[#allocation108_spill] sm:$0xff]  ;;  %s3815_s17 = sld [smem:[#allocation2 + $0x44]] }
 0x1b0   : > { %v1032_v1 = vmul.f32 %v4616_v15, %v1028_v58  ;;  %v1037_v2 = vmul.f32 %v4617_v40, %v1027_v4  ;;  %v4618_v12 = vmov %v4617_v40  ;;  %v4619_v63 = vstv %s4613_s0  ;;  %s3827_s0 = sld [smem:[#allocation2 + $0x68]] }
 0x1b1   : > { %v1038_v55 = vmul.f32 %v4618_v12, %v1028_v58  ;;  %v1043_v3 = vmul.f32 %v4619_v63, %v1027_v4  ;;  %v4620_v28 = vmov %v4619_v63  ;;  %v4621_v19 = vstv %s4614_s1  ;;  %s3829_s1 = sld [smem:[#allocation2 + $0x8c]] }
 0x1b2   : > { %v1044_v45 = vmul.f32 %v4620_v28, %v1028_v58  ;;  %v1049_v62 = vmul.f32 %v4621_v19, %v1027_v4  ;;  %v4622_v14 = vmov %v4621_v19  ;;  %v1033_v49 = vadd.f32 %v1031_v43, %v1001_v26  ;;  %v1193_v4 = vpop.permute.xlu1 %1192  ;;  %v4627_v26 = vld [vmem:[#allocation111_spill] sm:$0xff] }
 0x1b3   : > { %v1050_v25 = vmul.f32 %v4622_v14, %v1028_v58  ;;  %v1034_v57 = vadd.f32 %v1032_v1, %v1002_v7  ;;  %v1039_v46 = vadd.f32 %v1037_v2, %v1007_v9  ;;  %v1040_v42 = vadd.f32 %v1038_v55, %v1008_v53  ;;  %v1191_v58 = vpop.permute.xlu0 %1190  ;;  %v4628_v9 = vld [vmem:[#allocation113_spill] sm:$0xff] }
 0x1b4   : > { %v1045_v44 = vadd.f32 %v1043_v3, %v1013_v30  ;;  %v1046_v50 = vadd.f32 %v1044_v45, %v1014_v21  ;;  %v1051_v20 = vadd.f32 %v1049_v62, %v1019_v10  ;;  %v1074_v38 = vadd.f32 %v4625_v6, %v1033_v49  ;;  %v4630_v30 = vld [vmem:[#allocation110_spill] sm:$0xff]  ;;  %v4631_v10 = vld [vmem:[#allocation112_spill] sm:$0xff] }
 0x1b5   : > { %v1052_v0 = vadd.f32 %v1050_v25, %v1020_v41  ;;  %v1075_v32 = vadd.f32 %v4623_v5, %v1034_v57  ;;  %v1081_v54 = vadd.f32 %v4624_v31, %v1040_v42  ;;  %v1080_v23 = vadd.f32 %v4626_v39, %v1039_v46 }
 0x1b6   : > { %v1087_v7 = vadd.f32 %v4627_v26, %v1046_v50  ;;  %v1086_v21 = vadd.f32 %v4630_v30, %v1045_v44  ;;  %v1092_v41 = vadd.f32 %v4631_v10, %v1051_v20  ;;  %v1100_v43 = vmul.f32 %v1099_v13, %v2792_v56 }
 0x1b7   : > { %v1093_v53 = vadd.f32 %v4628_v9, %v1052_v0  ;;  %v1101_v15 = vmul.f32 %v1098_v61, %v4526_v18  ;;  %v1130_v1 = vsel %vm473_vm8, %v1127_v47, %v1129_v48  ;;  %v1131_v40 = vsel %vm473_vm8, %v1129_v48, %v1127_v47  ;;  %v1225_v0 = vpop.permute.xlu1 %1224  ;;  %v1223_v5 = vpop.permute.xlu0 %1222 }
 0x1b8   : > { %v1132_v2 = vmul.f32 %v1131_v40, %v4527_v34  ;;  %v1133_v12 = vmul.f32 %v1130_v1, %v4528_v35  ;;  %v1162_v55 = vsel %vm514_vm10, %v1159_v8, %v1161_v37  ;;  %v1163_v63 = vsel %vm514_vm10, %v1161_v37, %v1159_v8 }
 0x1b9   : > { %v4633_v3 = vstv %s4390_s7  ;;  %v4635_v45 = vstv %s4392_s4  ;;  %v4637_v48 = vstv %s4629_s13  ;;  %v4639_v57 = vstv %s4632_s23  ;;  %s4649_s4 = sld [smem:[#allocation100_spill]] }
 0x1ba   : > { %v1104_v13 = vmul.f32 %v4633_v3, %v1100_v43  ;;  %v4634_v28 = vmov %v4633_v3  ;;  %v1110_v19 = vmul.f32 %v4635_v45, %v1100_v43  ;;  %v4636_v62 = vmov %v4635_v45  ;;  %s3775_s7 = sld [smem:[#allocation2 + $0x65]] }
 0x1bb   : > { %v1105_v61 = vmul.f32 %v4634_v28, %v1101_v15  ;;  %v1111_v14 = vmul.f32 %v4636_v62, %v1101_v15  ;;  %v1116_v47 = vmul.f32 %v4637_v48, %v1100_v43  ;;  %v4638_v25 = vmov %v4637_v48  ;;  %s3831_s13 = sld [smem:[#allocation2 + $0x21]] }
 0x1bc   : > { %v1117_v49 = vmul.f32 %v4638_v25, %v1101_v15  ;;  %v1122_v46 = vmul.f32 %v4639_v57, %v1100_v43  ;;  %v4640_v42 = vmov %v4639_v57  ;;  %v1106_v8 = vadd.f32 %v1104_v13, %v1074_v38  ;;  %v1255_v57 = vpop.permute.xlu0 %1254  ;;  %s3833_s23 = sld [smem:[#allocation2 + $0x45]] }
 0x1bd   : > { %v1123_v37 = vmul.f32 %v4640_v42, %v1101_v15  ;;  %v1107_v44 = vadd.f32 %v1105_v61, %v1075_v32  ;;  %v1112_v50 = vadd.f32 %v1110_v19, %v1080_v23  ;;  %v1113_v20 = vadd.f32 %v1111_v14, %v1081_v54 }
 0x1be   : > { %v1118_v31 = vadd.f32 %v1116_v47, %v1086_v21  ;;  %v1119_v6 = vadd.f32 %v1117_v49, %v1087_v7  ;;  %v1124_v39 = vadd.f32 %v1122_v46, %v1092_v41  ;;  %v4641_v9 = vstv %s4397_s24  ;;  %v1257_v49 = vpop.permute.xlu1 %1256  ;;  %s3780_s24 = sld [smem:[#allocation2 + $0x89]] }
 0x1bf   : > { %v1125_v26 = vadd.f32 %v1123_v37, %v1093_v53  ;;  %v1136_v30 = vmul.f32 %v4641_v9, %v1132_v2  ;;  %v4642_v10 = vmov %v4641_v9  ;;  %v4643_v1 = vstv %s4400_s22  ;;  %s3759_s22 = sld [smem:[#allocation2 + $0x1d]] }
 0x1c0   : > { %v1137_v43 = vmul.f32 %v4642_v10, %v1133_v12  ;;  %v1142_v40 = vmul.f32 %v4643_v1, %v1132_v2  ;;  %v4644_v15 = vmov %v4643_v1  ;;  %v4645_v38 = vstv %s4401_s12  ;;  %s4650_s12 = sld [smem:[#allocation101_spill]] }
 0x1c1   : > { %v1143_v3 = vmul.f32 %v4644_v15, %v1133_v12  ;;  %v1148_v13 = vmul.f32 %v4645_v38, %v1132_v2  ;;  %v4646_v32 = vmov %v4645_v38  ;;  %v4647_v23 = vstv %s4402_s10  ;;  %s4655_s10 = sld [smem:[#allocation49_spill]] }
 0x1c2   : > { %v1149_v28 = vmul.f32 %v4646_v32, %v1133_v12  ;;  %v1154_v54 = vmul.f32 %v4647_v23, %v1132_v2  ;;  %v4648_v61 = vmov %v4647_v23  ;;  %v1138_v21 = vadd.f32 %v1136_v30, %v1106_v8 }
 0x1c3   : > { %v1155_v45 = vmul.f32 %v4648_v61, %v1133_v12  ;;  %v1139_v7 = vadd.f32 %v1137_v43, %v1107_v44  ;;  %v1144_v41 = vadd.f32 %v1142_v40, %v1112_v50  ;;  %v1145_v53 = vadd.f32 %v1143_v3, %v1113_v20 }
 0x1c4   : > { %v1150_v19 = vadd.f32 %v1148_v13, %v1118_v31  ;;  %v1151_v62 = vadd.f32 %v1149_v28, %v1119_v6  ;;  %v1156_v14 = vadd.f32 %v1154_v54, %v1124_v39  ;;  %v1164_v47 = vmul.f32 %v1163_v63, %v2805_v59 }
 0x1c5   : > { %v1157_v48 = vadd.f32 %v1155_v45, %v1125_v26  ;;  %v1165_v2 = vmul.f32 %v1162_v55, %v2808_v60  ;;  %v1194_v12 = vsel %vm555_vm11, %v1191_v58, %v1193_v4  ;;  %v1195_v25 = vsel %vm555_vm11, %v1193_v4, %v1191_v58 }
 0x1c6   : > { %v1196_v46 = vmul.f32 %v1195_v25, %v2855_v16  ;;  %v1197_v42 = vmul.f32 %v1194_v12, %v2858_v17  ;;  %v1226_v37 = vsel %vm596_vm12, %v1223_v5, %v1225_v0  ;;  %v1227_v63 = vsel %vm596_vm12, %v1225_v0, %v1223_v5 }
 0x1c7   : > { %v4651_v55 = vstv %s4403_s19  ;;  %v4653_v20 = vstv %s4405_s15  ;;  %v4656_v6 = vstv %s4649_s4  ;;  %v4658_v30 = vstv %s4650_s12  ;;  %s4668_s19 = sld [smem:[#allocation105_spill]] }
 0x1c8   : > { %v1168_v8 = vmul.f32 %v4651_v55, %v1164_v47  ;;  %v4652_v44 = vmov %v4651_v55  ;;  %v1174_v4 = vmul.f32 %v4653_v20, %v1164_v47  ;;  %v4654_v58 = vmov %v4653_v20  ;;  %v1287_v55 = vpop.permute.xlu0 %1286  ;;  %s4697_s15 = sld [smem:[#allocation89_spill]] }
 0x1c9   : > { %v1169_v50 = vmul.f32 %v4652_v44, %v1165_v2  ;;  %v1175_v31 = vmul.f32 %v4654_v58, %v1165_v2  ;;  %v1180_v39 = vmul.f32 %v4656_v6, %v1164_v47  ;;  %v4657_v26 = vmov %v4656_v6  ;;  %s3853_s4 = sld [smem:[#allocation2 + $0x69]] }
 0x1ca   : > { %v1181_v9 = vmul.f32 %v4657_v26, %v1165_v2  ;;  %v1186_v10 = vmul.f32 %v4658_v30, %v1164_v47  ;;  %v4659_v43 = vmov %v4658_v30  ;;  %v1170_v5 = vadd.f32 %v1168_v8, %v1138_v21  ;;  %s3855_s12 = sld [smem:[#allocation2 + $0x8d]] }
 0x1cb   : > { %v1187_v0 = vmul.f32 %v4659_v43, %v1165_v2  ;;  %v1171_v1 = vadd.f32 %v1169_v50, %v1139_v7  ;;  %v1176_v40 = vadd.f32 %v1174_v4, %v1144_v41  ;;  %v1177_v15 = vadd.f32 %v1175_v31, %v1145_v53  ;;  %v1289_v2 = vpop.permute.xlu1 %1288 }
 0x1cc   : > { %v1182_v3 = vadd.f32 %v1180_v39, %v1150_v19  ;;  %v1183_v38 = vadd.f32 %v1181_v9, %v1151_v62  ;;  %v1188_v13 = vadd.f32 %v1186_v10, %v1156_v14  ;;  %v4660_v28 = vstv %s4410_s2  ;;  %s3785_s2 = sld [smem:[#allocation2 + $0x1e]] }
 0x1cd   : > { %v1189_v32 = vadd.f32 %v1187_v0, %v1157_v48  ;;  %v1200_v23 = vmul.f32 %v4660_v28, %v1196_v46  ;;  %v4661_v54 = vmov %v4660_v28  ;;  %v4662_v45 = vstv %s4655_s10  ;;  %s3875_s10 = sld [smem:[#allocation2 + $0x46]] }
 0x1ce   : > { %v1201_v61 = vmul.f32 %v4661_v54, %v1197_v42  ;;  %v1206_v47 = vmul.f32 %v4662_v45, %v1196_v46  ;;  %v4663_v12 = vmov %v4662_v45  ;;  %v4664_v21 = vstv %s4412_s25  ;;  %s3703_s25 = sld [smem:[#allocation2 + $0x1b]] }
 0x1cf   : > { %v1207_v25 = vmul.f32 %v4663_v12, %v1197_v42  ;;  %v1212_v8 = vmul.f32 %v4664_v21, %v1196_v46  ;;  %v4665_v7 = vmov %v4664_v21  ;;  %v4666_v41 = vstv %s4413_s14  ;;  %s3707_s14 = sld [smem:[#allocation2 + $0x3f]] }
 0x1d0   : > { %v1213_v44 = vmul.f32 %v4665_v7, %v1197_v42  ;;  %v1218_v53 = vmul.f32 %v4666_v41, %v1196_v46  ;;  %v4667_v19 = vmov %v4666_v41  ;;  %v1202_v14 = vadd.f32 %v1200_v23, %v1170_v5 }
 0x1d1   : > { %v1219_v62 = vmul.f32 %v4667_v19, %v1197_v42  ;;  %v1203_v48 = vadd.f32 %v1201_v61, %v1171_v1  ;;  %v1208_v50 = vadd.f32 %v1206_v47, %v1176_v40  ;;  %v1209_v20 = vadd.f32 %v1207_v25, %v1177_v15 }
 0x1d2   : > { %v1214_v4 = vadd.f32 %v1212_v8, %v1182_v3  ;;  %v1215_v58 = vadd.f32 %v1213_v44, %v1183_v38  ;;  %v1220_v31 = vadd.f32 %v1218_v53, %v1188_v13  ;;  %v1228_v39 = vmul.f32 %v1226_v37, %v2873_v24 }
 0x1d3   : > { %v1221_v6 = vadd.f32 %v1219_v62, %v1189_v32  ;;  %v1229_v46 = vmul.f32 %v1227_v63, %v2880_v27  ;;  %v1258_v42 = vsel %vm637_vm13, %v1255_v57, %v1257_v49  ;;  %v1259_v26 = vsel %vm637_vm13, %v1257_v49, %v1255_v57  ;;  %v1321_v49 = vpop.permute.xlu1 %1320  ;;  %v1319_v57 = vpop.permute.xlu0 %1318 }
 0x1d4   : > { %v1260_v9 = vmul.f32 %v1258_v42, %v2883_v11  ;;  %v1261_v30 = vmul.f32 %v1259_v26, %v2894_v29  ;;  %v1290_v10 = vsel %vm678_vm14, %v1287_v55, %v1289_v2  ;;  %v1291_v37 = vsel %vm678_vm14, %v1289_v2, %v1287_v55 }
 0x1d5   : > { %v4669_v43 = vstv %s4414_s8  ;;  %v4671_v1 = vstv %s4668_s19  ;;  %v4673_v38 = vstv %s2975_s30  ;;  %v4675_v23 = vstv %s2981_s21  ;;  %s4685_s21 = sld [smem:[#allocation88_spill]] }
 0x1d6   : > { %v1232_v0 = vmul.f32 %v4669_v43, %v1228_v39  ;;  %v4670_v63 = vmov %v4669_v43  ;;  %v1238_v40 = vmul.f32 %v4671_v1, %v1228_v39  ;;  %v4672_v15 = vmov %v4671_v1  ;;  %s3715_s30 = sld [smem:[#allocation2 + $0x63]] }
 0x1d7   : > { %v1233_v5 = vmul.f32 %v4670_v63, %v1229_v46  ;;  %v1239_v3 = vmul.f32 %v4672_v15, %v1229_v46  ;;  %v1244_v13 = vmul.f32 %v4673_v38, %v1228_v39  ;;  %v4674_v32 = vmov %v4673_v38  ;;  %s3735_s8 = sld [smem:[#allocation2 + $0x1c]] }
 0x1d8   : > { %v1245_v28 = vmul.f32 %v4674_v32, %v1229_v46  ;;  %v1250_v54 = vmul.f32 %v4675_v23, %v1228_v39  ;;  %v4676_v61 = vmov %v4675_v23  ;;  %v1234_v47 = vadd.f32 %v1232_v0, %v1202_v14  ;;  %v3701_v0 = vpop.permute.xlu1 %1393  ;;  %s3881_s19 = sld [smem:[#allocation2 + $0x47]] }
 0x1d9   : > { %v1251_v45 = vmul.f32 %v4676_v61, %v1229_v46  ;;  %v1235_v12 = vadd.f32 %v1233_v5, %v1203_v48  ;;  %v1240_v25 = vadd.f32 %v1238_v40, %v1208_v50  ;;  %v1241_v2 = vadd.f32 %v1239_v3, %v1209_v20  ;;  %v3705_v5 = vpop.permute.xlu0 %1391 }
 0x1da   : > { %v1246_v55 = vadd.f32 %v1244_v13, %v1214_v4  ;;  %v1247_v21 = vadd.f32 %v1245_v28, %v1215_v58  ;;  %v1252_v8 = vadd.f32 %v1250_v54, %v1220_v31  ;;  %v4677_v44 = vstv %s2987_s9  ;;  %v4686_v54 = vld [vmem:[#allocation93_spill] sm:$0xff]  ;;  %s3725_s9 = sld [smem:[#allocation2 + $0x87]] }
 0x1db   : > { %v1253_v7 = vadd.f32 %v1251_v45, %v1221_v6  ;;  %v1264_v41 = vmul.f32 %v4677_v44, %v1260_v9  ;;  %v4678_v53 = vmov %v4677_v44  ;;  %v4679_v62 = vstv %s3001_s16  ;;  %v4688_v45 = vld [vmem:[#allocation91_spill] sm:$0xff]  ;;  %s3745_s16 = sld [smem:[#allocation2 + $0x40]] }
 0x1dc   : > { %v1265_v19 = vmul.f32 %v4678_v53, %v1261_v30  ;;  %v1270_v42 = vmul.f32 %v4679_v62, %v1260_v9  ;;  %v4680_v26 = vmov %v4679_v62  ;;  %v4681_v43 = vstv %s3007_s5  ;;  %s3769_s5 = sld [smem:[#allocation2 + $0x41]] }
 0x1dd   : > { %v1271_v39 = vmul.f32 %v4680_v26, %v1261_v30  ;;  %v1276_v63 = vmul.f32 %v4681_v43, %v1260_v9  ;;  %v4682_v46 = vmov %v4681_v43  ;;  %v4683_v14 = vstv %s3013_s26  ;;  %s3749_s26 = sld [smem:[#allocation2 + $0x88]] }
 0x1de   : > { %v1277_v1 = vmul.f32 %v4682_v46, %v1261_v30  ;;  %v1282_v48 = vmul.f32 %v4683_v14, %v1260_v9  ;;  %v4684_v50 = vmov %v4683_v14  ;;  %v1266_v4 = vadd.f32 %v1264_v41, %v1234_v47  ;;  %v1424_v14 = vpop.permute.xlu0 %1423 }
 0x1df   : > { %v1283_v20 = vmul.f32 %v4684_v50, %v1261_v30  ;;  %v1267_v58 = vadd.f32 %v1265_v19, %v1235_v12  ;;  %v1272_v31 = vadd.f32 %v1270_v42, %v1240_v25  ;;  %v1273_v6 = vadd.f32 %v1271_v39, %v1241_v2 }
 0x1e0   : > { %v1278_v40 = vadd.f32 %v1276_v63, %v1246_v55  ;;  %v1279_v15 = vadd.f32 %v1277_v1, %v1247_v21  ;;  %v1284_v9 = vadd.f32 %v1282_v48, %v1252_v8  ;;  %v1292_v3 = vmul.f32 %v1290_v10, %v2902_v33  ;;  %v1426_v1 = vpop.permute.xlu1 %1425 }
 0x1e1   : > { %v1285_v30 = vadd.f32 %v1283_v20, %v1253_v7  ;;  %v1293_v38 = vmul.f32 %v1291_v37, %v2905_v36  ;;  %v1322_v13 = vsel %vm719_vm15, %v1319_v57, %v1321_v49  ;;  %v1323_v32 = vsel %vm719_vm15, %v1321_v49, %v1319_v57 }
 0x1e2   : > { %v1324_v28 = vmul.f32 %v1322_v13, %v4601_v51  ;;  %v1325_v23 = vmul.f32 %v1323_v32, %v4602_v22  ;;  %v4687_v61 = vstv %s3115_s11  ;;  %v4690_v12 = vstv %s3019_s20  ;;  %s4699_s11 = sld [smem:[#allocation94_spill]] }
 0x1e3   : > { %v1387_v10 = vmul.f32 %v4687_v61, %v4686_v54  ;;  %v4689_v47 = vmov %v4687_v61  ;;  %v1296_v25 = vmul.f32 %v4690_v12, %v1292_v3  ;;  %v4691_v2 = vmov %v4690_v12  ;;  %s4700_s20 = sld [smem:[#allocation95_spill]] }
 0x1e4   : > { %v1388_v37 = vmul.f32 %v4689_v47, %v4688_v45  ;;  %v1297_v55 = vmul.f32 %v4691_v2, %v1293_v38  ;;  %v4692_v21 = vstv %s3033_s18  ;;  %v4694_v7 = vstv %s3039_s28  ;;  %s4701_s18 = sld [smem:[#allocation96_spill]] }
 0x1e5   : > { %v1302_v49 = vmul.f32 %v4692_v21, %v1292_v3  ;;  %v4693_v57 = vmov %v4692_v21  ;;  %v1308_v44 = vmul.f32 %v4694_v7, %v1292_v3  ;;  %v4695_v41 = vmov %v4694_v7  ;;  %s3747_s28 = sld [smem:[#allocation2 + $0x64]] }
 0x1e6   : > { %v1303_v8 = vmul.f32 %v4693_v57, %v1293_v38  ;;  %v1309_v53 = vmul.f32 %v4695_v41, %v1293_v38  ;;  %v4696_v19 = vstv %s4685_s21  ;;  %v1298_v39 = vadd.f32 %v1296_v25, %v1266_v4  ;;  %s3899_s21 = sld [smem:[#allocation2 + $0x23]] }
 0x1e7   : > { %v1314_v62 = vmul.f32 %v4696_v19, %v1292_v3  ;;  %v4698_v42 = vmov %v4696_v19  ;;  %v1299_v43 = vadd.f32 %v1297_v55, %v1267_v58  ;;  %v1304_v63 = vadd.f32 %v1302_v49, %v1272_v31 }
 0x1e8   : > { %v1315_v26 = vmul.f32 %v4698_v42, %v1293_v38  ;;  %v1305_v46 = vadd.f32 %v1303_v8, %v1273_v6  ;;  %v1310_v48 = vadd.f32 %v1308_v44, %v1278_v40  ;;  %v1311_v50 = vadd.f32 %v1309_v53, %v1279_v15  ;;  %v4710_v44 = vld [vmem:[#allocation115_spill] sm:$0xff]  ;;  %v4711_v53 = vld [vmem:[#allocation117_spill] sm:$0xff]  ;;  %v1456_v42 = vpop.permute.xlu0 %1455 }
 0x1e9   : > { %v1316_v20 = vadd.f32 %v1314_v62, %v1284_v9  ;;  %v4702_v38 = vstv %s4697_s15  ;;  %v4704_v32 = vstv %s4699_s11  ;;  %v4706_v61 = vstv %s4700_s20  ;;  %s4716_s15 = sld [smem:[#allocation15_spill]] }
 0x1ea   : > { %v1317_v3 = vadd.f32 %v1315_v26, %v1285_v30  ;;  %v1328_v13 = vmul.f32 %v4702_v38, %v1324_v28  ;;  %v4703_v4 = vmov %v4702_v38  ;;  %v1334_v31 = vmul.f32 %v4704_v32, %v1324_v28  ;;  %v4712_v26 = vld [vmem:[#allocation119_spill] sm:$0xff]  ;;  %v4715_v38 = vld [vmem:[#allocation118_spill] sm:$0xff]  ;;  %s3938_s11 = sld [smem:[#allocation4 + $0x2]] }
 0x1eb   : > { %v1329_v58 = vmul.f32 %v4703_v4, %v1325_v23  ;;  %v4705_v54 = vmov %v4704_v32  ;;  %v1340_v45 = vmul.f32 %v4706_v61, %v1324_v28  ;;  %v4707_v47 = vmov %v4706_v61  ;;  %s3947_s20 = sld [smem:[#allocation2 + $0x8f]] }
 0x1ec   : > { %v1335_v6 = vmul.f32 %v4705_v54, %v1325_v23  ;;  %v1341_v40 = vmul.f32 %v4707_v47, %v1325_v23  ;;  %v4708_v15 = vstv %s4701_s18  ;;  %v1330_v25 = vadd.f32 %v1328_v13, %v1298_v39 }
 0x1ed   : > { %v1346_v9 = vmul.f32 %v4708_v15, %v1324_v28  ;;  %v4709_v30 = vmov %v4708_v15  ;;  %v1331_v2 = vadd.f32 %v1329_v58, %v1299_v43  ;;  %v1336_v55 = vadd.f32 %v1334_v31, %v1304_v63 }
 0x1ee   : > { %v1347_v12 = vmul.f32 %v4709_v30, %v1325_v23  ;;  %v1337_v21 = vadd.f32 %v1335_v6, %v1305_v46  ;;  %v1342_v49 = vadd.f32 %v1340_v45, %v1310_v48  ;;  %v1343_v57 = vadd.f32 %v1341_v40, %v1311_v50  ;;  %v1458_v23 = vpop.permute.xlu1 %1457  ;;  %v4713_v48 = vld [vmem:[#allocation114_spill] sm:$0xff] }
 0x1ef   : > { %v1348_v8 = vadd.f32 %v1346_v9, %v1316_v20  ;;  %v1372_v41 = vadd.f32 %v4710_v44, %v1331_v2  ;;  %v1400_v62 = vstv %s3703_s25  ;;  %v1406_v28 = vstv %s3707_s14  ;;  %v4714_v20 = vld [vmem:[#allocation116_spill] sm:$0xff]  ;;  %s3891_s25 = sld [smem:[#allocation4 + $0x1]]  ;;  %s4717_s18 = sshll.u32 %s4716_s15, 6 }
 0x1f0   : > { %v1349_v7 = vadd.f32 %v1347_v12, %v1317_v3  ;;  %v1378_v19 = vadd.f32 %v4711_v53, %v1337_v21  ;;  %v1384_v39 = vadd.f32 %v4712_v26, %v1343_v57  ;;  %v1412_v63 = vstv %s3715_s30  ;;  %s3893_s14 = sld [smem:[#allocation2 + $0x22]] }
 0x1f1   : > { %v1418_v46 = vstv %s3725_s9  ;;  %v1371_v50 = vadd.f32 %v4713_v48, %v1330_v25  ;;  %v1377_v3 = vadd.f32 %v4714_v20, %v1336_v55  ;;  %v1383_v13 = vadd.f32 %v4715_v38, %v1342_v49  ;;  %s3913_s30 = sld [smem:[#allocation4]] }
 0x1f2   : > { %v1390_v43 = vadd.f32 %v1388_v37, %v1349_v7  ;;  %v1389_v4 = vadd.f32 %v1387_v10, %v1348_v8  ;;  %v1395_v37 = vsel %vm432_vm9, %v3705_v5, %v3701_v0  ;;  %v1396_v58 = vsel %vm432_vm9, %v3701_v0, %v3705_v5  ;;  %v1490_v12 = vpop.permute.xlu1 %1489  ;;  %s3915_s9 = sld [smem:[#allocation2 + $0x6a]] }
 0x1f3   : > { %v1432_v32 = vstv %s3735_s8  ;;  %v1438_v31 = vstv %s3745_s16  ;;  %v1397_v54 = vmul.f32 %v1396_v58, %v2792_v56  ;;  %v1398_v10 = vmul.f32 %v1395_v37, %v4526_v18  ;;  %v1488_v56 = vpop.permute.xlu0 %1487  ;;  %s3921_s8 = sld [smem:[#allocation2 + $0x6b]] }
 0x1f4   : > { %v1444_v6 = vstv %s3747_s28  ;;  %v1450_v61 = vstv %s3749_s26  ;;  %v1427_v45 = vsel %vm473_vm8, %v1424_v14, %v1426_v1  ;;  %v1428_v47 = vsel %vm473_vm8, %v1426_v1, %v1424_v14  ;;  %s3942_s16 = sld [smem:[#allocation2 + $0x8e]] }
 0x1f5   : > { %v1464_v40 = vstv %s3759_s22  ;;  %v1470_v15 = vstv %s3769_s5  ;;  %v1401_v9 = vmul.f32 %v1400_v62, %v1397_v54  ;;  %v1402_v0 = vmul.f32 %v1400_v62, %v1398_v10  ;;  %s4718_s22 = sld [smem:[#allocation126_spill]] }
 0x1f6   : > { %v1407_v5 = vmul.f32 %v1406_v28, %v1397_v54  ;;  %v1408_v30 = vmul.f32 %v1406_v28, %v1398_v10  ;;  %v1413_v25 = vmul.f32 %v1412_v63, %v1397_v54  ;;  %v1414_v18 = vmul.f32 %v1412_v63, %v1398_v10  ;;  %v1522_v20 = vpop.permute.xlu1 %1521 }
 0x1f7   : > { %v1419_v2 = vmul.f32 %v1418_v46, %v1397_v54  ;;  %v1420_v55 = vmul.f32 %v1418_v46, %v1398_v10  ;;  %v1403_v21 = vadd.f32 %v1401_v9, %v1371_v50  ;;  %v1404_v1 = vadd.f32 %v1402_v0, %v1372_v41 }
 0x1f8   : > { %v1409_v14 = vadd.f32 %v1407_v5, %v1377_v3  ;;  %v1410_v49 = vadd.f32 %v1408_v30, %v1378_v19  ;;  %v1415_v57 = vadd.f32 %v1413_v25, %v1383_v13  ;;  %v1416_v8 = vadd.f32 %v1414_v18, %v1384_v39 }
 0x1f9   : > { %v1421_v7 = vadd.f32 %v1419_v2, %v1389_v4  ;;  %v1422_v44 = vadd.f32 %v1420_v55, %v1390_v43  ;;  %v1429_v53 = vmul.f32 %v1428_v47, %v4527_v34  ;;  %v1430_v62 = vmul.f32 %v1427_v45, %v4528_v35  ;;  %v1520_v34 = vpop.permute.xlu0 %1519 }
 0x1fa   : > { %v1476_v28 = vstv %s3775_s7  ;;  %v1482_v26 = vstv %s3780_s24  ;;  %v1459_v41 = vsel %vm514_vm10, %v1456_v42, %v1458_v23  ;;  %v1460_v19 = vsel %vm514_vm10, %v1458_v23, %v1456_v42  ;;  %v1554_v2 = vpop.permute.xlu1 %1553  ;;  %s3961_s7 = sld [smem:[#allocation4 + $0x3]]  ;;  %s2003_s24 = sshll.u32 %s4716_s15, 2 }
 0x1fb   : > { %v1496_v63 = vstv %s3785_s2  ;;  %v1502_v46 = vstv %s3797_s3  ;;  %v1433_v48 = vmul.f32 %v1432_v32, %v1429_v53  ;;  %v1434_v39 = vmul.f32 %v1432_v32, %v1430_v62  ;;  %s3955_s5 = scalar_lea.vmem %s4718_s22, %s4717_s18 }
 0x1fc   : > { %v1439_v50 = vmul.f32 %v1438_v31, %v1429_v53  ;;  %v1440_v43 = vmul.f32 %v1438_v31, %v1430_v62  ;;  %v1445_v3 = vmul.f32 %v1444_v6, %v1429_v53  ;;  %v1446_v35 = vmul.f32 %v1444_v6, %v1430_v62 }
 0x1fd   : > { %v1451_v38 = vmul.f32 %v1450_v61, %v1429_v53  ;;  %v1452_v13 = vmul.f32 %v1450_v61, %v1430_v62  ;;  %v1435_v4 = vadd.f32 %v1433_v48, %v1403_v21  ;;  %v1436_v23 = vadd.f32 %v1434_v39, %v1404_v1 }
 0x1fe   : > { %v1441_v42 = vadd.f32 %v1439_v50, %v1409_v14  ;;  %v1442_v37 = vadd.f32 %v1440_v43, %v1410_v49  ;;  %v1447_v58 = vadd.f32 %v1445_v3, %v1415_v57  ;;  %v1448_v32 = vadd.f32 %v1446_v35, %v1416_v8  ;;  %v1586_v35 = vpop.permute.xlu1 %1585 }
 0x1ff   : > { %v1453_v31 = vadd.f32 %v1451_v38, %v1421_v7  ;;  %v1454_v54 = vadd.f32 %v1452_v13, %v1422_v44  ;;  %v1461_v10 = vmul.f32 %v1460_v19, %v2805_v59  ;;  %v1462_v6 = vmul.f32 %v1459_v41, %v2808_v60  ;;  %v1552_v60 = vpop.permute.xlu0 %1551 }
 0x200   : > { %v1508_v61 = vstv %s3809_s6  ;;  %v1514_v45 = vstv %s3811_s29  ;;  %v1491_v47 = vsel %vm555_vm11, %v1488_v56, %v1490_v12  ;;  %v1492_v9 = vsel %vm555_vm11, %v1490_v12, %v1488_v56  ;;  %s4719_s6 = sld [smem:[#allocation127_spill]] }
 0x201   : > { %v1528_v0 = vstv %s3813_s27  ;;  %v1534_v5 = vstv %s3815_s17  ;;  %v1465_v30 = vmul.f32 %v1464_v40, %v1461_v10  ;;  %v1466_v25 = vmul.f32 %v1464_v40, %v1462_v6  ;;  %s1718_s27 = smul.f32 2048.0, %s3891_s25 }
 0x202   : > { %v1471_v18 = vmul.f32 %v1470_v15, %v1461_v10  ;;  %v1472_v59 = vmul.f32 %v1470_v15, %v1462_v6  ;;  %v1477_v55 = vmul.f32 %v1476_v28, %v1461_v10  ;;  %v1478_v21 = vmul.f32 %v1476_v28, %v1462_v6  ;;  %s1678_s17 = smul.f32 2.0, %s3913_s30 }
 0x203   : > { %v1483_v1 = vmul.f32 %v1482_v26, %v1461_v10  ;;  %v1484_v14 = vmul.f32 %v1482_v26, %v1462_v6  ;;  %v1467_v12 = vadd.f32 %v1465_v30, %v1435_v4  ;;  %v1468_v56 = vadd.f32 %v1466_v25, %v1436_v23  ;;  %v1584_v38 = vpop.permute.xlu0 %1583  ;;  %v1618_v25 = vpop.permute.xlu1 %1617 }
 0x204   : > { %v1473_v49 = vadd.f32 %v1471_v18, %v1441_v42  ;;  %v1474_v40 = vadd.f32 %v1472_v59, %v1442_v37  ;;  %v1479_v57 = vadd.f32 %v1477_v55, %v1447_v58  ;;  %v1480_v15 = vadd.f32 %v1478_v21, %v1448_v32 }
 0x205   : > { %v1485_v8 = vadd.f32 %v1483_v1, %v1453_v31  ;;  %v1486_v7 = vadd.f32 %v1484_v14, %v1454_v54  ;;  %v1493_v44 = vmul.f32 %v1492_v9, %v2855_v16  ;;  %v1494_v53 = vmul.f32 %v1491_v47, %v2858_v17 }
 0x206   : > { %v1540_v62 = vstv %s3827_s0  ;;  %v1546_v28 = vstv %s3829_s1  ;;  %v1523_v26 = vsel %vm596_vm12, %v1520_v34, %v1522_v20  ;;  %v1524_v41 = vsel %vm596_vm12, %v1522_v20, %v1520_v34  ;;  %s3992_s29 = scalar_lea.vmem %s4719_s6, %s2003_s24  ;;  %s1721_s0 = smul.f32 2.0, %s3891_s25 }
 0x207   : > { %v1560_v19 = vstv %s3831_s13  ;;  %v1566_v48 = vstv %s3833_s23  ;;  %v1497_v39 = vmul.f32 %v1496_v63, %v1493_v44  ;;  %v1498_v50 = vmul.f32 %v1496_v63, %v1494_v53  ;;  %v1616_v18 = vpop.permute.xlu0 %1615  ;;  %s1682_s1 = smul.f32 %s3913_s30, %s3913_s30 }
 0x208   : > { %v1503_v43 = vmul.f32 %v1502_v46, %v1493_v44  ;;  %v1504_v3 = vmul.f32 %v1502_v46, %v1494_v53  ;;  %v1509_v16 = vmul.f32 %v1508_v61, %v1493_v44  ;;  %v1510_v17 = vmul.f32 %v1508_v61, %v1494_v53  ;;  %s1725_s13 = smul.f32 %s3891_s25, %s3891_s25 }
 0x209   : > { %v1515_v13 = vmul.f32 %v1514_v45, %v1493_v44  ;;  %v1516_v4 = vmul.f32 %v1514_v45, %v1494_v53  ;;  %v1499_v23 = vadd.f32 %v1497_v39, %v1467_v12  ;;  %v1500_v42 = vadd.f32 %v1498_v50, %v1468_v56  ;;  %s1675_s23 = smul.f32 2048.0, %s3913_s30 }
 0x20a   : > { %v1505_v37 = vadd.f32 %v1503_v43, %v1473_v49  ;;  %v1506_v58 = vadd.f32 %v1504_v3, %v1474_v40  ;;  %v3867_v32 = vadd.f32 %v1509_v16, %v1479_v57  ;;  %v3869_v20 = vadd.f32 %v1510_v17, %v1480_v15 }
 0x20b   : > { %v3871_v34 = vadd.f32 %v1515_v13, %v1485_v8  ;;  %v3873_v63 = vadd.f32 %v1516_v4, %v1486_v7  ;;  %v1525_v46 = vmul.f32 %v1523_v26, %v2873_v24  ;;  %v1526_v31 = vmul.f32 %v1524_v41, %v2880_v27 }
 0x20c   : > { %v1572_v54 = vstv %s3853_s4  ;;  %v1578_v10 = vstv %s3855_s12  ;;  %v1555_v6 = vsel %vm637_vm13, %v1552_v60, %v1554_v2  ;;  %v1556_v61 = vsel %vm637_vm13, %v1554_v2, %v1552_v60  ;;  %s1763_s4 = smul.f32 2.0, %s3938_s11 }
 0x20d   : > { %v1587_v45 = vsel %vm678_vm14, %v1584_v38, %v1586_v35  ;;  %v1588_v47 = vsel %vm678_vm14, %v1586_v35, %v1584_v38  ;;  %v1529_v24 = vmul.f32 %v1528_v0, %v1525_v46  ;;  %v1530_v27 = vmul.f32 %v1528_v0, %v1526_v31  ;;  %s4005_s12 = smul.f32 2048.0, %s1682_s1 }
 0x20e   : > { %v1535_v9 = vmul.f32 %v1534_v5, %v1525_v46  ;;  %v1536_v30 = vmul.f32 %v1534_v5, %v1526_v31  ;;  %v1541_v59 = vmul.f32 %v1540_v62, %v1525_v46  ;;  %v1542_v55 = vmul.f32 %v1540_v62, %v1526_v31 }
 0x20f   : > { %v3895_v21 = vmul.f32 %v1546_v28, %v1525_v46  ;;  %v3897_v2 = vmul.f32 %v1546_v28, %v1526_v31  ;;  %v1557_v60 = vmul.f32 %v1555_v6, %v2883_v11  ;;  %v1558_v1 = vmul.f32 %v1556_v61, %v2894_v29 }
 0x210   : > { %v3904_v0 = vmul.f32 %v1587_v45, %v2902_v33  ;;  %v3907_v5 = vmul.f32 %v1588_v47, %v2905_v36  ;;  %v1619_v14 = vsel %vm719_vm15, %v1616_v18, %v1618_v25  ;;  %v1620_v12 = vsel %vm719_vm15, %v1618_v25, %v1616_v18 }
 0x211   : > { %v1537_v56 = vadd.f32 %v1535_v9, %v1505_v37  ;;  %v1538_v49 = vadd.f32 %v1536_v30, %v1506_v58  ;;  %v1561_v11 = vmul.f32 %v1560_v19, %v1557_v60  ;;  %v1562_v29 = vmul.f32 %v1560_v19, %v1558_v1 }
 0x212   : > { %v1567_v33 = vmul.f32 %v1566_v48, %v1557_v60  ;;  %v1568_v40 = vmul.f32 %v1566_v48, %v1558_v1  ;;  %v1573_v36 = vmul.f32 %v1572_v54, %v1557_v60  ;;  %v1574_v57 = vmul.f32 %v1572_v54, %v1558_v1 }
 0x213   : > { %v3917_v15 = vmul.f32 %v1578_v10, %v1557_v60  ;;  %v3919_v8 = vmul.f32 %v1578_v10, %v1558_v1  ;;  %v3924_v7 = vmul.f32 %v1619_v14, %v4601_v51  ;;  %v3927_v44 = vmul.f32 %v1620_v12, %v4602_v22 }
 0x214   : > { %v1569_v53 = vadd.f32 %v1567_v33, %v1537_v56  ;;  %v1570_v62 = vadd.f32 %v1568_v40, %v1538_v49  ;;  %v1598_v28 = vstv %s3875_s10  ;;  %v1630_v26 = vstv %s3881_s19  ;;  %s4007_s10 = smul.f32 2048.0, %s1725_s13 }
 0x215   : > { %v1692_v41 = vstv %s3891_s25  ;;  %v1531_v19 = vadd.f32 %v1529_v24, %v1499_v23  ;;  %v1599_v48 = vmul.f32 %v1598_v28, %v3904_v0  ;;  %v1600_v39 = vmul.f32 %v1598_v28, %v3907_v5  ;;  %s1767_s19 = smul.f32 %s3938_s11, %s3938_s11 }
 0x216   : > { %v1631_v50 = vmul.f32 %v1630_v26, %v3924_v7  ;;  %v1632_v43 = vmul.f32 %v1630_v26, %v3927_v44  ;;  %v1532_v51 = vadd.f32 %v1530_v27, %v1500_v42  ;;  %v1592_v35 = vstv %s3893_s14  ;;  %s1760_s14 = smul.f32 2048.0, %s3938_s11 }
 0x217   : > { %v1563_v3 = vadd.f32 %v1561_v11, %v1531_v19  ;;  %v1624_v22 = vstv %s3899_s21  ;;  %v1601_v38 = vadd.f32 %v1599_v48, %v1569_v53  ;;  %v1602_v16 = vadd.f32 %v1600_v39, %v1570_v62  ;;  %s1805_s21 = smul.f32 2.0, %s3961_s7 }
 0x218   : > { %v1593_v17 = vmul.f32 %v1592_v35, %v3904_v0  ;;  %v1594_v13 = vmul.f32 %v1592_v35, %v3907_v5  ;;  %v1564_v4 = vadd.f32 %v1562_v29, %v1532_v51  ;;  %v1625_v23 = vmul.f32 %v1624_v22, %v3924_v7  ;;  %s1768_s25 = smul.f32 2048.0, %s1767_s19 }
 0x219   : > { %v1626_v42 = vmul.f32 %v1624_v22, %v3927_v44  ;;  %v1650_v37 = vstv %s3913_s30  ;;  %v1633_v58 = vadd.f32 %v1631_v50, %v1601_v38  ;;  %v1634_v46 = vadd.f32 %v1632_v43, %v1602_v16  ;;  %s1809_s30 = smul.f32 %s3961_s7, %s3961_s7 }
 0x21a   : > { %v1595_v31 = vadd.f32 %v1593_v17, %v1563_v3  ;;  %v1543_v54 = vadd.f32 %v1541_v59, %v3867_v32  ;;  %v1596_v10 = vadd.f32 %v1594_v13, %v1564_v4  ;;  %v1544_v6 = vadd.f32 %v1542_v55, %v3869_v20 }
 0x21b   : > { %v1604_v61 = vstv %s3915_s9  ;;  %v1636_v45 = vstv %s3921_s8  ;;  %v1694_v47 = vadd.f32 %v1692_v41, %v1634_v46  ;;  %v1698_v24 = vadd.f32 %v1634_v46, %v1633_v58  ;;  %s1802_s9 = smul.f32 2048.0, %s3961_s7 }
 0x21c   : > { %v1693_v27 = vadd.f32 %v1692_v41, %v1633_v58  ;;  %v1627_v9 = vadd.f32 %v1625_v23, %v1595_v31  ;;  %v1628_v30 = vadd.f32 %v1626_v42, %v1596_v10  ;;  %v1575_v32 = vadd.f32 %v1573_v36, %v1543_v54  ;;  %s1810_s8 = smul.f32 2048.0, %s1809_s30 }
 0x21d   : > { %v1576_v25 = vadd.f32 %v1574_v57, %v1544_v6  ;;  %v1605_v18 = vmul.f32 %v1604_v61, %v3904_v0  ;;  %2161 = vst [vmem:[%s3955_s5 + $0x18] sm:$0xff] %v1694_v47  ;;  %1699 = vadd.xlane.f32.xlu1 %v1698_v24  ;;  %v1606_v59 = vmul.f32 %v1604_v61, %v3907_v5  ;;  %v1734_v56 = vstv %s3938_s11 }
 0x21e   : > { %2160 = vst [vmem:[%s3955_s5 + $0x10] sm:$0xff] %v1693_v27  ;;  %v1651_v20 = vadd.f32 %v1650_v37, %v1627_v9  ;;  %v1637_v55 = vmul.f32 %v1636_v45, %v3924_v7  ;;  %v1638_v60 = vmul.f32 %v1636_v45, %v3927_v44  ;;  %v1652_v1 = vadd.f32 %v1650_v37, %v1628_v30 }
 0x21f   : > { %v1655_v14 = vadd.f32 %v1628_v30, %v1627_v9  ;;  %v1607_v12 = vadd.f32 %v1605_v18, %v1575_v32  ;;  %v1608_v49 = vadd.f32 %v1606_v59, %v1576_v25  ;;  %v1664_v11 = vmul.f32 %v1627_v9, %v1627_v9 }
 0x220   : > { %1653 = vst [vmem:[%s3955_s5] sm:$0xff] %v1651_v20  ;;  %v1665_v29 = vmul.f32 %v1628_v30, %v1628_v30  ;;  %v1549_v33 = vadd.f32 %v3895_v21, %v3871_v34  ;;  %1654 = vst [vmem:[%s3955_s5 + $0x8] sm:$0xff] %v1652_v1  ;;  %v1550_v36 = vadd.f32 %v3897_v2, %v3873_v63  ;;  %v1610_v57 = vstv %s3942_s16 }
 0x221   : > { %1656 = vadd.xlane.f32.xlu0 %v1655_v14  ;;  %v1639_v40 = vadd.f32 %v1637_v55, %v1607_v12  ;;  %v1642_v53 = vstv %s3947_s20  ;;  %v1640_v62 = vadd.f32 %v1638_v60, %v1608_v49  ;;  %v1611_v41 = vmul.f32 %v1610_v57, %v3904_v0 }
 0x222   : > { %v1666_v28 = vadd.f32 %v1665_v29, %v1664_v11  ;;  %v1581_v26 = vadd.f32 %v3917_v15, %v1549_v33  ;;  %v1582_v34 = vadd.f32 %v3919_v8, %v1550_v36  ;;  %v1612_v21 = vmul.f32 %v1610_v57, %v3907_v5 }
 0x223   : > { %v1735_v19 = vadd.f32 %v1734_v56, %v1639_v40  ;;  %v1643_v48 = vmul.f32 %v1642_v53, %v3924_v7  ;;  %v1736_v39 = vadd.f32 %v1734_v56, %v1640_v62  ;;  %v1740_v50 = vadd.f32 %v1640_v62, %v1639_v40 }
 0x224   : > { %v1613_v63 = vadd.f32 %v1611_v41, %v1581_v26  ;;  %v1644_v2 = vmul.f32 %v1642_v53, %v3927_v44  ;;  %v1614_v43 = vadd.f32 %v1612_v21, %v1582_v34  ;;  %v1776_v51 = vstv %s3961_s7 }
 0x225   : > { %2163 = vst [vmem:[%s3955_s5 + $0x20] sm:$0xff] %v1735_v19  ;;  %1667 = vadd.xlane.f32.xlu0 %v1666_v28  ;;  %v1707_v15 = vmul.f32 %v1633_v58, %v1633_v58  ;;  %v1708_v3 = vmul.f32 %v1634_v46, %v1634_v46  ;;  %2164 = vst [vmem:[%s3955_s5 + $0x28] sm:$0xff] %v1736_v39  ;;  %1741 = vadd.xlane.f32.xlu1 %v1740_v50  ;;  %v2354_v23 = vmov 0.0   ;;  %v1679_v33 = vstv %s1678_s17 }
 0x226   : > { %v1645_v0 = vadd.f32 %v1643_v48, %v1613_v63  ;;  %v1749_v8 = vmul.f32 %v1639_v40, %v1639_v40  ;;  %v1750_v5 = vmul.f32 %v1640_v62, %v1640_v62  ;;  %v1646_v7 = vadd.f32 %v1644_v2, %v1614_v43  ;;  %385 = vst.msk [vmem:[%s3992_s29] sm:$0xf] %vm384_vm0, %v2354_v23 }
 0x227   : > { %v1709_v35 = vadd.f32 %v1708_v3, %v1707_v15  ;;  %v1722_v39 = vstv %s1721_s0  ;;  %v1719_v2 = vstv %s1718_s27  ;;  %v1676_v3 = vstv %s1675_s23 }
 0x228   : > { %v1777_v22 = vadd.f32 %v1776_v51, %v1645_v0  ;;  %v1751_v38 = vadd.f32 %v1750_v5, %v1749_v8  ;;  %v1791_v16 = vmul.f32 %v1645_v0, %v1645_v0  ;;  %v1778_v44 = vadd.f32 %v1776_v51, %v1646_v7 }
 0x229   : > { %v1782_v17 = vadd.f32 %v1646_v7, %v1645_v0  ;;  %1710 = vadd.xlane.f32.xlu0 %v1709_v35  ;;  %v1792_v13 = vmul.f32 %v1646_v7, %v1646_v7  ;;  %v1684_v0 = vstv %s4005_s12 }
 0x22a   : > { %2166 = vst [vmem:[%s3955_s5 + $0x30] sm:$0xff] %v1777_v22  ;;  %2167 = vst [vmem:[%s3955_s5 + $0x38] sm:$0xff] %v1778_v44  ;;  %v1727_v44 = vstv %s4007_s10 }
 0x22b   : > { %1783 = vadd.xlane.f32.xlu1 %v1782_v17  ;;  %v1793_v4 = vadd.f32 %v1792_v13, %v1791_v16  ;;  %v1764_v16 = vstv %s1763_s4 }
 0x22d   : > { %1752 = vadd.xlane.f32.xlu0 %v1751_v38 }
 0x231   : > { %1794 = vadd.xlane.f32.xlu0 %v1793_v4  ;;  %v4720_v4 = vld [vmem:[#allocation79_spill] sm:$0xff] }
 0x232   : > { %vm1729_vm2 = vcmp.eq.s32.totalorder %v4720_v4, 1  ;;  %vm1686_vm3 = vcmp.eq.s32.totalorder %v4720_v4, 0  ;;  %vm1771_vm4 = vcmp.eq.s32.totalorder %v4720_v4, 2  ;;  %vm1813_vm5 = vcmp.eq.s32.totalorder %v4720_v4, 3 }
 0x2a6   : > { %v1700_v42 = vpop.xlane.xlu1 %1699 }
 0x2a7   : > { %v1701_v37 = vrot.slane %v1700_v42, 4 }
 0x2a9   : > { %v1702_v58 = vadd.f32 %v1701_v37, %v1700_v42 }
 0x2aa   : > { %v1657_v46 = vpop.xlane.xlu0 %1656 }
 0x2ab   : > { %v1658_v31 = vrot.slane %v1657_v46, 4  ;;  %v1703_v54 = vrot.slane %v1702_v58, 2 }
 0x2ad   : > { %v1659_v10 = vadd.f32 %v1658_v31, %v1657_v46  ;;  %v1704_v27 = vadd.f32 %v1703_v54, %v1702_v58  ;;  %v1806_v58 = vstv %s1805_s21 }
 0x2ae   : > { %v1668_v6 = vpop.xlane.xlu0 %1667  ;;  %v1742_v45 = vpop.xlane.xlu1 %1741 }
 0x2af   : > { %v1660_v61 = vrot.slane %v1659_v10, 2  ;;  %v1669_v47 = vrot.slane %v1668_v6, 4  ;;  %v1743_v24 = vrot.slane %v1742_v45, 4  ;;  %v1705_v1 = vrot.slane %v1704_v27, 1 }
 0x2b1   : > { %v1661_v9 = vadd.f32 %v1660_v61, %v1659_v10  ;;  %v1670_v30 = vadd.f32 %v1669_v47, %v1668_v6  ;;  %v1744_v32 = vadd.f32 %v1743_v24, %v1742_v45  ;;  %v1706_v62 = vadd.f32 %v1705_v1, %v1704_v27 }
 0x2b2   : > { %v1711_v25 = vpop.xlane.xlu0 %1710  ;;  %v1761_v45 = vstv %s1760_s14  ;;  %v1769_v47 = vstv %s1768_s25 }
 0x2b3   : > { %v1662_v18 = vrot.slane %v1661_v9, 1  ;;  %v1671_v20 = vrot.slane %v1670_v30, 2  ;;  %v1712_v59 = vrot.slane %v1711_v25, 4  ;;  %v1745_v55 = vrot.slane %v1744_v32, 2 }
 0x2b4   : > { %v1784_v60 = vpop.xlane.xlu1 %1783  ;;  %v1723_v7 = vmul.f32 %v1722_v39, %v1706_v62  ;;  %v1720_v37 = vadd.f32 %v1719_v2, %v1706_v62 }
 0x2b5   : > { %v1672_v14 = vadd.f32 %v1671_v20, %v1670_v30  ;;  %v1785_v12 = vrot.slane %v1784_v60, 4  ;;  %v1713_v56 = vadd.f32 %v1712_v59, %v1711_v25  ;;  %v1663_v49 = vadd.f32 %v1662_v18, %v1661_v9 }
 0x2b6   : > { %v1746_v11 = vadd.f32 %v1745_v55, %v1744_v32  ;;  %v1753_v29 = vpop.xlane.xlu0 %1752  ;;  %v1803_v32 = vstv %s1802_s9 }
 0x2b7   : > { %v1673_v40 = vrot.slane %v1672_v14, 1  ;;  %v1786_v36 = vadd.f32 %v1785_v12, %v1784_v60  ;;  %v1714_v57 = vrot.slane %v1713_v56, 2  ;;  %v1754_v53 = vrot.slane %v1753_v29, 4 }
 0x2b8   : > { %v1680_v41 = vmul.f32 %v1679_v33, %v1663_v49  ;;  %v1747_v19 = vrot.slane %v1746_v11, 1  ;;  %v1677_v54 = vadd.f32 %v1676_v3, %v1663_v49  ;;  %v1811_v60 = vstv %s1810_s8 }
 0x2b9   : > { %v1674_v28 = vadd.f32 %v1673_v40, %v1672_v14  ;;  %v1787_v26 = vrot.slane %v1786_v36, 2  ;;  %v1715_v34 = vadd.f32 %v1714_v57, %v1713_v56  ;;  %v1755_v21 = vadd.f32 %v1754_v53, %v1753_v29 }
 0x2ba   : > { %v1795_v48 = vpop.xlane.xlu0 %1794  ;;  %v1748_v35 = vadd.f32 %v1747_v19, %v1746_v11 }
 0x2bb   : > { %v1788_v50 = vadd.f32 %v1787_v26, %v1786_v36  ;;  %v1796_v63 = vrot.slane %v1795_v48, 4  ;;  %v1681_v43 = vadd.f32 %v1680_v41, %v1674_v28  ;;  %v1716_v51 = vrot.slane %v1715_v34, 1  ;;  %v1817_v36 = vld [vmem:[%s3992_s29] sm:$0xf] }
 0x2bc   : > { %v1756_v15 = vrot.slane %v1755_v21, 2  ;;  %v1765_v10 = vmul.f32 %v1764_v16, %v1748_v35  ;;  %v1762_v59 = vadd.f32 %v1761_v45, %v1748_v35 }
 0x2bd   : > { %v1789_v8 = vrot.slane %v1788_v50, 1  ;;  %v1797_v5 = vadd.f32 %v1796_v63, %v1795_v48  ;;  %v1717_v22 = vadd.f32 %v1716_v51, %v1715_v34  ;;  %v1685_v13 = vadd.f32 %v1684_v0, %v1681_v43 }
 0x2be   : > { %v1757_v38 = vadd.f32 %v1756_v15, %v1755_v21 }
 0x2bf   : > { %v1798_v17 = vrot.slane %v1797_v5, 2  ;;  %v1724_v23 = vadd.f32 %v1723_v7, %v1717_v22  ;;  %v1790_v46 = vadd.f32 %v1789_v8, %v1788_v50  ;;  %v1688_v27 = vsel %vm1687_vm1, %v1677_v54, %v1685_v13 }
 0x2c0   : > { %v1758_v42 = vrot.slane %v1757_v38, 1  ;;  %v1689_v1 = vsel %vm1686_vm3, %v1688_v27, 0.0 }
 0x2c1   : > { %v1799_v31 = vadd.f32 %v1798_v17, %v1797_v5  ;;  %v1728_v6 = vadd.f32 %v1727_v44, %v1724_v23  ;;  %v1807_v25 = vmul.f32 %v1806_v58, %v1790_v46  ;;  %v1804_v49 = vadd.f32 %v1803_v32, %v1790_v46 }
 0x2c2   : > { %v1759_v61 = vadd.f32 %v1758_v42, %v1757_v38 }
 0x2c3   : > { %v1800_v24 = vrot.slane %v1799_v31, 1  ;;  %v1730_v9 = vsel %vm1687_vm1, %v1720_v37, %v1728_v6 }
 0x2c4   : > { %v1766_v30 = vadd.f32 %v1765_v10, %v1759_v61  ;;  %v1731_v18 = vsel %vm1729_vm2, %v1730_v9, 0.0 }
 0x2c5   : > { %v1801_v20 = vadd.f32 %v1800_v24, %v1799_v31  ;;  %v1732_v12 = vadd.f32 %v1731_v18, %v1689_v1 }
 0x2c6   : > { %v1770_v55 = vadd.f32 %v1769_v47, %v1766_v30 }
 0x2c7   : > { %v1808_v14 = vadd.f32 %v1807_v25, %v1801_v20 }
 0x2c8   : > { %v1772_v56 = vsel %vm1687_vm1, %v1762_v59, %v1770_v55 }
 0x2c9   : > { %v1773_v11 = vsel %vm1771_vm4, %v1772_v56, 0.0  ;;  %v1812_v29 = vadd.f32 %v1811_v60, %v1808_v14 }
 0x2ca   : > { %v1774_v33 = vadd.f32 %v1773_v11, %v1732_v12 }
 0x2cb   : > { %v1814_v40 = vsel %vm1687_vm1, %v1804_v49, %v1812_v29 }
 0x2cc   : > { %v1815_v57 = vsel %vm1813_vm5, %v1814_v40, 0.0 }
 0x2cd   : > { %v1816_v53 = vadd.f32 %v1815_v57, %v1774_v33 }
 0x2cf   : > { %v1818_v62 = vadd.f32 %v1817_v36, %v1816_v53 }
 0x2d1   : > { %1820 = vst.msk [vmem:[%s3992_s29] sm:$0xf] %vm384_vm0, %v1818_v62 }
 0x2d2 PF: > { %s4721_s15 = sld [smem:[#allocation13_spill]] }
 0x2d3   : > { %s4722_s24 = sld [smem:[#allocation12_spill]] }
 0x2d4   : > { %s4723_s25 = sld [smem:[#allocation14_spill]] }
 0x2d8   : > { %s21_s26 = sadd.s32 1, %s4721_s15  }
 0x2d9   : > { %p18_p8 = scmp.ge.s32.totalorder %s21_s26, 4  }
 0x2db   :  { %20 = sbr.rel (!%p18_p8) target bundleno = 13 (0xd), region = 113 }
 0x2e0   :  { %1864 = vsyncpa [#allocation3], 1 }
 0x2e1   :  { %1866 = vsyncpa [#allocation3 + $0x1], 1 }
 0x2e2   :  { %1867 = vsyncpa [#allocation5], 1 }
 0x2e3   :  { %1868 = vsyncpa [#allocation8], 1 }

</bundles_post_ra>
